<compile_context>
chip_gen: v5e
topology: v5e:2x2
jax: 0.10.0
libtpu: 0.0.40
codegen_flags: <defaults>
</compile_context>

<pallas_src>
import functools

import jax
import jax.numpy as jnp
from jax import lax
from jax.experimental import pallas as pl
from jax.experimental.pallas import tpu as pltpu

BN_EPS = 1e-5
LANES = 128   # every channel dim is zero-padded to the 128-lane vreg width
SLAB = 24     # packed params: row 0/1 gamma/beta (2/3 fc1-BN, 4 fc2 bias in the
              # tail), rows 8..15 SE w1 (hidden x C), rows 16..23 SE w2^T


def _round_up(x, m):
    return (x + m - 1) // m * m


# ---------------------------------------------------------------------------
# Kernel 1: one conv stage, fully fused:
#   (im2col A) @ W -> BatchNorm(batch stats) -> ReLU -> SE -> 2x2 maxpool
# A rows are ordered (b, h%2, w%2, h//2, w//2): the four taps of the 2x2/2
# max-pool are the four contiguous quarter row-blocks of each image, and the
# pooled output lands in plain (b, oh, ow) row order.
# ---------------------------------------------------------------------------
def _conv_stage_kernel(a_ref, w_ref, p_ref, o_ref, zbuf_ref, *, batch, hw):
    m = a_ref.shape[0]
    q = hw // 4

    # conv as one MXU matmul.  (Conv bias omitted: a per-channel constant added
    # before training-mode BatchNorm cancels exactly in (x - mean).)
    z = jnp.dot(a_ref[...], w_ref[...], preferred_element_type=jnp.float32)

    # Training-mode BatchNorm2d (biased batch stats) folded into a single FMA
    # pass: sum and sum-of-squares in one sweep, then z*scale + shift, + ReLU.
    mu = jnp.sum(z, axis=0, keepdims=True) * (1.0 / m)
    ex2 = jnp.sum(z * z, axis=0, keepdims=True) * (1.0 / m)
    scale = p_ref[0:1, :] * lax.rsqrt(ex2 - mu * mu + BN_EPS)
    shift = p_ref[1:2, :] - mu * scale
    z = jnp.maximum(z * scale + shift, 0.0)

    # SE squeeze: per-image global average pool via a tile-aligned reshape
    # (hw % 8 == 0), one reduction instead of per-image loops.
    zr = z.reshape(batch, hw, LANES)
    zbuf_ref[...] = zr
    y = jnp.sum(zr, axis=1) * (1.0 / hw)                               # (B, C)
    h = jnp.maximum(jnp.dot(y, p_ref[8:16, :].T,
                            preferred_element_type=jnp.float32), 0.0)  # (B, hid)
    s = jax.nn.sigmoid(jnp.dot(h, p_ref[16:24, :],
                               preferred_element_type=jnp.float32))    # (B, C)

    # Fused 2x2 max-pool = max over the four quarter blocks.  The SE rescale
    # commutes with max (s > 0), so it is applied to the 4x smaller pooled slab.
    pooled = jnp.maximum(
        jnp.maximum(zbuf_ref[:, 0 * q:1 * q, :], zbuf_ref[:, 1 * q:2 * q, :]),
        jnp.maximum(zbuf_ref[:, 2 * q:3 * q, :], zbuf_ref[:, 3 * q:4 * q, :]))
    o_ref[...] = (pooled * s[:, None, :]).astype(o_ref.dtype)


def conv_stage(a, w, slab, *, batch, hw):
    m, kp = a.shape
    q = hw // 4
    kernel = functools.partial(_conv_stage_kernel, batch=batch, hw=hw)
    return pl.pallas_call(
        kernel,
        out_shape=jax.ShapeDtypeStruct((batch, q, LANES), jnp.float32),
        grid=(1,),
        in_specs=[
            pl.BlockSpec((m, kp), lambda i: (0, 0)),
            pl.BlockSpec((kp, LANES), lambda i: (0, 0)),
            pl.BlockSpec((SLAB, LANES), lambda i: (0, 0)),
        ],
        out_specs=pl.BlockSpec((batch, q, LANES), lambda i: (0, 0, 0)),
        scratch_shapes=[pltpu.VMEM((batch, hw, LANES), jnp.float32)],
    )(a, w, slab)


# ---------------------------------------------------------------------------
# Kernel 2: fused tail
#   conv3 (1x1 spatial output -> matmul on the flattened row) + BN + ReLU + SE3
#   -> fc1 + BatchNorm1d + ReLU -> fc2 (+bias) -> log_softmax
# ---------------------------------------------------------------------------
def _tail_kernel(a_ref, w3_ref, w4_ref, w5_ref, p_ref, o_ref, *, n_classes):
    nb = a_ref.shape[0]
    inv_b = 1.0 / nb

    def bn_relu(z, g_row, b_row):
        mu = jnp.sum(z, axis=0, keepdims=True) * inv_b
        ex2 = jnp.sum(z * z, axis=0, keepdims=True) * inv_b
        scale = g_row * lax.rsqrt(ex2 - mu * mu + BN_EPS)
        shift = b_row - mu * scale
        return jnp.maximum(z * scale + shift, 0.0)

    # conv3 (6x6 kernel on the 6x6 input -> plain matmul) + BN + ReLU
    z = jnp.dot(a_ref[...], w3_ref[...], preferred_element_type=jnp.float32)
    z = bn_relu(z, p_ref[0:1, :], p_ref[1:2, :])
    # SE3 (spatial size is 1x1, so the global average pool is the identity)
    h = jnp.maximum(jnp.dot(z, p_ref[8:16, :].T,
                            preferred_element_type=jnp.float32), 0.0)
    z = z * jax.nn.sigmoid(jnp.dot(h, p_ref[16:24, :],
                                   preferred_element_type=jnp.float32))
    # fc1 + BatchNorm1d + ReLU  (fc1 bias cancels under training-mode BN)
    z = bn_relu(jnp.dot(z, w4_ref[...], preferred_element_type=jnp.float32),
                p_ref[2:3, :], p_ref[3:4, :])
    # fc2 + bias + log_softmax over the real classes (padded lanes masked out)
    z = jnp.dot(z, w5_ref[...], preferred_element_type=jnp.float32) + p_ref[4:5, :]
    mask = lax.broadcasted_iota(jnp.int32, z.shape, 1) < n_classes
    zm = jnp.where(mask, z, jnp.float32(-1e30))
    mx = jnp.max(zm, axis=-1, keepdims=True)
    e = jnp.where(mask, jnp.exp(zm - mx), 0.0)
    logp = zm - mx - jnp.log(jnp.sum(e, axis=-1, keepdims=True))
    o_ref[...] = jnp.where(mask, logp, 0.0).astype(o_ref.dtype)


def tail(a3, w3, w4, w5, slab, *, n_classes):
    b, k3p = a3.shape
    kernel = functools.partial(_tail_kernel, n_classes=n_classes)
    return pl.pallas_call(
        kernel,
        out_shape=jax.ShapeDtypeStruct((b, LANES), jnp.float32),
        grid=(1,),
        in_specs=[
            pl.BlockSpec((b, k3p), lambda i: (0, 0)),
            pl.BlockSpec((k3p, LANES), lambda i: (0, 0)),
            pl.BlockSpec((LANES, LANES), lambda i: (0, 0)),
            pl.BlockSpec((LANES, LANES), lambda i: (0, 0)),
            pl.BlockSpec((SLAB, LANES), lambda i: (0, 0)),
        ],
        out_specs=pl.BlockSpec((b, LANES), lambda i: (0, 0)),
    )(a3, w3, w4, w5, slab)


# ---------------------------------------------------------------------------
# Glue: im2col with pool-friendly row ordering (rows = (b, h%2, w%2, h//2, w//2),
# K zero-padded to a multiple of 128).
# ---------------------------------------------------------------------------
def im2col_pool_order(x, kh, kw, pad):
    if pad:
        x = jnp.pad(x, ((0, 0), (pad, pad), (pad, pad), (0, 0)))
    b, hh, ww, c = x.shape
    ho, wo = hh - kh + 1, ww - kw + 1
    cols = [x[:, i:i + ho, j:j + wo, :] for i in range(kh) for j in range(kw)]
    patches = jnp.stack(cols, axis=3).reshape(b, ho, wo, kh * kw * c)
    p6 = patches.reshape(b, ho // 2, 2, wo // 2, 2, kh * kw * c)
    p6 = jnp.transpose(p6, (0, 2, 4, 1, 3, 5))     # (b, h%2, w%2, h//2, w//2, K)
    a = p6.reshape(b * ho * wo, kh * kw * c)
    kp = _round_up(a.shape[1], 128)
    if kp > a.shape[1]:
        a = jnp.pad(a, ((0, 0), (0, kp - a.shape[1])))
    return a, ho, wo


# ---------------------------------------------------------------------------
# Parameter init (deterministic, synthetic), pre-packed for the kernels.
# ---------------------------------------------------------------------------
def _slab(gamma, beta, se_w1=None, se_w2=None, extra=()):
    """Pack BN affine params, SE weights and extras into one (SLAB, 128) DMA."""
    s = jnp.zeros((SLAB, LANES), jnp.float32)
    s = s.at[0, :gamma.shape[0]].set(gamma)
    s = s.at[1, :beta.shape[0]].set(beta)
    for row, v in extra:
        s = s.at[row, :v.shape[0]].set(v)
    if se_w1 is not None:
        s = s.at[8:8 + se_w1.shape[0], :se_w1.shape[1]].set(se_w1)
        w2t = se_w2.T
        s = s.at[16:16 + w2t.shape[0], :w2t.shape[1]].set(w2t)
    return s


def init_params(key):
    ks = iter(jax.random.split(key, 24))

    def nrm(shape, scale=0.1):
        return jax.random.normal(next(ks), shape, jnp.float32) * scale

    def conv_pack(w):  # (Cout, Cin, kh, kw) -> (Kp, 128), im2col K order (i, j, cin)
        cout, cin, kh, kw = w.shape
        wp = jnp.transpose(w, (2, 3, 1, 0)).reshape(kh * kw * cin, cout)
        return jnp.pad(wp, ((0, _round_up(wp.shape[0], 128) - wp.shape[0]),
                            (0, LANES - cout)))

    def fc_pack(w):    # torch Linear weight (out, in) -> weight.T padded to (128,128)
        wt = w.T
        return jnp.pad(wt, ((0, LANES - wt.shape[0]), (0, LANES - wt.shape[1])))

    # NOTE: conv1/conv2/conv3/fc1 biases are not generated: each feeds directly
    # into a training-mode BatchNorm, where a per-channel constant cancels
    # exactly in (x - mean), so it cannot affect the output.
    p = {}
    p["conv1_w"] = conv_pack(nrm((6, 3, 5, 5)))
    # SEBlock(channel=6, reduction=16): hidden width 6 // 16 == 0 (zero-size,
    # bias-free Linear pair in PyTorch) -> excite output is sigmoid(0) = 0.5
    # per channel; the all-zero SE slab rows reproduce that exactly.
    p["stage1_p"] = _slab(1.0 + nrm((6,)), nrm((6,)))

    p["conv2_w"] = conv_pack(nrm((16, 6, 5, 5)))
    p["stage2_p"] = _slab(1.0 + nrm((16,)), nrm((16,)),
                          se_w1=nrm((1, 16)), se_w2=nrm((16, 1)))

    p["conv3_w"] = conv_pack(nrm((120, 16, 6, 6)))
    p["fc1_w"] = fc_pack(nrm((84, 120)))
    p["fc2_w"] = fc_pack(nrm((10, 84)))
    p["tail_p"] = _slab(1.0 + nrm((120,)), nrm((120,)),
                        se_w1=nrm((7, 120)), se_w2=nrm((120, 7)),
                        extra=((2, 1.0 + nrm((84,))),     # fc1-BN gamma
                               (3, nrm((84,))),           # fc1-BN beta
                               (4, nrm((10,)))))          # fc2 bias
    return p


# ---------------------------------------------------------------------------
# Forward pass
# ---------------------------------------------------------------------------
def forward(params, x_nchw):
    # TODO(synk): BatchNorm running-mean/var buffer updates (training-mode side
    # effect) are not modelled; normalization uses exact batch statistics.
    x = jnp.transpose(x_nchw, (0, 2, 3, 1)).astype(jnp.float32)  # NCHW -> NHWC
    b = x.shape[0]

    # stage 1: conv1(5x5, pad 2) + BN + ReLU + SE1 + 2x2 maxpool (one kernel)
    a, ho, wo = im2col_pool_order(x, 5, 5, 2)
    out = conv_stage(a, params["conv1_w"], params["stage1_p"], batch=b, hw=ho * wo)
    out = out.reshape(b, ho // 2, wo // 2, LANES)[..., :6]        # (B, 16, 16, 6)

    # stage 2: conv2(5x5) + BN + ReLU + SE2 + 2x2 maxpool (one kernel)
    a, ho, wo = im2col_pool_order(out, 5, 5, 0)
    out = conv_stage(a, params["conv2_w"], params["stage2_p"], batch=b, hw=ho * wo)
    out = out.reshape(b, ho // 2, wo // 2, LANES)[..., :16]       # (B, 6, 6, 16)

    # fused tail: conv3 + BN + ReLU + SE3 + fc1 + BN1d + ReLU + fc2 + log_softmax
    a3 = out.reshape(b, 6 * 6 * 16)                               # (i, j, cin) order
    a3 = jnp.pad(a3, ((0, 0), (0, _round_up(a3.shape[1], 128) - a3.shape[1])))
    logp = tail(a3, params["conv3_w"], params["fc1_w"], params["fc2_w"],
                params["tail_p"], n_classes=10)
    return logp[:, :10]


if __name__ == "__main__":
    key = jax.random.PRNGKey(0)
    pkey, xkey = jax.random.split(key)
    params = init_params(pkey)
    # LeNet geometry requires 32x32 spatial input (3 channels); batch = 2.
    x = jax.random.normal(xkey, (2, 3, 32, 32), jnp.float32)

    fwd = jax.jit(forward)
    logp = fwd(params, x)
    jax.block_until_ready(logp)
    assert logp.shape == (2, 10)
    assert bool(jnp.all(jnp.isfinite(logp)))
    print("KERNEL_OK")
</pallas_src>

<mosaic_0001>
module attributes {stable_mosaic.version = 11 : i64} {
  func.func @_conv_stage_kernel(%arg0: i32, %arg1: memref<2048x128xf32, #tpu.memory_space<vmem>>, %arg2: memref<128x128xf32, #tpu.memory_space<vmem>>, %arg3: memref<24x128xf32, #tpu.memory_space<vmem>>, %arg4: memref<2x256x128xf32, #tpu.memory_space<vmem>>, %arg5: memref<2x1024x128xf32, #tpu.memory_space<vmem>>) attributes {dimension_semantics = [#tpu.dimension_semantics<arbitrary>], iteration_bounds = array<i64: 1>, scalar_prefetch = 0 : i64, scratch_operands = 1 : i64, tpu.core_type = #tpu.core_type<tc>, window_params = [{pipeline_mode = #tpu.pipeline_mode<synchronous>, transform_indices = @transform_0, window_bounds = array<i64: 2048, 128>}, {pipeline_mode = #tpu.pipeline_mode<synchronous>, transform_indices = @transform_1, window_bounds = array<i64: 128, 128>}, {pipeline_mode = #tpu.pipeline_mode<synchronous>, transform_indices = @transform_2, window_bounds = array<i64: 24, 128>}, {pipeline_mode = #tpu.pipeline_mode<synchronous>, transform_indices = @transform_3, window_bounds = array<i64: 2, 256, 128>}]} {
    %c0 = arith.constant 0 : index
    %c0_0 = arith.constant 0 : index
    %0 = vector.load %arg1[%c0, %c0_0] : memref<2048x128xf32, #tpu.memory_space<vmem>>, vector<2048x128xf32>
    %c0_1 = arith.constant 0 : index
    %c0_2 = arith.constant 0 : index
    %1 = vector.load %arg2[%c0_1, %c0_2] : memref<128x128xf32, #tpu.memory_space<vmem>>, vector<128x128xf32>
    %cst = arith.constant dense<0.000000e+00> : vector<2048x128xf32>
    %2 = tpu.matmul %0, %1, %cst {dimension_numbers = #tpu.dot_dimension_numbers<[1], [0], [0], [1], [0, 0, 1, 1], [], []>} : vector<2048x128xf32>, vector<128x128xf32>, vector<2048x128xf32> -> vector<2048x128xf32>
    %cst_3 = arith.constant dense<0.000000e+00> : vector<128xf32>
    %3 = vector.multi_reduction <add>, %2, %cst_3 [0] : vector<2048x128xf32> to vector<128xf32>
    %4 = vector.shape_cast %3 : vector<128xf32> to vector<1x128xf32>
    %cst_4 = arith.constant 4.8828125E-4 : f32
    %5 = vector.broadcast %cst_4 : f32 to vector<1x128xf32>
    %6 = arith.mulf %4, %5 : vector<1x128xf32>
    %7 = arith.mulf %2, %2 : vector<2048x128xf32>
    %cst_5 = arith.constant dense<0.000000e+00> : vector<128xf32>
    %8 = vector.multi_reduction <add>, %7, %cst_5 [0] : vector<2048x128xf32> to vector<128xf32>
    %9 = vector.shape_cast %8 : vector<128xf32> to vector<1x128xf32>
    %cst_6 = arith.constant 4.8828125E-4 : f32
    %10 = vector.broadcast %cst_6 : f32 to vector<1x128xf32>
    %11 = arith.mulf %9, %10 : vector<1x128xf32>
    %c0_7 = arith.constant 0 : index
    %c0_8 = arith.constant 0 : index
    %12 = vector.load %arg3[%c0_7, %c0_8] : memref<24x128xf32, #tpu.memory_space<vmem>>, vector<1x128xf32>
    %13 = arith.mulf %6, %6 : vector<1x128xf32>
    %14 = arith.subf %11, %13 : vector<1x128xf32>
    %cst_9 = arith.constant 9.99999974E-6 : f32
    %15 = vector.broadcast %cst_9 : f32 to vector<1x128xf32>
    %16 = arith.addf %14, %15 : vector<1x128xf32>
    %17 = math.rsqrt %16 : vector<1x128xf32>
    %18 = arith.mulf %12, %17 : vector<1x128xf32>
    %c1 = arith.constant 1 : index
    %c0_10 = arith.constant 0 : index
    %19 = vector.load %arg3[%c1, %c0_10] : memref<24x128xf32, #tpu.memory_space<vmem>>, vector<1x128xf32>
    %20 = arith.mulf %6, %18 : vector<1x128xf32>
    %21 = arith.subf %19, %20 : vector<1x128xf32>
    %22 = vector.broadcast %18 : vector<1x128xf32> to vector<2048x128xf32>
    %23 = arith.mulf %2, %22 : vector<2048x128xf32>
    %24 = vector.broadcast %21 : vector<1x128xf32> to vector<2048x128xf32>
    %25 = arith.addf %23, %24 : vector<2048x128xf32>
    %cst_11 = arith.constant 0.000000e+00 : f32
    %26 = vector.broadcast %cst_11 : f32 to vector<2048x128xf32>
    %27 = arith.maximumf %25, %26 : vector<2048x128xf32>
    %28 = vector.shape_cast %27 : vector<2048x128xf32> to vector<2x1024x128xf32>
    %c0_12 = arith.constant 0 : index
    %c0_13 = arith.constant 0 : index
    %c0_14 = arith.constant 0 : index
    %29 = vector.load %arg5[%c0_12, %c0_13, %c0_14] : memref<2x1024x128xf32, #tpu.memory_space<vmem>>, vector<2x1024x128xf32>
    tpu.vector_store %arg5[%c0_12, %c0_13, %c0_14], %28 {strides = array<i32>} : memref<2x1024x128xf32, #tpu.memory_space<vmem>>, vector<2x1024x128xf32>,
    %cst_15 = arith.constant dense<0.000000e+00> : vector<2x128xf32>
    %30 = vector.multi_reduction <add>, %28, %cst_15 [1] : vector<2x1024x128xf32> to vector<2x128xf32>
    %cst_16 = arith.constant 9.765625E-4 : f32
    %31 = vector.broadcast %cst_16 : f32 to vector<2x128xf32>
    %32 = arith.mulf %30, %31 : vector<2x128xf32>
    %c8 = arith.constant 8 : index
    %c0_17 = arith.constant 0 : index
    %33 = vector.load %arg3[%c8, %c0_17] : memref<24x128xf32, #tpu.memory_space<vmem>>, vector<8x128xf32>
    %34 = tpu.transpose %33, [1, 0] : vector<8x128xf32> -> vector<128x8xf32>
    %cst_18 = arith.constant dense<0.000000e+00> : vector<2x8xf32>
    %35 = tpu.matmul %32, %34, %cst_18 {dimension_numbers = #tpu.dot_dimension_numbers<[1], [0], [0], [1], [0, 0, 1, 1], [], []>} : vector<2x128xf32>, vector<128x8xf32>, vector<2x8xf32> -> vector<2x8xf32>
    %cst_19 = arith.constant 0.000000e+00 : f32
    %36 = vector.broadcast %cst_19 : f32 to vector<2x8xf32>
    %37 = arith.maximumf %35, %36 : vector<2x8xf32>
    %c16 = arith.constant 16 : index
    %c0_20 = arith.constant 0 : index
    %38 = vector.load %arg3[%c16, %c0_20] : memref<24x128xf32, #tpu.memory_space<vmem>>, vector<8x128xf32>
    %cst_21 = arith.constant dense<0.000000e+00> : vector<2x128xf32>
    %39 = tpu.matmul %37, %38, %cst_21 {dimension_numbers = #tpu.dot_dimension_numbers<[1], [0], [0], [1], [0, 0, 1, 1], [], []>} : vector<2x8xf32>, vector<8x128xf32>, vector<2x128xf32> -> vector<2x128xf32>
    %40 = arith.negf %39 : vector<2x128xf32>
    %41 = math.exp %40 : vector<2x128xf32>
    %cst_22 = arith.constant 1.000000e+00 : f32
    %42 = vector.broadcast %cst_22 : f32 to vector<2x128xf32>
    %43 = arith.addf %42, %41 : vector<2x128xf32>
    %44 = arith.divf %42, %43 : vector<2x128xf32>
    %c0_23 = arith.constant 0 : index
    %c0_24 = arith.constant 0 : index
    %c0_25 = arith.constant 0 : index
    %45 = vector.load %arg5[%c0_23, %c0_24, %c0_25] : memref<2x1024x128xf32, #tpu.memory_space<vmem>>, vector<2x256x128xf32>
    %c0_26 = arith.constant 0 : index
    %c256 = arith.constant 256 : index
    %c0_27 = arith.constant 0 : index
    %46 = vector.load %arg5[%c0_26, %c256, %c0_27] : memref<2x1024x128xf32, #tpu.memory_space<vmem>>, vector<2x256x128xf32>
    %47 = arith.maximumf %45, %46 : vector<2x256x128xf32>
    %c0_28 = arith.constant 0 : index
    %c512 = arith.constant 512 : index
    %c0_29 = arith.constant 0 : index
    %48 = vector.load %arg5[%c0_28, %c512, %c0_29] : memref<2x1024x128xf32, #tpu.memory_space<vmem>>, vector<2x256x128xf32>
    %c0_30 = arith.constant 0 : index
    %c768 = arith.constant 768 : index
    %c0_31 = arith.constant 0 : index
    %49 = vector.load %arg5[%c0_30, %c768, %c0_31] : memref<2x1024x128xf32, #tpu.memory_space<vmem>>, vector<2x256x128xf32>
    %50 = arith.maximumf %48, %49 : vector<2x256x128xf32>
    %51 = arith.maximumf %47, %50 : vector<2x256x128xf32>
    %52 = vector.shape_cast %44 : vector<2x128xf32> to vector<2x1x128xf32>
    %53 = vector.broadcast %52 : vector<2x1x128xf32> to vector<2x256x128xf32>
    %54 = arith.mulf %51, %53 : vector<2x256x128xf32>
    %c0_32 = arith.constant 0 : index
    %c0_33 = arith.constant 0 : index
    %c0_34 = arith.constant 0 : index
    %55 = vector.load %arg4[%c0_32, %c0_33, %c0_34] : memref<2x256x128xf32, #tpu.memory_space<vmem>>, vector<2x256x128xf32>
    tpu.vector_store %arg4[%c0_32, %c0_33, %c0_34], %54 {strides = array<i32>} : memref<2x256x128xf32, #tpu.memory_space<vmem>>, vector<2x256x128xf32>,
    return
  }
  func.func @transform_0(%arg0: i32) -> (i32, i32) {
    %c0_i32 = arith.constant 0 : i32
    %c0_i32_0 = arith.constant 0 : i32
    %c0_i32_1 = arith.constant 0 : i32
    return %c0_i32, %c0_i32_0 : i32, i32
  }
  func.func @transform_1(%arg0: i32) -> (i32, i32) {
    %c0_i32 = arith.constant 0 : i32
    %c0_i32_0 = arith.constant 0 : i32
    %c0_i32_1 = arith.constant 0 : i32
    return %c0_i32, %c0_i32_0 : i32, i32
  }
  func.func @transform_2(%arg0: i32) -> (i32, i32) {
    %c0_i32 = arith.constant 0 : i32
    %c0_i32_0 = arith.constant 0 : i32
    %c0_i32_1 = arith.constant 0 : i32
    return %c0_i32, %c0_i32_0 : i32, i32
  }
  func.func @transform_3(%arg0: i32) -> (i32, i32, i32) {
    %c0_i32 = arith.constant 0 : i32
    %c0_i32_0 = arith.constant 0 : i32
    %c0_i32_1 = arith.constant 0 : i32
    %c0_i32_2 = arith.constant 0 : i32
    return %c0_i32, %c0_i32_0, %c0_i32_1 : i32, i32, i32
  }
}

module attributes {stable_mosaic.version = 11 : i64} {
  func.func @_conv_stage_kernel(%arg0: i32, %arg1: memref<288x256xf32, #tpu.memory_space<vmem>>, %arg2: memref<256x128xf32, #tpu.memory_space<vmem>>, %arg3: memref<24x128xf32, #tpu.memory_space<vmem>>, %arg4: memref<2x36x128xf32, #tpu.memory_space<vmem>>, %arg5: memref<2x144x128xf32, #tpu.memory_space<vmem>>) attributes {dimension_semantics = [#tpu.dimension_semantics<arbitrary>], iteration_bounds = array<i64: 1>, scalar_prefetch = 0 : i64, scratch_operands = 1 : i64, tpu.core_type = #tpu.core_type<tc>, window_params = [{pipeline_mode = #tpu.pipeline_mode<synchronous>, transform_indices = @transform_0, window_bounds = array<i64: 288, 256>}, {pipeline_mode = #tpu.pipeline_mode<synchronous>, transform_indices = @transform_1, window_bounds = array<i64: 256, 128>}, {pipeline_mode = #tpu.pipeline_mode<synchronous>, transform_indices = @transform_2, window_bounds = array<i64: 24, 128>}, {pipeline_mode = #tpu.pipeline_mode<synchronous>, transform_indices = @transform_3, window_bounds = array<i64: 2, 36, 128>}]} {
    %c0 = arith.constant 0 : index
    %c0_0 = arith.constant 0 : index
    %0 = vector.load %arg1[%c0, %c0_0] : memref<288x256xf32, #tpu.memory_space<vmem>>, vector<288x256xf32>
    %c0_1 = arith.constant 0 : index
    %c0_2 = arith.constant 0 : index
    %1 = vector.load %arg2[%c0_1, %c0_2] : memref<256x128xf32, #tpu.memory_space<vmem>>, vector<256x128xf32>
    %cst = arith.constant dense<0.000000e+00> : vector<288x128xf32>
    %2 = tpu.matmul %0, %1, %cst {dimension_numbers = #tpu.dot_dimension_numbers<[1], [0], [0], [1], [0, 0, 1, 1], [], []>} : vector<288x256xf32>, vector<256x128xf32>, vector<288x128xf32> -> vector<288x128xf32>
    %cst_3 = arith.constant dense<0.000000e+00> : vector<128xf32>
    %3 = vector.multi_reduction <add>, %2, %cst_3 [0] : vector<288x128xf32> to vector<128xf32>
    %4 = vector.shape_cast %3 : vector<128xf32> to vector<1x128xf32>
    %cst_4 = arith.constant 0.00347222225 : f32
    %5 = vector.broadcast %cst_4 : f32 to vector<1x128xf32>
    %6 = arith.mulf %4, %5 : vector<1x128xf32>
    %7 = arith.mulf %2, %2 : vector<288x128xf32>
    %cst_5 = arith.constant dense<0.000000e+00> : vector<128xf32>
    %8 = vector.multi_reduction <add>, %7, %cst_5 [0] : vector<288x128xf32> to vector<128xf32>
    %9 = vector.shape_cast %8 : vector<128xf32> to vector<1x128xf32>
    %cst_6 = arith.constant 0.00347222225 : f32
    %10 = vector.broadcast %cst_6 : f32 to vector<1x128xf32>
    %11 = arith.mulf %9, %10 : vector<1x128xf32>
    %c0_7 = arith.constant 0 : index
    %c0_8 = arith.constant 0 : index
    %12 = vector.load %arg3[%c0_7, %c0_8] : memref<24x128xf32, #tpu.memory_space<vmem>>, vector<1x128xf32>
    %13 = arith.mulf %6, %6 : vector<1x128xf32>
    %14 = arith.subf %11, %13 : vector<1x128xf32>
    %cst_9 = arith.constant 9.99999974E-6 : f32
    %15 = vector.broadcast %cst_9 : f32 to vector<1x128xf32>
    %16 = arith.addf %14, %15 : vector<1x128xf32>
    %17 = math.rsqrt %16 : vector<1x128xf32>
    %18 = arith.mulf %12, %17 : vector<1x128xf32>
    %c1 = arith.constant 1 : index
    %c0_10 = arith.constant 0 : index
    %19 = vector.load %arg3[%c1, %c0_10] : memref<24x128xf32, #tpu.memory_space<vmem>>, vector<1x128xf32>
    %20 = arith.mulf %6, %18 : vector<1x128xf32>
    %21 = arith.subf %19, %20 : vector<1x128xf32>
    %22 = vector.broadcast %18 : vector<1x128xf32> to vector<288x128xf32>
    %23 = arith.mulf %2, %22 : vector<288x128xf32>
    %24 = vector.broadcast %21 : vector<1x128xf32> to vector<288x128xf32>
    %25 = arith.addf %23, %24 : vector<288x128xf32>
    %cst_11 = arith.constant 0.000000e+00 : f32
    %26 = vector.broadcast %cst_11 : f32 to vector<288x128xf32>
    %27 = arith.maximumf %25, %26 : vector<288x128xf32>
    %28 = vector.shape_cast %27 : vector<288x128xf32> to vector<2x144x128xf32>
    %c0_12 = arith.constant 0 : index
    %c0_13 = arith.constant 0 : index
    %c0_14 = arith.constant 0 : index
    %29 = vector.load %arg5[%c0_12, %c0_13, %c0_14] : memref<2x144x128xf32, #tpu.memory_space<vmem>>, vector<2x144x128xf32>
    tpu.vector_store %arg5[%c0_12, %c0_13, %c0_14], %28 {strides = array<i32>} : memref<2x144x128xf32, #tpu.memory_space<vmem>>, vector<2x144x128xf32>,
    %cst_15 = arith.constant dense<0.000000e+00> : vector<2x128xf32>
    %30 = vector.multi_reduction <add>, %28, %cst_15 [1] : vector<2x144x128xf32> to vector<2x128xf32>
    %cst_16 = arith.constant 0.0069444445 : f32
    %31 = vector.broadcast %cst_16 : f32 to vector<2x128xf32>
    %32 = arith.mulf %30, %31 : vector<2x128xf32>
    %c8 = arith.constant 8 : index
    %c0_17 = arith.constant 0 : index
    %33 = vector.load %arg3[%c8, %c0_17] : memref<24x128xf32, #tpu.memory_space<vmem>>, vector<8x128xf32>
    %34 = tpu.transpose %33, [1, 0] : vector<8x128xf32> -> vector<128x8xf32>
    %cst_18 = arith.constant dense<0.000000e+00> : vector<2x8xf32>
    %35 = tpu.matmul %32, %34, %cst_18 {dimension_numbers = #tpu.dot_dimension_numbers<[1], [0], [0], [1], [0, 0, 1, 1], [], []>} : vector<2x128xf32>, vector<128x8xf32>, vector<2x8xf32> -> vector<2x8xf32>
    %cst_19 = arith.constant 0.000000e+00 : f32
    %36 = vector.broadcast %cst_19 : f32 to vector<2x8xf32>
    %37 = arith.maximumf %35, %36 : vector<2x8xf32>
    %c16 = arith.constant 16 : index
    %c0_20 = arith.constant 0 : index
    %38 = vector.load %arg3[%c16, %c0_20] : memref<24x128xf32, #tpu.memory_space<vmem>>, vector<8x128xf32>
    %cst_21 = arith.constant dense<0.000000e+00> : vector<2x128xf32>
    %39 = tpu.matmul %37, %38, %cst_21 {dimension_numbers = #tpu.dot_dimension_numbers<[1], [0], [0], [1], [0, 0, 1, 1], [], []>} : vector<2x8xf32>, vector<8x128xf32>, vector<2x128xf32> -> vector<2x128xf32>
    %40 = arith.negf %39 : vector<2x128xf32>
    %41 = math.exp %40 : vector<2x128xf32>
    %cst_22 = arith.constant 1.000000e+00 : f32
    %42 = vector.broadcast %cst_22 : f32 to vector<2x128xf32>
    %43 = arith.addf %42, %41 : vector<2x128xf32>
    %44 = arith.divf %42, %43 : vector<2x128xf32>
    %c0_23 = arith.constant 0 : index
    %c0_24 = arith.constant 0 : index
    %c0_25 = arith.constant 0 : index
    %45 = vector.load %arg5[%c0_23, %c0_24, %c0_25] : memref<2x144x128xf32, #tpu.memory_space<vmem>>, vector<2x36x128xf32>
    %c0_26 = arith.constant 0 : index
    %c36 = arith.constant 36 : index
    %c0_27 = arith.constant 0 : index
    %46 = vector.load %arg5[%c0_26, %c36, %c0_27] : memref<2x144x128xf32, #tpu.memory_space<vmem>>, vector<2x36x128xf32>
    %47 = arith.maximumf %45, %46 : vector<2x36x128xf32>
    %c0_28 = arith.constant 0 : index
    %c72 = arith.constant 72 : index
    %c0_29 = arith.constant 0 : index
    %48 = vector.load %arg5[%c0_28, %c72, %c0_29] : memref<2x144x128xf32, #tpu.memory_space<vmem>>, vector<2x36x128xf32>
    %c0_30 = arith.constant 0 : index
    %c108 = arith.constant 108 : index
    %c0_31 = arith.constant 0 : index
    %49 = vector.load %arg5[%c0_30, %c108, %c0_31] : memref<2x144x128xf32, #tpu.memory_space<vmem>>, vector<2x36x128xf32>
    %50 = arith.maximumf %48, %49 : vector<2x36x128xf32>
    %51 = arith.maximumf %47, %50 : vector<2x36x128xf32>
    %52 = vector.shape_cast %44 : vector<2x128xf32> to vector<2x1x128xf32>
    %53 = vector.broadcast %52 : vector<2x1x128xf32> to vector<2x36x128xf32>
    %54 = arith.mulf %51, %53 : vector<2x36x128xf32>
    %c0_32 = arith.constant 0 : index
    %c0_33 = arith.constant 0 : index
    %c0_34 = arith.constant 0 : index
    %55 = vector.load %arg4[%c0_32, %c0_33, %c0_34] : memref<2x36x128xf32, #tpu.memory_space<vmem>>, vector<2x36x128xf32>
    tpu.vector_store %arg4[%c0_32, %c0_33, %c0_34], %54 {strides = array<i32>} : memref<2x36x128xf32, #tpu.memory_space<vmem>>, vector<2x36x128xf32>,
    return
  }
  func.func @transform_0(%arg0: i32) -> (i32, i32) {
    %c0_i32 = arith.constant 0 : i32
    %c0_i32_0 = arith.constant 0 : i32
    %c0_i32_1 = arith.constant 0 : i32
    return %c0_i32, %c0_i32_0 : i32, i32
  }
  func.func @transform_1(%arg0: i32) -> (i32, i32) {
    %c0_i32 = arith.constant 0 : i32
    %c0_i32_0 = arith.constant 0 : i32
    %c0_i32_1 = arith.constant 0 : i32
    return %c0_i32, %c0_i32_0 : i32, i32
  }
  func.func @transform_2(%arg0: i32) -> (i32, i32) {
    %c0_i32 = arith.constant 0 : i32
    %c0_i32_0 = arith.constant 0 : i32
    %c0_i32_1 = arith.constant 0 : i32
    return %c0_i32, %c0_i32_0 : i32, i32
  }
  func.func @transform_3(%arg0: i32) -> (i32, i32, i32) {
    %c0_i32 = arith.constant 0 : i32
    %c0_i32_0 = arith.constant 0 : i32
    %c0_i32_1 = arith.constant 0 : i32
    %c0_i32_2 = arith.constant 0 : i32
    return %c0_i32, %c0_i32_0, %c0_i32_1 : i32, i32, i32
  }
}

module attributes {stable_mosaic.version = 11 : i64} {
  func.func @_tail_kernel(%arg0: i32, %arg1: memref<2x640xf32, #tpu.memory_space<vmem>>, %arg2: memref<640x128xf32, #tpu.memory_space<vmem>>, %arg3: memref<128x128xf32, #tpu.memory_space<vmem>>, %arg4: memref<128x128xf32, #tpu.memory_space<vmem>>, %arg5: memref<24x128xf32, #tpu.memory_space<vmem>>, %arg6: memref<2x128xf32, #tpu.memory_space<vmem>>) attributes {dimension_semantics = [#tpu.dimension_semantics<arbitrary>], iteration_bounds = array<i64: 1>, scalar_prefetch = 0 : i64, scratch_operands = 0 : i64, tpu.core_type = #tpu.core_type<tc>, window_params = [{pipeline_mode = #tpu.pipeline_mode<synchronous>, transform_indices = @transform_0, window_bounds = array<i64: 2, 640>}, {pipeline_mode = #tpu.pipeline_mode<synchronous>, transform_indices = @transform_1, window_bounds = array<i64: 640, 128>}, {pipeline_mode = #tpu.pipeline_mode<synchronous>, transform_indices = @transform_2, window_bounds = array<i64: 128, 128>}, {pipeline_mode = #tpu.pipeline_mode<synchronous>, transform_indices = @transform_3, window_bounds = array<i64: 128, 128>}, {pipeline_mode = #tpu.pipeline_mode<synchronous>, transform_indices = @transform_4, window_bounds = array<i64: 24, 128>}, {pipeline_mode = #tpu.pipeline_mode<synchronous>, transform_indices = @transform_5, window_bounds = array<i64: 2, 128>}]} {
    %c0 = arith.constant 0 : index
    %c0_0 = arith.constant 0 : index
    %0 = vector.load %arg1[%c0, %c0_0] : memref<2x640xf32, #tpu.memory_space<vmem>>, vector<2x640xf32>
    %c0_1 = arith.constant 0 : index
    %c0_2 = arith.constant 0 : index
    %1 = vector.load %arg2[%c0_1, %c0_2] : memref<640x128xf32, #tpu.memory_space<vmem>>, vector<640x128xf32>
    %cst = arith.constant dense<0.000000e+00> : vector<2x128xf32>
    %2 = tpu.matmul %0, %1, %cst {dimension_numbers = #tpu.dot_dimension_numbers<[1], [0], [0], [1], [0, 0, 1, 1], [], []>} : vector<2x640xf32>, vector<640x128xf32>, vector<2x128xf32> -> vector<2x128xf32>
    %c0_3 = arith.constant 0 : index
    %c0_4 = arith.constant 0 : index
    %3 = vector.load %arg5[%c0_3, %c0_4] : memref<24x128xf32, #tpu.memory_space<vmem>>, vector<1x128xf32>
    %c1 = arith.constant 1 : index
    %c0_5 = arith.constant 0 : index
    %4 = vector.load %arg5[%c1, %c0_5] : memref<24x128xf32, #tpu.memory_space<vmem>>, vector<1x128xf32>
    %cst_6 = arith.constant dense<0.000000e+00> : vector<128xf32>
    %5 = vector.multi_reduction <add>, %2, %cst_6 [0] : vector<2x128xf32> to vector<128xf32>
    %6 = vector.shape_cast %5 : vector<128xf32> to vector<1x128xf32>
    %cst_7 = arith.constant 5.000000e-01 : f32
    %7 = vector.broadcast %cst_7 : f32 to vector<1x128xf32>
    %8 = arith.mulf %6, %7 : vector<1x128xf32>
    %9 = arith.mulf %2, %2 : vector<2x128xf32>
    %cst_8 = arith.constant dense<0.000000e+00> : vector<128xf32>
    %10 = vector.multi_reduction <add>, %9, %cst_8 [0] : vector<2x128xf32> to vector<128xf32>
    %11 = vector.shape_cast %10 : vector<128xf32> to vector<1x128xf32>
    %cst_9 = arith.constant 5.000000e-01 : f32
    %12 = vector.broadcast %cst_9 : f32 to vector<1x128xf32>
    %13 = arith.mulf %11, %12 : vector<1x128xf32>
    %14 = arith.mulf %8, %8 : vector<1x128xf32>
    %15 = arith.subf %13, %14 : vector<1x128xf32>
    %cst_10 = arith.constant 9.99999974E-6 : f32
    %16 = vector.broadcast %cst_10 : f32 to vector<1x128xf32>
    %17 = arith.addf %15, %16 : vector<1x128xf32>
    %18 = math.rsqrt %17 : vector<1x128xf32>
    %19 = arith.mulf %3, %18 : vector<1x128xf32>
    %20 = arith.mulf %8, %19 : vector<1x128xf32>
    %21 = arith.subf %4, %20 : vector<1x128xf32>
    %22 = vector.broadcast %19 : vector<1x128xf32> to vector<2x128xf32>
    %23 = arith.mulf %2, %22 : vector<2x128xf32>
    %24 = vector.broadcast %21 : vector<1x128xf32> to vector<2x128xf32>
    %25 = arith.addf %23, %24 : vector<2x128xf32>
    %cst_11 = arith.constant 0.000000e+00 : f32
    %26 = vector.broadcast %cst_11 : f32 to vector<2x128xf32>
    %27 = arith.maximumf %25, %26 : vector<2x128xf32>
    %c8 = arith.constant 8 : index
    %c0_12 = arith.constant 0 : index
    %28 = vector.load %arg5[%c8, %c0_12] : memref<24x128xf32, #tpu.memory_space<vmem>>, vector<8x128xf32>
    %29 = tpu.transpose %28, [1, 0] : vector<8x128xf32> -> vector<128x8xf32>
    %cst_13 = arith.constant dense<0.000000e+00> : vector<2x8xf32>
    %30 = tpu.matmul %27, %29, %cst_13 {dimension_numbers = #tpu.dot_dimension_numbers<[1], [0], [0], [1], [0, 0, 1, 1], [], []>} : vector<2x128xf32>, vector<128x8xf32>, vector<2x8xf32> -> vector<2x8xf32>
    %cst_14 = arith.constant 0.000000e+00 : f32
    %31 = vector.broadcast %cst_14 : f32 to vector<2x8xf32>
    %32 = arith.maximumf %30, %31 : vector<2x8xf32>
    %c16 = arith.constant 16 : index
    %c0_15 = arith.constant 0 : index
    %33 = vector.load %arg5[%c16, %c0_15] : memref<24x128xf32, #tpu.memory_space<vmem>>, vector<8x128xf32>
    %cst_16 = arith.constant dense<0.000000e+00> : vector<2x128xf32>
    %34 = tpu.matmul %32, %33, %cst_16 {dimension_numbers = #tpu.dot_dimension_numbers<[1], [0], [0], [1], [0, 0, 1, 1], [], []>} : vector<2x8xf32>, vector<8x128xf32>, vector<2x128xf32> -> vector<2x128xf32>
    %35 = arith.negf %34 : vector<2x128xf32>
    %36 = math.exp %35 : vector<2x128xf32>
    %cst_17 = arith.constant 1.000000e+00 : f32
    %37 = vector.broadcast %cst_17 : f32 to vector<2x128xf32>
    %38 = arith.addf %37, %36 : vector<2x128xf32>
    %39 = arith.divf %37, %38 : vector<2x128xf32>
    %40 = arith.mulf %27, %39 : vector<2x128xf32>
    %c0_18 = arith.constant 0 : index
    %c0_19 = arith.constant 0 : index
    %41 = vector.load %arg3[%c0_18, %c0_19] : memref<128x128xf32, #tpu.memory_space<vmem>>, vector<128x128xf32>
    %cst_20 = arith.constant dense<0.000000e+00> : vector<2x128xf32>
    %42 = tpu.matmul %40, %41, %cst_20 {dimension_numbers = #tpu.dot_dimension_numbers<[1], [0], [0], [1], [0, 0, 1, 1], [], []>} : vector<2x128xf32>, vector<128x128xf32>, vector<2x128xf32> -> vector<2x128xf32>
    %c2 = arith.constant 2 : index
    %c0_21 = arith.constant 0 : index
    %43 = vector.load %arg5[%c2, %c0_21] : memref<24x128xf32, #tpu.memory_space<vmem>>, vector<1x128xf32>
    %c3 = arith.constant 3 : index
    %c0_22 = arith.constant 0 : index
    %44 = vector.load %arg5[%c3, %c0_22] : memref<24x128xf32, #tpu.memory_space<vmem>>, vector<1x128xf32>
    %cst_23 = arith.constant dense<0.000000e+00> : vector<128xf32>
    %45 = vector.multi_reduction <add>, %42, %cst_23 [0] : vector<2x128xf32> to vector<128xf32>
    %46 = vector.shape_cast %45 : vector<128xf32> to vector<1x128xf32>
    %cst_24 = arith.constant 5.000000e-01 : f32
    %47 = vector.broadcast %cst_24 : f32 to vector<1x128xf32>
    %48 = arith.mulf %46, %47 : vector<1x128xf32>
    %49 = arith.mulf %42, %42 : vector<2x128xf32>
    %cst_25 = arith.constant dense<0.000000e+00> : vector<128xf32>
    %50 = vector.multi_reduction <add>, %49, %cst_25 [0] : vector<2x128xf32> to vector<128xf32>
    %51 = vector.shape_cast %50 : vector<128xf32> to vector<1x128xf32>
    %cst_26 = arith.constant 5.000000e-01 : f32
    %52 = vector.broadcast %cst_26 : f32 to vector<1x128xf32>
    %53 = arith.mulf %51, %52 : vector<1x128xf32>
    %54 = arith.mulf %48, %48 : vector<1x128xf32>
    %55 = arith.subf %53, %54 : vector<1x128xf32>
    %cst_27 = arith.constant 9.99999974E-6 : f32
    %56 = vector.broadcast %cst_27 : f32 to vector<1x128xf32>
    %57 = arith.addf %55, %56 : vector<1x128xf32>
    %58 = math.rsqrt %57 : vector<1x128xf32>
    %59 = arith.mulf %43, %58 : vector<1x128xf32>
    %60 = arith.mulf %48, %59 : vector<1x128xf32>
    %61 = arith.subf %44, %60 : vector<1x128xf32>
    %62 = vector.broadcast %59 : vector<1x128xf32> to vector<2x128xf32>
    %63 = arith.mulf %42, %62 : vector<2x128xf32>
    %64 = vector.broadcast %61 : vector<1x128xf32> to vector<2x128xf32>
    %65 = arith.addf %63, %64 : vector<2x128xf32>
    %cst_28 = arith.constant 0.000000e+00 : f32
    %66 = vector.broadcast %cst_28 : f32 to vector<2x128xf32>
    %67 = arith.maximumf %65, %66 : vector<2x128xf32>
    %c0_29 = arith.constant 0 : index
    %c0_30 = arith.constant 0 : index
    %68 = vector.load %arg4[%c0_29, %c0_30] : memref<128x128xf32, #tpu.memory_space<vmem>>, vector<128x128xf32>
    %cst_31 = arith.constant dense<0.000000e+00> : vector<2x128xf32>
    %69 = tpu.matmul %67, %68, %cst_31 {dimension_numbers = #tpu.dot_dimension_numbers<[1], [0], [0], [1], [0, 0, 1, 1], [], []>} : vector<2x128xf32>, vector<128x128xf32>, vector<2x128xf32> -> vector<2x128xf32>
    %c4 = arith.constant 4 : index
    %c0_32 = arith.constant 0 : index
    %70 = vector.load %arg5[%c4, %c0_32] : memref<24x128xf32, #tpu.memory_space<vmem>>, vector<1x128xf32>
    %71 = vector.broadcast %70 : vector<1x128xf32> to vector<2x128xf32>
    %72 = arith.addf %69, %71 : vector<2x128xf32>
    %73 = tpu.iota {dimensions = array<i32: 1>} : vector<2x128xi32>
    %c10_i32 = arith.constant 10 : i32
    %74 = vector.broadcast %c10_i32 : i32 to vector<2x128xi32>
    %75 = arith.cmpi slt, %73, %74 : vector<2x128xi32>
    %cst_33 = arith.constant -1.000000e+30 : f32
    %76 = vector.broadcast %cst_33 : f32 to vector<2x128xf32>
    %77 = arith.select %75, %72, %76 : vector<2x128xi1>, vector<2x128xf32>
    %cst_34 = arith.constant dense<0xFF800000> : vector<2xf32>
    %78 = vector.multi_reduction <maximumf>, %77, %cst_34 [1] : vector<2x128xf32> to vector<2xf32>
    %79 = vector.shape_cast %78 : vector<2xf32> to vector<2x1xf32>
    %80 = vector.broadcast %79 : vector<2x1xf32> to vector<2x128xf32>
    %81 = arith.subf %77, %80 : vector<2x128xf32>
    %82 = math.exp %81 : vector<2x128xf32>
    %cst_35 = arith.constant 0.000000e+00 : f32
    %83 = vector.broadcast %cst_35 : f32 to vector<2x128xf32>
    %84 = arith.select %75, %82, %83 : vector<2x128xi1>, vector<2x128xf32>
    %85 = vector.broadcast %79 : vector<2x1xf32> to vector<2x128xf32>
    %86 = arith.subf %77, %85 : vector<2x128xf32>
    %cst_36 = arith.constant dense<0.000000e+00> : vector<2xf32>
    %87 = vector.multi_reduction <add>, %84, %cst_36 [1] : vector<2x128xf32> to vector<2xf32>
    %88 = vector.shape_cast %87 : vector<2xf32> to vector<2x1xf32>
    %89 = math.log %88 : vector<2x1xf32>
    %90 = vector.broadcast %89 : vector<2x1xf32> to vector<2x128xf32>
    %91 = arith.subf %86, %90 : vector<2x128xf32>
    %cst_37 = arith.constant 0.000000e+00 : f32
    %92 = vector.broadcast %cst_37 : f32 to vector<2x128xf32>
    %93 = arith.select %75, %91, %92 : vector<2x128xi1>, vector<2x128xf32>
    %c0_38 = arith.constant 0 : index
    %c0_39 = arith.constant 0 : index
    %94 = vector.load %arg6[%c0_38, %c0_39] : memref<2x128xf32, #tpu.memory_space<vmem>>, vector<2x128xf32>
    tpu.vector_store %arg6[%c0_38, %c0_39], %93 {strides = array<i32>} : memref<2x128xf32, #tpu.memory_space<vmem>>, vector<2x128xf32>,
    return
  }
  func.func @transform_0(%arg0: i32) -> (i32, i32) {
    %c0_i32 = arith.constant 0 : i32
    %c0_i32_0 = arith.constant 0 : i32
    %c0_i32_1 = arith.constant 0 : i32
    return %c0_i32, %c0_i32_0 : i32, i32
  }
  func.func @transform_1(%arg0: i32) -> (i32, i32) {
    %c0_i32 = arith.constant 0 : i32
    %c0_i32_0 = arith.constant 0 : i32
    %c0_i32_1 = arith.constant 0 : i32
    return %c0_i32, %c0_i32_0 : i32, i32
  }
  func.func @transform_2(%arg0: i32) -> (i32, i32) {
    %c0_i32 = arith.constant 0 : i32
    %c0_i32_0 = arith.constant 0 : i32
    %c0_i32_1 = arith.constant 0 : i32
    return %c0_i32, %c0_i32_0 : i32, i32
  }
  func.func @transform_3(%arg0: i32) -> (i32, i32) {
    %c0_i32 = arith.constant 0 : i32
    %c0_i32_0 = arith.constant 0 : i32
    %c0_i32_1 = arith.constant 0 : i32
    return %c0_i32, %c0_i32_0 : i32, i32
  }
  func.func @transform_4(%arg0: i32) -> (i32, i32) {
    %c0_i32 = arith.constant 0 : i32
    %c0_i32_0 = arith.constant 0 : i32
    %c0_i32_1 = arith.constant 0 : i32
    return %c0_i32, %c0_i32_0 : i32, i32
  }
  func.func @transform_5(%arg0: i32) -> (i32, i32) {
    %c0_i32 = arith.constant 0 : i32
    %c0_i32_0 = arith.constant 0 : i32
    %c0_i32_1 = arith.constant 0 : i32
    return %c0_i32, %c0_i32_0 : i32, i32
  }
}

</mosaic_0001>

<bundles_post_ra>
// kernel: forward.3
= control target key start
LH: loop header
LB: loop body
LE: loop exit
PB: predicated region body
PF: predicated region fallthrough
CT: control target
= control target key end

     0   :  { %vm3166_vm3 = vcmask 1041409   ;;  %vm3191_vm4 = vcmask 64512   ;;  %s8884_s1 = inlined_call_operand.vmem [shape: f32[128,128], index: 1, kind: input, shape index: {}]   ;;  %s8885_s0 = inlined_call_operand.vmem [shape: f32[2048,128], index: 0, kind: input, shape index: {}]   ;;  %s8886_s2 = inlined_call_operand.vmem [shape: f32[24,128], index: 2, kind: input, shape index: {}]   ;;  %s8887_s3 = inlined_call_operand.vmem [shape: f32[2,256,128], index: 3, kind: output, shape index: {}]  }
   0x1   :  { %v285_v0 = vld [vmem:[%s8884_s1 + $0x78] sm:$0xff]  ;;  %v284_v1 = vld [vmem:[%s8884_s1 + $0x70] sm:$0xff]  ;;  %v283_v2 = vld [vmem:[%s8884_s1 + $0x68] sm:$0xff] }
   0x2   :  { %286 = vmatpush.msra.mxu0 %v285_v0  ;;  %3822 = vmatpush.msra.mxu1 %v285_v0  ;;  %v282_v3 = vld [vmem:[%s8884_s1 + $0x60] sm:$0xff]  ;;  %v281_v4 = vld [vmem:[%s8884_s1 + $0x58] sm:$0xff]  ;;  %v280_v5 = vld [vmem:[%s8884_s1 + $0x50] sm:$0xff] }
   0x3   :  { %3823 = vmatpush.msra.mxu2 %v285_v0  ;;  %3824 = vmatpush.msra.mxu3 %v285_v0  ;;  %v279_v6 = vld [vmem:[%s8884_s1 + $0x48] sm:$0xff]  ;;  %v278_v7 = vld [vmem:[%s8884_s1 + $0x40] sm:$0xff]  ;;  %v277_v8 = vld [vmem:[%s8884_s1 + $0x38] sm:$0xff] }
   0x4   :  { %287 = vmatpush.msra.mxu0 %v284_v1  ;;  %3825 = vmatpush.msra.mxu1 %v284_v1  ;;  %v276_v9 = vld [vmem:[%s8884_s1 + $0x30] sm:$0xff]  ;;  %v275_v10 = vld [vmem:[%s8884_s1 + $0x28] sm:$0xff]  ;;  %v274_v11 = vld [vmem:[%s8884_s1 + $0x20] sm:$0xff] }
   0x5   :  { %3826 = vmatpush.msra.mxu2 %v284_v1  ;;  %3827 = vmatpush.msra.mxu3 %v284_v1  ;;  %v273_v12 = vld [vmem:[%s8884_s1 + $0x18] sm:$0xff]  ;;  %v272_v13 = vld [vmem:[%s8884_s1 + $0x10] sm:$0xff]  ;;  %v271_v14 = vld [vmem:[%s8884_s1 + $0x8] sm:$0xff] }
   0x6   :  { %288 = vmatpush.msra.mxu0 %v283_v2  ;;  %3828 = vmatpush.msra.mxu1 %v283_v2  ;;  %v270_v15 = vld [vmem:[%s8884_s1] sm:$0xff]  ;;  %v15_v17 = vld [vmem:[%s8885_s0 + $0x8] sm:$0xff]  ;;  %v16_v18 = vld [vmem:[%s8885_s0 + $0x10] sm:$0xff] }
   0x7   :  { %3829 = vmatpush.msra.mxu2 %v283_v2  ;;  %3830 = vmatpush.msra.mxu3 %v283_v2  ;;  %v14_v16 = vld [vmem:[%s8885_s0] sm:$0xff]  ;;  %v17_v19 = vld [vmem:[%s8885_s0 + $0x18] sm:$0xff]  ;;  %v19_v21 = vld [vmem:[%s8885_s0 + $0x28] sm:$0xff] }
   0x8   :  { %289 = vmatpush.msra.mxu0 %v282_v3  ;;  %3831 = vmatpush.msra.mxu1 %v282_v3  ;;  %v18_v20 = vld [vmem:[%s8885_s0 + $0x20] sm:$0xff]  ;;  %v20_v22 = vld [vmem:[%s8885_s0 + $0x30] sm:$0xff]  ;;  %v21_v23 = vld [vmem:[%s8885_s0 + $0x38] sm:$0xff] }
   0x9   :  { %3832 = vmatpush.msra.mxu2 %v282_v3  ;;  %3833 = vmatpush.msra.mxu3 %v282_v3  ;;  %v22_v24 = vld [vmem:[%s8885_s0 + $0x40] sm:$0xff]  ;;  %v23_v25 = vld [vmem:[%s8885_s0 + $0x48] sm:$0xff]  ;;  %v24_v26 = vld [vmem:[%s8885_s0 + $0x50] sm:$0xff] }
   0xa   :  { %290 = vmatpush.msra.mxu0 %v281_v4  ;;  %3834 = vmatpush.msra.mxu1 %v281_v4  ;;  %v25_v27 = vld [vmem:[%s8885_s0 + $0x58] sm:$0xff]  ;;  %v26_v28 = vld [vmem:[%s8885_s0 + $0x60] sm:$0xff]  ;;  %v27_v30 = vld [vmem:[%s8885_s0 + $0x68] sm:$0xff] }
   0xb   :  { %3835 = vmatpush.msra.mxu2 %v281_v4  ;;  %3836 = vmatpush.msra.mxu3 %v281_v4  ;;  %v78_v29 = vld [vmem:[%s8885_s0 + $0x200] sm:$0xff]  ;;  %v79_v31 = vld [vmem:[%s8885_s0 + $0x208] sm:$0xff]  ;;  %v28_v32 = vld [vmem:[%s8885_s0 + $0x70] sm:$0xff] }
   0xc   :  { %291 = vmatpush.msra.mxu0 %v280_v5  ;;  %3837 = vmatpush.msra.mxu1 %v280_v5  ;;  %v80_v33 = vld [vmem:[%s8885_s0 + $0x210] sm:$0xff]  ;;  %v29_v34 = vld [vmem:[%s8885_s0 + $0x78] sm:$0xff]  ;;  %v30_v37 = vld [vmem:[%s8885_s0 + $0x80] sm:$0xff] }
   0xd   :  { %3838 = vmatpush.msra.mxu2 %v280_v5  ;;  %3839 = vmatpush.msra.mxu3 %v280_v5  ;;  %v81_v35 = vld [vmem:[%s8885_s0 + $0x218] sm:$0xff]  ;;  %v82_v38 = vld [vmem:[%s8885_s0 + $0x220] sm:$0xff]  ;;  %v31_v40 = vld [vmem:[%s8885_s0 + $0x88] sm:$0xff] }
   0xe   :  { %292 = vmatpush.msra.mxu0 %v279_v6  ;;  %3840 = vmatpush.msra.mxu1 %v279_v6  ;;  %v83_v41 = vld [vmem:[%s8885_s0 + $0x228] sm:$0xff]  ;;  %v32_v43 = vld [vmem:[%s8885_s0 + $0x90] sm:$0xff]  ;;  %v33_v46 = vld [vmem:[%s8885_s0 + $0x98] sm:$0xff] }
   0xf   :  { %3841 = vmatpush.msra.mxu2 %v279_v6  ;;  %3842 = vmatpush.msra.mxu3 %v279_v6  ;;  %v84_v44 = vld [vmem:[%s8885_s0 + $0x230] sm:$0xff]  ;;  %v85_v47 = vld [vmem:[%s8885_s0 + $0x238] sm:$0xff]  ;;  %v34_v49 = vld [vmem:[%s8885_s0 + $0xa0] sm:$0xff] }
  0x10   :  { %293 = vmatpush.msra.mxu0 %v278_v7  ;;  %3843 = vmatpush.msra.mxu1 %v278_v7  ;;  %v86_v50 = vld [vmem:[%s8885_s0 + $0x240] sm:$0xff]  ;;  %v35_v52 = vld [vmem:[%s8885_s0 + $0xa8] sm:$0xff]  ;;  %v36_v55 = vld [vmem:[%s8885_s0 + $0xb0] sm:$0xff] }
  0x11   :  { %3844 = vmatpush.msra.mxu2 %v278_v7  ;;  %3845 = vmatpush.msra.mxu3 %v278_v7  ;;  %v87_v53 = vld [vmem:[%s8885_s0 + $0x248] sm:$0xff]  ;;  %v88_v56 = vld [vmem:[%s8885_s0 + $0x250] sm:$0xff]  ;;  %v37_v58 = vld [vmem:[%s8885_s0 + $0xb8] sm:$0xff] }
  0x12   :  { %294 = vmatpush.msra.mxu0 %v277_v8  ;;  %3846 = vmatpush.msra.mxu1 %v277_v8  ;;  %v89_v59 = vld [vmem:[%s8885_s0 + $0x258] sm:$0xff]  ;;  %v38_v61 = vld [vmem:[%s8885_s0 + $0xc0] sm:$0xff]  ;;  %v39_v0 = vld [vmem:[%s8885_s0 + $0xc8] sm:$0xff] }
  0x13   :  { %3847 = vmatpush.msra.mxu2 %v277_v8  ;;  %3848 = vmatpush.msra.mxu3 %v277_v8  ;;  %v90_v62 = vld [vmem:[%s8885_s0 + $0x260] sm:$0xff]  ;;  %v91_v1 = vld [vmem:[%s8885_s0 + $0x268] sm:$0xff]  ;;  %v40_v3 = vld [vmem:[%s8885_s0 + $0xd0] sm:$0xff] }
  0x14   :  { %295 = vmatpush.msra.mxu0 %v276_v9  ;;  %3849 = vmatpush.msra.mxu1 %v276_v9  ;;  %v92_v4 = vld [vmem:[%s8885_s0 + $0x270] sm:$0xff]  ;;  %v41_v6 = vld [vmem:[%s8885_s0 + $0xd8] sm:$0xff]  ;;  %v142_v8 = vld [vmem:[%s8885_s0 + $0x400] sm:$0xff] }
  0x15   :  { %3850 = vmatpush.msra.mxu2 %v276_v9  ;;  %3851 = vmatpush.msra.mxu3 %v276_v9  ;;  %v93_v7 = vld [vmem:[%s8885_s0 + $0x278] sm:$0xff] }
  0x16   :  { %296 = vmatpush.msra.mxu0 %v275_v10  ;;  %3852 = vmatpush.msra.mxu1 %v275_v10 }
  0x17   :  { %3853 = vmatpush.msra.mxu2 %v275_v10  ;;  %3854 = vmatpush.msra.mxu3 %v275_v10  ;;  %v42_v10 = vld [vmem:[%s8885_s0 + $0xe0] sm:$0xff] }
  0x18   :  { %297 = vmatpush.msra.mxu0 %v274_v11  ;;  %3855 = vmatpush.msra.mxu1 %v274_v11 }
  0x19   :  { %3856 = vmatpush.msra.mxu2 %v274_v11  ;;  %3857 = vmatpush.msra.mxu3 %v274_v11 }
  0x1a   :  { %298 = vmatpush.msra.mxu0 %v273_v12  ;;  %3858 = vmatpush.msra.mxu1 %v273_v12 }
  0x1b   :  { %3859 = vmatpush.msra.mxu2 %v273_v12  ;;  %3860 = vmatpush.msra.mxu3 %v273_v12  ;;  %v94_v12 = vld [vmem:[%s8885_s0 + $0x280] sm:$0xff] }
  0x1c   :  { %299 = vmatpush.msra.mxu0 %v272_v13  ;;  %3861 = vmatpush.msra.mxu1 %v272_v13 }
  0x1d   :  { %3862 = vmatpush.msra.mxu2 %v272_v13  ;;  %3863 = vmatpush.msra.mxu3 %v272_v13  ;;  %v143_v13 = vld [vmem:[%s8885_s0 + $0x408] sm:$0xff] }
  0x1e   :  { %300 = vmatpush.msra.mxu0 %v271_v14  ;;  %3864 = vmatpush.msra.mxu1 %v271_v14 }
  0x1f   :  { %3865 = vmatpush.msra.mxu2 %v271_v14  ;;  %3866 = vmatpush.msra.mxu3 %v271_v14 }
  0x20   :  { %301 = vmatpush.msra.mxu0 %v270_v15  ;;  %3867 = vmatpush.msra.mxu1 %v270_v15 }
  0x21   :  { %302 = vmatmul.f32.vlgmr.msra.gmra.mxu0 %v14_v16  ;;  %3868 = vmatpush.msra.mxu2 %v270_v15 }
  0x22   :  { %3869 = vmatpush.msra.mxu3 %v270_v15  ;;  %494 = vmatmul.f32.vlgmr.msra.gmra.mxu1 %v78_v29  ;;  %v43_v15 = vld [vmem:[%s8885_s0 + $0xe8] sm:$0xff] }
  0x23   :  { %686 = vmatmul.f32.vlgmr.msra.gmra.mxu2 %v142_v8  ;;  %v52_v8 = vld [vmem:[%s8885_s0 + $0x130] sm:$0xff] }
  0x29   :  { %305 = vmatmul.f32.gmra.mxu0 %v15_v17  ;;  %v95_v17 = vld [vmem:[%s8885_s0 + $0x288] sm:$0xff] }
  0x2a   :  { %497 = vmatmul.f32.gmra.mxu1 %v79_v31 }
  0x2b   :  { %689 = vmatmul.f32.gmra.mxu2 %v143_v13  ;;  %v153_v13 = vld [vmem:[%s8885_s0 + $0x458] sm:$0xff] }
  0x31   :  { %308 = vmatmul.f32.gmra.mxu0 %v16_v18  ;;  %v144_v18 = vld [vmem:[%s8885_s0 + $0x410] sm:$0xff] }
  0x32   :  { %500 = vmatmul.f32.gmra.mxu1 %v80_v33  ;;  %v147_v33 = vld [vmem:[%s8885_s0 + $0x428] sm:$0xff] }
  0x33   :  { %692 = vmatmul.f32.gmra.mxu2 %v144_v18 }
  0x39   :  { %311 = vmatmul.f32.gmra.mxu0 %v17_v19 }
  0x3a   :  { %503 = vmatmul.f32.gmra.mxu1 %v81_v35  ;;  %v47_v35 = vld [vmem:[%s8885_s0 + $0x108] sm:$0xff] }
  0x41   :  { %314 = vmatmul.f32.gmra.mxu0 %v18_v20  ;;  %v44_v20 = vld [vmem:[%s8885_s0 + $0xf0] sm:$0xff] }
  0x42   :  { %506 = vmatmul.f32.gmra.mxu1 %v82_v38  ;;  %v99_v38 = vld [vmem:[%s8885_s0 + $0x2a8] sm:$0xff] }
  0x49   :  { %317 = vmatmul.f32.gmra.mxu0 %v19_v21 }
  0x4a   :  { %509 = vmatmul.f32.gmra.mxu1 %v83_v41 }
  0x51   :  { %320 = vmatmul.f32.gmra.mxu0 %v20_v22  ;;  %v96_v22 = vld [vmem:[%s8885_s0 + $0x290] sm:$0xff] }
  0x52   :  { %512 = vmatmul.f32.gmra.mxu1 %v84_v44 }
  0x59   :  { %323 = vmatmul.f32.gmra.mxu0 %v21_v23  ;;  %v145_v23 = vld [vmem:[%s8885_s0 + $0x418] sm:$0xff] }
  0x5a   :  { %515 = vmatmul.f32.gmra.mxu1 %v85_v47  ;;  %695 = vmatmul.f32.gmra.mxu2 %v145_v23  ;;  %v149_v47 = vld [vmem:[%s8885_s0 + $0x438] sm:$0xff] }
  0x61   :  { %326 = vmatmul.f32.gmra.mxu0 %v22_v24 }
  0x62   :  { %518 = vmatmul.f32.gmra.mxu1 %v86_v50  ;;  %v49_v50 = vld [vmem:[%s8885_s0 + $0x118] sm:$0xff] }
  0x69   :  { %329 = vmatmul.f32.gmra.mxu0 %v23_v25  ;;  %v45_v25 = vld [vmem:[%s8885_s0 + $0xf8] sm:$0xff] }
  0x6a   :  { %521 = vmatmul.f32.gmra.mxu1 %v87_v53  ;;  %v101_v53 = vld [vmem:[%s8885_s0 + $0x2b8] sm:$0xff] }
  0x71   :  { %332 = vmatmul.f32.gmra.mxu0 %v24_v26 }
  0x72   :  { %524 = vmatmul.f32.gmra.mxu1 %v88_v56 }
  0x79   :  { %335 = vmatmul.f32.gmra.mxu0 %v25_v27  ;;  %v97_v27 = vld [vmem:[%s8885_s0 + $0x298] sm:$0xff] }
  0x7a   :  { %527 = vmatmul.f32.gmra.mxu1 %v89_v59 }
  0x81   :  { %338 = vmatmul.f32.gmra.mxu0 %v26_v28  ;;  %v146_v28 = vld [vmem:[%s8885_s0 + $0x420] sm:$0xff] }
  0x82   :  { %530 = vmatmul.f32.gmra.mxu1 %v90_v62  ;;  %698 = vmatmul.f32.gmra.mxu2 %v146_v28  ;;  %v151_v62 = vld [vmem:[%s8885_s0 + $0x448] sm:$0xff]  ;;  %v106_v28 = vld [vmem:[%s8885_s0 + $0x2e0] sm:$0xff] }
  0x89   :  { %341 = vmatmul.f32.gmra.mxu0 %v27_v30  ;;  %v46_v30 = vld [vmem:[%s8885_s0 + $0x100] sm:$0xff] }
  0x8a   :  { %533 = vmatmul.f32.gmra.mxu1 %v91_v1  ;;  %701 = vmatmul.f32.gmra.mxu2 %v147_v33  ;;  %v51_v1 = vld [vmem:[%s8885_s0 + $0x128] sm:$0xff] }
  0x8b   :  { %v55_v33 = vld [vmem:[%s8885_s0 + $0x148] sm:$0xff] }
  0x91   :  { %344 = vmatmul.f32.gmra.mxu0 %v28_v32  ;;  %v98_v32 = vld [vmem:[%s8885_s0 + $0x2a0] sm:$0xff] }
  0x92   :  { %536 = vmatmul.f32.gmra.mxu1 %v92_v4  ;;  %v103_v4 = vld [vmem:[%s8885_s0 + $0x2c8] sm:$0xff] }
  0x99   :  { %347 = vmatmul.f32.gmra.mxu0 %v29_v34 }
  0x9a   :  { %539 = vmatmul.f32.gmra.mxu1 %v93_v7 }
  0x9e   :  { %v4004_v36 = vpop.f32.mrf.mxu0 }
  0x9f   :  { %9570 = vst [vmem:[#allocation3_spill] sm:$0xff] %v4004_v36  ;;  %v4108_v11 = vpop.f32.mrf.mxu1 }
  0xa0   :  { %9583 = vst [vmem:[#allocation16_spill] sm:$0xff] %v4108_v11 }
  0xa1   :  { %350 = vmatmul.f32.gmra.mxu0 %v30_v37 }
  0xa2   :  { %542 = vmatmul.f32.gmra.mxu1 %v94_v12  ;;  %v104_v12 = vld [vmem:[%s8885_s0 + $0x2d0] sm:$0xff] }
  0xa6   :  { %v4012_v39 = vpop.f32.mrf.mxu0 }
  0xa7   :  { %9571 = vst [vmem:[#allocation4_spill] sm:$0xff] %v4012_v39  ;;  %v4121_v16 = vpop.f32.mrf.mxu1 }
  0xa8   :  { %9585 = vst [vmem:[#allocation18_spill] sm:$0xff] %v4121_v16 }
  0xa9   :  { %353 = vmatmul.f32.gmra.mxu0 %v31_v40  ;;  %v148_v40 = vld [vmem:[%s8885_s0 + $0x430] sm:$0xff] }
  0xaa   :  { %545 = vmatmul.f32.gmra.mxu1 %v95_v17  ;;  %704 = vmatmul.f32.gmra.mxu2 %v148_v40  ;;  %v53_v17 = vld [vmem:[%s8885_s0 + $0x138] sm:$0xff]  ;;  %v156_v40 = vld [vmem:[%s8885_s0 + $0x470] sm:$0xff] }
  0xae   :  { %v4020_v42 = vpop.f32.mrf.mxu0 }
  0xaf   :  { %9572 = vst [vmem:[#allocation5_spill] sm:$0xff] %v4020_v42  ;;  %v4134_v21 = vpop.f32.mrf.mxu1 }
  0xb0   :  { %9587 = vst [vmem:[#allocation20_spill] sm:$0xff] %v4134_v21 }
  0xb1   :  { %356 = vmatmul.f32.gmra.mxu0 %v32_v43  ;;  %v48_v43 = vld [vmem:[%s8885_s0 + $0x110] sm:$0xff] }
  0xb2   :  { %548 = vmatmul.f32.gmra.mxu1 %v96_v22  ;;  %707 = vmatmul.f32.gmra.mxu2 %v149_v47  ;;  %v154_v22 = vld [vmem:[%s8885_s0 + $0x460] sm:$0xff] }
  0xb6   :  { %v4028_v45 = vpop.f32.mrf.mxu0 }
  0xb7   :  { %9573 = vst [vmem:[#allocation6_spill] sm:$0xff] %v4028_v45  ;;  %v4147_v26 = vpop.f32.mrf.mxu1 }
  0xb8   :  { %9589 = vst [vmem:[#allocation22_spill] sm:$0xff] %v4147_v26 }
  0xb9   :  { %359 = vmatmul.f32.gmra.mxu0 %v33_v46  ;;  %v100_v46 = vld [vmem:[%s8885_s0 + $0x2b0] sm:$0xff] }
  0xba   :  { %551 = vmatmul.f32.gmra.mxu1 %v97_v27 }
  0xbe   :  { %v4036_v48 = vpop.f32.mrf.mxu0 }
  0xbf   :  { %9574 = vst [vmem:[#allocation7_spill] sm:$0xff] %v4036_v48  ;;  %v4160_v31 = vpop.f32.mrf.mxu1 }
  0xc0   :  { %9591 = vst [vmem:[#allocation24_spill] sm:$0xff] %v4160_v31  ;;  %v1337_v31 = vmul.f32 %v4036_v48, %v4036_v48 }
  0xc1   :  { %362 = vmatmul.f32.gmra.mxu0 %v34_v49 }
  0xc2   :  { %554 = vmatmul.f32.gmra.mxu1 %v98_v32 }
  0xc6   :  { %v4044_v51 = vpop.f32.mrf.mxu0 }
  0xc7   :  { %9575 = vst [vmem:[#allocation8_spill] sm:$0xff] %v4044_v51  ;;  %v4173_v37 = vpop.f32.mrf.mxu1 }
  0xc8   :  { %9593 = vst [vmem:[#allocation26_spill] sm:$0xff] %v4173_v37 }
  0xc9   :  { %365 = vmatmul.f32.gmra.mxu0 %v35_v52 }
  0xca   :  { %557 = vmatmul.f32.gmra.mxu1 %v99_v38  ;;  %v107_v38 = vld [vmem:[%s8885_s0 + $0x2e8] sm:$0xff] }
  0xce   :  { %v4052_v54 = vpop.f32.mrf.mxu0 }
  0xcf   :  { %9576 = vst [vmem:[#allocation9_spill] sm:$0xff] %v4052_v54  ;;  %v4186_v44 = vpop.f32.mrf.mxu1 }
  0xd0   :  { %9595 = vst [vmem:[#allocation28_spill] sm:$0xff] %v4186_v44 }
  0xd1   :  { %368 = vmatmul.f32.gmra.mxu0 %v36_v55  ;;  %v150_v55 = vld [vmem:[%s8885_s0 + $0x440] sm:$0xff] }
  0xd2   :  { %560 = vmatmul.f32.gmra.mxu1 %v100_v46  ;;  %710 = vmatmul.f32.gmra.mxu2 %v150_v55  ;;  %v56_v46 = vld [vmem:[%s8885_s0 + $0x150] sm:$0xff] }
  0xd6   :  { %v4060_v57 = vpop.f32.mrf.mxu0 }
  0xd7   :  { %9577 = vst [vmem:[#allocation10_spill] sm:$0xff] %v4060_v57  ;;  %v4199_v52 = vpop.f32.mrf.mxu1 }
  0xd8   :  { %9597 = vst [vmem:[#allocation30_spill] sm:$0xff] %v4199_v52  ;;  %v1336_v52 = vmul.f32 %v4028_v45, %v4028_v45 }
  0xd9   :  { %371 = vmatmul.f32.gmra.mxu0 %v37_v58  ;;  %v50_v58 = vld [vmem:[%s8885_s0 + $0x120] sm:$0xff] }
  0xda   :  { %563 = vmatmul.f32.gmra.mxu1 %v101_v53  ;;  %713 = vmatmul.f32.gmra.mxu2 %v151_v62  ;;  %v157_v53 = vld [vmem:[%s8885_s0 + $0x478] sm:$0xff] }
  0xdb   :  { %v109_v62 = vld [vmem:[%s8885_s0 + $0x2f8] sm:$0xff] }
  0xde   :  { %v4068_v60 = vpop.f32.mrf.mxu0 }
  0xdf   :  { %9578 = vst [vmem:[#allocation11_spill] sm:$0xff] %v4068_v60  ;;  %v4212_v59 = vpop.f32.mrf.mxu1 }
  0xe0   :  { %9599 = vst [vmem:[#allocation32_spill] sm:$0xff] %v4212_v59 }
  0xe1   :  { %374 = vmatmul.f32.gmra.mxu0 %v38_v61  ;;  %v102_v61 = vld [vmem:[%s8885_s0 + $0x2c0] sm:$0xff] }
  0xe2   :  { %566 = vmatmul.f32.gmra.mxu1 %v102_v61 }
  0xe6   :  { %v4076_v63 = vpop.f32.mrf.mxu0 }
  0xe7   :  { %9579 = vst [vmem:[#allocation12_spill] sm:$0xff] %v4076_v63 }
  0xe9   :  { %377 = vmatmul.f32.gmra.mxu0 %v39_v0 }
  0xea   :  { %569 = vmatmul.f32.gmra.mxu1 %v103_v4  ;;  %v206_v4 = vld [vmem:[%s8885_s0 + $0x600] sm:$0xff] }
  0xeb   :  { %878 = vmatmul.f32.vlgmr.msra.gmra.mxu3 %v206_v4  ;;  %v161_v4 = vld [vmem:[%s8885_s0 + $0x498] sm:$0xff] }
  0xee   :  { %v4084_v2 = vpop.f32.mrf.mxu0 }
  0xef   :  { %9580 = vst [vmem:[#allocation13_spill] sm:$0xff] %v4084_v2 }
  0xf1   :  { %380 = vmatmul.f32.gmra.mxu0 %v40_v3  ;;  %v4225_v3 = vpop.f32.mrf.mxu1 }
  0xf2   :  { %9601 = vst [vmem:[#allocation34_spill] sm:$0xff] %v4225_v3  ;;  %572 = vmatmul.f32.gmra.mxu1 %v104_v12  ;;  %v129_v3 = vld [vmem:[%s8885_s0 + $0x398] sm:$0xff] }
  0xf6   :  { %v4092_v5 = vpop.f32.mrf.mxu0 }
  0xf7   :  { %9581 = vst [vmem:[#allocation14_spill] sm:$0xff] %v4092_v5 }
  0xf9   :  { %383 = vmatmul.f32.gmra.mxu0 %v41_v6  ;;  %v152_v6 = vld [vmem:[%s8885_s0 + $0x450] sm:$0xff] }
  0xfa   :  { %716 = vmatmul.f32.gmra.mxu2 %v152_v6 }
  0xfe   :  { %v4103_v9 = vpop.f32.mrf.mxu0 }
  0xff   :  { %9582 = vst [vmem:[#allocation15_spill] sm:$0xff] %v4103_v9 }
 0x101   :  { %386 = vmatmul.f32.gmra.mxu0 %v42_v10  ;;  %v4238_v10 = vpop.f32.mrf.mxu1 }
 0x102   :  { %9603 = vst [vmem:[#allocation36_spill] sm:$0xff] %v4238_v10  ;;  %719 = vmatmul.f32.gmra.mxu2 %v153_v13  ;;  %v4321_v13 = vpop.f32.mrf.mxu2  ;;  %v128_v10 = vld [vmem:[%s8885_s0 + $0x390] sm:$0xff] }
 0x103   :  { %9616 = vst [vmem:[#allocation49_spill] sm:$0xff] %v4321_v13 }
 0x106   :  { %v4116_v14 = vpop.f32.mrf.mxu0 }
 0x107   :  { %9584 = vst [vmem:[#allocation17_spill] sm:$0xff] %v4116_v14 }
 0x109   :  { %389 = vmatmul.f32.gmra.mxu0 %v43_v15  ;;  %v4251_v18 = vpop.f32.mrf.mxu1 }
 0x10a   :  { %9605 = vst [vmem:[#allocation38_spill] sm:$0xff] %v4251_v18  ;;  %722 = vmatmul.f32.gmra.mxu2 %v154_v22  ;;  %v207_v22 = vld [vmem:[%s8885_s0 + $0x608] sm:$0xff] }
 0x10b   :  { %881 = vmatmul.f32.gmra.mxu3 %v207_v22  ;;  %v127_v18 = vld [vmem:[%s8885_s0 + $0x388] sm:$0xff] }
 0x10e   :  { %v4129_v19 = vpop.f32.mrf.mxu0 }
 0x10f   :  { %9586 = vst [vmem:[#allocation19_spill] sm:$0xff] %v4129_v19 }
 0x111   :  { %392 = vmatmul.f32.gmra.mxu0 %v44_v20  ;;  %v105_v20 = vld [vmem:[%s8885_s0 + $0x2d8] sm:$0xff]  ;;  %v4264_v27 = vpop.f32.mrf.mxu1 }
 0x112   :  { %575 = vmatmul.f32.gmra.mxu1 %v105_v20  ;;  %9607 = vst [vmem:[#allocation40_spill] sm:$0xff] %v4264_v27  ;;  %v159_v20 = vld [vmem:[%s8885_s0 + $0x488] sm:$0xff]  ;;  %v126_v27 = vld [vmem:[%s8885_s0 + $0x380] sm:$0xff] }
 0x116   :  { %v4142_v24 = vpop.f32.mrf.mxu0 }
 0x117   :  { %9588 = vst [vmem:[#allocation21_spill] sm:$0xff] %v4142_v24 }
 0x119   :  { %395 = vmatmul.f32.gmra.mxu0 %v45_v25  ;;  %v54_v25 = vld [vmem:[%s8885_s0 + $0x140] sm:$0xff] }
 0x11a   :  { %578 = vmatmul.f32.gmra.mxu1 %v106_v28  ;;  %v59_v28 = vld [vmem:[%s8885_s0 + $0x168] sm:$0xff] }
 0x11e   :  { %v4155_v29 = vpop.f32.mrf.mxu0 }
 0x11f   :  { %9590 = vst [vmem:[#allocation23_spill] sm:$0xff] %v4155_v29 }
 0x121   :  { %398 = vmatmul.f32.gmra.mxu0 %v46_v30  ;;  %v155_v30 = vld [vmem:[%s8885_s0 + $0x468] sm:$0xff] }
 0x122   :  { %725 = vmatmul.f32.gmra.mxu2 %v155_v30  ;;  %581 = vmatmul.f32.gmra.mxu1 %v107_v38  ;;  %v111_v38 = vld [vmem:[%s8885_s0 + $0x308] sm:$0xff] }
 0x126   :  { %v4168_v34 = vpop.f32.mrf.mxu0 }
 0x127   :  { %9592 = vst [vmem:[#allocation25_spill] sm:$0xff] %v4168_v34 }
 0x129   :  { %401 = vmatmul.f32.gmra.mxu0 %v47_v35  ;;  %v4277_v35 = vpop.f32.mrf.mxu1 }
 0x12a   :  { %9609 = vst [vmem:[#allocation42_spill] sm:$0xff] %v4277_v35  ;;  %728 = vmatmul.f32.gmra.mxu2 %v156_v40  ;;  %v160_v40 = vld [vmem:[%s8885_s0 + $0x490] sm:$0xff] }
 0x12e   :  { %v4181_v41 = vpop.f32.mrf.mxu0 }
 0x12f   :  { %9594 = vst [vmem:[#allocation27_spill] sm:$0xff] %v4181_v41 }
 0x131   :  { %404 = vmatmul.f32.gmra.mxu0 %v48_v43  ;;  %v4290_v47 = vpop.f32.mrf.mxu1 }
 0x132   :  { %9611 = vst [vmem:[#allocation44_spill] sm:$0xff] %v4290_v47  ;;  %731 = vmatmul.f32.gmra.mxu2 %v157_v53  ;;  %v60_v53 = vld [vmem:[%s8885_s0 + $0x170] sm:$0xff] }
 0x136   :  { %v4194_v49 = vpop.f32.mrf.mxu0 }
 0x137   :  { %9596 = vst [vmem:[#allocation29_spill] sm:$0xff] %v4194_v49 }
 0x139   :  { %407 = vmatmul.f32.gmra.mxu0 %v49_v50  ;;  %v108_v50 = vld [vmem:[%s8885_s0 + $0x2f0] sm:$0xff]  ;;  %v4303_v61 = vpop.f32.mrf.mxu1 }
 0x13a   :  { %584 = vmatmul.f32.gmra.mxu1 %v108_v50  ;;  %9613 = vst [vmem:[#allocation46_spill] sm:$0xff] %v4303_v61 }
 0x13e   :  { %v4207_v56 = vpop.f32.mrf.mxu0 }
 0x13f   :  { %9598 = vst [vmem:[#allocation31_spill] sm:$0xff] %v4207_v56 }
 0x141   :  { %410 = vmatmul.f32.gmra.mxu0 %v50_v58  ;;  %v57_v58 = vld [vmem:[%s8885_s0 + $0x158] sm:$0xff]  ;;  %v4319_v12 = vpop.f32.mrf.mxu1 }
 0x142   :  { %587 = vmatmul.f32.gmra.mxu1 %v109_v62  ;;  %9615 = vst [vmem:[#allocation48_spill] sm:$0xff] %v4319_v12 }
 0x146   :  { %v4220_v0 = vpop.f32.mrf.mxu0 }
 0x147   :  { %9600 = vst [vmem:[#allocation33_spill] sm:$0xff] %v4220_v0 }
 0x149   :  { %413 = vmatmul.f32.gmra.mxu0 %v51_v1  ;;  %v158_v1 = vld [vmem:[%s8885_s0 + $0x480] sm:$0xff]  ;;  %v4337_v30 = vpop.f32.mrf.mxu1 }
 0x14a   :  { %734 = vmatmul.f32.gmra.mxu2 %v158_v1  ;;  %9618 = vst [vmem:[#allocation51_spill] sm:$0xff] %v4337_v30  ;;  %v112_v1 = vld [vmem:[%s8885_s0 + $0x310] sm:$0xff] }
 0x14e   :  { %v4233_v7 = vpop.f32.mrf.mxu0 }
 0x14f   :  { %9602 = vst [vmem:[#allocation35_spill] sm:$0xff] %v4233_v7 }
 0x151   :  { %416 = vmatmul.f32.gmra.mxu0 %v52_v8  ;;  %v58_v8 = vld [vmem:[%s8885_s0 + $0x160] sm:$0xff] }
 0x152   :  { %737 = vmatmul.f32.gmra.mxu2 %v159_v20  ;;  %v61_v20 = vld [vmem:[%s8885_s0 + $0x178] sm:$0xff] }
 0x156   :  { %v4246_v15 = vpop.f32.mrf.mxu0 }
 0x157   :  { %9604 = vst [vmem:[#allocation37_spill] sm:$0xff] %v4246_v15 }
 0x159   :  { %419 = vmatmul.f32.gmra.mxu0 %v53_v17  ;;  %v110_v17 = vld [vmem:[%s8885_s0 + $0x300] sm:$0xff] }
 0x15a   :  { %590 = vmatmul.f32.gmra.mxu1 %v110_v17  ;;  %740 = vmatmul.f32.gmra.mxu2 %v160_v40  ;;  %v162_v40 = vld [vmem:[%s8885_s0 + $0x4a0] sm:$0xff] }
 0x15e   :  { %v4259_v23 = vpop.f32.mrf.mxu0 }
 0x15f   :  { %9606 = vst [vmem:[#allocation39_spill] sm:$0xff] %v4259_v23 }
 0x161   :  { %422 = vmatmul.f32.gmra.mxu0 %v54_v25 }
 0x162   :  { %593 = vmatmul.f32.gmra.mxu1 %v111_v38  ;;  %743 = vmatmul.f32.gmra.mxu2 %v161_v4  ;;  %v113_v38 = vld [vmem:[%s8885_s0 + $0x318] sm:$0xff] }
 0x166   :  { %v4272_v32 = vpop.f32.mrf.mxu0 }
 0x167   :  { %9608 = vst [vmem:[#allocation41_spill] sm:$0xff] %v4272_v32 }
 0x169   :  { %425 = vmatmul.f32.gmra.mxu0 %v55_v33  ;;  %v4339_v33 = vpop.f32.mrf.mxu2 }
 0x16a   :  { %9619 = vst [vmem:[#allocation52_spill] sm:$0xff] %v4339_v33  ;;  %596 = vmatmul.f32.gmra.mxu1 %v112_v1  ;;  %746 = vmatmul.f32.gmra.mxu2 %v162_v40  ;;  %v62_v1 = vld [vmem:[%s8885_s0 + $0x180] sm:$0xff]  ;;  %v211_v40 = vld [vmem:[%s8885_s0 + $0x628] sm:$0xff] }
 0x16e   :  { %v4285_v43 = vpop.f32.mrf.mxu0 }
 0x16f   :  { %9610 = vst [vmem:[#allocation43_spill] sm:$0xff] %v4285_v43 }
 0x171   :  { %428 = vmatmul.f32.gmra.mxu0 %v56_v46  ;;  %v208_v46 = vld [vmem:[%s8885_s0 + $0x610] sm:$0xff]  ;;  %v4357_v62 = vpop.f32.mrf.mxu2 }
 0x172   :  { %884 = vmatmul.f32.gmra.mxu3 %v208_v46  ;;  %9622 = vst [vmem:[#allocation55_spill] sm:$0xff] %v4357_v62  ;;  %599 = vmatmul.f32.gmra.mxu1 %v113_v38  ;;  %v210_v46 = vld [vmem:[%s8885_s0 + $0x620] sm:$0xff]  ;;  %v163_v38 = vld [vmem:[%s8885_s0 + $0x4a8] sm:$0xff] }
 0x173   :  { %749 = vmatmul.f32.gmra.mxu2 %v163_v38  ;;  %v164_v38 = vld [vmem:[%s8885_s0 + $0x4b0] sm:$0xff] }
 0x176   :  { %v4298_v55 = vpop.f32.mrf.mxu0 }
 0x177   :  { %9612 = vst [vmem:[#allocation45_spill] sm:$0xff] %v4298_v55 }
 0x179   :  { %431 = vmatmul.f32.gmra.mxu0 %v57_v58  ;;  %v4355_v58 = vpop.f32.mrf.mxu1 }
 0x17a   :  { %9621 = vst [vmem:[#allocation54_spill] sm:$0xff] %v4355_v58 }
 0x17b   :  { %752 = vmatmul.f32.gmra.mxu2 %v164_v38  ;;  %v165_v38 = vld [vmem:[%s8885_s0 + $0x4b8] sm:$0xff] }
 0x17e   :  { %v4314_v6 = vpop.f32.mrf.mxu0 }
 0x17f   :  { %9614 = vst [vmem:[#allocation47_spill] sm:$0xff] %v4314_v6 }
 0x181   :  { %434 = vmatmul.f32.gmra.mxu0 %v58_v8  ;;  %v209_v8 = vld [vmem:[%s8885_s0 + $0x618] sm:$0xff]  ;;  %v4373_v22 = vpop.f32.mrf.mxu1 }
 0x182   :  { %887 = vmatmul.f32.gmra.mxu3 %v209_v8  ;;  %9624 = vst [vmem:[#allocation57_spill] sm:$0xff] %v4373_v22 }
 0x183   :  { %755 = vmatmul.f32.gmra.mxu2 %v165_v38  ;;  %v166_v38 = vld [vmem:[%s8885_s0 + $0x4c0] sm:$0xff] }
 0x186   :  { %v4332_v25 = vpop.f32.mrf.mxu0 }
 0x187   :  { %9617 = vst [vmem:[#allocation50_spill] sm:$0xff] %v4332_v25 }
 0x189   :  { %437 = vmatmul.f32.gmra.mxu0 %v59_v28  ;;  %v4375_v28 = vpop.f32.mrf.mxu2  ;;  %v4391_v4 = vpop.f32.mrf.mxu1 }
 0x18a   :  { %9625 = vst [vmem:[#allocation58_spill] sm:$0xff] %v4375_v28  ;;  %890 = vmatmul.f32.gmra.mxu3 %v210_v46 }
 0x18b   :  { %9627 = vst [vmem:[#allocation60_spill] sm:$0xff] %v4391_v4  ;;  %758 = vmatmul.f32.gmra.mxu2 %v166_v38  ;;  %v167_v38 = vld [vmem:[%s8885_s0 + $0x4c8] sm:$0xff] }
 0x18e   :  { %v4350_v50 = vpop.f32.mrf.mxu0 }
 0x18f   :  { %9620 = vst [vmem:[#allocation53_spill] sm:$0xff] %v4350_v50 }
 0x191   :  { %440 = vmatmul.f32.gmra.mxu0 %v60_v53  ;;  %v4393_v8 = vpop.f32.mrf.mxu2  ;;  %v4409_v28 = vpop.f32.mrf.mxu1 }
 0x192   :  { %9628 = vst [vmem:[#allocation61_spill] sm:$0xff] %v4393_v8  ;;  %893 = vmatmul.f32.gmra.mxu3 %v211_v40  ;;  %v63_v8 = vld [vmem:[%s8885_s0 + $0x188] sm:$0xff]  ;;  %v212_v40 = vld [vmem:[%s8885_s0 + $0x630] sm:$0xff] }
 0x193   :  { %9630 = vst [vmem:[#allocation63_spill] sm:$0xff] %v4409_v28  ;;  %761 = vmatmul.f32.gmra.mxu2 %v167_v38  ;;  %v168_v38 = vld [vmem:[%s8885_s0 + $0x4d0] sm:$0xff] }
 0x196   :  { %v4368_v17 = vpop.f32.mrf.mxu0 }
 0x197   :  { %9623 = vst [vmem:[#allocation56_spill] sm:$0xff] %v4368_v17 }
 0x199   :  { %443 = vmatmul.f32.gmra.mxu0 %v61_v20  ;;  %v114_v20 = vld [vmem:[%s8885_s0 + $0x320] sm:$0xff]  ;;  %v4427_v33 = vpop.f32.mrf.mxu1 }
 0x19a   :  { %602 = vmatmul.f32.gmra.mxu1 %v114_v20  ;;  %v115_v20 = vld [vmem:[%s8885_s0 + $0x328] sm:$0xff]  ;;  %896 = vmatmul.f32.gmra.mxu3 %v212_v40  ;;  %9633 = vst [vmem:[#allocation66_spill] sm:$0xff] %v4427_v33  ;;  %v213_v40 = vld [vmem:[%s8885_s0 + $0x638] sm:$0xff] }
 0x19b   :  { %764 = vmatmul.f32.gmra.mxu2 %v168_v38  ;;  %v169_v38 = vld [vmem:[%s8885_s0 + $0x4d8] sm:$0xff] }
 0x19e   :  { %v4386_v53 = vpop.f32.mrf.mxu0 }
 0x19f   :  { %9626 = vst [vmem:[#allocation59_spill] sm:$0xff] %v4386_v53 }
 0x1a1   :  { %446 = vmatmul.f32.gmra.mxu0 %v62_v1  ;;  %v4411_v1 = vpop.f32.mrf.mxu2  ;;  %v4445_v33 = vpop.f32.mrf.mxu1 }
 0x1a2   :  { %9631 = vst [vmem:[#allocation64_spill] sm:$0xff] %v4411_v1  ;;  %605 = vmatmul.f32.gmra.mxu1 %v115_v20  ;;  %v64_v1 = vld [vmem:[%s8885_s0 + $0x190] sm:$0xff]  ;;  %899 = vmatmul.f32.gmra.mxu3 %v213_v40  ;;  %v214_v40 = vld [vmem:[%s8885_s0 + $0x640] sm:$0xff] }
 0x1a3   :  { %v116_v20 = vld [vmem:[%s8885_s0 + $0x330] sm:$0xff]  ;;  %9636 = vst [vmem:[#allocation69_spill] sm:$0xff] %v4445_v33  ;;  %767 = vmatmul.f32.gmra.mxu2 %v169_v38  ;;  %v170_v38 = vld [vmem:[%s8885_s0 + $0x4e0] sm:$0xff] }
 0x1a6   :  { %v4404_v46 = vpop.f32.mrf.mxu0 }
 0x1a7   :  { %9629 = vst [vmem:[#allocation62_spill] sm:$0xff] %v4404_v46 }
 0x1a9   :  { %449 = vmatmul.f32.gmra.mxu0 %v63_v8  ;;  %v4429_v8 = vpop.f32.mrf.mxu2  ;;  %v4463_v33 = vpop.f32.mrf.mxu1 }
 0x1aa   :  { %9634 = vst [vmem:[#allocation67_spill] sm:$0xff] %v4429_v8  ;;  %608 = vmatmul.f32.gmra.mxu1 %v116_v20  ;;  %v65_v8 = vld [vmem:[%s8885_s0 + $0x198] sm:$0xff]  ;;  %902 = vmatmul.f32.gmra.mxu3 %v214_v40  ;;  %v215_v40 = vld [vmem:[%s8885_s0 + $0x648] sm:$0xff] }
 0x1ab   :  { %v117_v20 = vld [vmem:[%s8885_s0 + $0x338] sm:$0xff]  ;;  %9639 = vst [vmem:[#allocation72_spill] sm:$0xff] %v4463_v33  ;;  %770 = vmatmul.f32.gmra.mxu2 %v170_v38  ;;  %v171_v38 = vld [vmem:[%s8885_s0 + $0x4e8] sm:$0xff] }
 0x1ae   :  { %v4422_v62 = vpop.f32.mrf.mxu0 }
 0x1af   :  { %9632 = vst [vmem:[#allocation65_spill] sm:$0xff] %v4422_v62 }
 0x1b1   :  { %452 = vmatmul.f32.gmra.mxu0 %v64_v1  ;;  %v4447_v1 = vpop.f32.mrf.mxu2  ;;  %v4481_v33 = vpop.f32.mrf.mxu1 }
 0x1b2   :  { %9637 = vst [vmem:[#allocation70_spill] sm:$0xff] %v4447_v1  ;;  %611 = vmatmul.f32.gmra.mxu1 %v117_v20  ;;  %v66_v1 = vld [vmem:[%s8885_s0 + $0x1a0] sm:$0xff]  ;;  %905 = vmatmul.f32.gmra.mxu3 %v215_v40  ;;  %v216_v40 = vld [vmem:[%s8885_s0 + $0x650] sm:$0xff] }
 0x1b3   :  { %v118_v20 = vld [vmem:[%s8885_s0 + $0x340] sm:$0xff]  ;;  %9642 = vst [vmem:[#allocation75_spill] sm:$0xff] %v4481_v33  ;;  %773 = vmatmul.f32.gmra.mxu2 %v171_v38  ;;  %v172_v38 = vld [vmem:[%s8885_s0 + $0x4f0] sm:$0xff] }
 0x1b6   :  { %v4440_v13 = vpop.f32.mrf.mxu0 }
 0x1b7   :  { %9635 = vst [vmem:[#allocation68_spill] sm:$0xff] %v4440_v13 }
 0x1b9   :  { %455 = vmatmul.f32.gmra.mxu0 %v65_v8  ;;  %v4465_v8 = vpop.f32.mrf.mxu2  ;;  %v4499_v33 = vpop.f32.mrf.mxu1 }
 0x1ba   :  { %9640 = vst [vmem:[#allocation73_spill] sm:$0xff] %v4465_v8  ;;  %614 = vmatmul.f32.gmra.mxu1 %v118_v20  ;;  %v67_v8 = vld [vmem:[%s8885_s0 + $0x1a8] sm:$0xff]  ;;  %908 = vmatmul.f32.gmra.mxu3 %v216_v40  ;;  %v217_v40 = vld [vmem:[%s8885_s0 + $0x658] sm:$0xff] }
 0x1bb   :  { %v119_v20 = vld [vmem:[%s8885_s0 + $0x348] sm:$0xff]  ;;  %9645 = vst [vmem:[#allocation78_spill] sm:$0xff] %v4499_v33  ;;  %776 = vmatmul.f32.gmra.mxu2 %v172_v38  ;;  %v173_v38 = vld [vmem:[%s8885_s0 + $0x4f8] sm:$0xff] }
 0x1be   :  { %v4458_v28 = vpop.f32.mrf.mxu0 }
 0x1bf   :  { %9638 = vst [vmem:[#allocation71_spill] sm:$0xff] %v4458_v28 }
 0x1c1   :  { %458 = vmatmul.f32.gmra.mxu0 %v66_v1  ;;  %v4483_v1 = vpop.f32.mrf.mxu2  ;;  %v4517_v33 = vpop.f32.mrf.mxu1 }
 0x1c2   :  { %9643 = vst [vmem:[#allocation76_spill] sm:$0xff] %v4483_v1  ;;  %617 = vmatmul.f32.gmra.mxu1 %v119_v20  ;;  %v68_v1 = vld [vmem:[%s8885_s0 + $0x1b0] sm:$0xff]  ;;  %911 = vmatmul.f32.gmra.mxu3 %v217_v40  ;;  %v218_v40 = vld [vmem:[%s8885_s0 + $0x660] sm:$0xff] }
 0x1c3   :  { %v120_v20 = vld [vmem:[%s8885_s0 + $0x350] sm:$0xff]  ;;  %9648 = vst [vmem:[#allocation81_spill] sm:$0xff] %v4517_v33  ;;  %779 = vmatmul.f32.gmra.mxu2 %v173_v38  ;;  %v174_v38 = vld [vmem:[%s8885_s0 + $0x500] sm:$0xff] }
 0x1c6   :  { %v4476_v4 = vpop.f32.mrf.mxu0 }
 0x1c7   :  { %9641 = vst [vmem:[#allocation74_spill] sm:$0xff] %v4476_v4 }
 0x1c9   :  { %461 = vmatmul.f32.gmra.mxu0 %v67_v8  ;;  %v4501_v8 = vpop.f32.mrf.mxu2  ;;  %v4535_v33 = vpop.f32.mrf.mxu1 }
 0x1ca   :  { %9646 = vst [vmem:[#allocation79_spill] sm:$0xff] %v4501_v8  ;;  %620 = vmatmul.f32.gmra.mxu1 %v120_v20  ;;  %v69_v8 = vld [vmem:[%s8885_s0 + $0x1b8] sm:$0xff]  ;;  %914 = vmatmul.f32.gmra.mxu3 %v218_v40  ;;  %v219_v40 = vld [vmem:[%s8885_s0 + $0x668] sm:$0xff] }
 0x1cb   :  { %v121_v20 = vld [vmem:[%s8885_s0 + $0x358] sm:$0xff]  ;;  %9651 = vst [vmem:[#allocation84_spill] sm:$0xff] %v4535_v33  ;;  %782 = vmatmul.f32.gmra.mxu2 %v174_v38  ;;  %v175_v38 = vld [vmem:[%s8885_s0 + $0x508] sm:$0xff] }
 0x1ce   :  { %v4494_v22 = vpop.f32.mrf.mxu0 }
 0x1cf   :  { %9644 = vst [vmem:[#allocation77_spill] sm:$0xff] %v4494_v22 }
 0x1d1   :  { %464 = vmatmul.f32.gmra.mxu0 %v68_v1  ;;  %v4519_v1 = vpop.f32.mrf.mxu2  ;;  %v4553_v33 = vpop.f32.mrf.mxu1 }
 0x1d2   :  { %9649 = vst [vmem:[#allocation82_spill] sm:$0xff] %v4519_v1  ;;  %623 = vmatmul.f32.gmra.mxu1 %v121_v20  ;;  %v70_v1 = vld [vmem:[%s8885_s0 + $0x1c0] sm:$0xff]  ;;  %917 = vmatmul.f32.gmra.mxu3 %v219_v40  ;;  %v220_v40 = vld [vmem:[%s8885_s0 + $0x670] sm:$0xff] }
 0x1d3   :  { %v122_v20 = vld [vmem:[%s8885_s0 + $0x360] sm:$0xff]  ;;  %9654 = vst [vmem:[#allocation87_spill] sm:$0xff] %v4553_v33  ;;  %785 = vmatmul.f32.gmra.mxu2 %v175_v38  ;;  %v176_v38 = vld [vmem:[%s8885_s0 + $0x510] sm:$0xff] }
 0x1d6   :  { %v4512_v58 = vpop.f32.mrf.mxu0 }
 0x1d7   :  { %9647 = vst [vmem:[#allocation80_spill] sm:$0xff] %v4512_v58 }
 0x1d9   :  { %467 = vmatmul.f32.gmra.mxu0 %v69_v8  ;;  %v4537_v8 = vpop.f32.mrf.mxu2  ;;  %v4571_v33 = vpop.f32.mrf.mxu1 }
 0x1da   :  { %9652 = vst [vmem:[#allocation85_spill] sm:$0xff] %v4537_v8  ;;  %626 = vmatmul.f32.gmra.mxu1 %v122_v20  ;;  %v71_v8 = vld [vmem:[%s8885_s0 + $0x1c8] sm:$0xff]  ;;  %920 = vmatmul.f32.gmra.mxu3 %v220_v40  ;;  %v221_v40 = vld [vmem:[%s8885_s0 + $0x678] sm:$0xff] }
 0x1db   :  { %v123_v20 = vld [vmem:[%s8885_s0 + $0x368] sm:$0xff]  ;;  %9657 = vst [vmem:[#allocation90_spill] sm:$0xff] %v4571_v33  ;;  %788 = vmatmul.f32.gmra.mxu2 %v176_v38  ;;  %v177_v38 = vld [vmem:[%s8885_s0 + $0x518] sm:$0xff] }
 0x1de   :  { %v4530_v30 = vpop.f32.mrf.mxu0 }
 0x1df   :  { %9650 = vst [vmem:[#allocation83_spill] sm:$0xff] %v4530_v30 }
 0x1e1   :  { %470 = vmatmul.f32.gmra.mxu0 %v70_v1  ;;  %v4555_v1 = vpop.f32.mrf.mxu2  ;;  %v4589_v33 = vpop.f32.mrf.mxu1 }
 0x1e2   :  { %9655 = vst [vmem:[#allocation88_spill] sm:$0xff] %v4555_v1  ;;  %629 = vmatmul.f32.gmra.mxu1 %v123_v20  ;;  %v72_v1 = vld [vmem:[%s8885_s0 + $0x1d0] sm:$0xff]  ;;  %923 = vmatmul.f32.gmra.mxu3 %v221_v40  ;;  %v222_v40 = vld [vmem:[%s8885_s0 + $0x680] sm:$0xff] }
 0x1e3   :  { %v124_v20 = vld [vmem:[%s8885_s0 + $0x370] sm:$0xff]  ;;  %9660 = vst [vmem:[#allocation93_spill] sm:$0xff] %v4589_v33  ;;  %791 = vmatmul.f32.gmra.mxu2 %v177_v38  ;;  %v1334_v38 = vmul.f32 %v4012_v39, %v4012_v39 }
 0x1e6   :  { %v4548_v12 = vpop.f32.mrf.mxu0 }
 0x1e7   :  { %9653 = vst [vmem:[#allocation86_spill] sm:$0xff] %v4548_v12 }
 0x1e9   :  { %473 = vmatmul.f32.gmra.mxu0 %v71_v8  ;;  %v4573_v8 = vpop.f32.mrf.mxu2  ;;  %v4607_v33 = vpop.f32.mrf.mxu1 }
 0x1ea   :  { %9658 = vst [vmem:[#allocation91_spill] sm:$0xff] %v4573_v8  ;;  %632 = vmatmul.f32.gmra.mxu1 %v124_v20  ;;  %v73_v8 = vld [vmem:[%s8885_s0 + $0x1d8] sm:$0xff]  ;;  %926 = vmatmul.f32.gmra.mxu3 %v222_v40  ;;  %v223_v40 = vld [vmem:[%s8885_s0 + $0x688] sm:$0xff] }
 0x1eb   :  { %v125_v20 = vld [vmem:[%s8885_s0 + $0x378] sm:$0xff]  ;;  %9663 = vst [vmem:[#allocation96_spill] sm:$0xff] %v4607_v33 }
 0x1ee   :  { %v4566_v61 = vpop.f32.mrf.mxu0 }
 0x1ef   :  { %9656 = vst [vmem:[#allocation89_spill] sm:$0xff] %v4566_v61 }
 0x1f1   :  { %476 = vmatmul.f32.gmra.mxu0 %v72_v1  ;;  %v4591_v1 = vpop.f32.mrf.mxu2 }
 0x1f2   :  { %9661 = vst [vmem:[#allocation94_spill] sm:$0xff] %v4591_v1  ;;  %635 = vmatmul.f32.gmra.mxu1 %v125_v20  ;;  %v74_v1 = vld [vmem:[%s8885_s0 + $0x1e0] sm:$0xff]  ;;  %v4611_v20 = vpop.f32.mrf.mxu3  ;;  %929 = vmatmul.f32.gmra.mxu3 %v223_v40  ;;  %v224_v40 = vld [vmem:[%s8885_s0 + $0x690] sm:$0xff] }
 0x1f3   :  { %9665 = vst [vmem:[#allocation98_spill] sm:$0xff] %v4611_v20  ;;  %v75_v20 = vld [vmem:[%s8885_s0 + $0x1e8] sm:$0xff] }
 0x1f6   :  { %v4584_v47 = vpop.f32.mrf.mxu0 }
 0x1f7   :  { %9659 = vst [vmem:[#allocation92_spill] sm:$0xff] %v4584_v47 }
 0x1f9   :  { %479 = vmatmul.f32.gmra.mxu0 %v73_v8  ;;  %v4609_v8 = vpop.f32.mrf.mxu2 }
 0x1fa   :  { %9664 = vst [vmem:[#allocation97_spill] sm:$0xff] %v4609_v8  ;;  %638 = vmatmul.f32.gmra.mxu1 %v126_v27  ;;  %v4627_v8 = vpop.f32.mrf.mxu1  ;;  %v4631_v27 = vpop.f32.mrf.mxu3  ;;  %932 = vmatmul.f32.gmra.mxu3 %v224_v40  ;;  %v225_v40 = vld [vmem:[%s8885_s0 + $0x698] sm:$0xff] }
 0x1fb   :  { %9667 = vst [vmem:[#allocation100_spill] sm:$0xff] %v4627_v8 }
 0x1fc   :  { %9669 = vst [vmem:[#allocation102_spill] sm:$0xff] %v4631_v27  ;;  %v76_v27 = vld [vmem:[%s8885_s0 + $0x1f0] sm:$0xff] }
 0x1fe   :  { %v4602_v35 = vpop.f32.mrf.mxu0 }
 0x1ff   :  { %9662 = vst [vmem:[#allocation95_spill] sm:$0xff] %v4602_v35 }
 0x201   :  { %482 = vmatmul.f32.gmra.mxu0 %v74_v1  ;;  %v4629_v1 = vpop.f32.mrf.mxu2 }
 0x202   :  { %9668 = vst [vmem:[#allocation101_spill] sm:$0xff] %v4629_v1  ;;  %641 = vmatmul.f32.gmra.mxu1 %v127_v18  ;;  %v4647_v1 = vpop.f32.mrf.mxu1  ;;  %v4651_v18 = vpop.f32.mrf.mxu3  ;;  %935 = vmatmul.f32.gmra.mxu3 %v225_v40  ;;  %v178_v40 = vld [vmem:[%s8885_s0 + $0x520] sm:$0xff] }
 0x203   :  { %9671 = vst [vmem:[#allocation104_spill] sm:$0xff] %v4647_v1  ;;  %794 = vmatmul.f32.gmra.mxu2 %v178_v40 }
 0x204   :  { %9673 = vst [vmem:[#allocation106_spill] sm:$0xff] %v4651_v18  ;;  %v77_v18 = vld [vmem:[%s8885_s0 + $0x1f8] sm:$0xff] }
 0x206   :  { %v4622_v33 = vpop.f32.mrf.mxu0 }
 0x207   :  { %9666 = vst [vmem:[#allocation99_spill] sm:$0xff] %v4622_v33 }
 0x209   :  { %485 = vmatmul.f32.gmra.mxu0 %v75_v20  ;;  %v4649_v20 = vpop.f32.mrf.mxu2 }
 0x20a   :  { %9672 = vst [vmem:[#allocation105_spill] sm:$0xff] %v4649_v20  ;;  %644 = vmatmul.f32.gmra.mxu1 %v128_v10  ;;  %v4667_v20 = vpop.f32.mrf.mxu1  ;;  %v4671_v10 = vpop.f32.mrf.mxu3 }
 0x20b   :  { %9675 = vst [vmem:[#allocation108_spill] sm:$0xff] %v4667_v20  ;;  %v226_v20 = vld [vmem:[%s8885_s0 + $0x6a0] sm:$0xff] }
 0x20c   :  { %9677 = vst [vmem:[#allocation110_spill] sm:$0xff] %v4671_v10  ;;  %938 = vmatmul.f32.gmra.mxu3 %v226_v20  ;;  %v1333_v10 = vmul.f32 %v4004_v36, %v4004_v36 }
 0x20e   :  { %v4642_v8 = vpop.f32.mrf.mxu0 }
 0x20f   :  { %9670 = vst [vmem:[#allocation103_spill] sm:$0xff] %v4642_v8 }
 0x211   :  { %488 = vmatmul.f32.gmra.mxu0 %v76_v27  ;;  %v4669_v27 = vpop.f32.mrf.mxu2 }
 0x212   :  { %9676 = vst [vmem:[#allocation109_spill] sm:$0xff] %v4669_v27  ;;  %647 = vmatmul.f32.gmra.mxu1 %v129_v3  ;;  %v1071_v27 = vadd.f32 %v4012_v39, %v4004_v36  ;;  %v1589_v3 = vadd.f32 %v1334_v38, %v1333_v10  ;;  %v4702_v36 = vpop.f32.mrf.mxu3 }
 0x213   :  { %9681 = vst [vmem:[#allocation114_spill] sm:$0xff] %v4702_v36 }
 0x214   :  { %v1072_v59 = vadd.f32 %v1071_v27, %v4020_v42  ;;  %v130_v27 = vld [vmem:[%s8885_s0 + $0x3a0] sm:$0xff] }
 0x216   :  { %v4662_v1 = vpop.f32.mrf.mxu0  ;;  %v1073_v40 = vadd.f32 %v1072_v59, %v4028_v45  ;;  %v179_v59 = vld [vmem:[%s8885_s0 + $0x528] sm:$0xff] }
 0x217   :  { %9674 = vst [vmem:[#allocation107_spill] sm:$0xff] %v4662_v1  ;;  %v4695_v37 = vpop.f32.mrf.mxu1  ;;  %797 = vmatmul.f32.gmra.mxu2 %v179_v59 }
 0x218   :  { %9679 = vst [vmem:[#allocation112_spill] sm:$0xff] %v4695_v37  ;;  %v1074_v38 = vadd.f32 %v1073_v40, %v4036_v48 }
 0x219   :  { %491 = vmatmul.f32.gmra.mxu0 %v77_v18  ;;  %v1335_v18 = vmul.f32 %v4020_v42, %v4020_v42  ;;  %v4700_v39 = vpop.f32.mrf.mxu2  ;;  %v1338_v42 = vmul.f32 %v4044_v51, %v4044_v51 }
 0x21a   :  { %9680 = vst [vmem:[#allocation113_spill] sm:$0xff] %v4700_v39  ;;  %650 = vmatmul.f32.gmra.mxu1 %v130_v27  ;;  %v1075_v45 = vadd.f32 %v1074_v38, %v4044_v51  ;;  %v1340_v27 = vmul.f32 %v4060_v57, %v4060_v57  ;;  %v4731_v38 = vpop.f32.mrf.mxu3 }
 0x21b   :  { %v1590_v20 = vadd.f32 %v1589_v3, %v1335_v18  ;;  %v227_v18 = vld [vmem:[%s8885_s0 + $0x6a8] sm:$0xff]  ;;  %9684 = vst [vmem:[#allocation117_spill] sm:$0xff] %v4731_v38 }
 0x21c   :  { %941 = vmatmul.f32.gmra.mxu3 %v227_v18  ;;  %v1076_v40 = vadd.f32 %v1075_v45, %v4052_v54 }
 0x21d   :  { %v1591_v10 = vadd.f32 %v1590_v20, %v1336_v52  ;;  %v1339_v52 = vmul.f32 %v4052_v54, %v4052_v54 }
 0x21e   :  { %v4693_v44 = vpop.f32.mrf.mxu0  ;;  %v1077_v59 = vadd.f32 %v1076_v40, %v4060_v57 }
 0x21f   :  { %9678 = vst [vmem:[#allocation111_spill] sm:$0xff] %v4693_v44  ;;  %v1592_v3 = vadd.f32 %v1591_v10, %v1337_v31  ;;  %v4724_v36 = vpop.f32.mrf.mxu1  ;;  %v1341_v31 = vmul.f32 %v4068_v60, %v4068_v60 }
 0x220   :  { %9683 = vst [vmem:[#allocation116_spill] sm:$0xff] %v4724_v36  ;;  %v1078_v18 = vadd.f32 %v1077_v59, %v4068_v60 }
 0x221   :  { %v1593_v20 = vadd.f32 %v1592_v3, %v1338_v42  ;;  %v4729_v10 = vpop.f32.mrf.mxu2  ;;  %v131_v42 = vld [vmem:[%s8885_s0 + $0x3a8] sm:$0xff]  ;;  %v1342_v3 = vmul.f32 %v4076_v63, %v4076_v63 }
 0x222   :  { %653 = vmatmul.f32.gmra.mxu1 %v131_v42  ;;  %v1079_v57 = vadd.f32 %v1078_v18, %v4076_v63  ;;  %v1344_v42 = vmul.f32 %v4092_v5, %v4092_v5  ;;  %v4760_v18 = vpop.f32.mrf.mxu3 }
 0x223   :  { %v1594_v39 = vadd.f32 %v1593_v20, %v1339_v52  ;;  %v180_v52 = vld [vmem:[%s8885_s0 + $0x530] sm:$0xff]  ;;  %9687 = vst [vmem:[#allocation120_spill] sm:$0xff] %v4760_v18 }
 0x224   :  { %v228_v20 = vld [vmem:[%s8885_s0 + $0x6b0] sm:$0xff]  ;;  %800 = vmatmul.f32.gmra.mxu2 %v180_v52  ;;  %v1080_v59 = vadd.f32 %v1079_v57, %v4084_v2 }
 0x225   :  { %v1595_v45 = vadd.f32 %v1594_v39, %v1340_v27  ;;  %944 = vmatmul.f32.gmra.mxu3 %v228_v20  ;;  %v1343_v39 = vmul.f32 %v4084_v2, %v4084_v2  ;;  %v132_v57 = vld [vmem:[%s8885_s0 + $0x3b0] sm:$0xff] }
 0x226   :  { %v4722_v48 = vpop.f32.mrf.mxu0  ;;  %v1081_v52 = vadd.f32 %v1080_v59, %v4092_v5 }
 0x227   :  { %9682 = vst [vmem:[#allocation115_spill] sm:$0xff] %v4722_v48  ;;  %v1596_v40 = vadd.f32 %v1595_v45, %v1341_v31  ;;  %v4753_v54 = vpop.f32.mrf.mxu1  ;;  %v1345_v31 = vmul.f32 %v4103_v9, %v4103_v9 }
 0x228   :  { %9686 = vst [vmem:[#allocation119_spill] sm:$0xff] %v4753_v54  ;;  %v1082_v20 = vadd.f32 %v1081_v52, %v4103_v9 }
 0x229   :  { %v1597_v27 = vadd.f32 %v1596_v40, %v1342_v3  ;;  %v4758_v45 = vpop.f32.mrf.mxu2  ;;  %v1346_v40 = vmul.f32 %v4116_v14, %v4116_v14 }
 0x22a   :  { %656 = vmatmul.f32.gmra.mxu1 %v132_v57  ;;  %v1083_v5 = vadd.f32 %v1082_v20, %v4116_v14  ;;  %v1348_v57 = vmul.f32 %v4142_v24, %v4142_v24  ;;  %v4789_v20 = vpop.f32.mrf.mxu3 }
 0x22b   :  { %v1598_v51 = vadd.f32 %v1597_v27, %v1343_v39  ;;  %v181_v39 = vld [vmem:[%s8885_s0 + $0x538] sm:$0xff]  ;;  %9690 = vst [vmem:[#allocation123_spill] sm:$0xff] %v4789_v20 }
 0x22c   :  { %v229_v27 = vld [vmem:[%s8885_s0 + $0x6b8] sm:$0xff]  ;;  %803 = vmatmul.f32.gmra.mxu2 %v181_v39  ;;  %v1084_v52 = vadd.f32 %v1083_v5, %v4129_v19 }
 0x22d   :  { %v1599_v3 = vadd.f32 %v1598_v51, %v1344_v42  ;;  %947 = vmatmul.f32.gmra.mxu3 %v229_v27  ;;  %v1347_v51 = vmul.f32 %v4129_v19, %v4129_v19  ;;  %v133_v5 = vld [vmem:[%s8885_s0 + $0x3b8] sm:$0xff] }
 0x22e   :  { %v4751_v60 = vpop.f32.mrf.mxu0  ;;  %v1085_v39 = vadd.f32 %v1084_v52, %v4142_v24 }
 0x22f   :  { %9685 = vst [vmem:[#allocation118_spill] sm:$0xff] %v4751_v60  ;;  %v1600_v59 = vadd.f32 %v1599_v3, %v1345_v31  ;;  %v4782_v2 = vpop.f32.mrf.mxu1  ;;  %v1349_v31 = vmul.f32 %v4155_v29, %v4155_v29 }
 0x230   :  { %9689 = vst [vmem:[#allocation122_spill] sm:$0xff] %v4782_v2  ;;  %v1086_v27 = vadd.f32 %v1085_v39, %v4155_v29 }
 0x231   :  { %v1601_v42 = vadd.f32 %v1600_v59, %v1346_v40  ;;  %v4787_v3 = vpop.f32.mrf.mxu2  ;;  %v1350_v59 = vmul.f32 %v4168_v34, %v4168_v34 }
 0x232   :  { %659 = vmatmul.f32.gmra.mxu1 %v133_v5  ;;  %v1087_v24 = vadd.f32 %v1086_v27, %v4168_v34  ;;  %v1352_v5 = vmul.f32 %v4194_v49, %v4194_v49  ;;  %v4818_v27 = vpop.f32.mrf.mxu3 }
 0x233   :  { %v1602_v63 = vadd.f32 %v1601_v42, %v1347_v51  ;;  %v182_v51 = vld [vmem:[%s8885_s0 + $0x540] sm:$0xff]  ;;  %9694 = vst [vmem:[#allocation127_spill] sm:$0xff] %v4818_v27 }
 0x234   :  { %v230_v42 = vld [vmem:[%s8885_s0 + $0x6c0] sm:$0xff]  ;;  %806 = vmatmul.f32.gmra.mxu2 %v182_v51  ;;  %v1088_v39 = vadd.f32 %v1087_v24, %v4181_v41 }
 0x235   :  { %v1603_v40 = vadd.f32 %v1602_v63, %v1348_v57  ;;  %950 = vmatmul.f32.gmra.mxu3 %v230_v42  ;;  %v1351_v63 = vmul.f32 %v4181_v41, %v4181_v41  ;;  %v134_v24 = vld [vmem:[%s8885_s0 + $0x3c0] sm:$0xff] }
 0x236   :  { %v4780_v9 = vpop.f32.mrf.mxu0  ;;  %v1089_v51 = vadd.f32 %v1088_v39, %v4194_v49 }
 0x237   :  { %9688 = vst [vmem:[#allocation121_spill] sm:$0xff] %v4780_v9  ;;  %v1604_v52 = vadd.f32 %v1603_v40, %v1349_v31  ;;  %v4811_v19 = vpop.f32.mrf.mxu1  ;;  %v1353_v31 = vmul.f32 %v4207_v56, %v4207_v56 }
 0x238   :  { %9692 = vst [vmem:[#allocation125_spill] sm:$0xff] %v4811_v19  ;;  %v1090_v42 = vadd.f32 %v1089_v51, %v4207_v56 }
 0x239   :  { %v1605_v57 = vadd.f32 %v1604_v52, %v1350_v59  ;;  %v4816_v40 = vpop.f32.mrf.mxu2  ;;  %v1354_v52 = vmul.f32 %v4220_v0, %v4220_v0 }
 0x23a   :  { %9693 = vst [vmem:[#allocation126_spill] sm:$0xff] %v4816_v40  ;;  %662 = vmatmul.f32.gmra.mxu1 %v134_v24  ;;  %v1091_v49 = vadd.f32 %v1090_v42, %v4220_v0  ;;  %v1356_v24 = vmul.f32 %v4246_v15, %v4246_v15  ;;  %v4847_v42 = vpop.f32.mrf.mxu3 }
 0x23b   :  { %v1606_v14 = vadd.f32 %v1605_v57, %v1351_v63  ;;  %v183_v63 = vld [vmem:[%s8885_s0 + $0x548] sm:$0xff]  ;;  %9697 = vst [vmem:[#allocation130_spill] sm:$0xff] %v4847_v42 }
 0x23c   :  { %v231_v57 = vld [vmem:[%s8885_s0 + $0x6c8] sm:$0xff]  ;;  %809 = vmatmul.f32.gmra.mxu2 %v183_v63  ;;  %v1092_v51 = vadd.f32 %v1091_v49, %v4233_v7 }
 0x23d   :  { %v1607_v59 = vadd.f32 %v1606_v14, %v1352_v5  ;;  %953 = vmatmul.f32.gmra.mxu3 %v231_v57  ;;  %v1355_v14 = vmul.f32 %v4233_v7, %v4233_v7  ;;  %v135_v49 = vld [vmem:[%s8885_s0 + $0x3c8] sm:$0xff] }
 0x23e   :  { %v4809_v29 = vpop.f32.mrf.mxu0  ;;  %v1093_v63 = vadd.f32 %v1092_v51, %v4246_v15 }
 0x23f   :  { %9691 = vst [vmem:[#allocation124_spill] sm:$0xff] %v4809_v29  ;;  %v1608_v39 = vadd.f32 %v1607_v59, %v1353_v31  ;;  %v4840_v41 = vpop.f32.mrf.mxu1  ;;  %v1357_v31 = vmul.f32 %v4259_v23, %v4259_v23 }
 0x240   :  { %9696 = vst [vmem:[#allocation129_spill] sm:$0xff] %v4840_v41  ;;  %v1094_v57 = vadd.f32 %v1093_v63, %v4259_v23 }
 0x241   :  { %v1609_v5 = vadd.f32 %v1608_v39, %v1354_v52  ;;  %v4845_v59 = vpop.f32.mrf.mxu2  ;;  %v1358_v39 = vmul.f32 %v4272_v32, %v4272_v32 }
 0x242   :  { %665 = vmatmul.f32.gmra.mxu1 %v135_v49  ;;  %v1095_v15 = vadd.f32 %v1094_v57, %v4272_v32  ;;  %v1360_v49 = vmul.f32 %v4298_v55, %v4298_v55  ;;  %v4876_v57 = vpop.f32.mrf.mxu3 }
 0x243   :  { %v1610_v34 = vadd.f32 %v1609_v5, %v1355_v14  ;;  %v184_v14 = vld [vmem:[%s8885_s0 + $0x550] sm:$0xff]  ;;  %9700 = vst [vmem:[#allocation133_spill] sm:$0xff] %v4876_v57 }
 0x244   :  { %v232_v5 = vld [vmem:[%s8885_s0 + $0x6d0] sm:$0xff]  ;;  %812 = vmatmul.f32.gmra.mxu2 %v184_v14  ;;  %v1096_v63 = vadd.f32 %v1095_v15, %v4285_v43 }
 0x245   :  { %v1611_v52 = vadd.f32 %v1610_v34, %v1356_v24  ;;  %956 = vmatmul.f32.gmra.mxu3 %v232_v5  ;;  %v1359_v34 = vmul.f32 %v4285_v43, %v4285_v43  ;;  %v136_v15 = vld [vmem:[%s8885_s0 + $0x3d0] sm:$0xff] }
 0x246   :  { %v4838_v56 = vpop.f32.mrf.mxu0  ;;  %v1097_v14 = vadd.f32 %v1096_v63, %v4298_v55 }
 0x247   :  { %9695 = vst [vmem:[#allocation128_spill] sm:$0xff] %v4838_v56  ;;  %v1612_v51 = vadd.f32 %v1611_v52, %v1357_v31  ;;  %v4869_v7 = vpop.f32.mrf.mxu1  ;;  %v1361_v31 = vmul.f32 %v4314_v6, %v4314_v6 }
 0x248   :  { %9699 = vst [vmem:[#allocation132_spill] sm:$0xff] %v4869_v7  ;;  %v1098_v5 = vadd.f32 %v1097_v14, %v4314_v6 }
 0x249   :  { %v1613_v24 = vadd.f32 %v1612_v51, %v1358_v39  ;;  %v4874_v52 = vpop.f32.mrf.mxu2  ;;  %v1362_v51 = vmul.f32 %v4332_v25, %v4332_v25 }
 0x24a   :  { %668 = vmatmul.f32.gmra.mxu1 %v136_v15  ;;  %v1099_v55 = vadd.f32 %v1098_v5, %v4332_v25  ;;  %v1364_v15 = vmul.f32 %v4368_v17, %v4368_v17  ;;  %v4905_v5 = vpop.f32.mrf.mxu3 }
 0x24b   :  { %v1614_v0 = vadd.f32 %v1613_v24, %v1359_v34  ;;  %v185_v34 = vld [vmem:[%s8885_s0 + $0x558] sm:$0xff]  ;;  %9704 = vst [vmem:[#allocation137_spill] sm:$0xff] %v4905_v5 }
 0x24c   :  { %v233_v24 = vld [vmem:[%s8885_s0 + $0x6d8] sm:$0xff]  ;;  %815 = vmatmul.f32.gmra.mxu2 %v185_v34  ;;  %v1100_v14 = vadd.f32 %v1099_v55, %v4350_v50 }
 0x24d   :  { %v1615_v39 = vadd.f32 %v1614_v0, %v1360_v49  ;;  %959 = vmatmul.f32.gmra.mxu3 %v233_v24  ;;  %v1363_v0 = vmul.f32 %v4350_v50, %v4350_v50  ;;  %v137_v55 = vld [vmem:[%s8885_s0 + $0x3d8] sm:$0xff] }
 0x24e   :  { %v4867_v23 = vpop.f32.mrf.mxu0  ;;  %v1101_v34 = vadd.f32 %v1100_v14, %v4368_v17 }
 0x24f   :  { %9698 = vst [vmem:[#allocation131_spill] sm:$0xff] %v4867_v23  ;;  %v1616_v63 = vadd.f32 %v1615_v39, %v1361_v31  ;;  %v4898_v43 = vpop.f32.mrf.mxu1  ;;  %v1365_v31 = vmul.f32 %v4386_v53, %v4386_v53 }
 0x250   :  { %9702 = vst [vmem:[#allocation135_spill] sm:$0xff] %v4898_v43  ;;  %v1102_v24 = vadd.f32 %v1101_v34, %v4386_v53 }
 0x251   :  { %v1617_v49 = vadd.f32 %v1616_v63, %v1362_v51  ;;  %v4903_v39 = vpop.f32.mrf.mxu2  ;;  %v1366_v63 = vmul.f32 %v4404_v46, %v4404_v46 }
 0x252   :  { %9703 = vst [vmem:[#allocation136_spill] sm:$0xff] %v4903_v39  ;;  %671 = vmatmul.f32.gmra.mxu1 %v137_v55  ;;  %v1103_v17 = vadd.f32 %v1102_v24, %v4404_v46  ;;  %v1368_v55 = vmul.f32 %v4440_v13, %v4440_v13  ;;  %v4934_v24 = vpop.f32.mrf.mxu3 }
 0x253   :  { %v1618_v32 = vadd.f32 %v1617_v49, %v1363_v0  ;;  %v186_v0 = vld [vmem:[%s8885_s0 + $0x560] sm:$0xff]  ;;  %9708 = vst [vmem:[#allocation141_spill] sm:$0xff] %v4934_v24 }
 0x254   :  { %v234_v49 = vld [vmem:[%s8885_s0 + $0x6e0] sm:$0xff]  ;;  %818 = vmatmul.f32.gmra.mxu2 %v186_v0  ;;  %v1104_v34 = vadd.f32 %v1103_v17, %v4422_v62 }
 0x255   :  { %v1619_v51 = vadd.f32 %v1618_v32, %v1364_v15  ;;  %962 = vmatmul.f32.gmra.mxu3 %v234_v49  ;;  %v1367_v32 = vmul.f32 %v4422_v62, %v4422_v62  ;;  %v138_v17 = vld [vmem:[%s8885_s0 + $0x3e0] sm:$0xff] }
 0x256   :  { %v4896_v6 = vpop.f32.mrf.mxu0  ;;  %v1105_v0 = vadd.f32 %v1104_v34, %v4440_v13 }
 0x257   :  { %9701 = vst [vmem:[#allocation134_spill] sm:$0xff] %v4896_v6  ;;  %v1620_v14 = vadd.f32 %v1619_v51, %v1365_v31  ;;  %v4927_v25 = vpop.f32.mrf.mxu1  ;;  %v1369_v31 = vmul.f32 %v4458_v28, %v4458_v28 }
 0x258   :  { %9706 = vst [vmem:[#allocation139_spill] sm:$0xff] %v4927_v25  ;;  %v1106_v49 = vadd.f32 %v1105_v0, %v4458_v28 }
 0x259   :  { %v1621_v15 = vadd.f32 %v1620_v14, %v1366_v63  ;;  %v4932_v51 = vpop.f32.mrf.mxu2  ;;  %v1370_v14 = vmul.f32 %v4476_v4, %v4476_v4 }
 0x25a   :  { %9707 = vst [vmem:[#allocation140_spill] sm:$0xff] %v4932_v51  ;;  %674 = vmatmul.f32.gmra.mxu1 %v138_v17  ;;  %v1107_v13 = vadd.f32 %v1106_v49, %v4476_v4  ;;  %v1372_v17 = vmul.f32 %v4512_v58, %v4512_v58  ;;  %v4963_v49 = vpop.f32.mrf.mxu3 }
 0x25b   :  { %v1622_v53 = vadd.f32 %v1621_v15, %v1367_v32  ;;  %v187_v32 = vld [vmem:[%s8885_s0 + $0x568] sm:$0xff]  ;;  %9712 = vst [vmem:[#allocation145_spill] sm:$0xff] %v4963_v49 }
 0x25c   :  { %v235_v15 = vld [vmem:[%s8885_s0 + $0x6e8] sm:$0xff]  ;;  %821 = vmatmul.f32.gmra.mxu2 %v187_v32  ;;  %v1108_v0 = vadd.f32 %v1107_v13, %v4494_v22 }
 0x25d   :  { %v1623_v63 = vadd.f32 %v1622_v53, %v1368_v55  ;;  %965 = vmatmul.f32.gmra.mxu3 %v235_v15  ;;  %v1371_v53 = vmul.f32 %v4494_v22, %v4494_v22  ;;  %v139_v13 = vld [vmem:[%s8885_s0 + $0x3e8] sm:$0xff] }
 0x25e   :  { %v4925_v50 = vpop.f32.mrf.mxu0  ;;  %v1109_v32 = vadd.f32 %v1108_v0, %v4512_v58 }
 0x25f   :  { %9705 = vst [vmem:[#allocation138_spill] sm:$0xff] %v4925_v50  ;;  %v1624_v34 = vadd.f32 %v1623_v63, %v1369_v31  ;;  %v4956_v62 = vpop.f32.mrf.mxu1  ;;  %v1373_v31 = vmul.f32 %v4530_v30, %v4530_v30 }
 0x260   :  { %9710 = vst [vmem:[#allocation143_spill] sm:$0xff] %v4956_v62 }
 0x261   :  { %v1625_v55 = vadd.f32 %v1624_v34, %v1370_v14  ;;  %v4961_v63 = vpop.f32.mrf.mxu2  ;;  %v1110_v14 = vadd.f32 %v1109_v32, %v4530_v30  ;;  %v1374_v34 = vmul.f32 %v4548_v12, %v4548_v12 }
 0x262   :  { %9711 = vst [vmem:[#allocation144_spill] sm:$0xff] %v4961_v63  ;;  %677 = vmatmul.f32.gmra.mxu1 %v139_v13  ;;  %v1376_v13 = vmul.f32 %v4584_v47, %v4584_v47 }
 0x263   :  { %v1626_v46 = vadd.f32 %v1625_v55, %v1371_v53  ;;  %v188_v53 = vld [vmem:[%s8885_s0 + $0x570] sm:$0xff]  ;;  %v1111_v58 = vadd.f32 %v1110_v14, %v4548_v12 }
 0x264   :  { %v236_v55 = vld [vmem:[%s8885_s0 + $0x6f0] sm:$0xff]  ;;  %824 = vmatmul.f32.gmra.mxu2 %v188_v53 }
 0x265   :  { %v1627_v15 = vadd.f32 %v1626_v46, %v1372_v17  ;;  %968 = vmatmul.f32.gmra.mxu3 %v236_v55  ;;  %v1375_v46 = vmul.f32 %v4566_v61, %v4566_v61  ;;  %v1112_v32 = vadd.f32 %v1111_v58, %v4566_v61  ;;  %v140_v58 = vld [vmem:[%s8885_s0 + $0x3f0] sm:$0xff] }
 0x266   :  { %v4954_v28 = vpop.f32.mrf.mxu0 }
 0x267   :  { %9709 = vst [vmem:[#allocation142_spill] sm:$0xff] %v4954_v28  ;;  %v1628_v0 = vadd.f32 %v1627_v15, %v1373_v31  ;;  %v4985_v22 = vpop.f32.mrf.mxu1  ;;  %v1113_v53 = vadd.f32 %v1112_v32, %v4584_v47  ;;  %v1377_v31 = vmul.f32 %v4602_v35, %v4602_v35  ;;  %v4992_v15 = vpop.f32.mrf.mxu3 }
 0x268   :  { %9714 = vst [vmem:[#allocation147_spill] sm:$0xff] %v4985_v22 }
 0x269   :  { %v1629_v17 = vadd.f32 %v1628_v0, %v1374_v34  ;;  %v4990_v14 = vpop.f32.mrf.mxu2  ;;  %9716 = vst [vmem:[#allocation149_spill] sm:$0xff] %v4992_v15  ;;  %v1114_v55 = vadd.f32 %v1113_v53, %v4602_v35  ;;  %v1378_v0 = vmul.f32 %v4622_v33, %v4622_v33 }
 0x26a   :  { %9715 = vst [vmem:[#allocation148_spill] sm:$0xff] %v4990_v14  ;;  %680 = vmatmul.f32.gmra.mxu1 %v140_v58  ;;  %v1380_v58 = vmul.f32 %v4662_v1, %v4662_v1 }
 0x26b   :  { %v1630_v4 = vadd.f32 %v1629_v17, %v1375_v46  ;;  %v189_v46 = vld [vmem:[%s8885_s0 + $0x578] sm:$0xff]  ;;  %v1115_v47 = vadd.f32 %v1114_v55, %v4622_v33 }
 0x26c   :  { %v237_v17 = vld [vmem:[%s8885_s0 + $0x6f8] sm:$0xff]  ;;  %827 = vmatmul.f32.gmra.mxu2 %v189_v46 }
 0x26d   :  { %v1631_v34 = vadd.f32 %v1630_v4, %v1376_v13  ;;  %971 = vmatmul.f32.gmra.mxu3 %v237_v17  ;;  %v1379_v4 = vmul.f32 %v4642_v8, %v4642_v8  ;;  %v1116_v53 = vadd.f32 %v1115_v47, %v4642_v8  ;;  %v141_v47 = vld [vmem:[%s8885_s0 + $0x3f8] sm:$0xff] }
 0x26e   :  { %v4983_v30 = vpop.f32.mrf.mxu0 }
 0x26f   :  { %9713 = vst [vmem:[#allocation146_spill] sm:$0xff] %v4983_v30  ;;  %v1632_v32 = vadd.f32 %v1631_v34, %v1377_v31  ;;  %v5014_v61 = vpop.f32.mrf.mxu1  ;;  %v1117_v46 = vadd.f32 %v1116_v53, %v4662_v1  ;;  %v1381_v31 = vmul.f32 %v4693_v44, %v4693_v44  ;;  %v5021_v55 = vpop.f32.mrf.mxu3 }
 0x270   :  { %9718 = vst [vmem:[#allocation151_spill] sm:$0xff] %v5014_v61 }
 0x271   :  { %v1633_v13 = vadd.f32 %v1632_v32, %v1378_v0  ;;  %v5019_v34 = vpop.f32.mrf.mxu2  ;;  %9720 = vst [vmem:[#allocation153_spill] sm:$0xff] %v5021_v55  ;;  %v1118_v17 = vadd.f32 %v1117_v46, %v4693_v44  ;;  %v1382_v32 = vmul.f32 %v4722_v48, %v4722_v48 }
 0x272   :  { %9719 = vst [vmem:[#allocation152_spill] sm:$0xff] %v5019_v34  ;;  %683 = vmatmul.f32.gmra.mxu1 %v141_v47  ;;  %v1384_v47 = vmul.f32 %v4780_v9, %v4780_v9 }
 0x273   :  { %v1634_v12 = vadd.f32 %v1633_v13, %v1379_v4  ;;  %v190_v4 = vld [vmem:[%s8885_s0 + $0x580] sm:$0xff]  ;;  %v1119_v1 = vadd.f32 %v1118_v17, %v4722_v48 }
 0x274   :  { %v238_v13 = vld [vmem:[%s8885_s0 + $0x700] sm:$0xff]  ;;  %830 = vmatmul.f32.gmra.mxu2 %v190_v4 }
 0x275   :  { %v1635_v0 = vadd.f32 %v1634_v12, %v1380_v58  ;;  %v1383_v12 = vmul.f32 %v4751_v60, %v4751_v60  ;;  %974 = vmatmul.f32.gmra.mxu3 %v238_v13  ;;  %v1120_v46 = vadd.f32 %v1119_v1, %v4751_v60  ;;  %v1386_v13 = vmul.f32 %v4838_v56, %v4838_v56 }
 0x276   :  { %v5012_v35 = vpop.f32.mrf.mxu0 }
 0x277   :  { %9717 = vst [vmem:[#allocation150_spill] sm:$0xff] %v5012_v35  ;;  %v1636_v53 = vadd.f32 %v1635_v0, %v1381_v31  ;;  %v5043_v8 = vpop.f32.mrf.mxu1  ;;  %v1121_v31 = vadd.f32 %v1120_v46, %v4780_v9  ;;  %v1385_v0 = vmul.f32 %v4809_v29, %v4809_v29  ;;  %v5050_v4 = vpop.f32.mrf.mxu3  ;;  %v1387_v9 = vmul.f32 %v4867_v23, %v4867_v23 }
 0x278   :  { %9722 = vst [vmem:[#allocation155_spill] sm:$0xff] %v5043_v8 }
 0x279   :  { %v1637_v58 = vadd.f32 %v1636_v53, %v1382_v32  ;;  %v5048_v17 = vpop.f32.mrf.mxu2  ;;  %9723 = vst [vmem:[#allocation156_spill] sm:$0xff] %v5050_v4  ;;  %v1122_v1 = vadd.f32 %v1121_v31, %v4809_v29  ;;  %v191_v53 = vld [vmem:[%s8885_s0 + $0x588] sm:$0xff]  ;;  %v1388_v31 = vmul.f32 %v4896_v6, %v4896_v6 }
 0x27b   :  { %v1638_v33 = vadd.f32 %v1637_v58, %v1383_v12  ;;  %v239_v12 = vld [vmem:[%s8885_s0 + $0x708] sm:$0xff]  ;;  %v1123_v46 = vadd.f32 %v1122_v1, %v4838_v56 }
 0x27c   :  { %833 = vmatmul.f32.gmra.mxu2 %v191_v53 }
 0x27d   :  { %v1639_v32 = vadd.f32 %v1638_v33, %v1384_v47  ;;  %977 = vmatmul.f32.gmra.mxu3 %v239_v12  ;;  %v1124_v47 = vadd.f32 %v1123_v46, %v4867_v23  ;;  %v192_v46 = vld [vmem:[%s8885_s0 + $0x590] sm:$0xff] }
 0x27e   :  { %v5041_v44 = vpop.f32.mrf.mxu0 }
 0x27f   :  { %9721 = vst [vmem:[#allocation154_spill] sm:$0xff] %v5041_v44  ;;  %v1640_v58 = vadd.f32 %v1639_v32, %v1385_v0  ;;  %v5069_v60 = vpop.f32.mrf.mxu1  ;;  %v1125_v0 = vadd.f32 %v1124_v47, %v4896_v6  ;;  %v1389_v32 = vmul.f32 %v4925_v50, %v4925_v50  ;;  %v5076_v53 = vpop.f32.mrf.mxu3  ;;  %v1391_v6 = vmul.f32 %v4983_v30, %v4983_v30 }
 0x280   :  { %9725 = vst [vmem:[#allocation158_spill] sm:$0xff] %v5069_v60 }
 0x281   :  { %v1641_v33 = vadd.f32 %v1640_v58, %v1386_v13  ;;  %v5074_v1 = vpop.f32.mrf.mxu2  ;;  %9726 = vst [vmem:[#allocation159_spill] sm:$0xff] %v5076_v53  ;;  %v1126_v12 = vadd.f32 %v1125_v0, %v4925_v50  ;;  %v1390_v58 = vmul.f32 %v4954_v28, %v4954_v28  ;;  %v1392_v0 = vmul.f32 %v5012_v35, %v5012_v35 }
 0x283   :  { %v1642_v48 = vadd.f32 %v1641_v33, %v1387_v9  ;;  %v240_v9 = vld [vmem:[%s8885_s0 + $0x710] sm:$0xff]  ;;  %v1127_v47 = vadd.f32 %v1126_v12, %v4954_v28 }
 0x284   :  { %836 = vmatmul.f32.gmra.mxu2 %v192_v46 }
 0x285   :  { %v1643_v13 = vadd.f32 %v1642_v48, %v1388_v31  ;;  %980 = vmatmul.f32.gmra.mxu3 %v240_v9  ;;  %v1128_v31 = vadd.f32 %v1127_v47, %v4983_v30  ;;  %v241_v47 = vld [vmem:[%s8885_s0 + $0x718] sm:$0xff] }
 0x286   :  { %v5067_v29 = vpop.f32.mrf.mxu0 }
 0x287   :  { %9724 = vst [vmem:[#allocation157_spill] sm:$0xff] %v5067_v29  ;;  %v1644_v33 = vadd.f32 %v1643_v13, %v1389_v32  ;;  %v1129_v56 = vadd.f32 %v1128_v31, %v5012_v35  ;;  %v1393_v32 = vmul.f32 %v5041_v44, %v5041_v44  ;;  %v5100_v12 = vpop.f32.mrf.mxu3  ;;  %v5102_v46 = vpop.f32.mrf.mxu1 }
 0x288   :  { %9728 = vst [vmem:[#allocation161_spill] sm:$0xff] %v5100_v12 }
 0x289   :  { %v1645_v48 = vadd.f32 %v1644_v33, %v1390_v58  ;;  %v5098_v13 = vpop.f32.mrf.mxu2  ;;  %9729 = vst [vmem:[#allocation162_spill] sm:$0xff] %v5102_v46  ;;  %v1130_v9 = vadd.f32 %v1129_v56, %v5041_v44  ;;  %v1394_v33 = vmul.f32 %v5067_v29, %v5067_v29 }
 0x28b   :  { %v1646_v23 = vadd.f32 %v1645_v48, %v1391_v6  ;;  %v193_v6 = vld [vmem:[%s8885_s0 + $0x598] sm:$0xff]  ;;  %v1131_v31 = vadd.f32 %v1130_v9, %v5067_v29 }
 0x28c   :  { %839 = vmatmul.f32.gmra.mxu2 %v193_v6 }
 0x28d   :  { %v1647_v58 = vadd.f32 %v1646_v23, %v1392_v0  ;;  %983 = vmatmul.f32.gmra.mxu3 %v241_v47  ;;  %v242_v47 = vld [vmem:[%s8885_s0 + $0x720] sm:$0xff] }
 0x28e   :  { %v5093_v50 = vpop.f32.mrf.mxu0 }
 0x28f   :  { %9727 = vst [vmem:[#allocation160_spill] sm:$0xff] %v5093_v50  ;;  %v1648_v48 = vadd.f32 %v1647_v58, %v1393_v32  ;;  %v1395_v35 = vmul.f32 %v5093_v50, %v5093_v50  ;;  %v1132_v23 = vadd.f32 %v1131_v31, %v5093_v50  ;;  %v5124_v32 = vpop.f32.mrf.mxu3  ;;  %v1397_v58 = vmul.f32 %v4108_v11, %v4108_v11  ;;  %v5129_v6 = vpop.f32.mrf.mxu1 }
 0x290   :  { %9731 = vst [vmem:[#allocation164_spill] sm:$0xff] %v5124_v32 }
 0x291   :  { %v1649_v56 = vadd.f32 %v1648_v48, %v1394_v33  ;;  %v5122_v12 = vpop.f32.mrf.mxu2  ;;  %9732 = vst [vmem:[#allocation165_spill] sm:$0xff] %v5129_v6  ;;  %v1398_v48 = vmul.f32 %v4121_v16, %v4121_v16 }
 0x293   :  { %v1650_v44 = vadd.f32 %v1649_v56, %v1395_v35  ;;  %v194_v35 = vld [vmem:[%s8885_s0 + $0x5a0] sm:$0xff] }
 0x294   :  { %842 = vmatmul.f32.gmra.mxu2 %v194_v35 }
 0x295   :  { %986 = vmatmul.f32.gmra.mxu3 %v242_v47  ;;  %v195_v47 = vld [vmem:[%s8885_s0 + $0x5a8] sm:$0xff] }
 0x296   :  { %v5117_v0 = vpop.f32.mrf.mxu0 }
 0x297   :  { %9730 = vst [vmem:[#allocation163_spill] sm:$0xff] %v5117_v0  ;;  %v1133_v30 = vadd.f32 %v1132_v23, %v5117_v0  ;;  %v1396_v28 = vmul.f32 %v5117_v0, %v5117_v0  ;;  %v1400_v23 = vmul.f32 %v4147_v26, %v4147_v26  ;;  %v5148_v29 = vpop.f32.mrf.mxu3 }
 0x298   :  { %9734 = vst [vmem:[#allocation167_spill] sm:$0xff] %v5148_v29 }
 0x299   :  { %v1134_v9 = vadd.f32 %v1133_v30, %v4108_v11  ;;  %v1651_v33 = vadd.f32 %v1650_v44, %v1396_v28  ;;  %v1399_v44 = vmul.f32 %v4134_v21, %v4134_v21  ;;  %v5146_v50 = vpop.f32.mrf.mxu2 }
 0x29a   :  { %9733 = vst [vmem:[#allocation166_spill] sm:$0xff] %v5146_v50 }
 0x29b   :  { %v1135_v31 = vadd.f32 %v1134_v9, %v4121_v16  ;;  %v1652_v56 = vadd.f32 %v1651_v33, %v1397_v58  ;;  %v9735_v9 = vld [vmem:[#allocation24_spill] sm:$0xff] }
 0x29c   :  { %v1401_v58 = vmul.f32 %v9735_v9, %v9735_v9  ;;  %845 = vmatmul.f32.gmra.mxu2 %v195_v47 }
 0x29d   :  { %v1136_v30 = vadd.f32 %v1135_v31, %v4134_v21  ;;  %v1653_v28 = vadd.f32 %v1652_v56, %v1398_v48  ;;  %v243_v48 = vld [vmem:[%s8885_s0 + $0x728] sm:$0xff]  ;;  %v9736_v31 = vld [vmem:[#allocation26_spill] sm:$0xff] }
 0x29e   :  { %v1402_v56 = vmul.f32 %v9736_v31, %v9736_v31  ;;  %989 = vmatmul.f32.gmra.mxu3 %v243_v48 }
 0x29f   :  { %v1137_v11 = vadd.f32 %v1136_v30, %v4147_v26  ;;  %v1654_v0 = vadd.f32 %v1653_v28, %v1399_v44  ;;  %v5162_v28 = vpop.f32.mrf.mxu1  ;;  %v9739_v26 = vld [vmem:[#allocation30_spill] sm:$0xff] }
 0x2a0   :  { %9737 = vst [vmem:[#allocation168_spill] sm:$0xff] %v5162_v28  ;;  %v1404_v21 = vmul.f32 %v9739_v26, %v9739_v26 }
 0x2a1   :  { %v1138_v33 = vadd.f32 %v1137_v11, %v9735_v9  ;;  %v1655_v35 = vadd.f32 %v1654_v0, %v1400_v23  ;;  %v9738_v11 = vld [vmem:[#allocation28_spill] sm:$0xff]  ;;  %v5170_v32 = vpop.f32.mrf.mxu2 }
 0x2a2   :  { %v1403_v0 = vmul.f32 %v9738_v11, %v9738_v11 }
 0x2a3   :  { %v1139_v44 = vadd.f32 %v1138_v33, %v9736_v31  ;;  %v1656_v30 = vadd.f32 %v1655_v35, %v1401_v58  ;;  %v5172_v33 = vpop.f32.mrf.mxu3  ;;  %v9741_v58 = vld [vmem:[#allocation32_spill] sm:$0xff] }
 0x2a4   :  { %9740 = vst [vmem:[#allocation169_spill] sm:$0xff] %v5172_v33  ;;  %v1405_v35 = vmul.f32 %v9741_v58, %v9741_v58 }
 0x2a5   :  { %v1140_v23 = vadd.f32 %v1139_v44, %v9738_v11  ;;  %v1657_v9 = vadd.f32 %v1656_v30, %v1402_v56  ;;  %v196_v56 = vld [vmem:[%s8885_s0 + $0x5b0] sm:$0xff]  ;;  %v9742_v30 = vld [vmem:[#allocation34_spill] sm:$0xff] }
 0x2a6   :  { %v244_v44 = vld [vmem:[%s8885_s0 + $0x730] sm:$0xff]  ;;  %848 = vmatmul.f32.gmra.mxu2 %v196_v56  ;;  %v9745_v11 = vld [vmem:[#allocation38_spill] sm:$0xff] }
 0x2a7   :  { %v1141_v16 = vadd.f32 %v1140_v23, %v9739_v26  ;;  %v1658_v29 = vadd.f32 %v1657_v9, %v1403_v0  ;;  %v1406_v9 = vmul.f32 %v9742_v30, %v9742_v30  ;;  %992 = vmatmul.f32.gmra.mxu3 %v244_v44  ;;  %v9743_v26 = vld [vmem:[#allocation36_spill] sm:$0xff]  ;;  %v1408_v31 = vmul.f32 %v9745_v11, %v9745_v11 }
 0x2a9   :  { %v1142_v47 = vadd.f32 %v1141_v16, %v9741_v58  ;;  %v1659_v48 = vadd.f32 %v1658_v29, %v1404_v21  ;;  %v1407_v16 = vmul.f32 %v9743_v26, %v9743_v26  ;;  %v5189_v58 = vpop.f32.mrf.mxu1  ;;  %v5194_v4 = vpop.f32.mrf.mxu2 }
 0x2aa   :  { %9744 = vst [vmem:[#allocation170_spill] sm:$0xff] %v5189_v58 }
 0x2ab   :  { %v1143_v0 = vadd.f32 %v1142_v47, %v9742_v30  ;;  %v1660_v23 = vadd.f32 %v1659_v48, %v1405_v35  ;;  %v5196_v47 = vpop.f32.mrf.mxu3  ;;  %v9747_v35 = vld [vmem:[#allocation40_spill] sm:$0xff] }
 0x2ac   :  { %9746 = vst [vmem:[#allocation171_spill] sm:$0xff] %v5196_v47  ;;  %v1409_v48 = vmul.f32 %v9747_v35, %v9747_v35 }
 0x2ad   :  { %v1144_v21 = vadd.f32 %v1143_v0, %v9743_v26  ;;  %v1661_v29 = vadd.f32 %v1660_v23, %v1406_v9  ;;  %v197_v9 = vld [vmem:[%s8885_s0 + $0x5b8] sm:$0xff] }
 0x2ae   :  { %v245_v0 = vld [vmem:[%s8885_s0 + $0x738] sm:$0xff]  ;;  %851 = vmatmul.f32.gmra.mxu2 %v197_v9 }
 0x2af   :  { %v1145_v33 = vadd.f32 %v1144_v21, %v9745_v11  ;;  %v1662_v53 = vadd.f32 %v1661_v29, %v1407_v16  ;;  %v9748_v23 = vld [vmem:[#allocation42_spill] sm:$0xff]  ;;  %995 = vmatmul.f32.gmra.mxu3 %v245_v0  ;;  %v9749_v11 = vld [vmem:[#allocation44_spill] sm:$0xff] }
 0x2b0   :  { %v1410_v16 = vmul.f32 %v9748_v23, %v9748_v23 }
 0x2b1   :  { %v1146_v56 = vadd.f32 %v1145_v33, %v9747_v35  ;;  %v1663_v44 = vadd.f32 %v1662_v53, %v1408_v31  ;;  %v1411_v33 = vmul.f32 %v9749_v11, %v9749_v11  ;;  %v9750_v35 = vld [vmem:[#allocation46_spill] sm:$0xff]  ;;  %v5216_v55 = vpop.f32.mrf.mxu2 }
 0x2b2   :  { %v1412_v26 = vmul.f32 %v9750_v35, %v9750_v35 }
 0x2b3   :  { %v1147_v21 = vadd.f32 %v1146_v56, %v9748_v23  ;;  %v1664_v29 = vadd.f32 %v1663_v44, %v1409_v48  ;;  %v5218_v15 = vpop.f32.mrf.mxu3  ;;  %v5220_v56 = vpop.f32.mrf.mxu1  ;;  %v9753_v48 = vld [vmem:[#allocation48_spill] sm:$0xff] }
 0x2b4   :  { %9751 = vst [vmem:[#allocation172_spill] sm:$0xff] %v5218_v15  ;;  %v1413_v44 = vmul.f32 %v9753_v48, %v9753_v48 }
 0x2b5   :  { %v1148_v53 = vadd.f32 %v1147_v21, %v9749_v11  ;;  %v1665_v31 = vadd.f32 %v1664_v29, %v1410_v16  ;;  %9752 = vst [vmem:[#allocation173_spill] sm:$0xff] %v5220_v56  ;;  %v198_v16 = vld [vmem:[%s8885_s0 + $0x5c0] sm:$0xff] }
 0x2b6   :  { %v246_v21 = vld [vmem:[%s8885_s0 + $0x740] sm:$0xff]  ;;  %854 = vmatmul.f32.gmra.mxu2 %v198_v16 }
 0x2b7   :  { %v1149_v30 = vadd.f32 %v1148_v53, %v9750_v35  ;;  %v1666_v47 = vadd.f32 %v1665_v31, %v1411_v33  ;;  %v9754_v29 = vld [vmem:[#allocation51_spill] sm:$0xff]  ;;  %998 = vmatmul.f32.gmra.mxu3 %v246_v21  ;;  %v9755_v35 = vld [vmem:[#allocation54_spill] sm:$0xff] }
 0x2b8   :  { %v1414_v33 = vmul.f32 %v9754_v29, %v9754_v29 }
 0x2b9   :  { %v1150_v9 = vadd.f32 %v1149_v30, %v9753_v48  ;;  %v1667_v0 = vadd.f32 %v1666_v47, %v1412_v26  ;;  %v1415_v30 = vmul.f32 %v9755_v35, %v9755_v35  ;;  %v9756_v48 = vld [vmem:[#allocation57_spill] sm:$0xff]  ;;  %v5240_v49 = vpop.f32.mrf.mxu2 }
 0x2ba   :  { %v1416_v11 = vmul.f32 %v9756_v48, %v9756_v48  ;;  %9757 = vst [vmem:[#allocation174_spill] sm:$0xff] %v5240_v49 }
 0x2bb   :  { %v1151_v53 = vadd.f32 %v1150_v9, %v9754_v29  ;;  %v1668_v31 = vadd.f32 %v1667_v0, %v1413_v44  ;;  %v5242_v24 = vpop.f32.mrf.mxu3  ;;  %v9759_v9 = vld [vmem:[#allocation60_spill] sm:$0xff]  ;;  %v5247_v21 = vpop.f32.mrf.mxu1 }
 0x2bc   :  { %9758 = vst [vmem:[#allocation175_spill] sm:$0xff] %v5242_v24  ;;  %v1417_v44 = vmul.f32 %v9759_v9, %v9759_v9 }
 0x2bd   :  { %v1152_v26 = vadd.f32 %v1151_v53, %v9755_v35  ;;  %v1669_v47 = vadd.f32 %v1668_v31, %v1414_v33  ;;  %9760 = vst [vmem:[#allocation176_spill] sm:$0xff] %v5247_v21  ;;  %v199_v33 = vld [vmem:[%s8885_s0 + $0x5c8] sm:$0xff]  ;;  %v9761_v31 = vld [vmem:[#allocation63_spill] sm:$0xff] }
 0x2be   :  { %v247_v53 = vld [vmem:[%s8885_s0 + $0x748] sm:$0xff]  ;;  %857 = vmatmul.f32.gmra.mxu2 %v199_v33 }
 0x2bf   :  { %v1153_v23 = vadd.f32 %v1152_v26, %v9756_v48  ;;  %v1670_v15 = vadd.f32 %v1669_v47, %v1415_v30  ;;  %v1418_v30 = vmul.f32 %v9761_v31, %v9761_v31  ;;  %1001 = vmatmul.f32.gmra.mxu3 %v247_v53  ;;  %v9763_v48 = vld [vmem:[#allocation69_spill] sm:$0xff] }
 0x2c0   :  { %v1420_v35 = vmul.f32 %v9763_v48, %v9763_v48  ;;  %v200_v53 = vld [vmem:[%s8885_s0 + $0x5d0] sm:$0xff] }
 0x2c1   :  { %v1154_v0 = vadd.f32 %v1153_v23, %v9759_v9  ;;  %v1671_v16 = vadd.f32 %v1670_v15, %v1416_v11  ;;  %v9762_v23 = vld [vmem:[#allocation66_spill] sm:$0xff]  ;;  %v5264_v5 = vpop.f32.mrf.mxu2 }
 0x2c2   :  { %v1419_v15 = vmul.f32 %v9762_v23, %v9762_v23 }
 0x2c3   :  { %v1155_v26 = vadd.f32 %v1154_v0, %v9761_v31  ;;  %v1672_v47 = vadd.f32 %v1671_v16, %v1417_v44  ;;  %v5266_v57 = vpop.f32.mrf.mxu3  ;;  %v9765_v0 = vld [vmem:[#allocation72_spill] sm:$0xff] }
 0x2c4   :  { %9764 = vst [vmem:[#allocation177_spill] sm:$0xff] %v5266_v57  ;;  %v1421_v44 = vmul.f32 %v9765_v0, %v9765_v0 }
 0x2c5   :  { %v1156_v11 = vadd.f32 %v1155_v26, %v9762_v23  ;;  %v1673_v9 = vadd.f32 %v1672_v47, %v1418_v30  ;;  %v248_v30 = vld [vmem:[%s8885_s0 + $0x750] sm:$0xff]  ;;  %v9766_v26 = vld [vmem:[#allocation75_spill] sm:$0xff] }
 0x2c6   :  { %860 = vmatmul.f32.gmra.mxu2 %v200_v53 }
 0x2c7   :  { %v1157_v29 = vadd.f32 %v1156_v11, %v9763_v48  ;;  %v1674_v24 = vadd.f32 %v1673_v9, %v1419_v15  ;;  %v1422_v9 = vmul.f32 %v9766_v26, %v9766_v26  ;;  %1004 = vmatmul.f32.gmra.mxu3 %v248_v30  ;;  %v5280_v11 = vpop.f32.mrf.mxu1  ;;  %v9769_v48 = vld [vmem:[#allocation81_spill] sm:$0xff] }
 0x2c8   :  { %9767 = vst [vmem:[#allocation178_spill] sm:$0xff] %v5280_v11  ;;  %v1424_v23 = vmul.f32 %v9769_v48, %v9769_v48 }
 0x2c9   :  { %v1158_v16 = vadd.f32 %v1157_v29, %v9765_v0  ;;  %v1675_v33 = vadd.f32 %v1674_v24, %v1420_v35  ;;  %v9768_v29 = vld [vmem:[#allocation78_spill] sm:$0xff]  ;;  %v5288_v42 = vpop.f32.mrf.mxu2 }
 0x2ca   :  { %v1423_v24 = vmul.f32 %v9768_v29, %v9768_v29 }
 0x2cb   :  { %v1159_v47 = vadd.f32 %v1158_v16, %v9766_v26  ;;  %v1676_v15 = vadd.f32 %v1675_v33, %v1421_v44  ;;  %v5290_v16 = vpop.f32.mrf.mxu3  ;;  %v9771_v44 = vld [vmem:[#allocation84_spill] sm:$0xff] }
 0x2cc   :  { %9770 = vst [vmem:[#allocation179_spill] sm:$0xff] %v5290_v16  ;;  %v1425_v33 = vmul.f32 %v9771_v44, %v9771_v44 }
 0x2cd   :  { %v1160_v35 = vadd.f32 %v1159_v47, %v9768_v29  ;;  %v1677_v0 = vadd.f32 %v1676_v15, %v1422_v9  ;;  %v201_v9 = vld [vmem:[%s8885_s0 + $0x5d8] sm:$0xff]  ;;  %v9772_v15 = vld [vmem:[#allocation87_spill] sm:$0xff]  ;;  %v9775_v29 = vld [vmem:[#allocation93_spill] sm:$0xff] }
 0x2ce   :  { %v249_v47 = vld [vmem:[%s8885_s0 + $0x758] sm:$0xff]  ;;  %863 = vmatmul.f32.gmra.mxu2 %v201_v9  ;;  %v1428_v26 = vmul.f32 %v9775_v29, %v9775_v29 }
 0x2cf   :  { %v1161_v31 = vadd.f32 %v1160_v35, %v9769_v48  ;;  %v1678_v57 = vadd.f32 %v1677_v0, %v1423_v24  ;;  %v1426_v0 = vmul.f32 %v9772_v15, %v9772_v15  ;;  %1007 = vmatmul.f32.gmra.mxu3 %v249_v47  ;;  %v9773_v48 = vld [vmem:[#allocation90_spill] sm:$0xff] }
 0x2d1   :  { %v1162_v53 = vadd.f32 %v1161_v31, %v9771_v44  ;;  %v1679_v30 = vadd.f32 %v1678_v57, %v1424_v23  ;;  %v1427_v31 = vmul.f32 %v9773_v48, %v9773_v48  ;;  %v5307_v44 = vpop.f32.mrf.mxu1  ;;  %v5312_v20 = vpop.f32.mrf.mxu2 }
 0x2d2   :  { %9774 = vst [vmem:[#allocation180_spill] sm:$0xff] %v5307_v44 }
 0x2d3   :  { %v1163_v24 = vadd.f32 %v1162_v53, %v9772_v15  ;;  %v1680_v35 = vadd.f32 %v1679_v30, %v1425_v33  ;;  %9776 = vst [vmem:[#allocation181_spill] sm:$0xff] %v5312_v20  ;;  %v5314_v53 = vpop.f32.mrf.mxu3  ;;  %v9778_v33 = vld [vmem:[#allocation96_spill] sm:$0xff] }
 0x2d4   :  { %9777 = vst [vmem:[#allocation182_spill] sm:$0xff] %v5314_v53  ;;  %v1429_v30 = vmul.f32 %v9778_v33, %v9778_v33 }
 0x2d5   :  { %v1164_v57 = vadd.f32 %v1163_v24, %v9773_v48  ;;  %v1681_v23 = vadd.f32 %v1680_v35, %v1426_v0  ;;  %v202_v0 = vld [vmem:[%s8885_s0 + $0x5e0] sm:$0xff]  ;;  %v9779_v35 = vld [vmem:[#allocation100_spill] sm:$0xff] }
 0x2d6   :  { %v250_v24 = vld [vmem:[%s8885_s0 + $0x760] sm:$0xff]  ;;  %866 = vmatmul.f32.gmra.mxu2 %v202_v0 }
 0x2d7   :  { %v1165_v16 = vadd.f32 %v1164_v57, %v9775_v29  ;;  %v1682_v27 = vadd.f32 %v1681_v23, %v1427_v31  ;;  %v1430_v31 = vmul.f32 %v9779_v35, %v9779_v35  ;;  %1010 = vmatmul.f32.gmra.mxu3 %v250_v24  ;;  %v9780_v29 = vld [vmem:[#allocation104_spill] sm:$0xff] }
 0x2d8   :  { %v203_v24 = vld [vmem:[%s8885_s0 + $0x5e8] sm:$0xff] }
 0x2d9   :  { %v1166_v9 = vadd.f32 %v1165_v16, %v9778_v33  ;;  %v1683_v47 = vadd.f32 %v1682_v27, %v1428_v26  ;;  %v1431_v16 = vmul.f32 %v9780_v29, %v9780_v29  ;;  %v9781_v33 = vld [vmem:[#allocation108_spill] sm:$0xff]  ;;  %v5334_v18 = vpop.f32.mrf.mxu2  ;;  %v5336_v38 = vpop.f32.mrf.mxu1 }
 0x2da   :  { %v1432_v48 = vmul.f32 %v9781_v33, %v9781_v33  ;;  %9782 = vst [vmem:[#allocation183_spill] sm:$0xff] %v5334_v18 }
 0x2db   :  { %v1167_v57 = vadd.f32 %v1166_v9, %v9779_v35  ;;  %v1684_v23 = vadd.f32 %v1683_v47, %v1429_v30  ;;  %9783 = vst [vmem:[#allocation184_spill] sm:$0xff] %v5336_v38  ;;  %v5338_v9 = vpop.f32.mrf.mxu3  ;;  %v1433_v30 = vmul.f32 %v4695_v37, %v4695_v37  ;;  %v9812_v35 = vld [vmem:[#allocation79_spill] sm:$0xff] }
 0x2dc   :  { %9784 = vst [vmem:[#allocation185_spill] sm:$0xff] %v5338_v9 }
 0x2dd   :  { %v1168_v27 = vadd.f32 %v1167_v57, %v9780_v29  ;;  %v1685_v26 = vadd.f32 %v1684_v23, %v1430_v31  ;;  %v251_v31 = vld [vmem:[%s8885_s0 + $0x768] sm:$0xff]  ;;  %v1434_v57 = vmul.f32 %v4724_v36, %v4724_v36 }
 0x2de   :  { %869 = vmatmul.f32.gmra.mxu2 %v203_v24 }
 0x2df   :  { %v1169_v15 = vadd.f32 %v1168_v27, %v9781_v33  ;;  %v1686_v53 = vadd.f32 %v1685_v26, %v1431_v16  ;;  %1013 = vmatmul.f32.gmra.mxu3 %v251_v31  ;;  %v1436_v27 = vmul.f32 %v4782_v2, %v4782_v2 }
 0x2e1   :  { %v1170_v47 = vadd.f32 %v1169_v15, %v4695_v37  ;;  %v1687_v0 = vadd.f32 %v1686_v53, %v1432_v48  ;;  %v1435_v15 = vmul.f32 %v4753_v54, %v4753_v54  ;;  %v5358_v33 = vpop.f32.mrf.mxu2  ;;  %v5363_v24 = vpop.f32.mrf.mxu1 }
 0x2e2   :  { %9785 = vst [vmem:[#allocation186_spill] sm:$0xff] %v5363_v24 }
 0x2e3   :  { %v1171_v23 = vadd.f32 %v1170_v47, %v4724_v36  ;;  %v1688_v16 = vadd.f32 %v1687_v0, %v1433_v30  ;;  %v1437_v47 = vmul.f32 %v4811_v19, %v4811_v19  ;;  %v5365_v31 = vpop.f32.mrf.mxu3  ;;  %v9810_v36 = vld [vmem:[#allocation73_spill] sm:$0xff] }
 0x2e4   :  { %9786 = vst [vmem:[#allocation187_spill] sm:$0xff] %v5365_v31 }
 0x2e5   :  { %v1172_v48 = vadd.f32 %v1171_v23, %v4753_v54  ;;  %v1689_v53 = vadd.f32 %v1688_v16, %v1434_v57  ;;  %v204_v57 = vld [vmem:[%s8885_s0 + $0x5f0] sm:$0xff]  ;;  %v1438_v16 = vmul.f32 %v4840_v41, %v4840_v41 }
 0x2e6   :  { %v252_v23 = vld [vmem:[%s8885_s0 + $0x770] sm:$0xff]  ;;  %872 = vmatmul.f32.gmra.mxu2 %v204_v57  ;;  %v205_v57 = vld [vmem:[%s8885_s0 + $0x5f8] sm:$0xff] }
 0x2e7   :  { %v1173_v26 = vadd.f32 %v1172_v48, %v4782_v2  ;;  %v1690_v37 = vadd.f32 %v1689_v53, %v1435_v15  ;;  %1016 = vmatmul.f32.gmra.mxu3 %v252_v23  ;;  %v253_v23 = vld [vmem:[%s8885_s0 + $0x778] sm:$0xff] }
 0x2e9   :  { %v1174_v30 = vadd.f32 %v1173_v26, %v4811_v19  ;;  %v1691_v0 = vadd.f32 %v1690_v37, %v1436_v27  ;;  %v1439_v37 = vmul.f32 %v4869_v7, %v4869_v7  ;;  %v1440_v26 = vmul.f32 %v4898_v43, %v4898_v43  ;;  %v5382_v54 = vpop.f32.mrf.mxu2 }
 0x2eb   :  { %v1175_v15 = vadd.f32 %v1174_v30, %v4840_v41  ;;  %v1692_v48 = vadd.f32 %v1691_v0, %v1437_v47  ;;  %v1441_v30 = vmul.f32 %v4927_v25, %v4927_v25 }
 0x2ed   :  { %v1176_v53 = vadd.f32 %v1175_v15, %v4869_v7  ;;  %v1693_v27 = vadd.f32 %v1692_v48, %v1438_v16  ;;  %v1442_v16 = vmul.f32 %v4956_v62, %v4956_v62 }
 0x2ee   :  { %875 = vmatmul.f32.gmra.mxu2 %v205_v57  ;;  %v1445_v57 = vmul.f32 %v5043_v8, %v5043_v8 }
 0x2ef   :  { %v1177_v19 = vadd.f32 %v1176_v53, %v4898_v43  ;;  %v1694_v2 = vadd.f32 %v1693_v27, %v1439_v37  ;;  %1019 = vmatmul.f32.gmra.mxu3 %v253_v23  ;;  %v5396_v37 = vpop.f32.mrf.mxu1  ;;  %v1444_v43 = vmul.f32 %v5014_v61, %v5014_v61  ;;  %v254_v23 = vld [vmem:[%s8885_s0 + $0x780] sm:$0xff] }
 0x2f0   :  { %9787 = vst [vmem:[#allocation188_spill] sm:$0xff] %v5396_v37 }
 0x2f1   :  { %v1178_v47 = vadd.f32 %v1177_v19, %v4927_v25  ;;  %v1695_v0 = vadd.f32 %v1694_v2, %v1440_v26  ;;  %v5398_v19 = vpop.f32.mrf.mxu3  ;;  %v1443_v2 = vmul.f32 %v4985_v22, %v4985_v22 }
 0x2f2   :  { %9788 = vst [vmem:[#allocation189_spill] sm:$0xff] %v5398_v19 }
 0x2f3   :  { %v1179_v15 = vadd.f32 %v1178_v47, %v4956_v62  ;;  %v1696_v48 = vadd.f32 %v1695_v0, %v1441_v30  ;;  %v5406_v47 = vpop.f32.mrf.mxu2 }
 0x2f4   :  { %9789 = vst [vmem:[#allocation190_spill] sm:$0xff] %v5406_v47 }
 0x2f5   :  { %v1180_v53 = vadd.f32 %v1179_v15, %v4985_v22  ;;  %v1697_v27 = vadd.f32 %v1696_v48, %v1442_v16  ;;  %v1446_v48 = vmul.f32 %v5069_v60, %v5069_v60 }
 0x2f7   :  { %v1698_v26 = vadd.f32 %v1697_v27, %v1443_v2  ;;  %v1181_v25 = vadd.f32 %v1180_v53, %v5014_v61  ;;  %1022 = vmatmul.f32.gmra.mxu3 %v254_v23 }
 0x2f9   :  { %v1699_v30 = vadd.f32 %v1698_v26, %v1444_v43  ;;  %v1182_v0 = vadd.f32 %v1181_v25, %v5043_v8  ;;  %v1447_v43 = vmul.f32 %v5102_v46, %v5102_v46  ;;  %v5420_v25 = vpop.f32.mrf.mxu1  ;;  %v5422_v27 = vpop.f32.mrf.mxu3 }
 0x2fa   :  { %9790 = vst [vmem:[#allocation191_spill] sm:$0xff] %v5420_v25 }
 0x2fb   :  { %v1700_v15 = vadd.f32 %v1699_v30, %v1445_v57  ;;  %v1183_v16 = vadd.f32 %v1182_v0, %v5069_v60  ;;  %9791 = vst [vmem:[#allocation192_spill] sm:$0xff] %v5422_v27  ;;  %v1448_v30 = vmul.f32 %v5129_v6, %v5129_v6  ;;  %v5427_v0 = vpop.f32.mrf.mxu2  ;;  %v9804_v60 = vld [vmem:[#allocation61_spill] sm:$0xff] }
 0x2fc   :  { %v1465_v61 = vmul.f32 %v9804_v60, %v9804_v60 }
 0x2fd   :  { %v1701_v2 = vadd.f32 %v1700_v15, %v1446_v48  ;;  %v1184_v53 = vadd.f32 %v1183_v16, %v5102_v46  ;;  %v1449_v15 = vmul.f32 %v5162_v28, %v5162_v28  ;;  %v255_v16 = vld [vmem:[%s8885_s0 + $0x788] sm:$0xff] }
 0x2ff   :  { %v1702_v26 = vadd.f32 %v1701_v2, %v1447_v43  ;;  %v1185_v8 = vadd.f32 %v1184_v53, %v5129_v6  ;;  %v1450_v53 = vmul.f32 %v5189_v58, %v5189_v58  ;;  %1025 = vmatmul.f32.gmra.mxu3 %v255_v16 }
 0x301   :  { %v1703_v57 = vadd.f32 %v1702_v26, %v1448_v30  ;;  %v1186_v23 = vadd.f32 %v1185_v8, %v5162_v28  ;;  %v1451_v8 = vmul.f32 %v5220_v56, %v5220_v56  ;;  %v1452_v28 = vmul.f32 %v5247_v21, %v5247_v21 }
 0x303   :  { %v1704_v48 = vadd.f32 %v1703_v57, %v1449_v15  ;;  %v1187_v2 = vadd.f32 %v1186_v23, %v5189_v58  ;;  %v5444_v46 = vpop.f32.mrf.mxu2  ;;  %v5446_v57 = vpop.f32.mrf.mxu1 }
 0x304   :  { %9792 = vst [vmem:[#allocation193_spill] sm:$0xff] %v5444_v46  ;;  %v5448_v23 = vpop.f32.mrf.mxu3 }
 0x305   :  { %v1705_v43 = vadd.f32 %v1704_v48, %v1450_v53  ;;  %v1188_v6 = vadd.f32 %v1187_v2, %v5220_v56  ;;  %9793 = vst [vmem:[#allocation194_spill] sm:$0xff] %v5446_v57  ;;  %v1453_v48 = vmul.f32 %v5280_v11, %v5280_v11  ;;  %v256_v2 = vld [vmem:[%s8885_s0 + $0x790] sm:$0xff] }
 0x306   :  { %9794 = vst [vmem:[#allocation195_spill] sm:$0xff] %v5448_v23 }
 0x307   :  { %v1706_v26 = vadd.f32 %v1705_v43, %v1451_v8  ;;  %v1189_v30 = vadd.f32 %v1188_v6, %v5247_v21  ;;  %v1454_v43 = vmul.f32 %v5307_v44, %v5307_v44  ;;  %1028 = vmatmul.f32.gmra.mxu3 %v256_v2 }
 0x309   :  { %v1707_v15 = vadd.f32 %v1706_v26, %v1452_v28  ;;  %v1190_v16 = vadd.f32 %v1189_v30, %v5280_v11  ;;  %v1455_v28 = vmul.f32 %v5336_v38, %v5336_v38  ;;  %v1456_v11 = vmul.f32 %v5363_v24, %v5363_v24 }
 0x30b   :  { %v1708_v6 = vadd.f32 %v1707_v15, %v1453_v48  ;;  %v1191_v53 = vadd.f32 %v1190_v16, %v5307_v44  ;;  %v5465_v56 = vpop.f32.mrf.mxu2  ;;  %v1457_v48 = vmul.f32 %v5396_v37, %v5396_v37  ;;  %v5470_v2 = vpop.f32.mrf.mxu1 }
 0x30c   :  { %9795 = vst [vmem:[#allocation196_spill] sm:$0xff] %v5465_v56 }
 0x30d   :  { %v1709_v8 = vadd.f32 %v1708_v6, %v1454_v43  ;;  %v1192_v21 = vadd.f32 %v1191_v53, %v5336_v38  ;;  %9796 = vst [vmem:[#allocation197_spill] sm:$0xff] %v5470_v2  ;;  %v5472_v6 = vpop.f32.mrf.mxu3  ;;  %v257_v53 = vld [vmem:[%s8885_s0 + $0x798] sm:$0xff]  ;;  %v9798_v38 = vld [vmem:[#allocation49_spill] sm:$0xff] }
 0x30e   :  { %9797 = vst [vmem:[#allocation198_spill] sm:$0xff] %v5472_v6 }
 0x30f   :  { %v1710_v26 = vadd.f32 %v1709_v8, %v1455_v28  ;;  %v1193_v30 = vadd.f32 %v1192_v21, %v5363_v24  ;;  %v1458_v8 = vmul.f32 %v5420_v25, %v5420_v25  ;;  %1031 = vmatmul.f32.gmra.mxu3 %v257_v53  ;;  %v258_v53 = vld [vmem:[%s8885_s0 + $0x7a0] sm:$0xff] }
 0x311   :  { %v1711_v15 = vadd.f32 %v1710_v26, %v1456_v11  ;;  %v1194_v16 = vadd.f32 %v1193_v30, %v5396_v37  ;;  %v1459_v26 = vmul.f32 %v5446_v57, %v5446_v57  ;;  %v1460_v30 = vmul.f32 %v5470_v2, %v5470_v2 }
 0x313   :  { %v1712_v21 = vadd.f32 %v1711_v15, %v1457_v48  ;;  %v1195_v43 = vadd.f32 %v1194_v16, %v5420_v25  ;;  %v1461_v15 = vmul.f32 %v9798_v38, %v9798_v38  ;;  %v5489_v25 = vpop.f32.mrf.mxu2 }
 0x314   :  { %9799 = vst [vmem:[#allocation49_spill] sm:$0xff] %v5489_v25 }
 0x315   :  { %v1713_v11 = vadd.f32 %v1712_v21, %v1458_v8  ;;  %v1196_v28 = vadd.f32 %v1195_v43, %v5446_v57  ;;  %v9800_v21 = vld [vmem:[#allocation52_spill] sm:$0xff] }
 0x316   :  { %v1462_v43 = vmul.f32 %v9800_v21, %v9800_v21 }
 0x317   :  { %v1714_v37 = vadd.f32 %v1713_v11, %v1459_v26  ;;  %v1197_v24 = vadd.f32 %v1196_v28, %v5470_v2  ;;  %1034 = vmatmul.f32.gmra.mxu3 %v258_v53  ;;  %v5497_v28 = vpop.f32.mrf.mxu3  ;;  %v9802_v26 = vld [vmem:[#allocation55_spill] sm:$0xff]  ;;  %v9805_v53 = vld [vmem:[#allocation64_spill] sm:$0xff] }
 0x318   :  { %9801 = vst [vmem:[#allocation199_spill] sm:$0xff] %v5497_v28  ;;  %v1463_v2 = vmul.f32 %v9802_v26, %v9802_v26 }
 0x319   :  { %v1198_v16 = vadd.f32 %v1197_v24, %v9798_v38  ;;  %v1715_v48 = vadd.f32 %v1714_v37, %v1460_v30  ;;  %v9803_v30 = vld [vmem:[#allocation58_spill] sm:$0xff] }
 0x31a   :  { %v1464_v57 = vmul.f32 %v9803_v30, %v9803_v30 }
 0x31b   :  { %v1199_v8 = vadd.f32 %v1198_v16, %v9800_v21  ;;  %v1716_v11 = vadd.f32 %v1715_v48, %v1461_v15  ;;  %v259_v48 = vld [vmem:[%s8885_s0 + $0x7a8] sm:$0xff]  ;;  %v5514_v22 = vpop.f32.mrf.mxu2 }
 0x31c   :  { %9806 = vst [vmem:[#allocation200_spill] sm:$0xff] %v5514_v22 }
 0x31d   :  { %v1200_v24 = vadd.f32 %v1199_v8, %v9802_v26  ;;  %v1717_v37 = vadd.f32 %v1716_v11, %v1462_v43  ;;  %v1466_v8 = vmul.f32 %v9805_v53, %v9805_v53 }
 0x31f   :  { %v1201_v44 = vadd.f32 %v1200_v24, %v9803_v30  ;;  %v1718_v58 = vadd.f32 %v1717_v37, %v1463_v2  ;;  %1037 = vmatmul.f32.gmra.mxu3 %v259_v48  ;;  %v9807_v2 = vld [vmem:[#allocation67_spill] sm:$0xff]  ;;  %v260_v48 = vld [vmem:[%s8885_s0 + $0x7b0] sm:$0xff] }
 0x320   :  { %v1467_v24 = vmul.f32 %v9807_v2, %v9807_v2 }
 0x321   :  { %v1202_v15 = vadd.f32 %v1201_v44, %v9804_v60  ;;  %v1719_v16 = vadd.f32 %v1718_v58, %v1464_v57  ;;  %v5519_v58 = vpop.f32.mrf.mxu3  ;;  %v9809_v57 = vld [vmem:[#allocation70_spill] sm:$0xff]  ;;  %v9821_v60 = vld [vmem:[#allocation97_spill] sm:$0xff] }
 0x322   :  { %9808 = vst [vmem:[#allocation201_spill] sm:$0xff] %v5519_v58  ;;  %v1468_v62 = vmul.f32 %v9809_v57, %v9809_v57  ;;  %v1477_v30 = vmul.f32 %v9821_v60, %v9821_v60 }
 0x323   :  { %v1203_v43 = vadd.f32 %v1202_v15, %v9805_v53  ;;  %v1720_v11 = vadd.f32 %v1719_v16, %v1465_v61  ;;  %v1469_v61 = vmul.f32 %v9810_v36, %v9810_v36  ;;  %v9816_v53 = vld [vmem:[#allocation85_spill] sm:$0xff] }
 0x325   :  { %v1204_v37 = vadd.f32 %v1203_v43, %v9807_v2  ;;  %v1721_v44 = vadd.f32 %v1720_v11, %v1466_v8  ;;  %v9811_v43 = vld [vmem:[#allocation76_spill] sm:$0xff] }
 0x326   :  { %v1470_v8 = vmul.f32 %v9811_v43, %v9811_v43 }
 0x327   :  { %v1205_v7 = vadd.f32 %v1204_v37, %v9809_v57  ;;  %v1722_v41 = vadd.f32 %v1721_v44, %v1467_v24  ;;  %1040 = vmatmul.f32.gmra.mxu3 %v260_v48  ;;  %v1471_v24 = vmul.f32 %v9812_v35, %v9812_v35  ;;  %v5536_v57 = vpop.f32.mrf.mxu2  ;;  %v9817_v48 = vld [vmem:[#allocation88_spill] sm:$0xff] }
 0x328   :  { %9813 = vst [vmem:[#allocation202_spill] sm:$0xff] %v5536_v57 }
 0x329   :  { %v1206_v15 = vadd.f32 %v1205_v7, %v9810_v36  ;;  %v1723_v16 = vadd.f32 %v1722_v41, %v1468_v62  ;;  %v9814_v41 = vld [vmem:[#allocation82_spill] sm:$0xff]  ;;  %v5541_v2 = vpop.f32.mrf.mxu3 }
 0x32a   :  { %v1472_v7 = vmul.f32 %v9814_v41, %v9814_v41  ;;  %9815 = vst [vmem:[#allocation203_spill] sm:$0xff] %v5541_v2 }
 0x32b   :  { %v1207_v11 = vadd.f32 %v1206_v15, %v9811_v43  ;;  %v1724_v29 = vadd.f32 %v1723_v16, %v1469_v61  ;;  %v1473_v61 = vmul.f32 %v9816_v53, %v9816_v53  ;;  %v9819_v43 = vld [vmem:[#allocation94_spill] sm:$0xff] }
 0x32d   :  { %v1208_v37 = vadd.f32 %v1207_v11, %v9812_v35  ;;  %v1725_v44 = vadd.f32 %v1724_v29, %v1470_v8  ;;  %v261_v29 = vld [vmem:[%s8885_s0 + $0x7b8] sm:$0xff]  ;;  %v1474_v8 = vmul.f32 %v9817_v48, %v9817_v48 }
 0x32f   :  { %v1209_v62 = vadd.f32 %v1208_v37, %v9814_v41  ;;  %v1726_v36 = vadd.f32 %v1725_v44, %v1471_v24  ;;  %1043 = vmatmul.f32.gmra.mxu3 %v261_v29  ;;  %v9818_v24 = vld [vmem:[#allocation91_spill] sm:$0xff]  ;;  %v9823_v29 = vld [vmem:[#allocation101_spill] sm:$0xff] }
 0x330   :  { %v1475_v37 = vmul.f32 %v9818_v24, %v9818_v24 }
 0x331   :  { %v1210_v15 = vadd.f32 %v1209_v62, %v9816_v53  ;;  %v1727_v16 = vadd.f32 %v1726_v36, %v1472_v7  ;;  %v1476_v36 = vmul.f32 %v9819_v43, %v9819_v43  ;;  %v5558_v53 = vpop.f32.mrf.mxu2 }
 0x332   :  { %9820 = vst [vmem:[#allocation204_spill] sm:$0xff] %v5558_v53 }
 0x333   :  { %v1211_v11 = vadd.f32 %v1210_v15, %v9817_v48  ;;  %v1728_v35 = vadd.f32 %v1727_v16, %v1473_v61  ;;  %v5563_v16 = vpop.f32.mrf.mxu3  ;;  %v9826_v48 = vld [vmem:[#allocation113_spill] sm:$0xff] }
 0x334   :  { %9822 = vst [vmem:[#allocation205_spill] sm:$0xff] %v5563_v16  ;;  %v1481_v26 = vmul.f32 %v9826_v48, %v9826_v48 }
 0x335   :  { %v1212_v44 = vadd.f32 %v1211_v11, %v9818_v24  ;;  %v1729_v41 = vadd.f32 %v1728_v35, %v1474_v8  ;;  %v262_v35 = vld [vmem:[%s8885_s0 + $0x7c0] sm:$0xff]  ;;  %v1478_v8 = vmul.f32 %v9823_v29, %v9823_v29 }
 0x337   :  { %v1213_v7 = vadd.f32 %v1212_v44, %v9819_v43  ;;  %v1730_v62 = vadd.f32 %v1729_v41, %v1475_v37  ;;  %1046 = vmatmul.f32.gmra.mxu3 %v262_v35  ;;  %v9824_v37 = vld [vmem:[#allocation105_spill] sm:$0xff]  ;;  %v1482_v35 = vmul.f32 %v4729_v10, %v4729_v10 }
 0x338   :  { %v1479_v44 = vmul.f32 %v9824_v37, %v9824_v37 }
 0x339   :  { %v1214_v61 = vadd.f32 %v1213_v7, %v9821_v60  ;;  %v1731_v15 = vadd.f32 %v1730_v62, %v1476_v36  ;;  %v9825_v36 = vld [vmem:[#allocation109_spill] sm:$0xff] }
 0x33a   :  { %v1480_v62 = vmul.f32 %v9825_v36, %v9825_v36 }
 0x33b   :  { %v1215_v11 = vadd.f32 %v1214_v61, %v9823_v29  ;;  %v1732_v41 = vadd.f32 %v1731_v15, %v1477_v30  ;;  %v5580_v30 = vpop.f32.mrf.mxu2  ;;  %v263_v15 = vld [vmem:[%s8885_s0 + $0x7c8] sm:$0xff] }
 0x33c   :  { %9827 = vst [vmem:[#allocation101_spill] sm:$0xff] %v5580_v30 }
 0x33d   :  { %v1216_v43 = vadd.f32 %v1215_v11, %v9824_v37  ;;  %v1733_v7 = vadd.f32 %v1732_v41, %v1478_v8  ;;  %v1483_v41 = vmul.f32 %v4758_v45, %v4758_v45 }
 0x33f   :  { %v1217_v60 = vadd.f32 %v1216_v43, %v9825_v36  ;;  %v1734_v24 = vadd.f32 %v1733_v7, %v1479_v44  ;;  %1049 = vmatmul.f32.gmra.mxu3 %v263_v15  ;;  %v5588_v43 = vpop.f32.mrf.mxu3  ;;  %v1484_v44 = vmul.f32 %v4787_v3, %v4787_v3  ;;  %v1486_v15 = vmul.f32 %v4845_v59, %v4845_v59 }
 0x340   :  { %9828 = vst [vmem:[#allocation105_spill] sm:$0xff] %v5588_v43 }
 0x341   :  { %v1218_v21 = vadd.f32 %v1217_v60, %v9826_v48  ;;  %v1735_v61 = vadd.f32 %v1734_v24, %v1480_v62  ;;  %v1485_v48 = vmul.f32 %v4816_v40, %v4816_v40 }
 0x343   :  { %v1219_v8 = vadd.f32 %v1218_v21, %v4729_v10  ;;  %v1736_v11 = vadd.f32 %v1735_v61, %v1481_v26  ;;  %v264_v61 = vld [vmem:[%s8885_s0 + $0x7d0] sm:$0xff] }
 0x345   :  { %v1220_v60 = vadd.f32 %v1219_v8, %v4758_v45  ;;  %v1737_v24 = vadd.f32 %v1736_v11, %v1482_v35  ;;  %v5605_v11 = vpop.f32.mrf.mxu2 }
 0x346   :  { %9829 = vst [vmem:[#allocation109_spill] sm:$0xff] %v5605_v11 }
 0x347   :  { %v1221_v7 = vadd.f32 %v1220_v60, %v4787_v3  ;;  %v1738_v62 = vadd.f32 %v1737_v24, %v1483_v41  ;;  %1052 = vmatmul.f32.gmra.mxu3 %v264_v61  ;;  %v1487_v41 = vmul.f32 %v4874_v52, %v4874_v52  ;;  %v265_v61 = vld [vmem:[%s8885_s0 + $0x7d8] sm:$0xff] }
 0x349   :  { %v1222_v21 = vadd.f32 %v1221_v7, %v4816_v40  ;;  %v1739_v26 = vadd.f32 %v1738_v62, %v1484_v44  ;;  %v5610_v44 = vpop.f32.mrf.mxu3  ;;  %v1488_v7 = vmul.f32 %v4903_v39, %v4903_v39 }
 0x34a   :  { %9830 = vst [vmem:[#allocation206_spill] sm:$0xff] %v5610_v44 }
 0x34b   :  { %v1223_v35 = vadd.f32 %v1222_v21, %v4845_v59  ;;  %v1740_v8 = vadd.f32 %v1739_v26, %v1485_v48  ;;  %v1489_v48 = vmul.f32 %v4932_v51, %v4932_v51 }
 0x34d   :  { %v1741_v60 = vadd.f32 %v1740_v8, %v1486_v15  ;;  %v1224_v24 = vadd.f32 %v1223_v35, %v4874_v52  ;;  %v1490_v15 = vmul.f32 %v4961_v63, %v4961_v63 }
 0x34f   :  { %v1225_v62 = vadd.f32 %v1224_v24, %v4903_v39  ;;  %v1742_v40 = vadd.f32 %v1741_v60, %v1487_v41  ;;  %1055 = vmatmul.f32.gmra.mxu3 %v265_v61  ;;  %v1491_v41 = vmul.f32 %v4990_v14, %v4990_v14  ;;  %v5627_v39 = vpop.f32.mrf.mxu2  ;;  %v266_v61 = vld [vmem:[%s8885_s0 + $0x7e0] sm:$0xff] }
 0x350   :  { %9831 = vst [vmem:[#allocation207_spill] sm:$0xff] %v5627_v39 }
 0x351   :  { %v1226_v21 = vadd.f32 %v1225_v62, %v4932_v51  ;;  %v1743_v26 = vadd.f32 %v1742_v40, %v1488_v7  ;;  %v1492_v40 = vmul.f32 %v5019_v34, %v5019_v34  ;;  %v5632_v51 = vpop.f32.mrf.mxu3 }
 0x352   :  { %9832 = vst [vmem:[#allocation208_spill] sm:$0xff] %v5632_v51 }
 0x353   :  { %v1227_v35 = vadd.f32 %v1226_v21, %v4961_v63  ;;  %v1744_v8 = vadd.f32 %v1743_v26, %v1489_v48  ;;  %v1493_v48 = vmul.f32 %v5048_v17, %v5048_v17  ;;  %v1501_v63 = vmul.f32 %v5240_v49, %v5240_v49 }
 0x355   :  { %v1228_v60 = vadd.f32 %v1227_v35, %v4990_v14  ;;  %v1745_v24 = vadd.f32 %v1744_v8, %v1490_v15  ;;  %v1494_v15 = vmul.f32 %v5074_v1, %v5074_v1  ;;  %v1497_v14 = vmul.f32 %v5146_v50, %v5146_v50 }
 0x357   :  { %v1229_v7 = vadd.f32 %v1228_v60, %v5019_v34  ;;  %v1746_v62 = vadd.f32 %v1745_v24, %v1491_v41  ;;  %1058 = vmatmul.f32.gmra.mxu3 %v266_v61  ;;  %v1495_v41 = vmul.f32 %v5098_v13, %v5098_v13  ;;  %v5649_v34 = vpop.f32.mrf.mxu2  ;;  %v267_v61 = vld [vmem:[%s8885_s0 + $0x7e8] sm:$0xff] }
 0x358   :  { %9833 = vst [vmem:[#allocation209_spill] sm:$0xff] %v5649_v34 }
 0x359   :  { %v1230_v21 = vadd.f32 %v1229_v7, %v5048_v17  ;;  %v1747_v26 = vadd.f32 %v1746_v62, %v1492_v40  ;;  %v1496_v40 = vmul.f32 %v5122_v12, %v5122_v12 }
 0x35b   :  { %v1231_v35 = vadd.f32 %v1230_v21, %v5074_v1  ;;  %v1748_v8 = vadd.f32 %v1747_v26, %v1493_v48  ;;  %v5654_v26 = vpop.f32.mrf.mxu3 }
 0x35c   :  { %9834 = vst [vmem:[#allocation210_spill] sm:$0xff] %v5654_v26 }
 0x35d   :  { %v1232_v60 = vadd.f32 %v1231_v35, %v5098_v13  ;;  %v1749_v24 = vadd.f32 %v1748_v8, %v1494_v15  ;;  %v1498_v15 = vmul.f32 %v5170_v32, %v5170_v32 }
 0x35f   :  { %v1233_v7 = vadd.f32 %v1232_v60, %v5122_v12  ;;  %v1750_v62 = vadd.f32 %v1749_v24, %v1495_v41  ;;  %1061 = vmatmul.f32.gmra.mxu3 %v267_v61  ;;  %v1499_v41 = vmul.f32 %v5194_v4, %v5194_v4  ;;  %v268_v61 = vld [vmem:[%s8885_s0 + $0x7f0] sm:$0xff] }
 0x361   :  { %v1234_v48 = vadd.f32 %v1233_v7, %v5146_v50  ;;  %v1751_v21 = vadd.f32 %v1750_v62, %v1496_v40  ;;  %v1500_v40 = vmul.f32 %v5216_v55, %v5216_v55 }
 0x363   :  { %v1235_v35 = vadd.f32 %v1234_v48, %v5170_v32  ;;  %v1752_v8 = vadd.f32 %v1751_v21, %v1497_v14  ;;  %v3163_v14 = vld [vmem:[%s8886_s2 + $0x8] sm:$0xff]  ;;  %v5674_v21 = vpop.f32.mrf.mxu2 }
 0x364   :  { %3184 = vmatpush.xpose.msrb.mxu1 %v3163_v14  ;;  %9835 = vst [vmem:[#allocation211_spill] sm:$0xff] %v5674_v21 }
 0x365   :  { %v1236_v60 = vadd.f32 %v1235_v35, %v5194_v4  ;;  %v1753_v24 = vadd.f32 %v1752_v8, %v1498_v15  ;;  %v1502_v15 = vmul.f32 %v5264_v5, %v5264_v5 }
 0x367   :  { %v1237_v7 = vadd.f32 %v1236_v60, %v5216_v55  ;;  %v1754_v62 = vadd.f32 %v1753_v24, %v1499_v41  ;;  %1064 = vmatmul.f32.gmra.mxu3 %v268_v61  ;;  %v5682_v41 = vpop.f32.mrf.mxu3  ;;  %v1503_v60 = vmul.f32 %v5288_v42, %v5288_v42  ;;  %v1506_v61 = vmul.f32 %v5358_v33, %v5358_v33 }
 0x368   :  { %9836 = vst [vmem:[#allocation212_spill] sm:$0xff] %v5682_v41 }
 0x369   :  { %v1238_v50 = vadd.f32 %v1237_v7, %v5240_v49  ;;  %v1755_v48 = vadd.f32 %v1754_v62, %v1500_v40  ;;  %v1504_v7 = vmul.f32 %v5312_v20, %v5312_v20  ;;  %v1505_v49 = vmul.f32 %v5334_v18, %v5334_v18 }
 0x36b   :  { %v1239_v35 = vadd.f32 %v1238_v50, %v5264_v5  ;;  %v1756_v8 = vadd.f32 %v1755_v48, %v1501_v63  ;;  %v269_v48 = vld [vmem:[%s8885_s0 + $0x7f8] sm:$0xff] }
 0x36d   :  { %v1240_v24 = vadd.f32 %v1239_v35, %v5288_v42  ;;  %v1757_v40 = vadd.f32 %v1756_v8, %v1502_v15  ;;  %v5699_v8 = vpop.f32.mrf.mxu2 }
 0x36e   :  { %9837 = vst [vmem:[#allocation213_spill] sm:$0xff] %v5699_v8 }
 0x36f   :  { %v1241_v62 = vadd.f32 %v1240_v24, %v5312_v20  ;;  %v1758_v14 = vadd.f32 %v1757_v40, %v1503_v60  ;;  %1067 = vmatmul.f32.gmra.mxu3 %v269_v48  ;;  %v1507_v60 = vmul.f32 %v5382_v54, %v5382_v54 }
 0x371   :  { %v1242_v50 = vadd.f32 %v1241_v62, %v5334_v18  ;;  %v1759_v63 = vadd.f32 %v1758_v14, %v1504_v7  ;;  %v5704_v7 = vpop.f32.mrf.mxu3  ;;  %v1508_v14 = vmul.f32 %v5406_v47, %v5406_v47 }
 0x372   :  { %9838 = vst [vmem:[#allocation214_spill] sm:$0xff] %v5704_v7 }
 0x373   :  { %v1243_v15 = vadd.f32 %v1242_v50, %v5358_v33  ;;  %v1760_v35 = vadd.f32 %v1759_v63, %v1505_v49  ;;  %v1509_v50 = vmul.f32 %v5427_v0, %v5427_v0 }
 0x375   :  { %v1244_v24 = vadd.f32 %v1243_v15, %v5382_v54  ;;  %v1761_v40 = vadd.f32 %v1760_v35, %v1506_v61  ;;  %v1510_v61 = vmul.f32 %v5444_v46, %v5444_v46 }
 0x377   :  { %v1245_v62 = vadd.f32 %v1244_v24, %v5406_v47  ;;  %v1762_v18 = vadd.f32 %v1761_v40, %v1507_v60  ;;  %v1511_v24 = vmul.f32 %v5465_v56, %v5465_v56  ;;  %v5718_v47 = vpop.f32.mrf.mxu2  ;;  %v1512_v40 = vmul.f32 %v5489_v25, %v5489_v25 }
 0x378   :  { %9839 = vst [vmem:[#allocation215_spill] sm:$0xff] %v5718_v47 }
 0x379   :  { %v1763_v20 = vadd.f32 %v1762_v18, %v1508_v14  ;;  %v1246_v49 = vadd.f32 %v1245_v62, %v5427_v0 }
 0x37b   :  { %v1764_v63 = vadd.f32 %v1763_v20, %v1509_v50  ;;  %v1247_v48 = vadd.f32 %v1246_v49, %v5444_v46  ;;  %v5723_v20 = vpop.f32.mrf.mxu3  ;;  %v1513_v49 = vmul.f32 %v5514_v22, %v5514_v22 }
 0x37c   :  { %9840 = vst [vmem:[#allocation216_spill] sm:$0xff] %v5723_v20 }
 0x37d   :  { %v1765_v15 = vadd.f32 %v1764_v63, %v1510_v61  ;;  %v1248_v35 = vadd.f32 %v1247_v48, %v5465_v56  ;;  %v1514_v48 = vmul.f32 %v5536_v57, %v5536_v57 }
 0x37f   :  { %v1766_v18 = vadd.f32 %v1765_v15, %v1511_v24  ;;  %v1249_v60 = vadd.f32 %v1248_v35, %v5489_v25  ;;  %v1515_v35 = vmul.f32 %v5558_v53, %v5558_v53 }
 0x381   :  { %v1767_v62 = vadd.f32 %v1766_v18, %v1512_v40  ;;  %v1250_v14 = vadd.f32 %v1249_v60, %v5514_v22  ;;  %v1516_v60 = vmul.f32 %v5580_v30, %v5580_v30  ;;  %v5737_v40 = vpop.f32.mrf.mxu2 }
 0x382   :  { %9841 = vst [vmem:[#allocation217_spill] sm:$0xff] %v5737_v40 }
 0x383   :  { %v1768_v50 = vadd.f32 %v1767_v62, %v1513_v49  ;;  %v1251_v63 = vadd.f32 %v1250_v14, %v5536_v57  ;;  %v1517_v49 = vmul.f32 %v5605_v11, %v5605_v11 }
 0x385   :  { %v1769_v61 = vadd.f32 %v1768_v50, %v1514_v48  ;;  %v1252_v15 = vadd.f32 %v1251_v63, %v5558_v53  ;;  %v5742_v50 = vpop.f32.mrf.mxu3 }
 0x386   :  { %9842 = vst [vmem:[#allocation218_spill] sm:$0xff] %v5742_v50 }
 0x387   :  { %v1770_v24 = vadd.f32 %v1769_v61, %v1515_v35  ;;  %v1253_v18 = vadd.f32 %v1252_v15, %v5580_v30  ;;  %v1518_v61 = vmul.f32 %v5627_v39, %v5627_v39  ;;  %v1519_v30 = vmul.f32 %v5649_v34, %v5649_v34 }
 0x389   :  { %v1771_v62 = vadd.f32 %v1770_v24, %v1516_v60  ;;  %v1254_v14 = vadd.f32 %v1253_v18, %v5605_v11  ;;  %v1520_v60 = vmul.f32 %v5674_v21, %v5674_v21 }
 0x38b   :  { %v1772_v63 = vadd.f32 %v1771_v62, %v1517_v49  ;;  %v1255_v48 = vadd.f32 %v1254_v14, %v5627_v39  ;;  %v1521_v14 = vmul.f32 %v5699_v8, %v5699_v8  ;;  %v5756_v49 = vpop.f32.mrf.mxu2 }
 0x38c   :  { %9843 = vst [vmem:[#allocation219_spill] sm:$0xff] %v5756_v49 }
 0x38d   :  { %v1773_v15 = vadd.f32 %v1772_v63, %v1518_v61  ;;  %v1256_v35 = vadd.f32 %v1255_v48, %v5649_v34  ;;  %v1522_v61 = vmul.f32 %v5718_v47, %v5718_v47  ;;  %v9847_v34 = vld [vmem:[#allocation106_spill] sm:$0xff] }
 0x38f   :  { %v1774_v24 = vadd.f32 %v1773_v15, %v1519_v30  ;;  %v1257_v18 = vadd.f32 %v1256_v35, %v5674_v21  ;;  %v5761_v30 = vpop.f32.mrf.mxu3  ;;  %v9846_v21 = vld [vmem:[#allocation102_spill] sm:$0xff] }
 0x390   :  { %9844 = vst [vmem:[#allocation220_spill] sm:$0xff] %v5761_v30 }
 0x391   :  { %v1775_v11 = vadd.f32 %v1774_v24, %v1520_v60  ;;  %v1258_v62 = vadd.f32 %v1257_v18, %v5699_v8  ;;  %v1523_v24 = vmul.f32 %v5737_v40, %v5737_v40  ;;  %v1524_v18 = vmul.f32 %v5756_v49, %v5756_v49 }
 0x393   :  { %v1776_v63 = vadd.f32 %v1775_v11, %v1521_v14  ;;  %v1259_v48 = vadd.f32 %v1258_v62, %v5718_v47  ;;  %v9845_v11 = vld [vmem:[#allocation98_spill] sm:$0xff] }
 0x394   :  { %v1525_v62 = vmul.f32 %v9845_v11, %v9845_v11 }
 0x395   :  { %v1777_v15 = vadd.f32 %v1776_v63, %v1522_v61  ;;  %v1260_v35 = vadd.f32 %v1259_v48, %v5737_v40  ;;  %v1526_v63 = vmul.f32 %v9846_v21, %v9846_v21  ;;  %v1527_v40 = vmul.f32 %v9847_v34, %v9847_v34 }
 0x397   :  { %v1778_v60 = vadd.f32 %v1777_v15, %v1523_v24  ;;  %v1261_v8 = vadd.f32 %v1260_v35, %v5756_v49  ;;  %v5778_v24 = vpop.f32.mrf.mxu3  ;;  %v9849_v35 = vld [vmem:[#allocation110_spill] sm:$0xff] }
 0x398   :  { %9848 = vst [vmem:[#allocation221_spill] sm:$0xff] %v5778_v24  ;;  %v1528_v49 = vmul.f32 %v9849_v35, %v9849_v35 }
 0x399   :  { %v1262_v14 = vadd.f32 %v1261_v8, %v9845_v11  ;;  %v1779_v47 = vadd.f32 %v1778_v60, %v1524_v18  ;;  %v9850_v60 = vld [vmem:[#allocation114_spill] sm:$0xff] }
 0x39a   :  { %v1529_v11 = vmul.f32 %v9850_v60, %v9850_v60 }
 0x39b   :  { %v1263_v48 = vadd.f32 %v1262_v14, %v9846_v21  ;;  %v1780_v61 = vadd.f32 %v1779_v47, %v1525_v62  ;;  %v9851_v62 = vld [vmem:[#allocation117_spill] sm:$0xff] }
 0x39c   :  { %v1530_v21 = vmul.f32 %v9851_v62, %v9851_v62 }
 0x39d   :  { %v1264_v39 = vadd.f32 %v1263_v48, %v9847_v34  ;;  %v1781_v15 = vadd.f32 %v1780_v61, %v1526_v63  ;;  %v9852_v61 = vld [vmem:[#allocation120_spill] sm:$0xff] }
 0x39e   :  { %v1531_v34 = vmul.f32 %v9852_v61, %v9852_v61 }
 0x39f   :  { %v1265_v8 = vadd.f32 %v1264_v39, %v9849_v35  ;;  %v1782_v18 = vadd.f32 %v1781_v15, %v1527_v40  ;;  %v9853_v39 = vld [vmem:[#allocation123_spill] sm:$0xff] }
 0x3a0   :  { %v1532_v40 = vmul.f32 %v9853_v39, %v9853_v39 }
 0x3a1   :  { %v1266_v14 = vadd.f32 %v1265_v8, %v9850_v60  ;;  %v1783_v47 = vadd.f32 %v1782_v18, %v1528_v49  ;;  %v5795_v8 = vpop.f32.mrf.mxu3  ;;  %v9855_v49 = vld [vmem:[#allocation127_spill] sm:$0xff] }
 0x3a2   :  { %9854 = vst [vmem:[#allocation222_spill] sm:$0xff] %v5795_v8  ;;  %v1533_v18 = vmul.f32 %v9855_v49, %v9855_v49 }
 0x3a3   :  { %v1267_v48 = vadd.f32 %v1266_v14, %v9851_v62  ;;  %v1784_v63 = vadd.f32 %v1783_v47, %v1529_v11  ;;  %v9856_v47 = vld [vmem:[#allocation130_spill] sm:$0xff] }
 0x3a4   :  { %v1534_v62 = vmul.f32 %v9856_v47, %v9856_v47 }
 0x3a5   :  { %v1268_v53 = vadd.f32 %v1267_v48, %v9852_v61  ;;  %v1785_v57 = vadd.f32 %v1784_v63, %v1530_v21  ;;  %v9857_v63 = vld [vmem:[#allocation133_spill] sm:$0xff] }
 0x3a6   :  { %v1535_v61 = vmul.f32 %v9857_v63, %v9857_v63 }
 0x3a7   :  { %v1269_v15 = vadd.f32 %v1268_v53, %v9853_v39  ;;  %v1786_v35 = vadd.f32 %v1785_v57, %v1531_v34  ;;  %v9858_v57 = vld [vmem:[#allocation137_spill] sm:$0xff] }
 0x3a8   :  { %v1536_v39 = vmul.f32 %v9858_v57, %v9858_v57 }
 0x3a9   :  { %v1270_v14 = vadd.f32 %v1269_v15, %v9855_v49  ;;  %v1787_v11 = vadd.f32 %v1786_v35, %v1532_v40  ;;  %v9859_v15 = vld [vmem:[#allocation141_spill] sm:$0xff] }
 0x3aa   :  { %v1537_v35 = vmul.f32 %v9859_v15, %v9859_v15 }
 0x3ab   :  { %v1271_v48 = vadd.f32 %v1270_v14, %v9856_v47  ;;  %v1788_v21 = vadd.f32 %v1787_v11, %v1533_v18  ;;  %v5812_v14 = vpop.f32.mrf.mxu3  ;;  %v9861_v18 = vld [vmem:[#allocation145_spill] sm:$0xff] }
 0x3ac   :  { %9860 = vst [vmem:[#allocation223_spill] sm:$0xff] %v5812_v14  ;;  %v1538_v11 = vmul.f32 %v9861_v18, %v9861_v18 }
 0x3ad   :  { %v1272_v53 = vadd.f32 %v1271_v48, %v9857_v63  ;;  %v1789_v34 = vadd.f32 %v1788_v21, %v1534_v62  ;;  %v9862_v21 = vld [vmem:[#allocation149_spill] sm:$0xff] }
 0x3ae   :  { %v1539_v63 = vmul.f32 %v9862_v21, %v9862_v21 }
 0x3af   :  { %v1273_v60 = vadd.f32 %v1272_v53, %v9858_v57  ;;  %v1790_v22 = vadd.f32 %v1789_v34, %v1535_v61  ;;  %v9863_v34 = vld [vmem:[#allocation153_spill] sm:$0xff] }
 0x3b0   :  { %v1540_v57 = vmul.f32 %v9863_v34, %v9863_v34 }
 0x3b1   :  { %v1274_v40 = vadd.f32 %v1273_v60, %v9859_v15  ;;  %v1791_v49 = vadd.f32 %v1790_v22, %v1536_v39  ;;  %v9864_v39 = vld [vmem:[#allocation156_spill] sm:$0xff] }
 0x3b2   :  { %v1541_v15 = vmul.f32 %v9864_v39, %v9864_v39 }
 0x3b3   :  { %v1275_v48 = vadd.f32 %v1274_v40, %v9861_v18  ;;  %v1792_v62 = vadd.f32 %v1791_v49, %v1537_v35  ;;  %v9865_v40 = vld [vmem:[#allocation159_spill] sm:$0xff] }
 0x3b4   :  { %v1542_v49 = vmul.f32 %v9865_v40, %v9865_v40 }
 0x3b5   :  { %v1276_v53 = vadd.f32 %v1275_v48, %v9862_v21  ;;  %v1793_v61 = vadd.f32 %v1792_v62, %v1538_v11  ;;  %v5829_v48 = vpop.f32.mrf.mxu3  ;;  %v9867_v11 = vld [vmem:[#allocation161_spill] sm:$0xff] }
 0x3b6   :  { %9866 = vst [vmem:[#allocation224_spill] sm:$0xff] %v5829_v48  ;;  %v1543_v62 = vmul.f32 %v9867_v11, %v9867_v11 }
 0x3b7   :  { %v1277_v60 = vadd.f32 %v1276_v53, %v9863_v34  ;;  %v1794_v22 = vadd.f32 %v1793_v61, %v1539_v63  ;;  %v9868_v61 = vld [vmem:[#allocation164_spill] sm:$0xff] }
 0x3b8   :  { %v1544_v34 = vmul.f32 %v9868_v61, %v9868_v61 }
 0x3b9   :  { %v1278_v47 = vadd.f32 %v1277_v60, %v9864_v39  ;;  %v1795_v25 = vadd.f32 %v1794_v22, %v1540_v57  ;;  %v9869_v22 = vld [vmem:[#allocation167_spill] sm:$0xff] }
 0x3ba   :  { %v1545_v39 = vmul.f32 %v9869_v22, %v9869_v22 }
 0x3bb   :  { %v1279_v35 = vadd.f32 %v1278_v47, %v9865_v40  ;;  %v1796_v18 = vadd.f32 %v1795_v25, %v1541_v15  ;;  %v9870_v15 = vld [vmem:[#allocation169_spill] sm:$0xff] }
 0x3bc   :  { %v1546_v40 = vmul.f32 %v9870_v15, %v9870_v15 }
 0x3bd   :  { %v1280_v53 = vadd.f32 %v1279_v35, %v9867_v11  ;;  %v1797_v63 = vadd.f32 %v1796_v18, %v1542_v49  ;;  %v9871_v35 = vld [vmem:[#allocation171_spill] sm:$0xff] }
 0x3be   :  { %v1547_v18 = vmul.f32 %v9871_v35, %v9871_v35 }
 0x3bf   :  { %v1281_v60 = vadd.f32 %v1280_v53, %v9868_v61  ;;  %v1798_v57 = vadd.f32 %v1797_v63, %v1543_v62  ;;  %v5846_v53 = vpop.f32.mrf.mxu3  ;;  %v9873_v62 = vld [vmem:[#allocation172_spill] sm:$0xff] }
 0x3c0   :  { %9872 = vst [vmem:[#allocation225_spill] sm:$0xff] %v5846_v53  ;;  %v1548_v63 = vmul.f32 %v9873_v62, %v9873_v62 }
 0x3c1   :  { %v1282_v47 = vadd.f32 %v1281_v60, %v9869_v22  ;;  %v1799_v25 = vadd.f32 %v1798_v57, %v1544_v34  ;;  %v9874_v60 = vld [vmem:[#allocation175_spill] sm:$0xff] }
 0x3c2   :  { %v1549_v57 = vmul.f32 %v9874_v60, %v9874_v60 }
 0x3c3   :  { %v1283_v21 = vadd.f32 %v1282_v47, %v9870_v15  ;;  %v1800_v56 = vadd.f32 %v1799_v25, %v1545_v39  ;;  %v9875_v25 = vld [vmem:[#allocation177_spill] sm:$0xff] }
 0x3c4   :  { %v1550_v15 = vmul.f32 %v9875_v25, %v9875_v25 }
 0x3c5   :  { %v1284_v49 = vadd.f32 %v1283_v21, %v9871_v35  ;;  %v1801_v11 = vadd.f32 %v1800_v56, %v1546_v40  ;;  %v9876_v40 = vld [vmem:[#allocation179_spill] sm:$0xff] }
 0x3c6   :  { %v1551_v35 = vmul.f32 %v9876_v40, %v9876_v40 }
 0x3c7   :  { %v1802_v61 = vadd.f32 %v1801_v11, %v1547_v18  ;;  %v1285_v34 = vadd.f32 %v1284_v49, %v9873_v62  ;;  %v9877_v18 = vld [vmem:[#allocation182_spill] sm:$0xff] }
 0x3c8   :  { %v1552_v49 = vmul.f32 %v9877_v18, %v9877_v18 }
 0x3c9   :  { %v1286_v47 = vadd.f32 %v1285_v34, %v9874_v60  ;;  %v1803_v39 = vadd.f32 %v1802_v61, %v1548_v63  ;;  %v5863_v34 = vpop.f32.mrf.mxu3  ;;  %v1553_v61 = vmul.f32 %v5338_v9, %v5338_v9 }
 0x3ca   :  { %9878 = vst [vmem:[#allocation226_spill] sm:$0xff] %v5863_v34 }
 0x3cb   :  { %v1287_v21 = vadd.f32 %v1286_v47, %v9875_v25  ;;  %v1804_v56 = vadd.f32 %v1803_v39, %v1549_v57  ;;  %v1554_v47 = vmul.f32 %v5365_v31, %v5365_v31  ;;  %v9929_v25 = vld [vmem:[#allocation101_spill] sm:$0xff] }
 0x3cd   :  { %v1288_v22 = vadd.f32 %v1287_v21, %v9876_v40  ;;  %v1805_v11 = vadd.f32 %v1804_v56, %v1550_v15  ;;  %v1555_v21 = vmul.f32 %v5398_v19, %v5398_v19  ;;  %v1556_v56 = vmul.f32 %v5422_v27, %v5422_v27  ;;  %v9928_v40 = vld [vmem:[#allocation204_spill] sm:$0xff] }
 0x3cf   :  { %v1289_v62 = vadd.f32 %v1288_v22, %v9877_v18  ;;  %v1806_v46 = vadd.f32 %v1805_v11, %v1551_v35 }
 0x3d1   :  { %v1290_v63 = vadd.f32 %v1289_v62, %v5338_v9  ;;  %v1807_v57 = vadd.f32 %v1806_v46, %v1552_v49  ;;  %v1557_v46 = vmul.f32 %v5448_v23, %v5448_v23  ;;  %v9927_v9 = vld [vmem:[#allocation202_spill] sm:$0xff] }
 0x3d3   :  { %v1291_v39 = vadd.f32 %v1290_v63, %v5365_v31  ;;  %v1808_v15 = vadd.f32 %v1807_v57, %v1553_v61  ;;  %v5880_v63 = vpop.f32.mrf.mxu3  ;;  %v1558_v61 = vmul.f32 %v5472_v6, %v5472_v6  ;;  %v9925_v31 = vld [vmem:[#allocation200_spill] sm:$0xff] }
 0x3d4   :  { %9879 = vst [vmem:[#allocation227_spill] sm:$0xff] %v5880_v63 }
 0x3d5   :  { %v1292_v22 = vadd.f32 %v1291_v39, %v5398_v19  ;;  %v1809_v35 = vadd.f32 %v1808_v15, %v1554_v47  ;;  %v1559_v39 = vmul.f32 %v5497_v28, %v5497_v28  ;;  %v9924_v19 = vld [vmem:[#allocation49_spill] sm:$0xff] }
 0x3d7   :  { %v1293_v11 = vadd.f32 %v1292_v22, %v5422_v27  ;;  %v1810_v18 = vadd.f32 %v1809_v35, %v1555_v21  ;;  %v1560_v22 = vmul.f32 %v5519_v58, %v5519_v58  ;;  %v9923_v27 = vld [vmem:[#allocation196_spill] sm:$0xff] }
 0x3d9   :  { %v1294_v62 = vadd.f32 %v1293_v11, %v5448_v23  ;;  %v1811_v49 = vadd.f32 %v1810_v18, %v1556_v56  ;;  %v1561_v56 = vmul.f32 %v5541_v2, %v5541_v2 }
 0x3db   :  { %v1295_v57 = vadd.f32 %v1294_v62, %v5472_v6  ;;  %v1812_v47 = vadd.f32 %v1811_v49, %v1557_v46  ;;  %v1562_v46 = vmul.f32 %v5563_v16, %v5563_v16  ;;  %v9922_v6 = vld [vmem:[#allocation193_spill] sm:$0xff] }
 0x3dd   :  { %v1296_v15 = vadd.f32 %v1295_v57, %v5497_v28  ;;  %v1813_v21 = vadd.f32 %v1812_v47, %v1558_v61  ;;  %v5897_v57 = vpop.f32.mrf.mxu3  ;;  %v1563_v61 = vmul.f32 %v5588_v43, %v5588_v43  ;;  %v9920_v28 = vld [vmem:[#allocation190_spill] sm:$0xff] }
 0x3de   :  { %9880 = vst [vmem:[#allocation228_spill] sm:$0xff] %v5897_v57 }
 0x3df   :  { %v1297_v35 = vadd.f32 %v1296_v15, %v5519_v58  ;;  %v1814_v18 = vadd.f32 %v1813_v21, %v1559_v39  ;;  %v1564_v15 = vmul.f32 %v5610_v44, %v5610_v44  ;;  %v9919_v58 = vld [vmem:[#allocation183_spill] sm:$0xff] }
 0x3e1   :  { %v1298_v11 = vadd.f32 %v1297_v35, %v5541_v2  ;;  %v1815_v23 = vadd.f32 %v1814_v18, %v1560_v22  ;;  %v1565_v35 = vmul.f32 %v5632_v51, %v5632_v51  ;;  %v9918_v2 = vld [vmem:[#allocation181_spill] sm:$0xff] }
 0x3e3   :  { %v1299_v62 = vadd.f32 %v1298_v11, %v5563_v16  ;;  %v1816_v49 = vadd.f32 %v1815_v23, %v1561_v56  ;;  %v3190_v56 = vld [vmem:[%s8886_s2 + $0x10] sm:$0xff]  ;;  %v1566_v11 = vmul.f32 %v5654_v26, %v5654_v26  ;;  %v9916_v16 = vld [vmem:[#allocation174_spill] sm:$0xff] }
 0x3e4   :  { %3210 = vmatpush.msrb.mxu2 %v3190_v56 }
 0x3e5   :  { %v1300_v47 = vadd.f32 %v1299_v62, %v5588_v43  ;;  %v1817_v39 = vadd.f32 %v1816_v49, %v1562_v46  ;;  %v9914_v43 = vld [vmem:[#allocation166_spill] sm:$0xff] }
 0x3e7   :  { %v1301_v21 = vadd.f32 %v1300_v47, %v5610_v44  ;;  %v1818_v22 = vadd.f32 %v1817_v39, %v1563_v61  ;;  %v5915_v47 = vpop.f32.mrf.mxu3  ;;  %v1567_v39 = vmul.f32 %v5682_v41, %v5682_v41  ;;  %v9911_v44 = vld [vmem:[#allocation136_spill] sm:$0xff] }
 0x3e8   :  { %9881 = vst [vmem:[#allocation229_spill] sm:$0xff] %v5915_v47 }
 0x3e9   :  { %v1302_v18 = vadd.f32 %v1301_v21, %v5632_v51  ;;  %v1819_v23 = vadd.f32 %v1818_v22, %v1564_v15  ;;  %v1568_v22 = vmul.f32 %v5704_v7, %v5704_v7 }
 0x3eb   :  { %v1303_v46 = vadd.f32 %v1302_v18, %v5654_v26  ;;  %v1820_v62 = vadd.f32 %v1819_v23, %v1565_v35  ;;  %v1569_v35 = vmul.f32 %v5723_v20, %v5723_v20  ;;  %v9910_v26 = vld [vmem:[#allocation126_spill] sm:$0xff] }
 0x3ed   :  { %v1304_v49 = vadd.f32 %v1303_v46, %v5682_v41  ;;  %v1821_v61 = vadd.f32 %v1820_v62, %v1566_v11  ;;  %v1570_v46 = vmul.f32 %v5742_v50, %v5742_v50 }
 0x3ef   :  { %v1305_v15 = vadd.f32 %v1304_v49, %v5704_v7  ;;  %v1822_v21 = vadd.f32 %v1821_v61, %v1567_v39  ;;  %v5925_v18 = vpop.f32.mrf.mxu3  ;;  %v1571_v61 = vmul.f32 %v5761_v30, %v5761_v30  ;;  %v9908_v7 = vld [vmem:[#allocation113_spill] sm:$0xff] }
 0x3f0   :  { %9882 = vst [vmem:[#allocation230_spill] sm:$0xff] %v5925_v18 }
 0x3f1   :  { %v1306_v56 = vadd.f32 %v1305_v15, %v5723_v20  ;;  %v1823_v51 = vadd.f32 %v1822_v21, %v1568_v22  ;;  %v1572_v22 = vmul.f32 %v5778_v24, %v5778_v24 }
 0x3f3   :  { %v1307_v23 = vadd.f32 %v1306_v56, %v5742_v50  ;;  %v1824_v11 = vadd.f32 %v1823_v51, %v1569_v35  ;;  %v1573_v56 = vmul.f32 %v5795_v8, %v5795_v8  ;;  %v9906_v50 = vld [vmem:[#allocation97_spill] sm:$0xff] }
 0x3f5   :  { %v1308_v62 = vadd.f32 %v1307_v23, %v5761_v30  ;;  %v1825_v49 = vadd.f32 %v1824_v11, %v1570_v46  ;;  %v1574_v11 = vmul.f32 %v5812_v14, %v5812_v14  ;;  %v9905_v30 = vld [vmem:[#allocation94_spill] sm:$0xff] }
 0x3f7   :  { %v1309_v39 = vadd.f32 %v1308_v62, %v5778_v24  ;;  %v1826_v15 = vadd.f32 %v1825_v49, %v1571_v61  ;;  %v5934_v21 = vpop.f32.mrf.mxu3  ;;  %v1575_v61 = vmul.f32 %v5829_v48, %v5829_v48  ;;  %v9904_v24 = vld [vmem:[#allocation91_spill] sm:$0xff] }
 0x3f8   :  { %9883 = vst [vmem:[#allocation231_spill] sm:$0xff] %v5934_v21 }
 0x3f9   :  { %v1827_v20 = vadd.f32 %v1826_v15, %v1572_v22  ;;  %v1310_v51 = vadd.f32 %v1309_v39, %v5795_v8  ;;  %v1576_v22 = vmul.f32 %v5846_v53, %v5846_v53 }
 0x3fb   :  { %v1828_v35 = vadd.f32 %v1827_v20, %v1573_v56  ;;  %v1311_v23 = vadd.f32 %v1310_v51, %v5812_v14  ;;  %v1577_v14 = vmul.f32 %v5863_v34, %v5863_v34 }
 0x3fd   :  { %v1829_v62 = vadd.f32 %v1828_v35, %v1574_v11  ;;  %v1312_v49 = vadd.f32 %v1311_v23, %v5829_v48  ;;  %v1578_v11 = vmul.f32 %v5880_v63, %v5880_v63 }
 0x3ff   :  { %v5944_v46 = vpop.f32.mrf.mxu3  ;;  %v1830_v15 = vadd.f32 %v1829_v62, %v1575_v61  ;;  %v1313_v39 = vadd.f32 %v1312_v49, %v5846_v53  ;;  %v1579_v61 = vmul.f32 %v5897_v57, %v5897_v57 }
 0x400   :  { %9884 = vst [vmem:[#allocation232_spill] sm:$0xff] %v5944_v46 }
 0x401   :  { %v1831_v20 = vadd.f32 %v1830_v15, %v1576_v22  ;;  %v1314_v51 = vadd.f32 %v1313_v39, %v5863_v34  ;;  %v1580_v34 = vmul.f32 %v5915_v47, %v5915_v47 }
 0x403   :  { %v1832_v35 = vadd.f32 %v1831_v20, %v1577_v14  ;;  %v1315_v23 = vadd.f32 %v1314_v51, %v5880_v63  ;;  %v1581_v51 = vmul.f32 %v5925_v18, %v5925_v18 }
 0x405   :  { %v1833_v62 = vadd.f32 %v1832_v35, %v1578_v11  ;;  %v1316_v49 = vadd.f32 %v1315_v23, %v5897_v57  ;;  %v1582_v57 = vmul.f32 %v5934_v21, %v5934_v21 }
 0x407   :  { %v5953_v56 = vpop.f32.mrf.mxu3  ;;  %v1834_v39 = vadd.f32 %v1833_v62, %v1579_v61  ;;  %v1317_v22 = vadd.f32 %v1316_v49, %v5915_v47  ;;  %v1583_v61 = vmul.f32 %v5944_v46, %v5944_v46 }
 0x408   :  { %9885 = vst [vmem:[#allocation233_spill] sm:$0xff] %v5953_v56 }
 0x409   :  { %v1835_v14 = vadd.f32 %v1834_v39, %v1580_v34  ;;  %v1318_v20 = vadd.f32 %v1317_v22, %v5925_v18  ;;  %v1584_v22 = vmul.f32 %v5953_v56, %v5953_v56 }
 0x40b   :  { %v1836_v35 = vadd.f32 %v1835_v14, %v1581_v51  ;;  %v1319_v23 = vadd.f32 %v1318_v20, %v5934_v21 }
 0x40d   :  { %v1837_v62 = vadd.f32 %v1836_v35, %v1582_v57  ;;  %v1320_v49 = vadd.f32 %v1319_v23, %v5944_v46 }
 0x40f   :  { %v5963_v15 = vpop.f32.mrf.mxu3  ;;  %v1838_v34 = vadd.f32 %v1837_v62, %v1583_v61  ;;  %v1321_v39 = vadd.f32 %v1320_v49, %v5953_v56 }
 0x410   :  { %9886 = vst [vmem:[#allocation234_spill] sm:$0xff] %v5963_v15  ;;  %v1585_v21 = vmul.f32 %v5963_v15, %v5963_v15 }
 0x411   :  { %v1839_v20 = vadd.f32 %v1838_v34, %v1584_v22  ;;  %v1322_v51 = vadd.f32 %v1321_v39, %v5963_v15 }
 0x413   :  { %v1840_v57 = vadd.f32 %v1839_v20, %v1585_v21 }
 0x417   :  { %v5972_v11 = vpop.f32.mrf.mxu3 }
 0x418   :  { %9887 = vst [vmem:[#allocation235_spill] sm:$0xff] %v5972_v11  ;;  %v1323_v35 = vadd.f32 %v1322_v51, %v5972_v11  ;;  %v1586_v23 = vmul.f32 %v5972_v11, %v5972_v11 }
 0x41a   :  { %v1841_v62 = vadd.f32 %v1840_v57, %v1586_v23 }
 0x41f   :  { %v5982_v14 = vpop.f32.mrf.mxu3 }
 0x420   :  { %9888 = vst [vmem:[#allocation236_spill] sm:$0xff] %v5982_v14  ;;  %v1324_v49 = vadd.f32 %v1323_v35, %v5982_v14  ;;  %v1587_v56 = vmul.f32 %v5982_v14, %v5982_v14 }
 0x422   :  { %v1842_v34 = vadd.f32 %v1841_v62, %v1587_v56 }
 0x427   :  { %v5991_v61 = vpop.f32.mrf.mxu3 }
 0x428   :  { %9889 = vst [vmem:[#allocation237_spill] sm:$0xff] %v5991_v61  ;;  %v1325_v39 = vadd.f32 %v1324_v49, %v5991_v61  ;;  %v1588_v22 = vmul.f32 %v5991_v61, %v5991_v61 }
 0x42a   :  { %v1326_v21 = vrot.slane %v1325_v39, 4  ;;  %v1843_v20 = vadd.f32 %v1842_v34, %v1588_v22 }
 0x42c   :  { %v1327_v51 = vadd.f32 %v1326_v21, %v1325_v39  ;;  %v1844_v15 = vrot.slane %v1843_v20, 4 }
 0x42e   :  { %v1328_v46 = vrot.slane %v1327_v51, 2  ;;  %v1845_v11 = vadd.f32 %v1844_v15, %v1843_v20  ;;  %v1866_v15 = vld [vmem:[%s8886_s2 + $0x1] sm:$0x1]  ;;  %v9890_v20 = vld [vmem:[#allocation52_spill] sm:$0xff] }
 0x430   :  { %v1329_v57 = vadd.f32 %v1328_v46, %v1327_v51  ;;  %v1846_v23 = vrot.slane %v1845_v11, 2  ;;  %v1851_v46 = vld [vmem:[%s8886_s2] sm:$0x1] }
 0x432   :  { %v1330_v35 = vrot.slane %v1329_v57, 1  ;;  %v1847_v18 = vadd.f32 %v1846_v23, %v1845_v11 }
 0x434   :  { %v1331_v47 = vadd.f32 %v1330_v35, %v1329_v57  ;;  %v1848_v63 = vrot.slane %v1847_v18, 1  ;;  %v9892_v35 = vld [vmem:[#allocation58_spill] sm:$0xff] }
 0x436   :  { %v1332_v53 = vmul.f32 0.00048828125, %v1331_v47  ;;  %v1849_v14 = vadd.f32 %v1848_v63, %v1847_v18 }
 0x438   :  { %v1850_v56 = vmul.f32 0.00048828125, %v1849_v14  ;;  %v1852_v62 = vmul.f32 %v1332_v53, %v1332_v53 }
 0x43a   :  { %v1853_v49 = vsub.f32 %v1850_v56, %v1852_v62 }
 0x43c   :  { %v1854_v48 = vadd.f32 1e-05, %v1853_v49 }
 0x43e   :  { %3870 = vrsqrt.f32 %v1854_v48  ;;  %vm1861_vm1 = vweird.f32 %v1854_v48 }
 0x444   :  { %v3871_v61 = vpop.eup %3870 }
 0x445   :  { %v1856_v8 = vmul.f32 %v3871_v61, %v1854_v48  ;;  %vm1862_vm0 = vweird.f32 %v3871_v61 }
 0x446   :  { %vm1863_vm2 = vmor %vm1861_vm1, %vm1862_vm0 }
 0x447   :  { %v1857_v34 = vmul.f32 %v3871_v61, %v1856_v8 }
 0x449   :  { %v1858_v39 = vmul.f32 0.5, %v1857_v34  ;;  %v9893_v34 = vld [vmem:[#allocation61_spill] sm:$0xff] }
 0x44b   :  { %v1859_v22 = vsub.f32 1.5, %v1858_v39 }
 0x44d   :  { %v1860_v21 = vmul.f32 %v3871_v61, %v1859_v22  ;;  %v9894_v22 = vld [vmem:[#allocation64_spill] sm:$0xff] }
 0x44f   :  { %v1864_v47 = vsel %vm1863_vm2, %v3871_v61, %v1860_v21  ;;  %v9891_v61 = vld [vmem:[#allocation55_spill] sm:$0xff] }
 0x450   :  { %v1865_v63 = vmul.f32 %v1864_v47, %v1851_v46  ;;  %v9895_v46 = vld [vmem:[#allocation67_spill] sm:$0xff] }
 0x452   :  { %v1867_v18 = vmul.f32 %v1865_v63, %v1332_v53  ;;  %v6004_v14 = vperm.slane %v1865_v63, 0  ;;  %v9896_v63 = vld [vmem:[#allocation70_spill] sm:$0xff] }
 0x454   :  { %v1868_v11 = vsub.f32 %v1866_v15, %v1867_v18  ;;  %v1998_v48 = vmul.f32 %v6004_v14, %v9798_v38  ;;  %v1999_v51 = vmul.f32 %v6004_v14, %v9890_v20  ;;  %v2000_v23 = vmul.f32 %v6004_v14, %v9891_v61  ;;  %v9897_v15 = vld [vmem:[#allocation73_spill] sm:$0xff]  ;;  %v9898_v20 = vld [vmem:[#allocation76_spill] sm:$0xff]  ;;  %v9899_v61 = vld [vmem:[#allocation79_spill] sm:$0xff] }
 0x455   :  { %v2001_v56 = vmul.f32 %v6004_v14, %v9892_v35  ;;  %v2002_v39 = vmul.f32 %v6004_v14, %v9893_v34  ;;  %v2003_v21 = vmul.f32 %v6004_v14, %v9894_v22  ;;  %v2004_v47 = vmul.f32 %v6004_v14, %v9895_v46  ;;  %v9900_v35 = vld [vmem:[#allocation82_spill] sm:$0xff]  ;;  %v9901_v22 = vld [vmem:[#allocation85_spill] sm:$0xff] }
 0x456   :  { %v6006_v8 = vperm.slane %v1868_v11, 0  ;;  %v2005_v18 = vmul.f32 %v6004_v14, %v9896_v63  ;;  %v2006_v11 = vmul.f32 %v6004_v14, %v9897_v15  ;;  %v2009_v34 = vmul.f32 %v6004_v14, %v9900_v35  ;;  %v9902_v63 = vld [vmem:[#allocation88_spill] sm:$0xff] }
 0x457   :  { %v6048_v46 = vmul.f32 %v6004_v14, %v9901_v22  ;;  %v6052_v49 = vmul.f32 %v6004_v14, %v9902_v63  ;;  %v2012_v35 = vmul.f32 %v6004_v14, %v9904_v24  ;;  %v6066_v22 = vmul.f32 %v6004_v14, %v9905_v30 }
 0x458   :  { %v6013_v57 = vadd.f32 %v6006_v8, %v1998_v48  ;;  %v6016_v53 = vadd.f32 %v6006_v8, %v1999_v51  ;;  %v6023_v62 = vadd.f32 %v6006_v8, %v2000_v23  ;;  %v6038_v48 = vadd.f32 %v6006_v8, %v2001_v56 }
 0x459   :  { %v2007_v51 = vmul.f32 %v6004_v14, %v9898_v20  ;;  %v2008_v23 = vmul.f32 %v6004_v14, %v9899_v61  ;;  %v6055_v56 = vadd.f32 %v6006_v8, %v2002_v39  ;;  %v6070_v63 = vmul.f32 %v6004_v14, %v9906_v50 }
 0x45a   :  { %v9187_v38 = vmax.f32 %v6013_v57, 0.0  ;;  %v9903_v20 = vmax.f32 %v6016_v53, 0.0  ;;  %v6074_v39 = vmul.f32 %v6004_v14, %v9823_v29  ;;  %v6078_v15 = vmul.f32 %v6004_v14, %v9824_v37 }
 0x45b   :  { %v9907_v30 = vmax.f32 %v6023_v62, 0.0  ;;  %v2017_v50 = vmul.f32 %v6004_v14, %v9825_v36  ;;  %v2018_v41 = vmul.f32 %v6004_v14, %v9908_v7  ;;  %v2019_v29 = vmul.f32 %v6004_v14, %v4729_v10 }
 0x45c   :  { %v3028_v61 = vadd.f32 %v9903_v20, %v9187_v38  ;;  %v6081_v20 = vadd.f32 %v6006_v8, %v2003_v21  ;;  %v2020_v37 = vmul.f32 %v6004_v14, %v4758_v45  ;;  %v2021_v21 = vmul.f32 %v6004_v14, %v4787_v3 }
 0x45d   :  { %v6097_v24 = vadd.f32 %v6006_v8, %v2004_v47  ;;  %v2022_v7 = vmul.f32 %v6004_v14, %v9910_v26  ;;  %v2023_v10 = vmul.f32 %v6004_v14, %v4845_v59  ;;  %v6108_v45 = vmul.f32 %v6004_v14, %v4874_v52 }
 0x45e   :  { %v3029_v38 = vadd.f32 %v3028_v61, %v9907_v30  ;;  %v9909_v30 = vmax.f32 %v6038_v48, 0.0  ;;  %v6112_v3 = vmul.f32 %v6004_v14, %v9911_v44  ;;  %v2030_v47 = vmul.f32 %v6004_v14, %v5048_v17 }
 0x45f   :  { %v6117_v61 = vadd.f32 %v6006_v8, %v2005_v18  ;;  %v9913_v26 = vmax.f32 %v6055_v56, 0.0  ;;  %v2031_v59 = vmul.f32 %v6004_v14, %v5074_v1  ;;  %v2032_v52 = vmul.f32 %v6004_v14, %v5098_v13 }
 0x460   :  { %v3030_v36 = vadd.f32 %v3029_v38, %v9909_v30  ;;  %9912 = vst [vmem:[#allocation52_spill] sm:$0xff] %v6112_v3  ;;  %v2033_v44 = vmul.f32 %v6004_v14, %v5122_v12  ;;  %v2034_v17 = vmul.f32 %v6004_v14, %v9914_v43  ;;  %v2035_v18 = vmul.f32 %v6004_v14, %v5170_v32 }
 0x461   :  { %v6133_v38 = vadd.f32 %v6006_v8, %v2006_v11  ;;  %v2036_v13 = vmul.f32 %v6004_v14, %v5194_v4  ;;  %v2037_v12 = vmul.f32 %v6004_v14, %v5216_v55  ;;  %v2038_v43 = vmul.f32 %v6004_v14, %v9916_v16 }
 0x462   :  { %v3031_v30 = vadd.f32 %v3030_v36, %v9913_v26  ;;  %v9915_v26 = vmax.f32 %v6081_v20, 0.0  ;;  %v2039_v32 = vmul.f32 %v6004_v14, %v5264_v5  ;;  %v2040_v11 = vmul.f32 %v6004_v14, %v5288_v42 }
 0x463   :  { %v6149_v36 = vadd.f32 %v6006_v8, %v2007_v51  ;;  %v2041_v55 = vmul.f32 %v6004_v14, %v9918_v2  ;;  %v2042_v16 = vmul.f32 %v6004_v14, %v9919_v58  ;;  %v2043_v5 = vmul.f32 %v6004_v14, %v5358_v33 }
 0x464   :  { %v3032_v1 = vadd.f32 %v3031_v30, %v9915_v26  ;;  %v9917_v26 = vmax.f32 %v6097_v24, 0.0  ;;  %v2044_v42 = vmul.f32 %v6004_v14, %v5382_v54  ;;  %v2045_v51 = vmul.f32 %v6004_v14, %v9920_v28 }
 0x465   :  { %v6165_v30 = vadd.f32 %v6006_v8, %v2008_v23  ;;  %v2046_v58 = vmul.f32 %v6004_v14, %v5427_v0  ;;  %v2047_v33 = vmul.f32 %v6004_v14, %v9922_v6  ;;  %v2048_v54 = vmul.f32 %v6004_v14, %v9923_v27 }
 0x466   :  { %v3033_v4 = vadd.f32 %v3032_v1, %v9917_v26  ;;  %v9921_v26 = vmax.f32 %v6117_v61, 0.0  ;;  %v2049_v28 = vmul.f32 %v6004_v14, %v9924_v19  ;;  %v2050_v23 = vmul.f32 %v6004_v14, %v9925_v31 }
 0x467   :  { %v6181_v1 = vadd.f32 %v6006_v8, %v2009_v34  ;;  %v2051_v6 = vmul.f32 %v6004_v14, %v9927_v9  ;;  %v2052_v27 = vmul.f32 %v6004_v14, %v9928_v40  ;;  %v2053_v19 = vmul.f32 %v6004_v14, %v9929_v25 }
 0x468   :  { %v3034_v2 = vadd.f32 %v3033_v4, %v9921_v26  ;;  %v9926_v26 = vmax.f32 %v6133_v38, 0.0  ;;  %v6194_v31 = vadd.f32 %v6006_v8, %v6048_v46  ;;  %v6198_v34 = vadd.f32 %v6006_v8, %v6052_v49 }
 0x469   :  { %v6201_v4 = vadd.f32 %v6006_v8, %v2012_v35  ;;  %v9930_v9 = vmax.f32 %v6149_v36, 0.0  ;;  %v6208_v40 = vadd.f32 %v6006_v8, %v6066_v22  ;;  %v6212_v25 = vadd.f32 %v6006_v8, %v6070_v63 }
 0x46a   :  { %v3035_v0 = vadd.f32 %v3034_v2, %v9926_v26  ;;  %v9204_v2 = vmax.f32 %v6165_v30, 0.0  ;;  %v6216_v49 = vadd.f32 %v6006_v8, %v6074_v39  ;;  %v6220_v46 = vadd.f32 %v6006_v8, %v6078_v15 }
 0x46b   :  { %v6223_v35 = vadd.f32 %v6006_v8, %v2017_v50  ;;  %v6235_v39 = vadd.f32 %v6006_v8, %v2020_v37  ;;  %v6238_v15 = vadd.f32 %v6006_v8, %v2021_v21  ;;  %v6241_v50 = vadd.f32 %v6006_v8, %v2022_v7 }
 0x46c   :  { %v3036_v26 = vadd.f32 %v3035_v0, %v9930_v9  ;;  %v6226_v0 = vadd.f32 %v6006_v8, %v2018_v41  ;;  %v6232_v9 = vadd.f32 %v6006_v8, %v2019_v29  ;;  %v6244_v41 = vadd.f32 %v6006_v8, %v2023_v10 }
 0x46d   :  { %9931 = vst [vmem:[#allocation55_spill] sm:$0xff] %v6241_v50  ;;  %v6247_v22 = vadd.f32 %v6006_v8, %v2030_v47  ;;  %v9934_v29 = vmax.f32 %v6181_v1, 0.0  ;;  %v6253_v37 = vadd.f32 %v6006_v8, %v2031_v59  ;;  %v6256_v21 = vadd.f32 %v6006_v8, %v2032_v52 }
 0x46e   :  { %v3037_v63 = vadd.f32 %v3036_v26, %v9204_v2  ;;  %9932 = vst [vmem:[#allocation58_spill] sm:$0xff] %v6244_v41  ;;  %v6259_v7 = vadd.f32 %v6006_v8, %v2033_v44  ;;  %v6262_v10 = vadd.f32 %v6006_v8, %v2034_v17  ;;  %v6265_v47 = vadd.f32 %v6006_v8, %v2035_v18 }
 0x46f   :  { %9933 = vst [vmem:[#allocation61_spill] sm:$0xff] %v6247_v22  ;;  %v6268_v26 = vadd.f32 %v6006_v8, %v2036_v13  ;;  %v9935_v59 = vmax.f32 %v6194_v31, 0.0  ;;  %v6274_v52 = vadd.f32 %v6006_v8, %v2037_v12  ;;  %v6277_v44 = vadd.f32 %v6006_v8, %v2038_v43 }
 0x470   :  { %v3038_v2 = vadd.f32 %v3037_v63, %v9934_v29  ;;  %v6280_v17 = vadd.f32 %v6006_v8, %v2039_v32  ;;  %v6283_v18 = vadd.f32 %v6006_v8, %v2040_v11  ;;  %v6286_v13 = vadd.f32 %v6006_v8, %v2041_v55 }
 0x471   :  { %v6289_v63 = vadd.f32 %v6006_v8, %v2042_v16  ;;  %v9936_v12 = vmax.f32 %v6198_v34, 0.0  ;;  %v6295_v43 = vadd.f32 %v6006_v8, %v2043_v5  ;;  %v6298_v32 = vadd.f32 %v6006_v8, %v2044_v42 }
 0x472   :  { %v3039_v29 = vadd.f32 %v3038_v2, %v9935_v59  ;;  %v6301_v11 = vadd.f32 %v6006_v8, %v2045_v51  ;;  %v6304_v55 = vadd.f32 %v6006_v8, %v2046_v58  ;;  %v6307_v16 = vadd.f32 %v6006_v8, %v2047_v33 }
 0x473   :  { %v6310_v2 = vadd.f32 %v6006_v8, %v2048_v54  ;;  %v9937_v5 = vmax.f32 %v6201_v4, 0.0  ;;  %v6316_v42 = vadd.f32 %v6006_v8, %v2049_v28  ;;  %v6319_v51 = vadd.f32 %v6006_v8, %v2050_v23 }
 0x474   :  { %v3040_v59 = vadd.f32 %v3039_v29, %v9936_v12  ;;  %v2526_v29 = vmax.f32 %v6208_v40, 0.0  ;;  %v6322_v58 = vadd.f32 %v6006_v8, %v2051_v6  ;;  %v6325_v33 = vadd.f32 %v6006_v8, %v2052_v27 }
 0x475   :  { %v6328_v54 = vadd.f32 %v6006_v8, %v2053_v19  ;;  %v2527_v40 = vmax.f32 %v6212_v25, 0.0  ;;  %v2528_v60 = vmax.f32 %v6216_v49, 0.0  ;;  %v2529_v28 = vmax.f32 %v6220_v46, 0.0 }
 0x476   :  { %v3041_v12 = vadd.f32 %v3040_v59, %v9937_v5  ;;  %v2530_v5 = vmax.f32 %v6223_v35, 0.0  ;;  %v2531_v23 = vmax.f32 %v6226_v0, 0.0  ;;  %v2532_v6 = vmax.f32 %v6232_v9, 0.0 }
 0x477   :  { %v2533_v41 = vmax.f32 %v6235_v39, 0.0  ;;  %v2534_v27 = vmax.f32 %v6238_v15, 0.0  ;;  %v9939_v0 = vmax.f32 %v6013_v57, 0.0  ;;  %v9942_v15 = vmax.f32 %v6016_v53, 0.0 }
 0x478   :  { %v3042_v59 = vadd.f32 %v3041_v12, %v2526_v29  ;;  %v9944_v25 = vmax.f32 %v6256_v21, 0.0  ;;  %v9947_v46 = vmax.f32 %v6259_v7, 0.0 }
 0x47a   :  { %v3043_v3 = vadd.f32 %v3042_v59, %v2527_v40 }
 0x47c   :  { %v3044_v39 = vadd.f32 %v3043_v3, %v2528_v60  ;;  %v9941_v3 = vmax.f32 %v6253_v37, 0.0 }
 0x47e   :  { %v3045_v35 = vadd.f32 %v3044_v39, %v2529_v28  ;;  %v9938_v39 = vmax.f32 %v6247_v22, 0.0  ;;  %v6372_v19 = vmax.f32 %v9942_v15, %v9941_v3  ;;  %v9948_v22 = vmax.f32 %v6038_v48, 0.0 }
 0x47f   :  { %v9954_v15 = vmax.f32 %v6081_v20, 0.0  ;;  %v9959_v48 = vmax.f32 %v6274_v52, 0.0 }
 0x480   :  { %v3046_v49 = vadd.f32 %v3045_v35, %v2530_v5  ;;  %v6366_v9 = vmax.f32 %v9939_v0, %v9938_v39  ;;  %9943 = vst [vmem:[#allocation67_spill] sm:$0xff] %v6372_v19  ;;  %v9945_v35 = vmax.f32 %v6023_v62, 0.0  ;;  %v6384_v57 = vmax.f32 %v9948_v22, %v9947_v46 }
 0x481   :  { %v9950_v0 = vmax.f32 %v6262_v10, 0.0  ;;  %v9951_v39 = vmax.f32 %v6055_v56, 0.0  ;;  %v9956_v62 = vmax.f32 %v6268_v26, 0.0  ;;  %v9960_v22 = vmax.f32 %v6117_v61, 0.0 }
 0x482   :  { %9940 = vst [vmem:[#allocation64_spill] sm:$0xff] %v6366_v9  ;;  %v3047_v59 = vadd.f32 %v3046_v49, %v2531_v23  ;;  %v6378_v12 = vmax.f32 %v9945_v35, %v9944_v25  ;;  %v9953_v49 = vmax.f32 %v6265_v47, 0.0  ;;  %v9957_v25 = vmax.f32 %v6097_v24, 0.0 }
 0x483   :  { %9949 = vst [vmem:[#allocation73_spill] sm:$0xff] %v6384_v57  ;;  %v6390_v53 = vmax.f32 %v9951_v39, %v9950_v0  ;;  %v6408_v46 = vmax.f32 %v9960_v22, %v9959_v48  ;;  %v9962_v56 = vmax.f32 %v6277_v44, 0.0  ;;  %v9963_v0 = vmax.f32 %v6133_v38, 0.0 }
 0x484   :  { %9946 = vst [vmem:[#allocation70_spill] sm:$0xff] %v6378_v12  ;;  %v6396_v3 = vmax.f32 %v9954_v15, %v9953_v49  ;;  %v6402_v35 = vmax.f32 %v9957_v25, %v9956_v62  ;;  %v3048_v20 = vadd.f32 %v3047_v59, %v2532_v6  ;;  %v9965_v49 = vmax.f32 %v6280_v17, 0.0 }
 0x485   :  { %9952 = vst [vmem:[#allocation76_spill] sm:$0xff] %v6390_v53  ;;  %v6414_v39 = vmax.f32 %v9963_v0, %v9962_v56  ;;  %v9966_v15 = vmax.f32 %v6149_v36, 0.0  ;;  %v9968_v62 = vmax.f32 %v6283_v18, 0.0  ;;  %v9969_v25 = vmax.f32 %v6165_v30, 0.0 }
 0x486   :  { %9955 = vst [vmem:[#allocation79_spill] sm:$0xff] %v6396_v3  ;;  %v9971_v48 = vmax.f32 %v6286_v13, 0.0  ;;  %v9972_v22 = vmax.f32 %v6181_v1, 0.0  ;;  %v9974_v59 = vmax.f32 %v6289_v63, 0.0  ;;  %v9975_v56 = vmax.f32 %v6194_v31, 0.0 }
 0x487   :  { %9958 = vst [vmem:[#allocation82_spill] sm:$0xff] %v6402_v35  ;;  %v6420_v24 = vmax.f32 %v9966_v15, %v9965_v49  ;;  %v6426_v61 = vmax.f32 %v9969_v25, %v9968_v62  ;;  %v9977_v36 = vmax.f32 %v6295_v43, 0.0  ;;  %v9978_v49 = vmax.f32 %v6198_v34, 0.0 }
 0x488   :  { %9961 = vst [vmem:[#allocation85_spill] sm:$0xff] %v6408_v46  ;;  %v6432_v38 = vmax.f32 %v9972_v22, %v9971_v48  ;;  %v6438_v0 = vmax.f32 %v9975_v56, %v9974_v59  ;;  %v9980_v30 = vmax.f32 %v6298_v32, 0.0  ;;  %v9981_v62 = vmax.f32 %v6201_v4, 0.0 }
 0x489   :  { %9964 = vst [vmem:[#allocation88_spill] sm:$0xff] %v6414_v39  ;;  %v6444_v15 = vmax.f32 %v9978_v49, %v9977_v36  ;;  %v9983_v1 = vmax.f32 %v6301_v11, 0.0  ;;  %v3049_v22 = vadd.f32 %v3048_v20, %v2533_v41  ;;  %v9985_v31 = vmax.f32 %v6304_v55, 0.0 }
 0x48a   :  { %9967 = vst [vmem:[#allocation91_spill] sm:$0xff] %v6420_v24  ;;  %v6450_v25 = vmax.f32 %v9981_v62, %v9980_v30  ;;  %v9987_v56 = vmax.f32 %v6307_v16, 0.0  ;;  %v9989_v36 = vmax.f32 %v6310_v2, 0.0  ;;  %v9991_v4 = vmax.f32 %v6316_v42, 0.0 }
 0x48b   :  { %9970 = vst [vmem:[#allocation94_spill] sm:$0xff] %v6426_v61  ;;  %v6454_v48 = vmax.f32 %v2526_v29, %v9983_v1  ;;  %v6458_v59 = vmax.f32 %v2527_v40, %v9985_v31  ;;  %v9993_v29 = vmax.f32 %v6319_v51, 0.0  ;;  %v9995_v20 = vmax.f32 %v6322_v58, 0.0 }
 0x48c   :  { %9973 = vst [vmem:[#allocation97_spill] sm:$0xff] %v6432_v38  ;;  %v6462_v34 = vmax.f32 %v2528_v60, %v9987_v56  ;;  %v6466_v49 = vmax.f32 %v2529_v28, %v9989_v36  ;;  %v6470_v30 = vmax.f32 %v2530_v5, %v9991_v4  ;;  %v9997_v1 = vmax.f32 %v6325_v33, 0.0 }
 0x48d   :  { %9976 = vst [vmem:[#allocation113_spill] sm:$0xff] %v6438_v0  ;;  %v6474_v62 = vmax.f32 %v2531_v23, %v9993_v29  ;;  %v6478_v40 = vmax.f32 %v2532_v6, %v9995_v20  ;;  %v6486_v28 = vadd.f32 %v6006_v8, %v6108_v45  ;;  %v9208_v31 = vmax.f32 %v6241_v50, 0.0  ;;  %v10002_v23 = vld [vmem:[#allocation140_spill] sm:$0xff] }
 0x48e   :  { %9979 = vst [vmem:[#allocation126_spill] sm:$0xff] %v6444_v15  ;;  %v6482_v60 = vmax.f32 %v2533_v41, %v9997_v1  ;;  %v3050_v5 = vadd.f32 %v3049_v22, %v2534_v27  ;;  %v10000_v56 = vmax.f32 %v6328_v54, 0.0  ;;  %v2026_v4 = vmul.f32 %v6004_v14, %v10002_v23  ;;  %v10003_v6 = vld [vmem:[#allocation52_spill] sm:$0xff]  ;;  %v10005_v41 = vld [vmem:[#allocation58_spill] sm:$0xff] }
 0x48f   :  { %9982 = vst [vmem:[#allocation136_spill] sm:$0xff] %v6450_v25  ;;  %v6497_v29 = vadd.f32 %v6006_v8, %v10003_v6  ;;  %v9210_v20 = vmax.f32 %v10005_v41, 0.0  ;;  %v10006_v1 = vld [vmem:[#allocation144_spill] sm:$0xff] }
 0x490   :  { %9984 = vst [vmem:[#allocation166_spill] sm:$0xff] %v6454_v48  ;;  %v6491_v36 = vmax.f32 %v2534_v27, %v10000_v56  ;;  %v3051_v45 = vadd.f32 %v3050_v5, %v9208_v31  ;;  %v6505_v22 = vadd.f32 %v6006_v8, %v2026_v4  ;;  %v9211_v27 = vmax.f32 %v6486_v28, 0.0  ;;  %v10008_v23 = vld [vmem:[#allocation148_spill] sm:$0xff] }
 0x491   :  { %9986 = vst [vmem:[#allocation174_spill] sm:$0xff] %v6458_v59  ;;  %v2028_v6 = vmul.f32 %v6004_v14, %v10008_v23 }
 0x492   :  { %9988 = vst [vmem:[#allocation181_spill] sm:$0xff] %v6462_v34  ;;  %v3052_v56 = vadd.f32 %v3051_v45, %v9210_v20  ;;  %v9216_v41 = vmax.f32 %v6505_v22, 0.0 }
 0x493   :  { %9990 = vst [vmem:[#allocation183_spill] sm:$0xff] %v6466_v49  ;;  %v6521_v31 = vadd.f32 %v6006_v8, %v2028_v6 }
 0x494   :  { %9992 = vst [vmem:[#allocation190_spill] sm:$0xff] %v6470_v30  ;;  %v3053_v5 = vadd.f32 %v3052_v56, %v9211_v27 }
 0x495   :  { %9994 = vst [vmem:[#allocation193_spill] sm:$0xff] %v6474_v62  ;;  %v9219_v56 = vmax.f32 %v6521_v31, 0.0 }
 0x496   :  { %9996 = vst [vmem:[#allocation196_spill] sm:$0xff] %v6478_v40  ;;  %v9212_v40 = vmax.f32 %v6497_v29, 0.0 }
 0x497   :  { %9998 = vst [vmem:[#allocation49_spill] sm:$0xff] %v6482_v60  ;;  %v2027_v60 = vmul.f32 %v6004_v14, %v10006_v1  ;;  %v10010_v1 = vld [vmem:[#allocation152_spill] sm:$0xff] }
 0x498   :  { %9999 = vst [vmem:[#allocation200_spill] sm:$0xff] %v6486_v28  ;;  %v2029_v4 = vmul.f32 %v6004_v14, %v10010_v1  ;;  %v3054_v45 = vadd.f32 %v3053_v5, %v9212_v40  ;;  %v10015_v28 = vmax.f32 %v6253_v37, 0.0  ;;  %v10022_v37 = vmax.f32 %v6277_v44, 0.0 }
 0x499   :  { %10001 = vst [vmem:[#allocation202_spill] sm:$0xff] %v6491_v36  ;;  %v6513_v36 = vadd.f32 %v6006_v8, %v2027_v60  ;;  %v10029_v44 = vmax.f32 %v6301_v11, 0.0  ;;  %v10036_v11 = vld [vmem:[#allocation207_spill] sm:$0xff] }
 0x49a   :  { %10004 = vst [vmem:[#allocation204_spill] sm:$0xff] %v6497_v29  ;;  %v6527_v23 = vadd.f32 %v6006_v8, %v2029_v4  ;;  %v3055_v20 = vadd.f32 %v3054_v45, %v9216_v41  ;;  %v10013_v4 = vld [vmem:[#allocation61_spill] sm:$0xff]  ;;  %v10016_v45 = vmax.f32 %v6256_v21, 0.0  ;;  %v10023_v21 = vmax.f32 %v6280_v17, 0.0 }
 0x49b   :  { %10007 = vst [vmem:[#allocation101_spill] sm:$0xff] %v6505_v22  ;;  %v9218_v60 = vmax.f32 %v6513_v36, 0.0  ;;  %v10014_v40 = vmax.f32 %v10013_v4, 0.0  ;;  %v10030_v17 = vmax.f32 %v6304_v55, 0.0 }
 0x49c   :  { %10009 = vst [vmem:[#allocation140_spill] sm:$0xff] %v6513_v36  ;;  %v9220_v6 = vmax.f32 %v6527_v23, 0.0  ;;  %v10017_v36 = vmax.f32 %v6259_v7, 0.0  ;;  %v10024_v7 = vmax.f32 %v6283_v18, 0.0  ;;  %v10031_v18 = vmax.f32 %v6307_v16, 0.0 }
 0x49d   :  { %10011 = vst [vmem:[#allocation52_spill] sm:$0xff] %v6521_v31  ;;  %v3056_v1 = vadd.f32 %v3055_v20, %v9218_v60  ;;  %v10018_v60 = vmax.f32 %v6262_v10, 0.0  ;;  %v10025_v10 = vmax.f32 %v6286_v13, 0.0  ;;  %v10032_v13 = vmax.f32 %v6310_v2, 0.0  ;;  %v10039_v2 = vld [vmem:[#allocation209_spill] sm:$0xff] }
 0x49e   :  { %10012 = vst [vmem:[#allocation144_spill] sm:$0xff] %v6527_v23  ;;  %v10038_v16 = vmax.f32 %v6322_v58, 0.0  ;;  %v10044_v58 = vmax.f32 %v6328_v54, 0.0 }
 0x49f   :  { %v3057_v27 = vadd.f32 %v3056_v1, %v9219_v56  ;;  %v10019_v1 = vmax.f32 %v6265_v47, 0.0  ;;  %v10026_v47 = vmax.f32 %v6289_v63, 0.0  ;;  %v10033_v63 = vmax.f32 %v6316_v42, 0.0 }
 0x4a1   :  { %v3058_v5 = vadd.f32 %v3057_v27, %v9220_v6  ;;  %v10020_v27 = vmax.f32 %v6268_v26, 0.0  ;;  %v10027_v26 = vmax.f32 %v6295_v43, 0.0  ;;  %v10034_v43 = vld [vmem:[#allocation109_spill] sm:$0xff] }
 0x4a3   :  { %v3059_v29 = vadd.f32 %v3058_v5, %v10014_v40  ;;  %v10021_v40 = vmax.f32 %v6274_v52, 0.0  ;;  %v10028_v52 = vmax.f32 %v6298_v32, 0.0  ;;  %v10035_v32 = vmax.f32 %v6319_v51, 0.0  ;;  %v10042_v51 = vld [vmem:[#allocation211_spill] sm:$0xff] }
 0x4a5   :  { %v3060_v22 = vadd.f32 %v3059_v29, %v10015_v28 }
 0x4a7   :  { %v3061_v41 = vadd.f32 %v3060_v22, %v10016_v45 }
 0x4a9   :  { %v3062_v20 = vadd.f32 %v3061_v41, %v10017_v36 }
 0x4ab   :  { %v3063_v62 = vadd.f32 %v3062_v20, %v10018_v60 }
 0x4ad   :  { %v3064_v56 = vadd.f32 %v3063_v62, %v10019_v1  ;;  %v2054_v1 = vmul.f32 %v6004_v14, %v10034_v43 }
 0x4af   :  { %v3065_v6 = vadd.f32 %v3064_v56, %v10020_v27  ;;  %v6587_v55 = vadd.f32 %v6006_v8, %v2054_v1  ;;  %v10053_v1 = vld [vmem:[#allocation98_spill] sm:$0xff] }
 0x4b1   :  { %v3066_v5 = vadd.f32 %v3065_v6, %v10021_v40  ;;  %v2055_v40 = vmul.f32 %v6004_v14, %v10036_v11  ;;  %10037 = vst [vmem:[#allocation148_spill] sm:$0xff] %v6587_v55 }
 0x4b3   :  { %v3067_v28 = vadd.f32 %v3066_v5, %v10022_v37  ;;  %v2056_v37 = vmul.f32 %v6004_v14, %v10039_v2  ;;  %v6594_v42 = vadd.f32 %v6006_v8, %v2055_v40  ;;  %v10056_v2 = vld [vmem:[#allocation4_spill] sm:$0xff] }
 0x4b5   :  { %v3068_v29 = vadd.f32 %v3067_v28, %v10023_v21  ;;  %10040 = vst [vmem:[#allocation152_spill] sm:$0xff] %v6594_v42  ;;  %v10041_v28 = vmax.f32 %v6325_v33, 0.0  ;;  %v9227_v33 = vmax.f32 %v6594_v42, 0.0 }
 0x4b7   :  { %v3069_v36 = vadd.f32 %v3068_v29, %v10024_v7  ;;  %v2057_v29 = vmul.f32 %v6004_v14, %v10042_v51  ;;  %v6601_v7 = vadd.f32 %v6006_v8, %v2056_v37  ;;  %v1871_v37 = vmul.f32 %v6004_v14, %v10056_v2  ;;  %v10058_v51 = vld [vmem:[#allocation102_spill] sm:$0xff] }
 0x4b9   :  { %v3070_v41 = vadd.f32 %v3069_v36, %v10025_v10  ;;  %10043 = vst [vmem:[#allocation61_spill] sm:$0xff] %v6601_v7  ;;  %v9228_v36 = vmax.f32 %v6587_v55, 0.0  ;;  %v9226_v54 = vmax.f32 %v6601_v7, 0.0 }
 0x4bb   :  { %v3071_v62 = vadd.f32 %v3070_v41, %v10026_v47  ;;  %v10045_v41 = vld [vmem:[#allocation213_spill] sm:$0xff] }
 0x4bc   :  { %v2058_v47 = vmul.f32 %v6004_v14, %v10045_v41  ;;  %v10060_v41 = vld [vmem:[#allocation62_spill] sm:$0xff] }
 0x4bd   :  { %v3072_v22 = vadd.f32 %v3071_v62, %v10027_v26  ;;  %v6609_v62 = vadd.f32 %v6006_v8, %v2057_v29  ;;  %v2063_v29 = vmul.f32 %v6004_v14, %v10058_v51 }
 0x4bf   :  { %v3073_v60 = vadd.f32 %v3072_v22, %v10028_v52  ;;  %10046 = vst [vmem:[#allocation109_spill] sm:$0xff] %v6609_v62  ;;  %v10047_v22 = vld [vmem:[#allocation215_spill] sm:$0xff] }
 0x4c0   :  { %v2059_v52 = vmul.f32 %v6004_v14, %v10047_v22 }
 0x4c1   :  { %v3074_v56 = vadd.f32 %v3073_v60, %v10029_v44  ;;  %v6617_v60 = vadd.f32 %v6006_v8, %v2058_v47  ;;  %v1903_v47 = vmul.f32 %v6004_v14, %v10060_v41 }
 0x4c3   :  { %v3075_v6 = vadd.f32 %v3074_v56, %v10030_v17  ;;  %10048 = vst [vmem:[#allocation207_spill] sm:$0xff] %v6617_v60  ;;  %v10049_v56 = vld [vmem:[#allocation217_spill] sm:$0xff] }
 0x4c4   :  { %v2060_v17 = vmul.f32 %v6004_v14, %v10049_v56  ;;  %v10061_v56 = vld [vmem:[#allocation106_spill] sm:$0xff] }
 0x4c5   :  { %v3076_v4 = vadd.f32 %v3075_v6, %v10031_v18  ;;  %v6625_v6 = vadd.f32 %v6006_v8, %v2059_v52  ;;  %v9225_v18 = vmax.f32 %v6609_v62, 0.0  ;;  %v2128_v52 = vadd.f32 %v6006_v8, %v1871_v37 }
 0x4c7   :  { %v3077_v45 = vadd.f32 %v3076_v4, %v10032_v13  ;;  %10050 = vst [vmem:[#allocation209_spill] sm:$0xff] %v6625_v6  ;;  %v10051_v13 = vld [vmem:[#allocation219_spill] sm:$0xff]  ;;  %v9222_v11 = vmax.f32 %v6625_v6, 0.0 }
 0x4c9   :  { %v3078_v20 = vadd.f32 %v3077_v45, %v10033_v63  ;;  %v2061_v45 = vmul.f32 %v6004_v14, %v10051_v13  ;;  %v6633_v63 = vadd.f32 %v6006_v8, %v2060_v17  ;;  %v2064_v17 = vmul.f32 %v6004_v14, %v10061_v56 }
 0x4ca   :  { %v2384_v56 = vmax.f32 %v2128_v52, 0.0 }
 0x4cb   :  { %v3079_v27 = vadd.f32 %v3078_v20, %v10035_v32  ;;  %10052 = vst [vmem:[#allocation211_spill] sm:$0xff] %v6633_v63  ;;  %v9224_v20 = vmax.f32 %v6617_v60, 0.0  ;;  %v2062_v32 = vmul.f32 %v6004_v14, %v10053_v1  ;;  %v6674_v1 = vadd.f32 %v6006_v8, %v1903_v47 }
 0x4cc   :  { %v6685_v37 = vadd.f32 %v6006_v8, %v2064_v17 }
 0x4cd   :  { %v3080_v5 = vadd.f32 %v3079_v27, %v10038_v16  ;;  %v6641_v27 = vadd.f32 %v6006_v8, %v2061_v45  ;;  %v10055_v16 = vld [vmem:[#allocation3_spill] sm:$0xff]  ;;  %v10063_v45 = vld [vmem:[#allocation5_spill] sm:$0xff] }
 0x4ce   :  { %10066 = vst [vmem:[#allocation219_spill] sm:$0xff] %v6685_v37 }
 0x4cf   :  { %v3081_v21 = vadd.f32 %v3080_v5, %v10041_v28  ;;  %10054 = vst [vmem:[#allocation213_spill] sm:$0xff] %v6641_v27  ;;  %v1870_v5 = vmul.f32 %v6004_v14, %v10055_v16  ;;  %v10057_v28 = vld [vmem:[#allocation59_spill] sm:$0xff]  ;;  %v6679_v16 = vadd.f32 %v6006_v8, %v2063_v29 }
 0x4d1   :  { %v3082_v10 = vadd.f32 %v3081_v21, %v10044_v58  ;;  %v1902_v21 = vmul.f32 %v6004_v14, %v10057_v28  ;;  %v6655_v58 = vadd.f32 %v6006_v8, %v2062_v32  ;;  %v2127_v22 = vadd.f32 %v6006_v8, %v1870_v5  ;;  %v10064_v32 = vld [vmem:[#allocation114_spill] sm:$0xff]  ;;  %10065 = vst [vmem:[#allocation217_spill] sm:$0xff] %v6679_v16 }
 0x4d2   :  { %v9223_v5 = vmax.f32 %v6641_v27, 0.0 }
 0x4d3   :  { %v3083_v26 = vadd.f32 %v3082_v10, %v9228_v36  ;;  %10059 = vst [vmem:[#allocation215_spill] sm:$0xff] %v6655_v58  ;;  %v9221_v10 = vmax.f32 %v6633_v63, 0.0  ;;  %v9230_v28 = vmax.f32 %v6655_v58, 0.0  ;;  %v2383_v47 = vmax.f32 %v2127_v22, 0.0 }
 0x4d5   :  { %v3084_v44 = vadd.f32 %v3083_v26, %v9227_v33  ;;  %v10075_v33 = vld [vmem:[#allocation9_spill] sm:$0xff] }
 0x4d7   :  { %v3085_v4 = vadd.f32 %v3084_v44, %v9226_v54  ;;  %v6665_v44 = vadd.f32 %v6006_v8, %v1902_v21  ;;  %v10067_v21 = vld [vmem:[#allocation6_spill] sm:$0xff] }
 0x4d8   :  { %v1873_v51 = vmul.f32 %v6004_v14, %v10067_v21  ;;  %v9231_v21 = vmax.f32 %v6674_v1, 0.0 }
 0x4d9   :  { %v3086_v43 = vadd.f32 %v3085_v4, %v9225_v18  ;;  %v10062_v4 = vld [vmem:[#allocation110_spill] sm:$0xff] }
 0x4da   :  { %v2065_v13 = vmul.f32 %v6004_v14, %v10062_v4  ;;  %v9232_v4 = vmax.f32 %v6665_v44, 0.0  ;;  %v6710_v52 = vadd.f32 %v6006_v8, %v1873_v51 }
 0x4db   :  { %v3087_v40 = vadd.f32 %v3086_v43, %v9224_v20  ;;  %v1872_v43 = vmul.f32 %v6004_v14, %v10063_v45  ;;  %v10068_v45 = vld [vmem:[#allocation117_spill] sm:$0xff] }
 0x4dc   :  { %v6699_v17 = vadd.f32 %v6006_v8, %v2065_v13  ;;  %v9233_v13 = vmax.f32 %v6685_v37, 0.0  ;;  %v6726_v51 = vmax.f32 %v2383_v47, %v9232_v4 }
 0x4dd   :  { %v3088_v26 = vadd.f32 %v3087_v40, %v9222_v11  ;;  %v2066_v40 = vmul.f32 %v6004_v14, %v10064_v32  ;;  %v6691_v41 = vadd.f32 %v6006_v8, %v1872_v43  ;;  %v10070_v32 = vld [vmem:[#allocation7_spill] sm:$0xff]  ;;  %v10071_v43 = vld [vmem:[#allocation120_spill] sm:$0xff] }
 0x4de   :  { %10069 = vst [vmem:[#allocation98_spill] sm:$0xff] %v6699_v17  ;;  %v2068_v11 = vmul.f32 %v6004_v14, %v10071_v43  ;;  %v9236_v54 = vmax.f32 %v6699_v17, 0.0 }
 0x4df   :  { %v3089_v2 = vadd.f32 %v3088_v26, %v9221_v10  ;;  %v2067_v26 = vmul.f32 %v6004_v14, %v10068_v45  ;;  %v1874_v10 = vmul.f32 %v6004_v14, %v10070_v32  ;;  %v6713_v45 = vadd.f32 %v6006_v8, %v2066_v40 }
 0x4e0   :  { %v9234_v18 = vmax.f32 %v6691_v41, 0.0 }
 0x4e1   :  { %v3090_v29 = vadd.f32 %v3089_v2, %v9223_v5  ;;  %v9229_v2 = vmax.f32 %v6679_v16, 0.0  ;;  %10072 = vst [vmem:[#allocation3_spill] sm:$0xff] %v6713_v45  ;;  %v10073_v5 = vld [vmem:[#allocation8_spill] sm:$0xff]  ;;  %v6719_v20 = vadd.f32 %v6006_v8, %v1874_v10  ;;  %v6729_v40 = vadd.f32 %v6006_v8, %v2067_v26 }
 0x4e2   :  { %v1875_v32 = vmul.f32 %v6004_v14, %v10073_v5  ;;  %v1876_v5 = vmul.f32 %v6004_v14, %v10075_v33  ;;  %v6736_v10 = vmax.f32 %v2384_v56, %v9231_v21  ;;  %v6749_v33 = vadd.f32 %v6006_v8, %v2068_v11  ;;  %v10078_v21 = vld [vmem:[#allocation10_spill] sm:$0xff]  ;;  %v10083_v11 = vld [vmem:[#allocation12_spill] sm:$0xff] }
 0x4e3   :  { %v3091_v22 = vadd.f32 %v3090_v29, %v9230_v28  ;;  %v2895_v29 = vadd.f32 %v2384_v56, %v2383_v47  ;;  %10074 = vst [vmem:[#allocation4_spill] sm:$0xff] %v6729_v40  ;;  %v9237_v47 = vmax.f32 %v6710_v52, 0.0  ;;  %v1877_v4 = vmul.f32 %v6004_v14, %v10078_v21 }
 0x4e4   :  { %v6741_v36 = vadd.f32 %v6006_v8, %v1875_v32  ;;  %10077 = vst [vmem:[#allocation59_spill] sm:$0xff] %v6749_v33  ;;  %v10081_v21 = vmax.f32 %v6713_v45, 0.0  ;;  %v1879_v27 = vmul.f32 %v6004_v14, %v10083_v11  ;;  %v10087_v11 = vmax.f32 %v6749_v33, 0.0 }
 0x4e5   :  { %v3092_v43 = vadd.f32 %v3091_v22, %v9229_v2  ;;  %v2896_v26 = vadd.f32 %v2895_v29, %v9234_v18  ;;  %v10076_v2 = vld [vmem:[#allocation123_spill] sm:$0xff] }
 0x4e6   :  { %v2069_v28 = vmul.f32 %v6004_v14, %v10076_v2  ;;  %v10080_v18 = vld [vmem:[#allocation11_spill] sm:$0xff] }
 0x4e7   :  { %v3093_v22 = vadd.f32 %v3092_v43, %v9233_v13  ;;  %v6757_v43 = vadd.f32 %v6006_v8, %v1876_v5  ;;  %v9240_v13 = vmax.f32 %v6719_v20, 0.0  ;;  %v2897_v29 = vadd.f32 %v2896_v26, %v9237_v47  ;;  %v10082_v26 = vld [vmem:[#allocation127_spill] sm:$0xff] }
 0x4e8   :  { %v6763_v2 = vadd.f32 %v6006_v8, %v2069_v28  ;;  %v1878_v56 = vmul.f32 %v6004_v14, %v10080_v18  ;;  %v9242_v5 = vmax.f32 %v6741_v36, 0.0  ;;  %v2070_v28 = vmul.f32 %v6004_v14, %v10082_v26 }
 0x4e9   :  { %v3094_v32 = vadd.f32 %v3093_v22, %v9236_v54  ;;  %v6771_v22 = vadd.f32 %v6006_v8, %v1877_v4  ;;  %v2898_v54 = vadd.f32 %v2897_v29, %v9240_v13  ;;  %v10084_v18 = vmax.f32 %v6729_v40, 0.0  ;;  %v10086_v13 = vld [vmem:[#allocation13_spill] sm:$0xff] }
 0x4ea   :  { %10079 = vst [vmem:[#allocation102_spill] sm:$0xff] %v6763_v2  ;;  %v9245_v4 = vmax.f32 %v6757_v43, 0.0  ;;  %v6790_v29 = vadd.f32 %v6006_v8, %v2070_v28  ;;  %v1880_v47 = vmul.f32 %v6004_v14, %v10086_v13  ;;  %v10090_v6 = vmax.f32 %v6763_v2, 0.0  ;;  %v10162_v2 = vld [vmem:[#allocation74_spill] sm:$0xff] }
 0x4eb   :  { %v3095_v23 = vadd.f32 %v3094_v32, %v10081_v21  ;;  %v6784_v32 = vadd.f32 %v6006_v8, %v1878_v56  ;;  %v2899_v21 = vadd.f32 %v2898_v54, %v9242_v5  ;;  %v9247_v56 = vmax.f32 %v6771_v22, 0.0  ;;  %v10088_v54 = vld [vmem:[#allocation130_spill] sm:$0xff] }
 0x4ec   :  { %10085 = vst [vmem:[#allocation62_spill] sm:$0xff] %v6790_v29  ;;  %v2071_v28 = vmul.f32 %v6004_v14, %v10088_v54  ;;  %v10089_v5 = vld [vmem:[#allocation14_spill] sm:$0xff]  ;;  %v6810_v60 = vadd.f32 %v6006_v8, %v1880_v47  ;;  %v10092_v54 = vld [vmem:[#allocation15_spill] sm:$0xff]  ;;  %v10094_v47 = vld [vmem:[#allocation133_spill] sm:$0xff] }
 0x4ed   :  { %v3096_v31 = vadd.f32 %v3095_v23, %v10084_v18  ;;  %v6798_v23 = vadd.f32 %v6006_v8, %v1879_v27  ;;  %v2900_v18 = vadd.f32 %v2899_v21, %v9245_v4  ;;  %v1881_v26 = vmul.f32 %v6004_v14, %v10089_v5 }
 0x4ee   :  { %v9251_v21 = vmax.f32 %v6790_v29, 0.0  ;;  %v1882_v4 = vmul.f32 %v6004_v14, %v10092_v54  ;;  %v2072_v62 = vmul.f32 %v6004_v14, %v10094_v47  ;;  %v10098_v47 = vld [vmem:[#allocation19_spill] sm:$0xff] }
 0x4ef   :  { %v3097_v63 = vadd.f32 %v3096_v31, %v10087_v11  ;;  %v9250_v31 = vmax.f32 %v6784_v32, 0.0  ;;  %v2901_v27 = vadd.f32 %v2900_v18, %v9247_v56  ;;  %v6816_v11 = vadd.f32 %v6006_v8, %v2071_v28  ;;  %v10095_v18 = vld [vmem:[#allocation17_spill] sm:$0xff] }
 0x4f0   :  { %v6822_v5 = vadd.f32 %v6006_v8, %v1881_v26  ;;  %v1883_v28 = vmul.f32 %v6004_v14, %v10095_v18  ;;  %v6834_v7 = vadd.f32 %v6006_v8, %v1882_v4  ;;  %v9255_v26 = vmax.f32 %v6810_v60, 0.0 }
 0x4f1   :  { %v3098_v13 = vadd.f32 %v3097_v63, %v10090_v6  ;;  %10091 = vst [vmem:[#allocation106_spill] sm:$0xff] %v6816_v11  ;;  %v9253_v6 = vmax.f32 %v6798_v23, 0.0  ;;  %v2902_v63 = vadd.f32 %v2901_v27, %v9250_v31  ;;  %v6840_v42 = vadd.f32 %v6006_v8, %v2072_v62 }
 0x4f2   :  { %10093 = vst [vmem:[#allocation110_spill] sm:$0xff] %v6822_v5  ;;  %v9256_v27 = vmax.f32 %v6816_v11, 0.0  ;;  %v1884_v31 = vmul.f32 %v6004_v14, %v10098_v47  ;;  %v6846_v18 = vadd.f32 %v6006_v8, %v1883_v28  ;;  %v9258_v28 = vmax.f32 %v6834_v7, 0.0 }
 0x4f3   :  { %v3099_v56 = vadd.f32 %v3098_v13, %v9251_v21  ;;  %10096 = vst [vmem:[#allocation5_spill] sm:$0xff] %v6834_v7  ;;  %v2903_v54 = vadd.f32 %v2902_v63, %v9253_v6  ;;  %v9257_v13 = vmax.f32 %v6822_v5, 0.0  ;;  %v10100_v21 = vld [vmem:[#allocation137_spill] sm:$0xff] }
 0x4f4   :  { %10097 = vst [vmem:[#allocation114_spill] sm:$0xff] %v6840_v42  ;;  %v2073_v50 = vmul.f32 %v6004_v14, %v10100_v21  ;;  %v10101_v63 = vld [vmem:[#allocation21_spill] sm:$0xff]  ;;  %v6858_v55 = vadd.f32 %v6006_v8, %v1884_v31  ;;  %v10104_v21 = vld [vmem:[#allocation23_spill] sm:$0xff] }
 0x4f5   :  { %10099 = vst [vmem:[#allocation6_spill] sm:$0xff] %v6846_v18  ;;  %v2904_v4 = vadd.f32 %v2903_v54, %v9255_v26  ;;  %v1885_v62 = vmul.f32 %v6004_v14, %v10101_v63  ;;  %v3100_v6 = vadd.f32 %v3099_v56, %v9256_v27  ;;  %v9259_v54 = vmax.f32 %v6840_v42, 0.0  ;;  %v10106_v27 = vld [vmem:[#allocation141_spill] sm:$0xff] }
 0x4f6   :  { %10102 = vst [vmem:[#allocation117_spill] sm:$0xff] %v6858_v55  ;;  %v6864_v30 = vadd.f32 %v6006_v8, %v2073_v50  ;;  %v1886_v26 = vmul.f32 %v6004_v14, %v10104_v21  ;;  %v9260_v56 = vmax.f32 %v6846_v18, 0.0  ;;  %v2074_v49 = vmul.f32 %v6004_v14, %v10106_v27  ;;  %v10110_v27 = vld [vmem:[#allocation27_spill] sm:$0xff] }
 0x4f7   :  { %v2905_v47 = vadd.f32 %v2904_v4, %v9257_v13  ;;  %v6870_v63 = vadd.f32 %v6006_v8, %v1885_v62  ;;  %v10107_v4 = vld [vmem:[#allocation25_spill] sm:$0xff]  ;;  %v3101_v13 = vadd.f32 %v3100_v6, %v9259_v54  ;;  %v9261_v62 = vmax.f32 %v6858_v55, 0.0 }
 0x4f8   :  { %10103 = vst [vmem:[#allocation7_spill] sm:$0xff] %v6864_v30  ;;  %v1887_v50 = vmul.f32 %v6004_v14, %v10107_v4  ;;  %v6882_v34 = vadd.f32 %v6006_v8, %v1886_v26  ;;  %v6888_v59 = vadd.f32 %v6006_v8, %v2074_v49  ;;  %v10112_v54 = vld [vmem:[#allocation145_spill] sm:$0xff] }
 0x4f9   :  { %10105 = vst [vmem:[#allocation120_spill] sm:$0xff] %v6870_v63  ;;  %v2906_v31 = vadd.f32 %v2905_v47, %v9258_v28  ;;  %v9262_v47 = vmax.f32 %v6864_v30, 0.0  ;;  %v1888_v28 = vmul.f32 %v6004_v14, %v10110_v27  ;;  %v9263_v6 = vmax.f32 %v6870_v63, 0.0 }
 0x4fa   :  { %10108 = vst [vmem:[#allocation8_spill] sm:$0xff] %v6882_v34  ;;  %v6894_v4 = vadd.f32 %v6006_v8, %v1887_v50  ;;  %v2075_v48 = vmul.f32 %v6004_v14, %v10112_v54  ;;  %v9264_v50 = vmax.f32 %v6882_v34, 0.0  ;;  %v10116_v54 = vld [vmem:[#allocation31_spill] sm:$0xff] }
 0x4fb   :  { %v2907_v21 = vadd.f32 %v2906_v31, %v9260_v56  ;;  %10109 = vst [vmem:[#allocation9_spill] sm:$0xff] %v6888_v59  ;;  %v10113_v31 = vld [vmem:[#allocation29_spill] sm:$0xff]  ;;  %v3102_v56 = vadd.f32 %v3101_v13, %v9262_v47  ;;  %v6906_v25 = vadd.f32 %v6006_v8, %v1888_v28 }
 0x4fc   :  { %10111 = vst [vmem:[#allocation123_spill] sm:$0xff] %v6894_v4  ;;  %v1889_v49 = vmul.f32 %v6004_v14, %v10113_v31  ;;  %v6912_v15 = vadd.f32 %v6006_v8, %v2075_v48  ;;  %v9266_v13 = vmax.f32 %v6894_v4, 0.0  ;;  %v10118_v47 = vld [vmem:[#allocation149_spill] sm:$0xff] }
 0x4fd   :  { %v2908_v26 = vadd.f32 %v2907_v21, %v9261_v62  ;;  %10114 = vst [vmem:[#allocation10_spill] sm:$0xff] %v6906_v25  ;;  %v9265_v21 = vmax.f32 %v6888_v59, 0.0  ;;  %v1890_v62 = vmul.f32 %v6004_v14, %v10116_v54  ;;  %v2076_v0 = vmul.f32 %v6004_v14, %v10118_v47  ;;  %v10122_v47 = vld [vmem:[#allocation35_spill] sm:$0xff] }
 0x4fe   :  { %10115 = vst [vmem:[#allocation11_spill] sm:$0xff] %v6912_v15  ;;  %v6918_v31 = vadd.f32 %v6006_v8, %v1889_v49  ;;  %v9268_v49 = vmax.f32 %v6906_v25, 0.0 }
 0x4ff   :  { %v2909_v27 = vadd.f32 %v2908_v26, %v9263_v6  ;;  %v10119_v26 = vld [vmem:[#allocation33_spill] sm:$0xff]  ;;  %v3103_v6 = vadd.f32 %v3102_v56, %v9265_v21  ;;  %v6930_v38 = vadd.f32 %v6006_v8, %v1890_v62  ;;  %v6936_v61 = vadd.f32 %v6006_v8, %v2076_v0 }
 0x500   :  { %10117 = vst [vmem:[#allocation127_spill] sm:$0xff] %v6918_v31  ;;  %v1891_v48 = vmul.f32 %v6004_v14, %v10119_v26  ;;  %v9271_v56 = vmax.f32 %v6918_v31, 0.0  ;;  %v10124_v21 = vld [vmem:[#allocation153_spill] sm:$0xff] }
 0x501   :  { %v2910_v28 = vadd.f32 %v2909_v27, %v9264_v50  ;;  %10120 = vst [vmem:[#allocation12_spill] sm:$0xff] %v6930_v38  ;;  %v9269_v27 = vmax.f32 %v6912_v15, 0.0  ;;  %v1892_v50 = vmul.f32 %v6004_v14, %v10122_v47  ;;  %v2077_v24 = vmul.f32 %v6004_v14, %v10124_v21  ;;  %v10128_v21 = vld [vmem:[#allocation39_spill] sm:$0xff] }
 0x502   :  { %10121 = vst [vmem:[#allocation13_spill] sm:$0xff] %v6936_v61  ;;  %v6942_v26 = vadd.f32 %v6006_v8, %v1891_v48  ;;  %v9273_v48 = vmax.f32 %v6930_v38, 0.0 }
 0x503   :  { %v2911_v54 = vadd.f32 %v2910_v28, %v9266_v13  ;;  %v10125_v28 = vld [vmem:[#allocation37_spill] sm:$0xff]  ;;  %v3104_v13 = vadd.f32 %v3103_v6, %v9269_v27  ;;  %v6954_v39 = vadd.f32 %v6006_v8, %v1892_v50  ;;  %v6960_v59 = vadd.f32 %v6006_v8, %v2077_v24  ;;  %v10130_v27 = vld [vmem:[#allocation156_spill] sm:$0xff] }
 0x504   :  { %10123 = vst [vmem:[#allocation130_spill] sm:$0xff] %v6942_v26  ;;  %v1893_v0 = vmul.f32 %v6004_v14, %v10125_v28  ;;  %v9276_v6 = vmax.f32 %v6942_v26, 0.0  ;;  %v2078_v15 = vmul.f32 %v6004_v14, %v10130_v27  ;;  %v10134_v27 = vld [vmem:[#allocation43_spill] sm:$0xff] }
 0x505   :  { %v2912_v62 = vadd.f32 %v2911_v54, %v9268_v49  ;;  %10126 = vst [vmem:[#allocation14_spill] sm:$0xff] %v6954_v39  ;;  %v9274_v54 = vmax.f32 %v6936_v61, 0.0  ;;  %v1894_v49 = vmul.f32 %v6004_v14, %v10128_v21 }
 0x506   :  { %10127 = vst [vmem:[#allocation15_spill] sm:$0xff] %v6960_v59  ;;  %v6966_v28 = vadd.f32 %v6006_v8, %v1893_v0  ;;  %v9278_v0 = vmax.f32 %v6954_v39, 0.0  ;;  %v6984_v30 = vadd.f32 %v6006_v8, %v2078_v15 }
 0x507   :  { %v2913_v47 = vadd.f32 %v2912_v62, %v9271_v56  ;;  %v10131_v62 = vld [vmem:[#allocation41_spill] sm:$0xff]  ;;  %v3105_v56 = vadd.f32 %v3104_v13, %v9274_v54  ;;  %v6978_v46 = vadd.f32 %v6006_v8, %v1894_v49  ;;  %v10136_v54 = vld [vmem:[#allocation159_spill] sm:$0xff] }
 0x508   :  { %10129 = vst [vmem:[#allocation133_spill] sm:$0xff] %v6966_v28  ;;  %v1895_v24 = vmul.f32 %v6004_v14, %v10131_v62  ;;  %v9281_v13 = vmax.f32 %v6966_v28, 0.0  ;;  %v2079_v61 = vmul.f32 %v6004_v14, %v10136_v54  ;;  %v10140_v54 = vld [vmem:[#allocation47_spill] sm:$0xff] }
 0x509   :  { %v2914_v50 = vadd.f32 %v2913_v47, %v9273_v48  ;;  %10132 = vst [vmem:[#allocation17_spill] sm:$0xff] %v6978_v46  ;;  %v9279_v47 = vmax.f32 %v6960_v59, 0.0  ;;  %v1896_v48 = vmul.f32 %v6004_v14, %v10134_v27 }
 0x50a   :  { %10133 = vst [vmem:[#allocation19_spill] sm:$0xff] %v6984_v30  ;;  %v6990_v62 = vadd.f32 %v6006_v8, %v1895_v24  ;;  %v9283_v24 = vmax.f32 %v6978_v46, 0.0  ;;  %v7008_v42 = vadd.f32 %v6006_v8, %v2079_v61 }
 0x50b   :  { %v2915_v21 = vadd.f32 %v2914_v50, %v9276_v6  ;;  %v10137_v50 = vld [vmem:[#allocation45_spill] sm:$0xff]  ;;  %v3106_v6 = vadd.f32 %v3105_v56, %v9279_v47  ;;  %v7002_v35 = vadd.f32 %v6006_v8, %v1896_v48 }
 0x50c   :  { %10135 = vst [vmem:[#allocation137_spill] sm:$0xff] %v6990_v62  ;;  %v1897_v15 = vmul.f32 %v6004_v14, %v10137_v50  ;;  %v9286_v56 = vmax.f32 %v6990_v62, 0.0  ;;  %v10142_v47 = vld [vmem:[#allocation161_spill] sm:$0xff] }
 0x50d   :  { %v2916_v49 = vadd.f32 %v2915_v21, %v9278_v0  ;;  %10138 = vst [vmem:[#allocation21_spill] sm:$0xff] %v7002_v35  ;;  %v9284_v21 = vmax.f32 %v6984_v30, 0.0  ;;  %v1898_v0 = vmul.f32 %v6004_v14, %v10140_v54  ;;  %v2080_v59 = vmul.f32 %v6004_v14, %v10142_v47  ;;  %v10146_v47 = vld [vmem:[#allocation53_spill] sm:$0xff] }
 0x50e   :  { %10139 = vst [vmem:[#allocation23_spill] sm:$0xff] %v7008_v42  ;;  %v7014_v50 = vadd.f32 %v6006_v8, %v1897_v15  ;;  %v9289_v15 = vmax.f32 %v7002_v35, 0.0 }
 0x50f   :  { %v2917_v27 = vadd.f32 %v2916_v49, %v9281_v13  ;;  %v10143_v49 = vld [vmem:[#allocation50_spill] sm:$0xff]  ;;  %v3107_v13 = vadd.f32 %v3106_v6, %v9284_v21  ;;  %v7026_v3 = vadd.f32 %v6006_v8, %v1898_v0  ;;  %v7032_v11 = vadd.f32 %v6006_v8, %v2080_v59  ;;  %v10148_v21 = vld [vmem:[#allocation164_spill] sm:$0xff] }
 0x510   :  { %10141 = vst [vmem:[#allocation141_spill] sm:$0xff] %v7014_v50  ;;  %v1899_v61 = vmul.f32 %v6004_v14, %v10143_v49  ;;  %v9290_v6 = vmax.f32 %v7014_v50, 0.0  ;;  %v2081_v30 = vmul.f32 %v6004_v14, %v10148_v21 }
 0x511   :  { %v2918_v48 = vadd.f32 %v2917_v27, %v9283_v24  ;;  %10144 = vst [vmem:[#allocation25_spill] sm:$0xff] %v7026_v3  ;;  %v9288_v27 = vmax.f32 %v7008_v42, 0.0  ;;  %v1900_v24 = vmul.f32 %v6004_v14, %v10146_v47  ;;  %v10155_v42 = vld [vmem:[#allocation65_spill] sm:$0xff] }
 0x512   :  { %10145 = vst [vmem:[#allocation27_spill] sm:$0xff] %v7032_v11  ;;  %v7038_v49 = vadd.f32 %v6006_v8, %v1899_v61  ;;  %v9292_v61 = vmax.f32 %v7026_v3, 0.0  ;;  %v7056_v29 = vadd.f32 %v6006_v8, %v2081_v30  ;;  %v1904_v57 = vmul.f32 %v6004_v14, %v10155_v42 }
 0x513   :  { %v2919_v54 = vadd.f32 %v2918_v48, %v9286_v56  ;;  %v10149_v48 = vld [vmem:[#allocation56_spill] sm:$0xff]  ;;  %v3108_v56 = vadd.f32 %v3107_v13, %v9288_v27  ;;  %v7050_v53 = vadd.f32 %v6006_v8, %v1900_v24  ;;  %v10153_v24 = vld [vmem:[#allocation167_spill] sm:$0xff] }
 0x514   :  { %10147 = vst [vmem:[#allocation145_spill] sm:$0xff] %v7038_v49  ;;  %v1901_v59 = vmul.f32 %v6004_v14, %v10149_v48  ;;  %v9294_v48 = vmax.f32 %v7038_v49, 0.0  ;;  %v2082_v27 = vmul.f32 %v6004_v14, %v10153_v24 }
 0x515   :  { %v2920_v0 = vadd.f32 %v2919_v54, %v9289_v15  ;;  %10150 = vst [vmem:[#allocation29_spill] sm:$0xff] %v7050_v53  ;;  %v9293_v54 = vmax.f32 %v7032_v11, 0.0 }
 0x516   :  { %10151 = vst [vmem:[#allocation31_spill] sm:$0xff] %v7056_v29  ;;  %v7060_v21 = vadd.f32 %v6006_v8, %v1901_v59  ;;  %v9298_v59 = vmax.f32 %v7056_v29, 0.0 }
 0x517   :  { %v2921_v47 = vadd.f32 %v2920_v0, %v9290_v6  ;;  %v3109_v15 = vadd.f32 %v3108_v56, %v9293_v54  ;;  %v9296_v0 = vmax.f32 %v7050_v53, 0.0  ;;  %v7073_v6 = vadd.f32 %v6006_v8, %v2082_v27 }
 0x518   :  { %10152 = vst [vmem:[#allocation149_spill] sm:$0xff] %v7060_v21 }
 0x519   :  { %v2922_v13 = vadd.f32 %v2921_v47, %v9292_v61  ;;  %10154 = vst [vmem:[#allocation33_spill] sm:$0xff] %v7073_v6  ;;  %v9300_v47 = vmax.f32 %v7060_v21, 0.0  ;;  %v10156_v61 = vld [vmem:[#allocation169_spill] sm:$0xff]  ;;  %v3110_v54 = vadd.f32 %v3109_v15, %v9298_v59  ;;  %v10160_v15 = vmax.f32 %v6665_v44, 0.0  ;;  %v10161_v59 = vld [vmem:[#allocation171_spill] sm:$0xff] }
 0x51a   :  { %v2083_v56 = vmul.f32 %v6004_v14, %v10156_v61 }
 0x51b   :  { %v2923_v30 = vadd.f32 %v2922_v13, %v9294_v48  ;;  %v10157_v13 = vld [vmem:[#allocation68_spill] sm:$0xff]  ;;  %v7088_v48 = vadd.f32 %v6006_v8, %v1904_v57  ;;  %v2084_v57 = vmul.f32 %v6004_v14, %v10161_v59  ;;  %v10165_v59 = vld [vmem:[#allocation77_spill] sm:$0xff] }
 0x51c   :  { %v1905_v27 = vmul.f32 %v6004_v14, %v10157_v13  ;;  %v7093_v11 = vadd.f32 %v6006_v8, %v2083_v56 }
 0x51d   :  { %v2924_v24 = vadd.f32 %v2923_v30, %v9296_v0  ;;  %v9301_v30 = vmax.f32 %v7073_v6, 0.0  ;;  %v10159_v0 = vld [vmem:[#allocation71_spill] sm:$0xff]  ;;  %v7116_v44 = vadd.f32 %v6006_v8, %v2084_v57 }
 0x51e   :  { %10158 = vst [vmem:[#allocation35_spill] sm:$0xff] %v7093_v11  ;;  %v1906_v61 = vmul.f32 %v6004_v14, %v10159_v0  ;;  %v7099_v29 = vadd.f32 %v6006_v8, %v1905_v27  ;;  %v9304_v0 = vmax.f32 %v7088_v48, 0.0  ;;  %v10163_v27 = vmax.f32 %v6674_v1, 0.0 }
 0x51f   :  { %v2925_v42 = vadd.f32 %v2924_v24, %v9300_v47  ;;  %v1907_v24 = vmul.f32 %v6004_v14, %v10162_v2  ;;  %v3111_v56 = vadd.f32 %v3110_v54, %v9301_v30  ;;  %10164 = vst [vmem:[#allocation153_spill] sm:$0xff] %v7116_v44  ;;  %v10166_v30 = vld [vmem:[#allocation172_spill] sm:$0xff] }
 0x520   :  { %v7110_v47 = vadd.f32 %v6006_v8, %v1906_v61  ;;  %v9307_v54 = vmax.f32 %v7099_v29, 0.0  ;;  %v2085_v1 = vmul.f32 %v6004_v14, %v10166_v30  ;;  %v10169_v30 = vld [vmem:[#allocation83_spill] sm:$0xff] }
 0x521   :  { %v2926_v13 = vadd.f32 %v2925_v42, %v10160_v15  ;;  %v9305_v42 = vmax.f32 %v7093_v11, 0.0  ;;  %v1908_v15 = vmul.f32 %v6004_v14, %v10165_v59  ;;  %v7122_v2 = vadd.f32 %v6006_v8, %v1907_v24 }
 0x522   :  { %v9309_v24 = vmax.f32 %v7110_v47, 0.0  ;;  %v7140_v33 = vadd.f32 %v6006_v8, %v2085_v1 }
 0x523   :  { %v2927_v12 = vadd.f32 %v2926_v13, %v10163_v27  ;;  %v10167_v13 = vld [vmem:[#allocation80_spill] sm:$0xff]  ;;  %v3112_v27 = vadd.f32 %v3111_v56, %v9305_v42  ;;  %v7134_v6 = vadd.f32 %v6006_v8, %v1908_v15  ;;  %v9312_v56 = vmax.f32 %v7122_v2, 0.0  ;;  %v10170_v42 = vld [vmem:[#allocation175_spill] sm:$0xff] }
 0x524   :  { %v1909_v57 = vmul.f32 %v6004_v14, %v10167_v13  ;;  %10168 = vst [vmem:[#allocation37_spill] sm:$0xff] %v7140_v33  ;;  %v2086_v11 = vmul.f32 %v6004_v14, %v10170_v42  ;;  %v10173_v42 = vld [vmem:[#allocation89_spill] sm:$0xff] }
 0x525   :  { %v2928_v61 = vadd.f32 %v2927_v12, %v9304_v0  ;;  %v9310_v12 = vmax.f32 %v7116_v44, 0.0  ;;  %v1910_v0 = vmul.f32 %v6004_v14, %v10169_v30 }
 0x526   :  { %v7146_v13 = vadd.f32 %v6006_v8, %v1909_v57  ;;  %v9314_v57 = vmax.f32 %v7134_v6, 0.0  ;;  %v7164_v40 = vadd.f32 %v6006_v8, %v2086_v11 }
 0x527   :  { %v2929_v59 = vadd.f32 %v2928_v61, %v9307_v54  ;;  %v10171_v61 = vld [vmem:[#allocation86_spill] sm:$0xff]  ;;  %v3113_v54 = vadd.f32 %v3112_v27, %v9310_v12  ;;  %v7158_v19 = vadd.f32 %v6006_v8, %v1910_v0  ;;  %v10174_v12 = vld [vmem:[#allocation177_spill] sm:$0xff] }
 0x528   :  { %v1911_v1 = vmul.f32 %v6004_v14, %v10171_v61  ;;  %10172 = vst [vmem:[#allocation39_spill] sm:$0xff] %v7164_v40  ;;  %v9317_v27 = vmax.f32 %v7146_v13, 0.0  ;;  %v2087_v44 = vmul.f32 %v6004_v14, %v10174_v12  ;;  %v10177_v12 = vld [vmem:[#allocation95_spill] sm:$0xff] }
 0x529   :  { %v2930_v15 = vadd.f32 %v2929_v59, %v9309_v24  ;;  %v9315_v59 = vmax.f32 %v7140_v33, 0.0  ;;  %v1912_v24 = vmul.f32 %v6004_v14, %v10173_v42 }
 0x52a   :  { %v7170_v61 = vadd.f32 %v6006_v8, %v1911_v1  ;;  %v9320_v1 = vmax.f32 %v7158_v19, 0.0  ;;  %v7188_v45 = vadd.f32 %v6006_v8, %v2087_v44 }
 0x52b   :  { %v2931_v30 = vadd.f32 %v2930_v15, %v9312_v56  ;;  %v10175_v15 = vld [vmem:[#allocation92_spill] sm:$0xff]  ;;  %v3114_v56 = vadd.f32 %v3113_v54, %v9315_v59  ;;  %v7182_v9 = vadd.f32 %v6006_v8, %v1912_v24  ;;  %v10178_v59 = vld [vmem:[#allocation179_spill] sm:$0xff] }
 0x52c   :  { %v1913_v11 = vmul.f32 %v6004_v14, %v10175_v15  ;;  %10176 = vst [vmem:[#allocation156_spill] sm:$0xff] %v7188_v45  ;;  %v9323_v54 = vmax.f32 %v7170_v61, 0.0  ;;  %v2088_v33 = vmul.f32 %v6004_v14, %v10178_v59  ;;  %v10182_v59 = vld [vmem:[#allocation103_spill] sm:$0xff] }
 0x52d   :  { %v2932_v0 = vadd.f32 %v2931_v30, %v9314_v57  ;;  %v9321_v30 = vmax.f32 %v7164_v40, 0.0  ;;  %v1914_v57 = vmul.f32 %v6004_v14, %v10177_v12 }
 0x52e   :  { %v7194_v15 = vadd.f32 %v6006_v8, %v1913_v11  ;;  %v9326_v11 = vmax.f32 %v7182_v9, 0.0  ;;  %v7212_v37 = vadd.f32 %v6006_v8, %v2088_v33 }
 0x52f   :  { %v2933_v42 = vadd.f32 %v2932_v0, %v9317_v27  ;;  %v10179_v0 = vld [vmem:[#allocation99_spill] sm:$0xff]  ;;  %v3115_v27 = vadd.f32 %v3114_v56, %v9321_v30  ;;  %v7206_v17 = vadd.f32 %v6006_v8, %v1914_v57  ;;  %v10184_v30 = vld [vmem:[#allocation182_spill] sm:$0xff] }
 0x530   :  { %v1915_v44 = vmul.f32 %v6004_v14, %v10179_v0  ;;  %10181 = vst [vmem:[#allocation43_spill] sm:$0xff] %v7212_v37  ;;  %v9329_v56 = vmax.f32 %v7194_v15, 0.0  ;;  %v2089_v40 = vmul.f32 %v6004_v14, %v10184_v30  ;;  %v10188_v30 = vld [vmem:[#allocation111_spill] sm:$0xff] }
 0x531   :  { %v2934_v24 = vadd.f32 %v2933_v42, %v9320_v1  ;;  %10180 = vst [vmem:[#allocation41_spill] sm:$0xff] %v7206_v17  ;;  %v9327_v42 = vmax.f32 %v7188_v45, 0.0  ;;  %v1916_v1 = vmul.f32 %v6004_v14, %v10182_v59 }
 0x532   :  { %v7218_v0 = vadd.f32 %v6006_v8, %v1915_v44  ;;  %v9332_v44 = vmax.f32 %v7206_v17, 0.0  ;;  %v7236_v58 = vadd.f32 %v6006_v8, %v2089_v40 }
 0x533   :  { %v2935_v12 = vadd.f32 %v2934_v24, %v9323_v54  ;;  %v10185_v24 = vld [vmem:[#allocation107_spill] sm:$0xff]  ;;  %v3116_v54 = vadd.f32 %v3115_v27, %v9327_v42  ;;  %v7230_v16 = vadd.f32 %v6006_v8, %v1916_v1  ;;  %v10190_v42 = vld [vmem:[#allocation185_spill] sm:$0xff] }
 0x534   :  { %10183 = vst [vmem:[#allocation159_spill] sm:$0xff] %v7218_v0  ;;  %v1917_v33 = vmul.f32 %v6004_v14, %v10185_v24  ;;  %v9335_v27 = vmax.f32 %v7218_v0, 0.0  ;;  %v2090_v45 = vmul.f32 %v6004_v14, %v10190_v42  ;;  %v10194_v42 = vld [vmem:[#allocation118_spill] sm:$0xff] }
 0x535   :  { %v2936_v57 = vadd.f32 %v2935_v12, %v9326_v11  ;;  %10186 = vst [vmem:[#allocation45_spill] sm:$0xff] %v7230_v16  ;;  %v9333_v12 = vmax.f32 %v7212_v37, 0.0  ;;  %v1918_v11 = vmul.f32 %v6004_v14, %v10188_v30 }
 0x536   :  { %10187 = vst [vmem:[#allocation47_spill] sm:$0xff] %v7236_v58  ;;  %v7242_v24 = vadd.f32 %v6006_v8, %v1917_v33  ;;  %v9338_v33 = vmax.f32 %v7230_v16, 0.0  ;;  %v7260_v53 = vadd.f32 %v6006_v8, %v2090_v45 }
 0x537   :  { %v2937_v59 = vadd.f32 %v2936_v57, %v9329_v56  ;;  %v10191_v57 = vld [vmem:[#allocation115_spill] sm:$0xff]  ;;  %v3117_v56 = vadd.f32 %v3116_v54, %v9333_v12  ;;  %v7254_v21 = vadd.f32 %v6006_v8, %v1918_v11 }
 0x538   :  { %10189 = vst [vmem:[#allocation161_spill] sm:$0xff] %v7242_v24  ;;  %v1919_v40 = vmul.f32 %v6004_v14, %v10191_v57  ;;  %v9341_v54 = vmax.f32 %v7242_v24, 0.0  ;;  %v10196_v12 = vld [vmem:[#allocation187_spill] sm:$0xff] }
 0x539   :  { %v2938_v1 = vadd.f32 %v2937_v59, %v9332_v44  ;;  %10192 = vst [vmem:[#allocation50_spill] sm:$0xff] %v7254_v21  ;;  %v9339_v59 = vmax.f32 %v7236_v58, 0.0  ;;  %v1920_v44 = vmul.f32 %v6004_v14, %v10194_v42  ;;  %v2091_v37 = vmul.f32 %v6004_v14, %v10196_v12  ;;  %v10200_v12 = vld [vmem:[#allocation124_spill] sm:$0xff] }
 0x53a   :  { %10193 = vst [vmem:[#allocation53_spill] sm:$0xff] %v7260_v53  ;;  %v7266_v57 = vadd.f32 %v6006_v8, %v1919_v40  ;;  %v9344_v40 = vmax.f32 %v7254_v21, 0.0 }
 0x53b   :  { %v2939_v30 = vadd.f32 %v2938_v1, %v9335_v27  ;;  %v10197_v1 = vld [vmem:[#allocation121_spill] sm:$0xff]  ;;  %v3118_v27 = vadd.f32 %v3117_v56, %v9339_v59  ;;  %v7278_v49 = vadd.f32 %v6006_v8, %v1920_v44  ;;  %v7284_v3 = vadd.f32 %v6006_v8, %v2091_v37 }
 0x53c   :  { %10195 = vst [vmem:[#allocation164_spill] sm:$0xff] %v7266_v57  ;;  %v1921_v45 = vmul.f32 %v6004_v14, %v10197_v1  ;;  %v9347_v56 = vmax.f32 %v7266_v57, 0.0  ;;  %v10202_v59 = vld [vmem:[#allocation189_spill] sm:$0xff] }
 0x53d   :  { %v2940_v11 = vadd.f32 %v2939_v30, %v9338_v33  ;;  %10198 = vst [vmem:[#allocation56_spill] sm:$0xff] %v7278_v49  ;;  %v9345_v30 = vmax.f32 %v7260_v53, 0.0  ;;  %v1922_v33 = vmul.f32 %v6004_v14, %v10200_v12  ;;  %v2092_v58 = vmul.f32 %v6004_v14, %v10202_v59  ;;  %v10206_v59 = vld [vmem:[#allocation131_spill] sm:$0xff] }
 0x53e   :  { %10199 = vst [vmem:[#allocation167_spill] sm:$0xff] %v7284_v3  ;;  %v7290_v1 = vadd.f32 %v6006_v8, %v1921_v45  ;;  %v9350_v45 = vmax.f32 %v7278_v49, 0.0 }
 0x53f   :  { %v2941_v42 = vadd.f32 %v2940_v11, %v9341_v54  ;;  %v10203_v11 = vld [vmem:[#allocation128_spill] sm:$0xff]  ;;  %v3119_v54 = vadd.f32 %v3118_v27, %v9345_v30  ;;  %v7302_v50 = vadd.f32 %v6006_v8, %v1922_v33  ;;  %v7308_v35 = vadd.f32 %v6006_v8, %v2092_v58 }
 0x540   :  { %10201 = vst [vmem:[#allocation65_spill] sm:$0xff] %v7290_v1  ;;  %v1923_v37 = vmul.f32 %v6004_v14, %v10203_v11  ;;  %v9353_v27 = vmax.f32 %v7290_v1, 0.0  ;;  %v10208_v30 = vld [vmem:[#allocation192_spill] sm:$0xff] }
 0x541   :  { %v2942_v44 = vadd.f32 %v2941_v42, %v9344_v40  ;;  %10204 = vst [vmem:[#allocation169_spill] sm:$0xff] %v7302_v50  ;;  %v9351_v42 = vmax.f32 %v7284_v3, 0.0  ;;  %v1924_v40 = vmul.f32 %v6004_v14, %v10206_v59  ;;  %v2093_v53 = vmul.f32 %v6004_v14, %v10208_v30  ;;  %v10212_v30 = vld [vmem:[#allocation138_spill] sm:$0xff] }
 0x542   :  { %10205 = vst [vmem:[#allocation68_spill] sm:$0xff] %v7308_v35  ;;  %v7314_v11 = vadd.f32 %v6006_v8, %v1923_v37  ;;  %v9356_v37 = vmax.f32 %v7302_v50, 0.0 }
 0x543   :  { %v2943_v12 = vadd.f32 %v2942_v44, %v9347_v56  ;;  %v10209_v44 = vld [vmem:[#allocation134_spill] sm:$0xff]  ;;  %v3120_v56 = vadd.f32 %v3119_v54, %v9351_v42  ;;  %v7326_v62 = vadd.f32 %v6006_v8, %v1924_v40  ;;  %v7332_v46 = vadd.f32 %v6006_v8, %v2093_v53  ;;  %v10214_v42 = vld [vmem:[#allocation195_spill] sm:$0xff] }
 0x544   :  { %10207 = vst [vmem:[#allocation71_spill] sm:$0xff] %v7314_v11  ;;  %v1925_v58 = vmul.f32 %v6004_v14, %v10209_v44  ;;  %v9359_v54 = vmax.f32 %v7314_v11, 0.0  ;;  %v2094_v3 = vmul.f32 %v6004_v14, %v10214_v42  ;;  %v10218_v42 = vld [vmem:[#allocation146_spill] sm:$0xff] }
 0x545   :  { %v2944_v33 = vadd.f32 %v2943_v12, %v9350_v45  ;;  %10210 = vst [vmem:[#allocation171_spill] sm:$0xff] %v7326_v62  ;;  %v9357_v12 = vmax.f32 %v7308_v35, 0.0  ;;  %v1926_v45 = vmul.f32 %v6004_v14, %v10212_v30 }
 0x546   :  { %10211 = vst [vmem:[#allocation74_spill] sm:$0xff] %v7332_v46  ;;  %v7338_v44 = vadd.f32 %v6006_v8, %v1925_v58  ;;  %v9362_v58 = vmax.f32 %v7326_v62, 0.0  ;;  %v7356_v39 = vadd.f32 %v6006_v8, %v2094_v3 }
 0x547   :  { %v2945_v59 = vadd.f32 %v2944_v33, %v9353_v27  ;;  %v10215_v33 = vld [vmem:[#allocation142_spill] sm:$0xff]  ;;  %v3121_v27 = vadd.f32 %v3120_v56, %v9357_v12  ;;  %v7350_v28 = vadd.f32 %v6006_v8, %v1926_v45 }
 0x548   :  { %10213 = vst [vmem:[#allocation77_spill] sm:$0xff] %v7338_v44  ;;  %v1927_v53 = vmul.f32 %v6004_v14, %v10215_v33  ;;  %v9365_v56 = vmax.f32 %v7338_v44, 0.0  ;;  %v10220_v12 = vld [vmem:[#allocation198_spill] sm:$0xff] }
 0x549   :  { %v2946_v40 = vadd.f32 %v2945_v59, %v9356_v37  ;;  %10216 = vst [vmem:[#allocation172_spill] sm:$0xff] %v7350_v28  ;;  %v9363_v59 = vmax.f32 %v7332_v46, 0.0  ;;  %v1928_v37 = vmul.f32 %v6004_v14, %v10218_v42  ;;  %v2095_v35 = vmul.f32 %v6004_v14, %v10220_v12  ;;  %v10224_v12 = vld [vmem:[#allocation154_spill] sm:$0xff] }
 0x54a   :  { %10217 = vst [vmem:[#allocation80_spill] sm:$0xff] %v7356_v39  ;;  %v7362_v33 = vadd.f32 %v6006_v8, %v1927_v53  ;;  %v9368_v53 = vmax.f32 %v7350_v28, 0.0 }
 0x54b   :  { %v2947_v30 = vadd.f32 %v2946_v40, %v9359_v54  ;;  %v10221_v40 = vld [vmem:[#allocation150_spill] sm:$0xff]  ;;  %v3122_v54 = vadd.f32 %v3121_v27, %v9363_v59  ;;  %v7374_v26 = vadd.f32 %v6006_v8, %v1928_v37  ;;  %v7380_v62 = vadd.f32 %v6006_v8, %v2095_v35  ;;  %v10226_v59 = vld [vmem:[#allocation199_spill] sm:$0xff] }
 0x54c   :  { %10219 = vst [vmem:[#allocation83_spill] sm:$0xff] %v7362_v33  ;;  %v1929_v3 = vmul.f32 %v6004_v14, %v10221_v40  ;;  %v9371_v27 = vmax.f32 %v7362_v33, 0.0  ;;  %v2096_v46 = vmul.f32 %v6004_v14, %v10226_v59  ;;  %v10230_v59 = vld [vmem:[#allocation160_spill] sm:$0xff] }
 0x54d   :  { %v2948_v45 = vadd.f32 %v2947_v30, %v9362_v58  ;;  %10222 = vst [vmem:[#allocation175_spill] sm:$0xff] %v7374_v26  ;;  %v9369_v30 = vmax.f32 %v7356_v39, 0.0  ;;  %v1930_v58 = vmul.f32 %v6004_v14, %v10224_v12 }
 0x54e   :  { %10223 = vst [vmem:[#allocation86_spill] sm:$0xff] %v7380_v62  ;;  %v7386_v40 = vadd.f32 %v6006_v8, %v1929_v3  ;;  %v9374_v3 = vmax.f32 %v7374_v26, 0.0  ;;  %v7404_v28 = vadd.f32 %v6006_v8, %v2096_v46 }
 0x54f   :  { %v2949_v42 = vadd.f32 %v2948_v45, %v9365_v56  ;;  %v10227_v45 = vld [vmem:[#allocation157_spill] sm:$0xff]  ;;  %v3123_v56 = vadd.f32 %v3122_v54, %v9369_v30  ;;  %v7398_v44 = vadd.f32 %v6006_v8, %v1930_v58 }
 0x550   :  { %10225 = vst [vmem:[#allocation89_spill] sm:$0xff] %v7386_v40  ;;  %v1931_v35 = vmul.f32 %v6004_v14, %v10227_v45  ;;  %v9377_v54 = vmax.f32 %v7386_v40, 0.0  ;;  %v10232_v30 = vld [vmem:[#allocation201_spill] sm:$0xff] }
 0x551   :  { %v2950_v37 = vadd.f32 %v2949_v42, %v9368_v53  ;;  %10228 = vst [vmem:[#allocation177_spill] sm:$0xff] %v7398_v44  ;;  %v9375_v42 = vmax.f32 %v7380_v62, 0.0  ;;  %v1932_v53 = vmul.f32 %v6004_v14, %v10230_v59  ;;  %v2097_v39 = vmul.f32 %v6004_v14, %v10232_v30  ;;  %v10236_v30 = vld [vmem:[#allocation16_spill] sm:$0xff] }
 0x552   :  { %10229 = vst [vmem:[#allocation92_spill] sm:$0xff] %v7404_v28  ;;  %v7410_v45 = vadd.f32 %v6006_v8, %v1931_v35  ;;  %v9380_v35 = vmax.f32 %v7398_v44, 0.0 }
 0x553   :  { %v2951_v12 = vadd.f32 %v2950_v37, %v9371_v27  ;;  %v10233_v37 = vld [vmem:[#allocation163_spill] sm:$0xff]  ;;  %v3124_v27 = vadd.f32 %v3123_v56, %v9375_v42  ;;  %v7422_v33 = vadd.f32 %v6006_v8, %v1932_v53  ;;  %v7428_v26 = vadd.f32 %v6006_v8, %v2097_v39 }
 0x554   :  { %10231 = vst [vmem:[#allocation95_spill] sm:$0xff] %v7410_v45  ;;  %v1933_v46 = vmul.f32 %v6004_v14, %v10233_v37  ;;  %v9383_v56 = vmax.f32 %v7410_v45, 0.0  ;;  %v10238_v42 = vld [vmem:[#allocation203_spill] sm:$0xff] }
 0x555   :  { %v2952_v58 = vadd.f32 %v2951_v12, %v9374_v3  ;;  %10234 = vst [vmem:[#allocation179_spill] sm:$0xff] %v7422_v33  ;;  %v9381_v12 = vmax.f32 %v7404_v28, 0.0  ;;  %v1934_v3 = vmul.f32 %v6004_v14, %v10236_v30  ;;  %v2098_v62 = vmul.f32 %v6004_v14, %v10238_v42  ;;  %v10241_v42 = vld [vmem:[#allocation20_spill] sm:$0xff] }
 0x556   :  { %10235 = vst [vmem:[#allocation99_spill] sm:$0xff] %v7428_v26  ;;  %v7434_v37 = vadd.f32 %v6006_v8, %v1933_v46  ;;  %v9386_v46 = vmax.f32 %v7422_v33, 0.0 }
 0x557   :  { %v2953_v59 = vadd.f32 %v2952_v58, %v9377_v54  ;;  %v10239_v58 = vld [vmem:[#allocation18_spill] sm:$0xff]  ;;  %v3125_v54 = vadd.f32 %v3124_v27, %v9381_v12  ;;  %v7446_v40 = vadd.f32 %v6006_v8, %v1934_v3  ;;  %v7452_v44 = vadd.f32 %v6006_v8, %v2098_v62  ;;  %v10242_v12 = vld [vmem:[#allocation205_spill] sm:$0xff] }
 0x558   :  { %10237 = vst [vmem:[#allocation103_spill] sm:$0xff] %v7434_v37  ;;  %v1935_v39 = vmul.f32 %v6004_v14, %v10239_v58  ;;  %v9389_v27 = vmax.f32 %v7434_v37, 0.0  ;;  %v2099_v28 = vmul.f32 %v6004_v14, %v10242_v12  ;;  %v10245_v12 = vld [vmem:[#allocation24_spill] sm:$0xff] }
 0x559   :  { %v2954_v53 = vadd.f32 %v2953_v59, %v9380_v35  ;;  %10240 = vst [vmem:[#allocation182_spill] sm:$0xff] %v7452_v44  ;;  %v9387_v59 = vmax.f32 %v7428_v26, 0.0  ;;  %v1936_v35 = vmul.f32 %v6004_v14, %v10241_v42 }
 0x55a   :  { %v7458_v58 = vadd.f32 %v6006_v8, %v1935_v39  ;;  %v9392_v39 = vmax.f32 %v7446_v40, 0.0  ;;  %v7476_v33 = vadd.f32 %v6006_v8, %v2099_v28 }
 0x55b   :  { %v2955_v30 = vadd.f32 %v2954_v53, %v9383_v56  ;;  %v10243_v53 = vld [vmem:[#allocation22_spill] sm:$0xff]  ;;  %v3126_v56 = vadd.f32 %v3125_v54, %v9387_v59  ;;  %v7470_v45 = vadd.f32 %v6006_v8, %v1936_v35  ;;  %v10246_v59 = vld [vmem:[#allocation105_spill] sm:$0xff] }
 0x55c   :  { %v1937_v62 = vmul.f32 %v6004_v14, %v10243_v53  ;;  %10244 = vst [vmem:[#allocation107_spill] sm:$0xff] %v7476_v33  ;;  %v9395_v54 = vmax.f32 %v7458_v58, 0.0  ;;  %v2100_v26 = vmul.f32 %v6004_v14, %v10246_v59  ;;  %v10249_v59 = vld [vmem:[#allocation28_spill] sm:$0xff] }
 0x55d   :  { %v2956_v3 = vadd.f32 %v2955_v30, %v9386_v46  ;;  %v9393_v30 = vmax.f32 %v7452_v44, 0.0  ;;  %v1938_v46 = vmul.f32 %v6004_v14, %v10245_v12 }
 0x55e   :  { %v7482_v53 = vadd.f32 %v6006_v8, %v1937_v62  ;;  %v9398_v62 = vmax.f32 %v7470_v45, 0.0  ;;  %v7500_v11 = vadd.f32 %v6006_v8, %v2100_v26 }
 0x55f   :  { %v2957_v42 = vadd.f32 %v2956_v3, %v9389_v27  ;;  %v10247_v3 = vld [vmem:[#allocation26_spill] sm:$0xff]  ;;  %v3127_v27 = vadd.f32 %v3126_v56, %v9393_v30  ;;  %v7494_v37 = vadd.f32 %v6006_v8, %v1938_v46 }
 0x560   :  { %v1939_v28 = vmul.f32 %v6004_v14, %v10247_v3  ;;  %10248 = vst [vmem:[#allocation111_spill] sm:$0xff] %v7500_v11  ;;  %v9401_v56 = vmax.f32 %v7482_v53, 0.0  ;;  %v10250_v30 = vld [vmem:[#allocation206_spill] sm:$0xff] }
 0x561   :  { %v2958_v35 = vadd.f32 %v2957_v42, %v9392_v39  ;;  %v9399_v42 = vmax.f32 %v7476_v33, 0.0  ;;  %v1940_v39 = vmul.f32 %v6004_v14, %v10249_v59  ;;  %v2101_v44 = vmul.f32 %v6004_v14, %v10250_v30  ;;  %v10253_v30 = vld [vmem:[#allocation32_spill] sm:$0xff] }
 0x562   :  { %v7506_v3 = vadd.f32 %v6006_v8, %v1939_v28  ;;  %v9404_v28 = vmax.f32 %v7494_v37, 0.0 }
 0x563   :  { %v2959_v12 = vadd.f32 %v2958_v35, %v9395_v54  ;;  %v10251_v35 = vld [vmem:[#allocation30_spill] sm:$0xff]  ;;  %v3128_v54 = vadd.f32 %v3127_v27, %v9399_v42  ;;  %v7518_v38 = vadd.f32 %v6006_v8, %v1940_v39  ;;  %v7524_v50 = vadd.f32 %v6006_v8, %v2101_v44  ;;  %v10254_v42 = vld [vmem:[#allocation208_spill] sm:$0xff] }
 0x564   :  { %v1941_v26 = vmul.f32 %v6004_v14, %v10251_v35  ;;  %v9407_v27 = vmax.f32 %v7506_v3, 0.0  ;;  %v2102_v33 = vmul.f32 %v6004_v14, %v10254_v42  ;;  %v10257_v42 = vld [vmem:[#allocation36_spill] sm:$0xff] }
 0x565   :  { %v2960_v46 = vadd.f32 %v2959_v12, %v9398_v62  ;;  %10252 = vst [vmem:[#allocation185_spill] sm:$0xff] %v7524_v50  ;;  %v9405_v12 = vmax.f32 %v7500_v11, 0.0  ;;  %v1942_v62 = vmul.f32 %v6004_v14, %v10253_v30 }
 0x566   :  { %v7530_v35 = vadd.f32 %v6006_v8, %v1941_v26  ;;  %v9410_v26 = vmax.f32 %v7518_v38, 0.0  ;;  %v7548_v1 = vadd.f32 %v6006_v8, %v2102_v33 }
 0x567   :  { %v2961_v59 = vadd.f32 %v2960_v46, %v9401_v56  ;;  %v10255_v46 = vld [vmem:[#allocation34_spill] sm:$0xff]  ;;  %v3129_v56 = vadd.f32 %v3128_v54, %v9405_v12  ;;  %v7542_v31 = vadd.f32 %v6006_v8, %v1942_v62 }
 0x568   :  { %v1943_v44 = vmul.f32 %v6004_v14, %v10255_v46  ;;  %10256 = vst [vmem:[#allocation115_spill] sm:$0xff] %v7548_v1  ;;  %v9413_v54 = vmax.f32 %v7530_v35, 0.0  ;;  %v10258_v12 = vld [vmem:[#allocation210_spill] sm:$0xff] }
 0x569   :  { %v2962_v39 = vadd.f32 %v2961_v59, %v9404_v28  ;;  %v9411_v59 = vmax.f32 %v7524_v50, 0.0  ;;  %v1944_v28 = vmul.f32 %v6004_v14, %v10257_v42  ;;  %v2103_v11 = vmul.f32 %v6004_v14, %v10258_v12  ;;  %v10262_v12 = vld [vmem:[#allocation40_spill] sm:$0xff] }
 0x56a   :  { %v7554_v46 = vadd.f32 %v6006_v8, %v1943_v44  ;;  %v9416_v44 = vmax.f32 %v7542_v31, 0.0 }
 0x56b   :  { %v2963_v30 = vadd.f32 %v2962_v39, %v9407_v27  ;;  %v10259_v39 = vld [vmem:[#allocation38_spill] sm:$0xff]  ;;  %v3130_v27 = vadd.f32 %v3129_v56, %v9411_v59  ;;  %v7566_v25 = vadd.f32 %v6006_v8, %v1944_v28  ;;  %v7572_v49 = vadd.f32 %v6006_v8, %v2103_v11  ;;  %v10264_v59 = vld [vmem:[#allocation212_spill] sm:$0xff] }
 0x56c   :  { %v1945_v33 = vmul.f32 %v6004_v14, %v10259_v39  ;;  %v9419_v56 = vmax.f32 %v7554_v46, 0.0  ;;  %v2104_v50 = vmul.f32 %v6004_v14, %v10264_v59  ;;  %v10268_v59 = vld [vmem:[#allocation44_spill] sm:$0xff] }
 0x56d   :  { %v2964_v62 = vadd.f32 %v2963_v30, %v9410_v26  ;;  %10260 = vst [vmem:[#allocation118_spill] sm:$0xff] %v7566_v25  ;;  %v9417_v30 = vmax.f32 %v7548_v1, 0.0  ;;  %v1946_v26 = vmul.f32 %v6004_v14, %v10262_v12 }
 0x56e   :  { %10261 = vst [vmem:[#allocation187_spill] sm:$0xff] %v7572_v49  ;;  %v7578_v39 = vadd.f32 %v6006_v8, %v1945_v33  ;;  %v9422_v33 = vmax.f32 %v7566_v25, 0.0  ;;  %v7596_v57 = vadd.f32 %v6006_v8, %v2104_v50 }
 0x56f   :  { %v2965_v42 = vadd.f32 %v2964_v62, %v9413_v54  ;;  %v10265_v62 = vld [vmem:[#allocation42_spill] sm:$0xff]  ;;  %v3131_v54 = vadd.f32 %v3130_v27, %v9417_v30  ;;  %v7590_v4 = vadd.f32 %v6006_v8, %v1946_v26 }
 0x570   :  { %10263 = vst [vmem:[#allocation121_spill] sm:$0xff] %v7578_v39  ;;  %v1947_v11 = vmul.f32 %v6004_v14, %v10265_v62  ;;  %v9425_v27 = vmax.f32 %v7578_v39, 0.0  ;;  %v10270_v30 = vld [vmem:[#allocation214_spill] sm:$0xff] }
 0x571   :  { %v2966_v28 = vadd.f32 %v2965_v42, %v9416_v44  ;;  %10266 = vst [vmem:[#allocation124_spill] sm:$0xff] %v7590_v4  ;;  %v9423_v42 = vmax.f32 %v7572_v49, 0.0  ;;  %v1948_v44 = vmul.f32 %v6004_v14, %v10268_v59  ;;  %v2105_v1 = vmul.f32 %v6004_v14, %v10270_v30  ;;  %v10274_v30 = vld [vmem:[#allocation48_spill] sm:$0xff] }
 0x572   :  { %10267 = vst [vmem:[#allocation189_spill] sm:$0xff] %v7596_v57  ;;  %v7602_v62 = vadd.f32 %v6006_v8, %v1947_v11  ;;  %v9428_v11 = vmax.f32 %v7590_v4, 0.0 }
 0x573   :  { %v2967_v12 = vadd.f32 %v2966_v28, %v9419_v56  ;;  %v10271_v28 = vld [vmem:[#allocation46_spill] sm:$0xff]  ;;  %v3132_v56 = vadd.f32 %v3131_v54, %v9423_v42  ;;  %v7614_v34 = vadd.f32 %v6006_v8, %v1948_v44  ;;  %v7620_v21 = vadd.f32 %v6006_v8, %v2105_v1  ;;  %v10276_v42 = vld [vmem:[#allocation216_spill] sm:$0xff] }
 0x574   :  { %10269 = vst [vmem:[#allocation128_spill] sm:$0xff] %v7602_v62  ;;  %v1949_v50 = vmul.f32 %v6004_v14, %v10271_v28  ;;  %v9431_v54 = vmax.f32 %v7602_v62, 0.0  ;;  %v2106_v49 = vmul.f32 %v6004_v14, %v10276_v42  ;;  %v10280_v42 = vld [vmem:[#allocation54_spill] sm:$0xff] }
 0x575   :  { %v2968_v26 = vadd.f32 %v2967_v12, %v9422_v33  ;;  %10272 = vst [vmem:[#allocation131_spill] sm:$0xff] %v7614_v34  ;;  %v9429_v12 = vmax.f32 %v7596_v57, 0.0  ;;  %v1950_v33 = vmul.f32 %v6004_v14, %v10274_v30 }
 0x576   :  { %10273 = vst [vmem:[#allocation192_spill] sm:$0xff] %v7620_v21  ;;  %v7626_v28 = vadd.f32 %v6006_v8, %v1949_v50  ;;  %v9434_v50 = vmax.f32 %v7614_v34, 0.0  ;;  %v7644_v24 = vadd.f32 %v6006_v8, %v2106_v49 }
 0x577   :  { %v2969_v59 = vadd.f32 %v2968_v26, %v9425_v27  ;;  %v10277_v26 = vld [vmem:[#allocation51_spill] sm:$0xff]  ;;  %v3133_v27 = vadd.f32 %v3132_v56, %v9429_v12  ;;  %v7638_v63 = vadd.f32 %v6006_v8, %v1950_v33  ;;  %v10282_v12 = vld [vmem:[#allocation218_spill] sm:$0xff] }
 0x578   :  { %10275 = vst [vmem:[#allocation134_spill] sm:$0xff] %v7626_v28  ;;  %v1951_v1 = vmul.f32 %v6004_v14, %v10277_v26  ;;  %v9437_v56 = vmax.f32 %v7626_v28, 0.0  ;;  %v2107_v57 = vmul.f32 %v6004_v14, %v10282_v12  ;;  %v10286_v12 = vld [vmem:[#allocation60_spill] sm:$0xff] }
 0x579   :  { %v2970_v44 = vadd.f32 %v2969_v59, %v9428_v11  ;;  %10278 = vst [vmem:[#allocation138_spill] sm:$0xff] %v7638_v63  ;;  %v9435_v59 = vmax.f32 %v7620_v21, 0.0  ;;  %v1952_v11 = vmul.f32 %v6004_v14, %v10280_v42 }
 0x57a   :  { %10279 = vst [vmem:[#allocation195_spill] sm:$0xff] %v7644_v24  ;;  %v7650_v26 = vadd.f32 %v6006_v8, %v1951_v1  ;;  %v9440_v1 = vmax.f32 %v7638_v63, 0.0  ;;  %v7668_v34 = vadd.f32 %v6006_v8, %v2107_v57 }
 0x57b   :  { %v2971_v30 = vadd.f32 %v2970_v44, %v9431_v54  ;;  %v10283_v44 = vld [vmem:[#allocation57_spill] sm:$0xff]  ;;  %v3134_v54 = vadd.f32 %v3133_v27, %v9435_v59  ;;  %v7662_v62 = vadd.f32 %v6006_v8, %v1952_v11  ;;  %v10288_v59 = vld [vmem:[#allocation220_spill] sm:$0xff] }
 0x57c   :  { %10281 = vst [vmem:[#allocation142_spill] sm:$0xff] %v7650_v26  ;;  %v1953_v49 = vmul.f32 %v6004_v14, %v10283_v44  ;;  %v9443_v27 = vmax.f32 %v7650_v26, 0.0  ;;  %v2108_v21 = vmul.f32 %v6004_v14, %v10288_v59  ;;  %v10292_v59 = vld [vmem:[#allocation66_spill] sm:$0xff] }
 0x57d   :  { %v2972_v33 = vadd.f32 %v2971_v30, %v9434_v50  ;;  %10284 = vst [vmem:[#allocation146_spill] sm:$0xff] %v7662_v62  ;;  %v9441_v30 = vmax.f32 %v7644_v24, 0.0  ;;  %v1954_v50 = vmul.f32 %v6004_v14, %v10286_v12 }
 0x57e   :  { %10285 = vst [vmem:[#allocation198_spill] sm:$0xff] %v7668_v34  ;;  %v7674_v44 = vadd.f32 %v6006_v8, %v1953_v49  ;;  %v9446_v49 = vmax.f32 %v7662_v62, 0.0  ;;  %v7692_v63 = vadd.f32 %v6006_v8, %v2108_v21 }
 0x57f   :  { %v2973_v42 = vadd.f32 %v2972_v33, %v9437_v56  ;;  %v10289_v33 = vld [vmem:[#allocation63_spill] sm:$0xff]  ;;  %v3135_v56 = vadd.f32 %v3134_v54, %v9441_v30  ;;  %v7686_v28 = vadd.f32 %v6006_v8, %v1954_v50  ;;  %v10294_v30 = vld [vmem:[#allocation221_spill] sm:$0xff] }
 0x580   :  { %10287 = vst [vmem:[#allocation150_spill] sm:$0xff] %v7674_v44  ;;  %v1955_v57 = vmul.f32 %v6004_v14, %v10289_v33  ;;  %v9449_v54 = vmax.f32 %v7674_v44, 0.0  ;;  %v2109_v24 = vmul.f32 %v6004_v14, %v10294_v30  ;;  %v10298_v30 = vld [vmem:[#allocation72_spill] sm:$0xff] }
 0x581   :  { %v2974_v11 = vadd.f32 %v2973_v42, %v9440_v1  ;;  %10290 = vst [vmem:[#allocation154_spill] sm:$0xff] %v7686_v28  ;;  %v9447_v42 = vmax.f32 %v7668_v34, 0.0  ;;  %v1956_v1 = vmul.f32 %v6004_v14, %v10292_v59 }
 0x582   :  { %10291 = vst [vmem:[#allocation199_spill] sm:$0xff] %v7692_v63  ;;  %v7698_v33 = vadd.f32 %v6006_v8, %v1955_v57  ;;  %v9452_v57 = vmax.f32 %v7686_v28, 0.0  ;;  %v7716_v62 = vadd.f32 %v6006_v8, %v2109_v24 }
 0x583   :  { %v2975_v12 = vadd.f32 %v2974_v11, %v9443_v27  ;;  %v10295_v11 = vld [vmem:[#allocation69_spill] sm:$0xff]  ;;  %v3136_v27 = vadd.f32 %v3135_v56, %v9447_v42  ;;  %v7710_v26 = vadd.f32 %v6006_v8, %v1956_v1  ;;  %v10300_v42 = vld [vmem:[#allocation222_spill] sm:$0xff] }
 0x584   :  { %10293 = vst [vmem:[#allocation157_spill] sm:$0xff] %v7698_v33  ;;  %v1957_v21 = vmul.f32 %v6004_v14, %v10295_v11  ;;  %v9455_v56 = vmax.f32 %v7698_v33, 0.0  ;;  %v2110_v34 = vmul.f32 %v6004_v14, %v10300_v42  ;;  %v10304_v42 = vld [vmem:[#allocation78_spill] sm:$0xff] }
 0x585   :  { %v2976_v50 = vadd.f32 %v2975_v12, %v9446_v49  ;;  %10296 = vst [vmem:[#allocation160_spill] sm:$0xff] %v7710_v26  ;;  %v9453_v12 = vmax.f32 %v7692_v63, 0.0  ;;  %v1958_v49 = vmul.f32 %v6004_v14, %v10298_v30 }
 0x586   :  { %10297 = vst [vmem:[#allocation201_spill] sm:$0xff] %v7716_v62  ;;  %v7722_v11 = vadd.f32 %v6006_v8, %v1957_v21  ;;  %v9458_v21 = vmax.f32 %v7710_v26, 0.0  ;;  %v7740_v28 = vadd.f32 %v6006_v8, %v2110_v34 }
 0x587   :  { %v2977_v59 = vadd.f32 %v2976_v50, %v9449_v54  ;;  %v10301_v50 = vld [vmem:[#allocation75_spill] sm:$0xff]  ;;  %v3137_v54 = vadd.f32 %v3136_v27, %v9453_v12  ;;  %v7734_v44 = vadd.f32 %v6006_v8, %v1958_v49 }
 0x588   :  { %10299 = vst [vmem:[#allocation163_spill] sm:$0xff] %v7722_v11  ;;  %v1959_v24 = vmul.f32 %v6004_v14, %v10301_v50  ;;  %v9461_v27 = vmax.f32 %v7722_v11, 0.0  ;;  %v10306_v12 = vld [vmem:[#allocation223_spill] sm:$0xff] }
 0x589   :  { %v2978_v1 = vadd.f32 %v2977_v59, %v9452_v57  ;;  %10302 = vst [vmem:[#allocation16_spill] sm:$0xff] %v7734_v44  ;;  %v9459_v59 = vmax.f32 %v7716_v62, 0.0  ;;  %v1960_v57 = vmul.f32 %v6004_v14, %v10304_v42  ;;  %v2111_v63 = vmul.f32 %v6004_v14, %v10306_v12  ;;  %v10310_v12 = vld [vmem:[#allocation84_spill] sm:$0xff] }
 0x58a   :  { %10303 = vst [vmem:[#allocation203_spill] sm:$0xff] %v7740_v28  ;;  %v7746_v50 = vadd.f32 %v6006_v8, %v1959_v24  ;;  %v9464_v24 = vmax.f32 %v7734_v44, 0.0 }
 0x58b   :  { %v2979_v30 = vadd.f32 %v2978_v1, %v9455_v56  ;;  %v10307_v1 = vld [vmem:[#allocation81_spill] sm:$0xff]  ;;  %v3138_v56 = vadd.f32 %v3137_v54, %v9459_v59  ;;  %v7758_v33 = vadd.f32 %v6006_v8, %v1960_v57  ;;  %v7764_v26 = vadd.f32 %v6006_v8, %v2111_v63  ;;  %v10312_v59 = vld [vmem:[#allocation224_spill] sm:$0xff] }
 0x58c   :  { %10305 = vst [vmem:[#allocation18_spill] sm:$0xff] %v7746_v50  ;;  %v1961_v34 = vmul.f32 %v6004_v14, %v10307_v1  ;;  %v9467_v54 = vmax.f32 %v7746_v50, 0.0  ;;  %v2112_v62 = vmul.f32 %v6004_v14, %v10312_v59  ;;  %v10316_v59 = vld [vmem:[#allocation90_spill] sm:$0xff] }
 0x58d   :  { %v2980_v49 = vadd.f32 %v2979_v30, %v9458_v21  ;;  %10308 = vst [vmem:[#allocation20_spill] sm:$0xff] %v7758_v33  ;;  %v9465_v30 = vmax.f32 %v7740_v28, 0.0  ;;  %v1962_v21 = vmul.f32 %v6004_v14, %v10310_v12 }
 0x58e   :  { %10309 = vst [vmem:[#allocation205_spill] sm:$0xff] %v7764_v26  ;;  %v7770_v1 = vadd.f32 %v6006_v8, %v1961_v34  ;;  %v9470_v34 = vmax.f32 %v7758_v33, 0.0  ;;  %v7788_v44 = vadd.f32 %v6006_v8, %v2112_v62 }
 0x58f   :  { %v2981_v42 = vadd.f32 %v2980_v49, %v9461_v27  ;;  %v10313_v49 = vld [vmem:[#allocation87_spill] sm:$0xff]  ;;  %v3139_v27 = vadd.f32 %v3138_v56, %v9465_v30  ;;  %v7782_v11 = vadd.f32 %v6006_v8, %v1962_v21  ;;  %v10318_v30 = vld [vmem:[#allocation225_spill] sm:$0xff] }
 0x590   :  { %10311 = vst [vmem:[#allocation22_spill] sm:$0xff] %v7770_v1  ;;  %v1963_v63 = vmul.f32 %v6004_v14, %v10313_v49  ;;  %v9473_v56 = vmax.f32 %v7770_v1, 0.0  ;;  %v2113_v28 = vmul.f32 %v6004_v14, %v10318_v30  ;;  %v10322_v30 = vld [vmem:[#allocation96_spill] sm:$0xff] }
 0x591   :  { %v2982_v57 = vadd.f32 %v2981_v42, %v9464_v24  ;;  %10314 = vst [vmem:[#allocation24_spill] sm:$0xff] %v7782_v11  ;;  %v9471_v42 = vmax.f32 %v7764_v26, 0.0  ;;  %v1964_v24 = vmul.f32 %v6004_v14, %v10316_v59 }
 0x592   :  { %10315 = vst [vmem:[#allocation105_spill] sm:$0xff] %v7788_v44  ;;  %v7794_v49 = vadd.f32 %v6006_v8, %v1963_v63  ;;  %v9476_v63 = vmax.f32 %v7782_v11, 0.0  ;;  %v7812_v33 = vadd.f32 %v6006_v8, %v2113_v28 }
 0x593   :  { %v2983_v12 = vadd.f32 %v2982_v57, %v9467_v54  ;;  %v10319_v57 = vld [vmem:[#allocation93_spill] sm:$0xff]  ;;  %v3140_v54 = vadd.f32 %v3139_v27, %v9471_v42  ;;  %v7806_v50 = vadd.f32 %v6006_v8, %v1964_v24  ;;  %v10324_v42 = vld [vmem:[#allocation226_spill] sm:$0xff] }
 0x594   :  { %10317 = vst [vmem:[#allocation26_spill] sm:$0xff] %v7794_v49  ;;  %v1965_v62 = vmul.f32 %v6004_v14, %v10319_v57  ;;  %v9479_v27 = vmax.f32 %v7794_v49, 0.0  ;;  %v2114_v26 = vmul.f32 %v6004_v14, %v10324_v42  ;;  %v10327_v42 = vld [vmem:[#allocation104_spill] sm:$0xff] }
 0x595   :  { %v2984_v21 = vadd.f32 %v2983_v12, %v9470_v34  ;;  %10320 = vst [vmem:[#allocation28_spill] sm:$0xff] %v7806_v50  ;;  %v9477_v12 = vmax.f32 %v7788_v44, 0.0  ;;  %v1966_v34 = vmul.f32 %v6004_v14, %v10322_v30 }
 0x596   :  { %10321 = vst [vmem:[#allocation206_spill] sm:$0xff] %v7812_v33  ;;  %v7818_v57 = vadd.f32 %v6006_v8, %v1965_v62  ;;  %v9482_v62 = vmax.f32 %v7806_v50, 0.0  ;;  %v7836_v11 = vadd.f32 %v6006_v8, %v2114_v26 }
 0x597   :  { %v2985_v59 = vadd.f32 %v2984_v21, %v9473_v56  ;;  %v10325_v21 = vld [vmem:[#allocation100_spill] sm:$0xff]  ;;  %v3141_v56 = vadd.f32 %v3140_v54, %v9477_v12  ;;  %v7830_v1 = vadd.f32 %v6006_v8, %v1966_v34  ;;  %v10328_v12 = vld [vmem:[#allocation227_spill] sm:$0xff] }
 0x598   :  { %10323 = vst [vmem:[#allocation30_spill] sm:$0xff] %v7818_v57  ;;  %v1967_v28 = vmul.f32 %v6004_v14, %v10325_v21  ;;  %v9485_v54 = vmax.f32 %v7818_v57, 0.0  ;;  %v2115_v44 = vmul.f32 %v6004_v14, %v10328_v12  ;;  %v10331_v12 = vld [vmem:[#allocation112_spill] sm:$0xff] }
 0x599   :  { %v2986_v24 = vadd.f32 %v2985_v59, %v9476_v63  ;;  %10326 = vst [vmem:[#allocation32_spill] sm:$0xff] %v7836_v11  ;;  %v9483_v59 = vmax.f32 %v7812_v33, 0.0  ;;  %v1968_v63 = vmul.f32 %v6004_v14, %v10327_v42 }
 0x59a   :  { %v7842_v21 = vadd.f32 %v6006_v8, %v1967_v28  ;;  %v9488_v28 = vmax.f32 %v7830_v1, 0.0  ;;  %v7860_v50 = vadd.f32 %v6006_v8, %v2115_v44 }
 0x59b   :  { %v2987_v30 = vadd.f32 %v2986_v24, %v9479_v27  ;;  %v10329_v24 = vld [vmem:[#allocation108_spill] sm:$0xff]  ;;  %v3142_v27 = vadd.f32 %v3141_v56, %v9483_v59  ;;  %v7854_v49 = vadd.f32 %v6006_v8, %v1968_v63 }
 0x59c   :  { %v1969_v26 = vmul.f32 %v6004_v14, %v10329_v24  ;;  %10330 = vst [vmem:[#allocation208_spill] sm:$0xff] %v7860_v50  ;;  %v9491_v56 = vmax.f32 %v7842_v21, 0.0  ;;  %v10332_v59 = vld [vmem:[#allocation228_spill] sm:$0xff] }
 0x59d   :  { %v2988_v34 = vadd.f32 %v2987_v30, %v9482_v62  ;;  %v9489_v30 = vmax.f32 %v7836_v11, 0.0  ;;  %v1970_v62 = vmul.f32 %v6004_v14, %v10331_v12  ;;  %v2116_v33 = vmul.f32 %v6004_v14, %v10332_v59  ;;  %v10335_v59 = vld [vmem:[#allocation119_spill] sm:$0xff] }
 0x59e   :  { %v7866_v24 = vadd.f32 %v6006_v8, %v1969_v26  ;;  %v9494_v26 = vmax.f32 %v7854_v49, 0.0 }
 0x59f   :  { %v2989_v42 = vadd.f32 %v2988_v34, %v9485_v54  ;;  %v10333_v34 = vld [vmem:[#allocation116_spill] sm:$0xff]  ;;  %v3143_v54 = vadd.f32 %v3142_v27, %v9489_v30  ;;  %v7878_v57 = vadd.f32 %v6006_v8, %v1970_v62  ;;  %v7884_v55 = vadd.f32 %v6006_v8, %v2116_v33  ;;  %v10336_v30 = vld [vmem:[#allocation229_spill] sm:$0xff] }
 0x5a0   :  { %v1971_v44 = vmul.f32 %v6004_v14, %v10333_v34  ;;  %v9497_v27 = vmax.f32 %v7866_v24, 0.0  ;;  %v2117_v11 = vmul.f32 %v6004_v14, %v10336_v30  ;;  %v10339_v30 = vld [vmem:[#allocation125_spill] sm:$0xff] }
 0x5a1   :  { %v2990_v63 = vadd.f32 %v2989_v42, %v9488_v28  ;;  %10334 = vst [vmem:[#allocation34_spill] sm:$0xff] %v7884_v55  ;;  %v9495_v42 = vmax.f32 %v7860_v50, 0.0  ;;  %v1972_v28 = vmul.f32 %v6004_v14, %v10335_v59 }
 0x5a2   :  { %v7890_v34 = vadd.f32 %v6006_v8, %v1971_v44  ;;  %v9500_v44 = vmax.f32 %v7878_v57, 0.0  ;;  %v7908_v4 = vadd.f32 %v6006_v8, %v2117_v11 }
 0x5a3   :  { %v2991_v12 = vadd.f32 %v2990_v63, %v9491_v56  ;;  %v10337_v63 = vld [vmem:[#allocation122_spill] sm:$0xff]  ;;  %v3144_v56 = vadd.f32 %v3143_v54, %v9495_v42  ;;  %v7902_v16 = vadd.f32 %v6006_v8, %v1972_v28 }
 0x5a4   :  { %v1973_v33 = vmul.f32 %v6004_v14, %v10337_v63  ;;  %10338 = vst [vmem:[#allocation36_spill] sm:$0xff] %v7908_v4  ;;  %v9503_v54 = vmax.f32 %v7890_v34, 0.0  ;;  %v10340_v42 = vld [vmem:[#allocation230_spill] sm:$0xff] }
 0x5a5   :  { %v2992_v62 = vadd.f32 %v2991_v12, %v9494_v26  ;;  %v9501_v12 = vmax.f32 %v7884_v55, 0.0  ;;  %v1974_v26 = vmul.f32 %v6004_v14, %v10339_v30  ;;  %v2118_v50 = vmul.f32 %v6004_v14, %v10340_v42  ;;  %v10343_v42 = vld [vmem:[#allocation132_spill] sm:$0xff] }
 0x5a6   :  { %v7914_v63 = vadd.f32 %v6006_v8, %v1973_v33  ;;  %v9506_v33 = vmax.f32 %v7902_v16, 0.0 }
 0x5a7   :  { %v2993_v59 = vadd.f32 %v2992_v62, %v9497_v27  ;;  %v10341_v62 = vld [vmem:[#allocation129_spill] sm:$0xff]  ;;  %v3145_v27 = vadd.f32 %v3144_v56, %v9501_v12  ;;  %v7926_v18 = vadd.f32 %v6006_v8, %v1974_v26  ;;  %v7932_v0 = vadd.f32 %v6006_v8, %v2118_v50  ;;  %v10344_v12 = vld [vmem:[#allocation231_spill] sm:$0xff] }
 0x5a8   :  { %v1975_v11 = vmul.f32 %v6004_v14, %v10341_v62  ;;  %v9509_v56 = vmax.f32 %v7914_v63, 0.0  ;;  %v2119_v55 = vmul.f32 %v6004_v14, %v10344_v12  ;;  %v10348_v12 = vld [vmem:[#allocation139_spill] sm:$0xff] }
 0x5a9   :  { %v2994_v28 = vadd.f32 %v2993_v59, %v9500_v44  ;;  %10342 = vst [vmem:[#allocation210_spill] sm:$0xff] %v7932_v0  ;;  %v9507_v59 = vmax.f32 %v7908_v4, 0.0  ;;  %v1976_v44 = vmul.f32 %v6004_v14, %v10343_v42 }
 0x5aa   :  { %v7938_v62 = vadd.f32 %v6006_v8, %v1975_v11  ;;  %v9512_v11 = vmax.f32 %v7926_v18, 0.0  ;;  %v7956_v7 = vadd.f32 %v6006_v8, %v2119_v55 }
 0x5ab   :  { %v2995_v30 = vadd.f32 %v2994_v28, %v9503_v54  ;;  %v10345_v28 = vld [vmem:[#allocation135_spill] sm:$0xff]  ;;  %v3146_v54 = vadd.f32 %v3145_v27, %v9507_v59  ;;  %v7950_v39 = vadd.f32 %v6006_v8, %v1976_v44  ;;  %v10350_v59 = vld [vmem:[#allocation232_spill] sm:$0xff] }
 0x5ac   :  { %v1977_v50 = vmul.f32 %v6004_v14, %v10345_v28  ;;  %10347 = vst [vmem:[#allocation40_spill] sm:$0xff] %v7956_v7  ;;  %v9515_v27 = vmax.f32 %v7938_v62, 0.0  ;;  %v2120_v4 = vmul.f32 %v6004_v14, %v10350_v59  ;;  %v10354_v59 = vld [vmem:[#allocation147_spill] sm:$0xff] }
 0x5ad   :  { %v2996_v26 = vadd.f32 %v2995_v30, %v9506_v33  ;;  %10346 = vst [vmem:[#allocation38_spill] sm:$0xff] %v7950_v39  ;;  %v9513_v30 = vmax.f32 %v7932_v0, 0.0  ;;  %v1978_v33 = vmul.f32 %v6004_v14, %v10348_v12 }
 0x5ae   :  { %v7962_v28 = vadd.f32 %v6006_v8, %v1977_v50  ;;  %v9518_v50 = vmax.f32 %v7950_v39, 0.0  ;;  %v7980_v25 = vadd.f32 %v6006_v8, %v2120_v4 }
 0x5af   :  { %v2997_v42 = vadd.f32 %v2996_v26, %v9509_v56  ;;  %v10351_v26 = vld [vmem:[#allocation143_spill] sm:$0xff]  ;;  %v3147_v56 = vadd.f32 %v3146_v54, %v9513_v30  ;;  %v7974_v17 = vadd.f32 %v6006_v8, %v1978_v33  ;;  %v10356_v30 = vld [vmem:[#allocation233_spill] sm:$0xff] }
 0x5b0   :  { %10349 = vst [vmem:[#allocation212_spill] sm:$0xff] %v7962_v28  ;;  %v1979_v55 = vmul.f32 %v6004_v14, %v10351_v26  ;;  %v9521_v54 = vmax.f32 %v7962_v28, 0.0  ;;  %v2121_v0 = vmul.f32 %v6004_v14, %v10356_v30  ;;  %v10360_v30 = vld [vmem:[#allocation155_spill] sm:$0xff] }
 0x5b1   :  { %v2998_v44 = vadd.f32 %v2997_v42, %v9512_v11  ;;  %10352 = vst [vmem:[#allocation42_spill] sm:$0xff] %v7974_v17  ;;  %v9519_v42 = vmax.f32 %v7956_v7, 0.0  ;;  %v1980_v11 = vmul.f32 %v6004_v14, %v10354_v59 }
 0x5b2   :  { %10353 = vst [vmem:[#allocation44_spill] sm:$0xff] %v7980_v25  ;;  %v7986_v26 = vadd.f32 %v6006_v8, %v1979_v55  ;;  %v9524_v55 = vmax.f32 %v7974_v17, 0.0  ;;  %v8004_v39 = vadd.f32 %v6006_v8, %v2121_v0 }
 0x5b3   :  { %v2999_v12 = vadd.f32 %v2998_v44, %v9515_v27  ;;  %v10357_v44 = vld [vmem:[#allocation151_spill] sm:$0xff]  ;;  %v3148_v27 = vadd.f32 %v3147_v56, %v9519_v42  ;;  %v7998_v5 = vadd.f32 %v6006_v8, %v1980_v11  ;;  %v10362_v42 = vld [vmem:[#allocation234_spill] sm:$0xff] }
 0x5b4   :  { %10355 = vst [vmem:[#allocation214_spill] sm:$0xff] %v7986_v26  ;;  %v1981_v4 = vmul.f32 %v6004_v14, %v10357_v44  ;;  %v9527_v56 = vmax.f32 %v7986_v26, 0.0  ;;  %v2122_v7 = vmul.f32 %v6004_v14, %v10362_v42  ;;  %v10366_v42 = vld [vmem:[#allocation162_spill] sm:$0xff] }
 0x5b5   :  { %v3000_v33 = vadd.f32 %v2999_v12, %v9518_v50  ;;  %10358 = vst [vmem:[#allocation46_spill] sm:$0xff] %v7998_v5  ;;  %v9525_v12 = vmax.f32 %v7980_v25, 0.0  ;;  %v1982_v50 = vmul.f32 %v6004_v14, %v10360_v30 }
 0x5b6   :  { %10359 = vst [vmem:[#allocation48_spill] sm:$0xff] %v8004_v39  ;;  %v8010_v44 = vadd.f32 %v6006_v8, %v1981_v4  ;;  %v9530_v4 = vmax.f32 %v7998_v5, 0.0  ;;  %v8028_v17 = vadd.f32 %v6006_v8, %v2122_v7 }
 0x5b7   :  { %v3001_v59 = vadd.f32 %v3000_v33, %v9521_v54  ;;  %v10363_v33 = vld [vmem:[#allocation158_spill] sm:$0xff]  ;;  %v3149_v54 = vadd.f32 %v3148_v27, %v9525_v12  ;;  %v8022_v28 = vadd.f32 %v6006_v8, %v1982_v50  ;;  %v10368_v12 = vld [vmem:[#allocation235_spill] sm:$0xff] }
 0x5b8   :  { %10361 = vst [vmem:[#allocation216_spill] sm:$0xff] %v8010_v44  ;;  %v1983_v0 = vmul.f32 %v6004_v14, %v10363_v33  ;;  %v9533_v27 = vmax.f32 %v8010_v44, 0.0  ;;  %v2123_v25 = vmul.f32 %v6004_v14, %v10368_v12  ;;  %v10372_v12 = vld [vmem:[#allocation168_spill] sm:$0xff] }
 0x5b9   :  { %v3002_v11 = vadd.f32 %v3001_v59, %v9524_v55  ;;  %10364 = vst [vmem:[#allocation51_spill] sm:$0xff] %v8022_v28  ;;  %v9531_v59 = vmax.f32 %v8004_v39, 0.0  ;;  %v1984_v55 = vmul.f32 %v6004_v14, %v10366_v42 }
 0x5ba   :  { %10365 = vst [vmem:[#allocation54_spill] sm:$0xff] %v8028_v17  ;;  %v8034_v33 = vadd.f32 %v6006_v8, %v1983_v0  ;;  %v9536_v0 = vmax.f32 %v8022_v28, 0.0  ;;  %v8052_v5 = vadd.f32 %v6006_v8, %v2123_v25 }
 0x5bb   :  { %v3003_v30 = vadd.f32 %v3002_v11, %v9527_v56  ;;  %v10369_v11 = vld [vmem:[#allocation165_spill] sm:$0xff]  ;;  %v3150_v56 = vadd.f32 %v3149_v54, %v9531_v59  ;;  %v8046_v26 = vadd.f32 %v6006_v8, %v1984_v55  ;;  %v10374_v59 = vld [vmem:[#allocation236_spill] sm:$0xff] }
 0x5bc   :  { %10367 = vst [vmem:[#allocation218_spill] sm:$0xff] %v8034_v33  ;;  %v1985_v7 = vmul.f32 %v6004_v14, %v10369_v11  ;;  %v9539_v54 = vmax.f32 %v8034_v33, 0.0  ;;  %v2124_v39 = vmul.f32 %v6004_v14, %v10374_v59  ;;  %v10378_v59 = vld [vmem:[#allocation173_spill] sm:$0xff] }
 0x5bd   :  { %v3004_v50 = vadd.f32 %v3003_v30, %v9530_v4  ;;  %10370 = vst [vmem:[#allocation57_spill] sm:$0xff] %v8046_v26  ;;  %v9537_v30 = vmax.f32 %v8028_v17, 0.0  ;;  %v1986_v4 = vmul.f32 %v6004_v14, %v10372_v12 }
 0x5be   :  { %10371 = vst [vmem:[#allocation60_spill] sm:$0xff] %v8052_v5  ;;  %v8058_v11 = vadd.f32 %v6006_v8, %v1985_v7  ;;  %v9542_v7 = vmax.f32 %v8046_v26, 0.0  ;;  %v8076_v28 = vadd.f32 %v6006_v8, %v2124_v39 }
 0x5bf   :  { %v3005_v42 = vadd.f32 %v3004_v50, %v9533_v27  ;;  %v10375_v50 = vld [vmem:[#allocation170_spill] sm:$0xff]  ;;  %v3151_v27 = vadd.f32 %v3150_v56, %v9537_v30  ;;  %v8070_v44 = vadd.f32 %v6006_v8, %v1986_v4  ;;  %v10379_v30 = vld [vmem:[#allocation237_spill] sm:$0xff] }
 0x5c0   :  { %10373 = vst [vmem:[#allocation220_spill] sm:$0xff] %v8058_v11  ;;  %v1987_v25 = vmul.f32 %v6004_v14, %v10375_v50  ;;  %v9545_v56 = vmax.f32 %v8058_v11, 0.0  ;;  %v2125_v17 = vmul.f32 %v6004_v14, %v10379_v30  ;;  %v10383_v30 = vld [vmem:[#allocation178_spill] sm:$0xff]  ;;  %v10387_v11 = vld [vmem:[#allocation184_spill] sm:$0xff] }
 0x5c1   :  { %v3006_v55 = vadd.f32 %v3005_v42, %v9536_v0  ;;  %10376 = vst [vmem:[#allocation63_spill] sm:$0xff] %v8070_v44  ;;  %v9543_v42 = vmax.f32 %v8052_v5, 0.0  ;;  %v1988_v0 = vmul.f32 %v6004_v14, %v10378_v59 }
 0x5c2   :  { %10377 = vst [vmem:[#allocation66_spill] sm:$0xff] %v8076_v28  ;;  %v8082_v50 = vadd.f32 %v6006_v8, %v1987_v25  ;;  %v9549_v25 = vmax.f32 %v8070_v44, 0.0  ;;  %v8100_v26 = vadd.f32 %v6006_v8, %v2125_v17  ;;  %v1992_v44 = vmul.f32 %v6004_v14, %v10387_v11  ;;  %v10391_v11 = vld [vmem:[#allocation188_spill] sm:$0xff] }
 0x5c3   :  { %v3007_v12 = vadd.f32 %v3006_v55, %v9539_v54  ;;  %v10380_v55 = vld [vmem:[#allocation176_spill] sm:$0xff]  ;;  %v3152_v54 = vadd.f32 %v3151_v27, %v9543_v42  ;;  %v8094_v33 = vadd.f32 %v6006_v8, %v1988_v0 }
 0x5c4   :  { %v1989_v39 = vmul.f32 %v6004_v14, %v10380_v55  ;;  %10382 = vst [vmem:[#allocation69_spill] sm:$0xff] %v8100_v26  ;;  %v9550_v27 = vmax.f32 %v8082_v50, 0.0  ;;  %v10385_v42 = vld [vmem:[#allocation180_spill] sm:$0xff] }
 0x5c5   :  { %v3008_v4 = vadd.f32 %v3007_v12, %v9542_v7  ;;  %10381 = vst [vmem:[#allocation221_spill] sm:$0xff] %v8094_v33  ;;  %v9548_v12 = vmax.f32 %v8076_v28, 0.0  ;;  %v1990_v7 = vmul.f32 %v6004_v14, %v10383_v30  ;;  %v1991_v5 = vmul.f32 %v6004_v14, %v10385_v42 }
 0x5c6   :  { %v8106_v55 = vadd.f32 %v6006_v8, %v1989_v39  ;;  %v9553_v30 = vmax.f32 %v8100_v26, 0.0  ;;  %v1994_v28 = vmul.f32 %v6004_v14, %v10391_v11 }
 0x5c7   :  { %v3009_v59 = vadd.f32 %v3008_v4, %v9545_v56  ;;  %v3153_v17 = vadd.f32 %v3152_v54, %v9548_v12  ;;  %v8116_v4 = vadd.f32 %v6006_v8, %v1990_v7  ;;  %v9554_v56 = vmax.f32 %v8094_v33, 0.0  ;;  %v10389_v7 = vld [vmem:[#allocation186_spill] sm:$0xff] }
 0x5c8   :  { %10384 = vst [vmem:[#allocation72_spill] sm:$0xff] %v8106_v55  ;;  %v9555_v42 = vmax.f32 %v8106_v55, 0.0  ;;  %v1993_v12 = vmul.f32 %v6004_v14, %v10389_v7 }
 0x5c9   :  { %v3010_v0 = vadd.f32 %v3009_v59, %v9549_v25  ;;  %10386 = vst [vmem:[#allocation222_spill] sm:$0xff] %v8116_v4  ;;  %v8125_v59 = vadd.f32 %v6006_v8, %v1991_v5  ;;  %v3154_v25 = vadd.f32 %v3153_v17, %v9553_v30  ;;  %v10393_v17 = vld [vmem:[#allocation191_spill] sm:$0xff] }
 0x5ca   :  { %v8143_v33 = vadd.f32 %v6006_v8, %v1993_v12 }
 0x5cb   :  { %v3011_v39 = vadd.f32 %v3010_v0, %v9550_v27  ;;  %10388 = vst [vmem:[#allocation75_spill] sm:$0xff] %v8125_v59  ;;  %v8135_v0 = vadd.f32 %v6006_v8, %v1992_v44  ;;  %v9557_v27 = vmax.f32 %v8116_v4, 0.0  ;;  %v1995_v44 = vmul.f32 %v6004_v14, %v10393_v17 }
 0x5cc   :  { %10392 = vst [vmem:[#allocation223_spill] sm:$0xff] %v8143_v33  ;;  %v3155_v30 = vrot.slane %v3154_v25, 4 }
 0x5cd   :  { %v3012_v54 = vadd.f32 %v3011_v39, %v9554_v56  ;;  %10390 = vst [vmem:[#allocation78_spill] sm:$0xff] %v8135_v0  ;;  %v9560_v39 = vmax.f32 %v8125_v59, 0.0  ;;  %v8151_v56 = vadd.f32 %v6006_v8, %v1994_v28  ;;  %v8159_v26 = vadd.f32 %v6006_v8, %v1995_v44 }
 0x5ce   :  { %v3156_v4 = vadd.f32 %v3155_v30, %v3154_v25 }
 0x5cf   :  { %v3013_v5 = vadd.f32 %v3012_v54, %v9555_v42  ;;  %10394 = vst [vmem:[#allocation81_spill] sm:$0xff] %v8151_v56  ;;  %v9561_v54 = vmax.f32 %v8135_v0, 0.0  ;;  %v10395_v42 = vld [vmem:[#allocation194_spill] sm:$0xff] }
 0x5d0   :  { %v1996_v12 = vmul.f32 %v6004_v14, %v10395_v42  ;;  %10396 = vst [vmem:[#allocation84_spill] sm:$0xff] %v8159_v26 }
 0x5d1   :  { %v3014_v7 = vadd.f32 %v3013_v5, %v9557_v27  ;;  %v9562_v5 = vmax.f32 %v8143_v33, 0.0  ;;  %v10397_v27 = vld [vmem:[#allocation197_spill] sm:$0xff] }
 0x5d2   :  { %v1997_v28 = vmul.f32 %v6004_v14, %v10397_v27  ;;  %v8167_v55 = vadd.f32 %v6006_v8, %v1996_v12 }
 0x5d3   :  { %v3015_v11 = vadd.f32 %v3014_v7, %v9560_v39  ;;  %v9564_v7 = vmax.f32 %v8151_v56, 0.0  ;;  %v9568_v39 = vmax.f32 %v8159_v26, 0.0 }
 0x5d4   :  { %v8173_v44 = vadd.f32 %v6006_v8, %v1997_v28  ;;  %v2509_v14 = vmax.f32 %v8167_v55, 0.0  ;;  %v10600_v55 = vld [vmem:[#allocation30_spill] sm:$0xff] }
 0x5d5   :  { %v3016_v17 = vadd.f32 %v3015_v11, %v9561_v54  ;;  %v3157_v54 = vrot.slane %v3156_v4, 2 }
 0x5d6   :  { %v2510_v27 = vmax.f32 %v8173_v44, 0.0  ;;  %v10606_v44 = vld [vmem:[#allocation86_spill] sm:$0xff] }
 0x5d7   :  { %v3017_v42 = vadd.f32 %v3016_v17, %v9562_v5  ;;  %v3158_v12 = vadd.f32 %v3157_v54, %v3156_v4 }
 0x5d9   :  { %v3018_v11 = vadd.f32 %v3017_v42, %v9564_v7  ;;  %v3159_v5 = vrot.slane %v3158_v12, 1 }
 0x5db   :  { %v3019_v25 = vadd.f32 %v3018_v11, %v9568_v39  ;;  %v3160_v7 = vadd.f32 %v3159_v5, %v3158_v12 }
 0x5dd   :  { %v3020_v30 = vadd.f32 %v3019_v25, %v2509_v14  ;;  %v3162_v59 = vmul.f32 0.0009765625, %v3160_v7 }
 0x5df   :  { %v3021_v8 = vadd.f32 %v3020_v30, %v2510_v27 }
 0x5e1   :  { %v3022_v17 = vrot.slane %v3021_v8, 4 }
 0x5e3   :  { %v3023_v28 = vadd.f32 %v3022_v17, %v3021_v8 }
 0x5e5   :  { %v3024_v56 = vrot.slane %v3023_v28, 2 }
 0x5e7   :  { %v3025_v42 = vadd.f32 %v3024_v56, %v3023_v28  ;;  %v10401_v28 = vmax.f32 %v6710_v52, 0.0  ;;  %v10409_v52 = vmax.f32 %v7470_v45, 0.0 }
 0x5e9   :  { %v3026_v33 = vrot.slane %v3025_v42, 1 }
 0x5eb   :  { %v3027_v0 = vadd.f32 %v3026_v33, %v3025_v42 }
 0x5ed   :  { %v3161_v11 = vmul.f32 0.0009765625, %v3027_v0  ;;  %v10399_v0 = vmax.f32 %v6691_v41, 0.0  ;;  %v10407_v41 = vmax.f32 %v7458_v58, 0.0  ;;  %v10414_v58 = vmax.f32 %v7866_v24, 0.0 }
 0x5ee   :  { %v10421_v24 = vmax.f32 %v6784_v32, 0.0 }
 0x5ef   :  { %v3167_v39 = vsel %vm3166_vm3, %v3162_v59, %v3161_v11  ;;  %v10398_v59 = vmax.f32 %v7088_v48, 0.0  ;;  %v10402_v11 = vmax.f32 %v7110_v47, 0.0  ;;  %v10406_v48 = vmax.f32 %v7842_v21, 0.0 }
 0x5f0   :  { %3185 = vmatmul.f32.vlgmr.msrb.gmra.mxu1 %v3167_v39  ;;  %v10411_v47 = vmax.f32 %v6741_v36, 0.0  ;;  %v10418_v36 = vmax.f32 %v7878_v57, 0.0 }
 0x5f1   :  { %v3364_v39 = vmax.f32 %v10399_v0, %v10398_v59 }
 0x66d   :  { %v3186_v26 = vpop.f32.mrf.mxu1 }
 0x66e   :  { %v3189_v25 = vmax.f32 %v3186_v26, 0.0  ;;  %v10400_v26 = vmax.f32 %v7099_v29, 0.0  ;;  %v10408_v29 = vmax.f32 %v7854_v49, 0.0 }
 0x670   :  { %3820 = vmatmul.msk.f32.vlgmr.msrb.gmra.mxu2 %vm3191_vm4, %v3189_v25  ;;  %v3365_v42 = vmax.f32 %v10401_v28, %v10400_v26  ;;  %v10403_v25 = vmax.f32 %v6719_v20, 0.0  ;;  %v3556_v59 = vmax.f32 %v10409_v52, %v10408_v29  ;;  %v10410_v20 = vmax.f32 %v7122_v2, 0.0 }
 0x671   :  { %v10413_v26 = vmax.f32 %v6757_v43, 0.0  ;;  %v10415_v28 = vmax.f32 %v7482_v53, 0.0  ;;  %v10420_v43 = vmax.f32 %v7158_v19, 0.0  ;;  %v10430_v29 = vmax.f32 %v7926_v18, 0.0 }
 0x672   :  { %v3620_v19 = vmax.f32 %v3364_v39, %v3556_v59  ;;  %v10435_v18 = vmax.f32 %v7554_v46, 0.0  ;;  %v10443_v46 = vld [vmem:[#allocation41_spill] sm:$0xff] }
 0x673   :  { %v3557_v49 = vmax.f32 %v10415_v28, %v10414_v58  ;;  %v3370_v53 = vmax.f32 %v10421_v24, %v10420_v43  ;;  %v10441_v28 = vld [vmem:[#allocation118_spill] sm:$0xff] }
 0x6f3   :  { %v3212_v4 = vpop.f32.mrf.mxu2 }
 0x6f4   :  { %v3821_v54 = vmul.f32 -1.442695, %v3212_v4  ;;  %v3366_v4 = vmax.f32 %v10403_v25, %v10402_v11  ;;  %v10419_v11 = vmax.f32 %v7494_v37, 0.0 }
 0x6f6   :  { %3872 = vpow2.f32 %v3821_v54  ;;  %v10404_v54 = vmax.f32 %v7830_v1, 0.0  ;;  %v3367_v1 = vmax.f32 %v10411_v47, %v10410_v20  ;;  %v10437_v20 = vld [vmem:[#allocation110_spill] sm:$0xff] }
 0x6f7   :  { %v10438_v47 = vmax.f32 %v10437_v20, 0.0  ;;  %v10473_v20 = vld [vmem:[#allocation131_spill] sm:$0xff] }
 0x6fc   :  { %v3873_v30 = vpop.eup %3872 }
 0x6fd   :  { %v3218_v8 = vadd.f32 1.0, %v3873_v30  ;;  %v10405_v30 = vmax.f32 %v7446_v40, 0.0  ;;  %v10412_v40 = vmax.f32 %v7134_v6, 0.0  ;;  %v3558_v6 = vmax.f32 %v10419_v11, %v10418_v36  ;;  %v10449_v11 = vld [vmem:[#allocation121_spill] sm:$0xff] }
 0x6ff   :  { %3874 = vrcp.f32 %v3218_v8  ;;  %v3230_v12 = vand.u32 2147483648, %v3218_v8  ;;  %v3228_v7 = vand.u32 2147483647, %v3218_v8  ;;  %vm3224_vm6 = vweird.f32 %v3218_v8 }
 0x700   :  { %v3368_v21 = vmax.f32 %v10413_v26, %v10412_v40  ;;  %v3622_v39 = vmax.f32 %v3366_v4, %v3558_v6  ;;  %v10436_v4 = vmax.f32 %v7194_v15, 0.0  ;;  %v10439_v26 = vld [vmem:[#allocation38_spill] sm:$0xff]  ;;  %v10450_v6 = vmax.f32 %v10449_v11, 0.0 }
 0x701   :  { %v3231_v45 = vor.u32 1.1754944e-38, %v3230_v12  ;;  %vm3229_vm8 = vcmp.eq.f32.partialorder %v3228_v7, 8.507059e+37  ;;  %v10423_v12 = vmax.f32 %v7506_v3, 0.0  ;;  %v10427_v3 = vmax.f32 %v6798_v23, 0.0 }
 0x702   :  { %v10432_v23 = vmax.f32 %v7182_v9, 0.0  ;;  %v3373_v40 = vmax.f32 %v10438_v47, %v10436_v4  ;;  %v10440_v58 = vmax.f32 %v10439_v26, 0.0  ;;  %v10442_v9 = vmax.f32 %v10441_v28, 0.0 }
 0x703   :  { %v10474_v47 = vmax.f32 %v10473_v20, 0.0 }
 0x705   :  { %v3875_v17 = vpop.eup %3874 }
 0x706   :  { %v3220_v56 = vmul.f32 %v3875_v17, %v3218_v8  ;;  %vm3225_vm5 = vweird.f32 %v3875_v17  ;;  %v10417_v8 = vmax.f32 %v6771_v22, 0.0  ;;  %v10424_v22 = vmax.f32 %v7902_v16, 0.0 }
 0x707   :  { %vm3226_vm7 = vmor %vm3224_vm6, %vm3225_vm5  ;;  %v10428_v16 = vmax.f32 %v7914_v63, 0.0  ;;  %v10433_v63 = vmax.f32 %v6810_v60, 0.0 }
 0x708   :  { %v3221_v5 = vsub.f32 1.0, %v3220_v56  ;;  %v3554_v56 = vmax.f32 %v10405_v30, %v10404_v54  ;;  %v10422_v54 = vmax.f32 %v7890_v34, 0.0  ;;  %v10425_v30 = vmax.f32 %v7518_v38, 0.0 }
 0x709   :  { %v10426_v34 = vmax.f32 %v7170_v61, 0.0  ;;  %v10429_v38 = vmax.f32 %v7530_v35, 0.0  ;;  %v3372_v59 = vmax.f32 %v10433_v63, %v10432_v23  ;;  %v10434_v35 = vmax.f32 %v7938_v62, 0.0 }
 0x70a   :  { %v3222_v33 = vmul.f32 %v3875_v17, %v3221_v5  ;;  %v3555_v5 = vmax.f32 %v10407_v41, %v10406_v48  ;;  %v3560_v57 = vmax.f32 %v10425_v30, %v10424_v22  ;;  %v3618_v37 = vmax.f32 %v6726_v51, %v3554_v56  ;;  %v10455_v30 = vld [vmem:[#allocation42_spill] sm:$0xff] }
 0x70b   :  { %v3371_v7 = vmax.f32 %v10427_v3, %v10426_v34  ;;  %v3561_v41 = vmax.f32 %v10429_v38, %v10428_v16  ;;  %v10431_v51 = vmax.f32 %v7542_v31, 0.0  ;;  %v10444_v62 = vmax.f32 %v10443_v46, 0.0  ;;  %v10461_v38 = vld [vmem:[#allocation117_spill] sm:$0xff]  ;;  %v10479_v46 = vld [vmem:[#allocation216_spill] sm:$0xff] }
 0x70c   :  { %v3223_v0 = vadd.f32 %v3875_v17, %v3222_v33  ;;  %v10416_v33 = vmax.f32 %v7146_v13, 0.0  ;;  %v3559_v13 = vmax.f32 %v10423_v12, %v10422_v54  ;;  %v3624_v60 = vmax.f32 %v3368_v21, %v3560_v57  ;;  %v10451_v21 = vld [vmem:[#allocation159_spill] sm:$0xff]  ;;  %v10453_v12 = vld [vmem:[#allocation6_spill] sm:$0xff] }
 0x70d   :  { %v3562_v56 = vmax.f32 %v10431_v51, %v10430_v29  ;;  %v10452_v54 = vmax.f32 %v10451_v21, 0.0  ;;  %v10456_v57 = vmax.f32 %v10455_v30, 0.0  ;;  %v10463_v51 = vld [vmem:[#allocation214_spill] sm:$0xff]  ;;  %v10487_v21 = vld [vmem:[#allocation51_spill] sm:$0xff] }
 0x70e   :  { %v3369_v2 = vmax.f32 %v10417_v8, %v10416_v33  ;;  %v3227_v25 = vsel %vm3226_vm7, %v3875_v17, %v3223_v0  ;;  %v3619_v17 = vmax.f32 %v6736_v10, %v3555_v5  ;;  %v3621_v10 = vmax.f32 %v3365_v42, %v3557_v49  ;;  %v10447_v8 = vld [vmem:[#allocation212_spill] sm:$0xff] }
 0x70f   :  { %v8242_v48 = vsel %vm3229_vm8, %v3231_v45, %v3227_v25  ;;  %v3563_v0 = vmax.f32 %v10435_v18, %v10434_v35  ;;  %v3623_v31 = vmax.f32 %v3367_v1, %v3559_v13  ;;  %v3564_v49 = vmax.f32 %v10442_v9, %v10440_v58  ;;  %v10445_v1 = vld [vmem:[#allocation5_spill] sm:$0xff] }
 0x710   :  { %v8247_v32 = vperm.slane %v8242_v48, 0  ;;  %v10446_v33 = vmax.f32 %v10445_v1, 0.0  ;;  %v10448_v36 = vmax.f32 %v10447_v8, 0.0  ;;  %v3625_v43 = vmax.f32 %v3369_v2, %v3561_v41  ;;  %v10459_v2 = vld [vmem:[#allocation45_spill] sm:$0xff]  ;;  %v10481_v1 = vld [vmem:[#allocation134_spill] sm:$0xff] }
 0x711   :  { %v10454_v13 = vmax.f32 %v10453_v12, 0.0  ;;  %v3626_v34 = vmax.f32 %v3370_v53, %v3562_v56  ;;  %v10460_v16 = vmax.f32 %v10459_v2, 0.0  ;;  %v10462_v41 = vmax.f32 %v10461_v38, 0.0  ;;  %v10467_v53 = vld [vmem:[#allocation161_spill] sm:$0xff]  ;;  %v10489_v12 = vld [vmem:[#allocation138_spill] sm:$0xff] }
 0x712   :  { %v3688_v5 = vmul.f32 %v8247_v32, %v3618_v37  ;;  %v3689_v52 = vmul.f32 %v8247_v32, %v3619_v17  ;;  %v3690_v61 = vmul.f32 %v8247_v32, %v3620_v19  ;;  %v3691_v42 = vmul.f32 %v8247_v32, %v3621_v10  ;;  %v10457_v37 = vld [vmem:[#allocation124_spill] sm:$0xff]  ;;  %v10495_v2 = vld [vmem:[#allocation218_spill] sm:$0xff] }
 0x713   :  { %v3692_v45 = vmul.f32 %v8247_v32, %v3622_v39  ;;  %v3374_v15 = vmax.f32 %v10446_v33, %v10444_v62  ;;  %v3565_v25 = vmax.f32 %v10450_v6, %v10448_v36  ;;  %v3693_v24 = vmul.f32 %v8247_v32, %v3623_v31  ;;  %v10465_v39 = vld [vmem:[#allocation128_spill] sm:$0xff]  ;;  %v10471_v31 = vld [vmem:[#allocation46_spill] sm:$0xff] }
 0x714   :  { %3752 = vst [vmem:[%s8887_s3] sm:$0xff] %v3688_v5  ;;  %v3375_v22 = vmax.f32 %v10454_v13, %v10452_v54  ;;  %v10458_v17 = vmax.f32 %v10457_v37, 0.0  ;;  %v3694_v3 = vmul.f32 %v8247_v32, %v3624_v60  ;;  %v3376_v29 = vmax.f32 %v10462_v41, %v10460_v16  ;;  %v10497_v38 = vld [vmem:[#allocation142_spill] sm:$0xff] }
 0x715   :  { %3753 = vst [vmem:[%s8887_s3 + $0x8] sm:$0xff] %v3689_v52  ;;  %v10464_v10 = vmax.f32 %v10463_v51, 0.0  ;;  %v10466_v5 = vmax.f32 %v10465_v39, 0.0  ;;  %v3627_v23 = vmax.f32 %v3371_v7, %v3563_v0  ;;  %v3695_v63 = vmul.f32 %v8247_v32, %v3625_v43  ;;  %v10475_v7 = vld [vmem:[#allocation50_spill] sm:$0xff] }
 0x716   :  { %v3566_v19 = vmax.f32 %v10458_v17, %v10456_v57  ;;  %3754 = vst [vmem:[%s8887_s3 + $0x10] sm:$0xff] %v3690_v61  ;;  %v10468_v56 = vmax.f32 %v10467_v53, 0.0  ;;  %v10469_v61 = vld [vmem:[#allocation120_spill] sm:$0xff]  ;;  %v10472_v4 = vmax.f32 %v10471_v31, 0.0  ;;  %v3628_v58 = vmax.f32 %v3372_v59, %v3564_v49  ;;  %v10503_v53 = vld [vmem:[#allocation57_spill] sm:$0xff] }
 0x717   :  { %v3567_v52 = vmax.f32 %v10466_v5, %v10464_v10  ;;  %3755 = vst [vmem:[%s8887_s3 + $0x18] sm:$0xff] %v3691_v42  ;;  %v10470_v35 = vmax.f32 %v10469_v61, 0.0  ;;  %v3696_v28 = vmul.f32 %v8247_v32, %v3626_v34  ;;  %v10476_v0 = vmax.f32 %v10475_v7, 0.0  ;;  %v10477_v42 = vld [vmem:[#allocation8_spill] sm:$0xff]  ;;  %v10505_v61 = vld [vmem:[#allocation146_spill] sm:$0xff] }
 0x718   :  { %v3568_v26 = vmax.f32 %v10474_v47, %v10472_v4  ;;  %3756 = vst [vmem:[%s8887_s3 + $0x20] sm:$0xff] %v3692_v45  ;;  %v10478_v9 = vmax.f32 %v10477_v42, 0.0  ;;  %v10480_v62 = vmax.f32 %v10479_v46, 0.0  ;;  %v10482_v33 = vmax.f32 %v10481_v1, 0.0  ;;  %v10483_v59 = vld [vmem:[#allocation164_spill] sm:$0xff]  ;;  %v10485_v45 = vld [vmem:[#allocation123_spill] sm:$0xff] }
 0x719   :  { %v3377_v18 = vmax.f32 %v10470_v35, %v10468_v56  ;;  %v3629_v36 = vmax.f32 %v3373_v40, %v3565_v25  ;;  %v3697_v11 = vmul.f32 %v8247_v32, %v3627_v23  ;;  %3757 = vst [vmem:[%s8887_s3 + $0x28] sm:$0xff] %v3693_v24  ;;  %v10484_v49 = vmax.f32 %v10483_v59, 0.0  ;;  %v10491_v40 = vld [vmem:[#allocation56_spill] sm:$0xff]  ;;  %v10493_v24 = vld [vmem:[#allocation10_spill] sm:$0xff]  ;;  %v10519_v59 = vld [vmem:[#allocation63_spill] sm:$0xff] }
 0x71a   :  { %v3378_v60 = vmax.f32 %v10478_v9, %v10476_v0  ;;  %v3569_v8 = vmax.f32 %v10482_v33, %v10480_v62  ;;  %v10486_v6 = vmax.f32 %v10485_v45, 0.0  ;;  %v10488_v54 = vmax.f32 %v10487_v21, 0.0  ;;  %3758 = vst [vmem:[%s8887_s3 + $0x30] sm:$0xff] %v3694_v3  ;;  %v10501_v3 = vld [vmem:[#allocation127_spill] sm:$0xff]  ;;  %v10511_v7 = vld [vmem:[#allocation220_spill] sm:$0xff]  ;;  %v10513_v42 = vld [vmem:[#allocation150_spill] sm:$0xff] }
 0x71b   :  { %v10490_v13 = vmax.f32 %v10489_v12, 0.0  ;;  %v3630_v57 = vmax.f32 %v3374_v15, %v3566_v19  ;;  %v3698_v37 = vmul.f32 %v8247_v32, %v3628_v58  ;;  %v10492_v25 = vmax.f32 %v10491_v40, 0.0  ;;  %3759 = vst [vmem:[%s8887_s3 + $0x38] sm:$0xff] %v3695_v63  ;;  %v10499_v15 = vld [vmem:[#allocation65_spill] sm:$0xff]  ;;  %v10509_v63 = vld [vmem:[#allocation12_spill] sm:$0xff]  ;;  %v10521_v45 = vld [vmem:[#allocation154_spill] sm:$0xff] }
 0x71c   :  { %v3379_v43 = vmax.f32 %v10486_v6, %v10484_v49  ;;  %v10494_v17 = vmax.f32 %v10493_v24, 0.0  ;;  %v10496_v16 = vmax.f32 %v10495_v2, 0.0  ;;  %v10498_v41 = vmax.f32 %v10497_v38, 0.0  ;;  %3760 = vst [vmem:[%s8887_s3 + $0x40] sm:$0xff] %v3696_v28  ;;  %v10517_v28 = vld [vmem:[#allocation130_spill] sm:$0xff] }
 0x71d   :  { %v3570_v30 = vmax.f32 %v10490_v13, %v10488_v54  ;;  %v3631_v10 = vmax.f32 %v3375_v22, %v3567_v52  ;;  %v3699_v39 = vmul.f32 %v8247_v32, %v3629_v36  ;;  %v10500_v19 = vmax.f32 %v10499_v15, 0.0  ;;  %v10507_v22 = vld [vmem:[#allocation169_spill] sm:$0xff]  ;;  %3761 = vst [vmem:[%s8887_s3 + $0x48] sm:$0xff] %v3697_v11  ;;  %v10525_v11 = vld [vmem:[#allocation14_spill] sm:$0xff] }
 0x71e   :  { %v3380_v34 = vmax.f32 %v10494_v17, %v10492_v25  ;;  %v3571_v51 = vmax.f32 %v10498_v41, %v10496_v16  ;;  %v10502_v5 = vmax.f32 %v10501_v3, 0.0  ;;  %v10504_v56 = vmax.f32 %v10503_v53, 0.0  ;;  %3762 = vst [vmem:[%s8887_s3 + $0x50] sm:$0xff] %v3698_v37  ;;  %v10528_v25 = vld [vmem:[#allocation157_spill] sm:$0xff] }
 0x71f   :  { %v10506_v35 = vmax.f32 %v10505_v61, 0.0  ;;  %v3632_v4 = vmax.f32 %v3376_v29, %v3568_v26  ;;  %v3700_v20 = vmul.f32 %v8247_v32, %v3630_v57  ;;  %v10508_v52 = vmax.f32 %v10507_v22, 0.0  ;;  %v10515_v29 = vld [vmem:[#allocation71_spill] sm:$0xff]  ;;  %3763 = vst [vmem:[%s8887_s3 + $0x58] sm:$0xff] %v3699_v39  ;;  %v10532_v37 = vld [vmem:[#allocation133_spill] sm:$0xff] }
 0x720   :  { %v3381_v23 = vmax.f32 %v10502_v5, %v10500_v19  ;;  %v10510_v47 = vmax.f32 %v10509_v63, 0.0  ;;  %v10512_v0 = vmax.f32 %v10511_v7, 0.0  ;;  %v10514_v9 = vmax.f32 %v10513_v42, 0.0  ;;  %v10536_v19 = vld [vmem:[#allocation160_spill] sm:$0xff]  ;;  %v10540_v39 = vld [vmem:[#allocation17_spill] sm:$0xff]  ;;  %v10544_v22 = vld [vmem:[#allocation163_spill] sm:$0xff] }
 0x721   :  { %v3572_v31 = vmax.f32 %v10506_v35, %v10504_v56  ;;  %v3633_v62 = vmax.f32 %v3377_v18, %v3569_v8  ;;  %v3701_v1 = vmul.f32 %v8247_v32, %v3631_v10  ;;  %v10516_v26 = vmax.f32 %v10515_v29, 0.0  ;;  %v10523_v18 = vld [vmem:[#allocation171_spill] sm:$0xff]  ;;  %v10534_v10 = vld [vmem:[#allocation221_spill] sm:$0xff]  ;;  %3764 = vst [vmem:[%s8887_s3 + $0x60] sm:$0xff] %v3700_v20  ;;  %v10542_v35 = vld [vmem:[#allocation72_spill] sm:$0xff] }
 0x722   :  { %v3382_v58 = vmax.f32 %v10510_v47, %v10508_v52  ;;  %v3573_v46 = vmax.f32 %v10514_v9, %v10512_v0  ;;  %v10518_v33 = vmax.f32 %v10517_v28, 0.0  ;;  %v10520_v49 = vmax.f32 %v10519_v59, 0.0  ;;  %v10548_v20 = vld [vmem:[#allocation137_spill] sm:$0xff]  ;;  %v10550_v9 = vld [vmem:[#allocation222_spill] sm:$0xff]  ;;  %v10552_v29 = vld [vmem:[#allocation16_spill] sm:$0xff] }
 0x723   :  { %v10522_v6 = vmax.f32 %v10521_v45, 0.0  ;;  %v3634_v54 = vmax.f32 %v3378_v60, %v3570_v30  ;;  %v3702_v12 = vmul.f32 %v8247_v32, %v3632_v4  ;;  %v10524_v8 = vmax.f32 %v10523_v18, 0.0  ;;  %v10530_v60 = vld [vmem:[#allocation77_spill] sm:$0xff]  ;;  %3765 = vst [vmem:[%s8887_s3 + $0x68] sm:$0xff] %v3701_v1  ;;  %v10560_v18 = vld [vmem:[#allocation18_spill] sm:$0xff] }
 0x724   :  { %v3383_v36 = vmax.f32 %v10518_v33, %v10516_v26  ;;  %v10526_v13 = vmax.f32 %v10525_v11, 0.0  ;;  %v10527_v40 = vmax.f32 %v8082_v50, 0.0  ;;  %v10529_v24 = vmax.f32 %v10528_v25, 0.0  ;;  %v10556_v1 = vld [vmem:[#allocation21_spill] sm:$0xff] }
 0x725   :  { %v3574_v21 = vmax.f32 %v10522_v6, %v10520_v49  ;;  %v3635_v2 = vmax.f32 %v3379_v43, %v3571_v51  ;;  %v3703_v16 = vmul.f32 %v8247_v32, %v3633_v62  ;;  %v10531_v30 = vmax.f32 %v10530_v60, 0.0  ;;  %v10538_v43 = vld [vmem:[#allocation172_spill] sm:$0xff]  ;;  %3766 = vst [vmem:[%s8887_s3 + $0x70] sm:$0xff] %v3702_v12  ;;  %v10558_v6 = vld [vmem:[#allocation75_spill] sm:$0xff]  ;;  %v10564_v12 = vld [vmem:[#allocation141_spill] sm:$0xff] }
 0x726   :  { %v3384_v57 = vmax.f32 %v10526_v13, %v10524_v8  ;;  %v3575_v17 = vmax.f32 %v10529_v24, %v10527_v40  ;;  %v10533_v38 = vmax.f32 %v10532_v37, 0.0  ;;  %v10535_v15 = vmax.f32 %v10534_v10, 0.0 }
 0x727   :  { %v10537_v3 = vmax.f32 %v10536_v19, 0.0  ;;  %v3636_v5 = vmax.f32 %v3380_v34, %v3572_v31  ;;  %v3704_v53 = vmul.f32 %v8247_v32, %v3634_v54  ;;  %v10539_v51 = vmax.f32 %v10538_v43, 0.0  ;;  %v10546_v34 = vld [vmem:[#allocation83_spill] sm:$0xff]  ;;  %3767 = vst [vmem:[%s8887_s3 + $0x78] sm:$0xff] %v3703_v16  ;;  %v10572_v16 = vld [vmem:[#allocation25_spill] sm:$0xff] }
 0x728   :  { %v3385_v41 = vmax.f32 %v10533_v38, %v10531_v30  ;;  %v10541_v56 = vmax.f32 %v10540_v39, 0.0  ;;  %v10543_v4 = vmax.f32 %v10542_v35, 0.0  ;;  %v10545_v52 = vmax.f32 %v10544_v22, 0.0  ;;  %v10568_v30 = vld [vmem:[#allocation20_spill] sm:$0xff] }
 0x729   :  { %v3576_v50 = vmax.f32 %v10537_v3, %v10535_v15  ;;  %v3637_v47 = vmax.f32 %v3381_v23, %v3573_v46  ;;  %v3705_v7 = vmul.f32 %v8247_v32, %v3635_v2  ;;  %v10547_v31 = vmax.f32 %v10546_v34, 0.0  ;;  %v10554_v23 = vld [vmem:[#allocation175_spill] sm:$0xff]  ;;  %v10566_v2 = vld [vmem:[#allocation78_spill] sm:$0xff]  ;;  %3768 = vst [vmem:[%s8887_s3 + $0x80] sm:$0xff] %v3704_v53  ;;  %v10580_v53 = vld [vmem:[#allocation145_spill] sm:$0xff] }
 0x72a   :  { %v3386_v61 = vmax.f32 %v10541_v56, %v10539_v51  ;;  %v3577_v63 = vmax.f32 %v10545_v52, %v10543_v4  ;;  %v10549_v0 = vmax.f32 %v10548_v20, 0.0  ;;  %v10551_v62 = vmax.f32 %v10550_v9, 0.0  ;;  %v10576_v51 = vld [vmem:[#allocation22_spill] sm:$0xff] }
 0x72b   :  { %v10553_v26 = vmax.f32 %v10552_v29, 0.0  ;;  %v3638_v33 = vmax.f32 %v3382_v58, %v3574_v21  ;;  %v3706_v59 = vmul.f32 %v8247_v32, %v3636_v5  ;;  %v10555_v46 = vmax.f32 %v10554_v23, 0.0  ;;  %v10562_v58 = vld [vmem:[#allocation89_spill] sm:$0xff]  ;;  %v10574_v5 = vld [vmem:[#allocation223_spill] sm:$0xff]  ;;  %3769 = vst [vmem:[%s8887_s3 + $0x88] sm:$0xff] %v3705_v7 }
 0x72c   :  { %v3387_v42 = vmax.f32 %v10549_v0, %v10547_v31  ;;  %v10557_v49 = vmax.f32 %v10556_v1, 0.0  ;;  %v10559_v54 = vmax.f32 %v10558_v6, 0.0  ;;  %v10561_v8 = vmax.f32 %v10560_v18, 0.0  ;;  %v10584_v31 = vld [vmem:[#allocation24_spill] sm:$0xff]  ;;  %v10588_v7 = vld [vmem:[#allocation29_spill] sm:$0xff] }
 0x72d   :  { %v3578_v28 = vmax.f32 %v10553_v26, %v10551_v62  ;;  %v3639_v13 = vmax.f32 %v3383_v36, %v3575_v17  ;;  %v3707_v40 = vmul.f32 %v8247_v32, %v3637_v47  ;;  %v10563_v21 = vmax.f32 %v10562_v58, 0.0  ;;  %v10570_v36 = vld [vmem:[#allocation177_spill] sm:$0xff]  ;;  %3770 = vst [vmem:[%s8887_s3 + $0x90] sm:$0xff] %v3706_v59 }
 0x72e   :  { %v3388_v45 = vmax.f32 %v10557_v49, %v10555_v46  ;;  %v3579_v11 = vmax.f32 %v10561_v8, %v10559_v54  ;;  %v10565_v25 = vmax.f32 %v10564_v12, 0.0  ;;  %v10567_v60 = vmax.f32 %v10566_v2, 0.0  ;;  %v10582_v47 = vld [vmem:[#allocation81_spill] sm:$0xff]  ;;  %v10592_v46 = vld [vmem:[#allocation26_spill] sm:$0xff] }
 0x72f   :  { %v10569_v37 = vmax.f32 %v10568_v30, 0.0  ;;  %v3640_v10 = vmax.f32 %v3384_v57, %v3576_v50  ;;  %v3708_v15 = vmul.f32 %v8247_v32, %v3638_v33  ;;  %v10571_v17 = vmax.f32 %v10570_v36, 0.0  ;;  %v10578_v57 = vld [vmem:[#allocation95_spill] sm:$0xff]  ;;  %v10590_v33 = vld [vmem:[#allocation84_spill] sm:$0xff]  ;;  %3771 = vst [vmem:[%s8887_s3 + $0x98] sm:$0xff] %v3707_v40  ;;  %v10598_v58 = vld [vmem:[#allocation149_spill] sm:$0xff] }
 0x730   :  { %v3389_v24 = vmax.f32 %v10565_v25, %v10563_v21  ;;  %v10573_v19 = vmax.f32 %v10572_v16, 0.0  ;;  %v10575_v43 = vmax.f32 %v10574_v5, 0.0  ;;  %v10577_v39 = vmax.f32 %v10576_v51, 0.0  ;;  %v10612_v5 = vld [vmem:[#allocation219_spill] sm:$0xff] }
 0x731   :  { %v3580_v38 = vmax.f32 %v10569_v37, %v10567_v60  ;;  %v3641_v35 = vmax.f32 %v3385_v41, %v3577_v63  ;;  %v3709_v4 = vmul.f32 %v8247_v32, %v3639_v13  ;;  %v10579_v50 = vmax.f32 %v10578_v57, 0.0  ;;  %v10586_v41 = vld [vmem:[#allocation179_spill] sm:$0xff]  ;;  %3772 = vst [vmem:[%s8887_s3 + $0xa0] sm:$0xff] %v3708_v15 }
 0x732   :  { %v3390_v3 = vmax.f32 %v10573_v19, %v10571_v17  ;;  %v3581_v56 = vmax.f32 %v10577_v39, %v10575_v43  ;;  %v10581_v22 = vmax.f32 %v10580_v53, 0.0  ;;  %v10583_v34 = vmax.f32 %v10582_v47, 0.0  ;;  %v10604_v60 = vld [vmem:[#allocation215_spill] sm:$0xff]  ;;  %v10610_v19 = vld [vmem:[#allocation92_spill] sm:$0xff] }
 0x733   :  { %v10585_v20 = vmax.f32 %v10584_v31, 0.0  ;;  %v3642_v9 = vmax.f32 %v3386_v61, %v3578_v28  ;;  %v3710_v62 = vmul.f32 %v8247_v32, %v3640_v10  ;;  %v10587_v63 = vmax.f32 %v10586_v41, 0.0  ;;  %v10594_v61 = vld [vmem:[#allocation28_spill] sm:$0xff]  ;;  %3773 = vst [vmem:[%s8887_s3 + $0xa8] sm:$0xff] %v3709_v4  ;;  %v10614_v4 = vld [vmem:[#allocation99_spill] sm:$0xff] }
 0x734   :  { %v3391_v52 = vmax.f32 %v10581_v22, %v10579_v50  ;;  %v10589_v29 = vmax.f32 %v10588_v7, 0.0  ;;  %v10591_v23 = vmax.f32 %v10590_v33, 0.0  ;;  %v10593_v1 = vmax.f32 %v10592_v46, 0.0  ;;  %v10616_v50 = vld [vmem:[#allocation98_spill] sm:$0xff]  ;;  %v10623_v7 = vld [vmem:[#allocation107_spill] sm:$0xff] }
 0x735   :  { %v3582_v0 = vmax.f32 %v10585_v20, %v10583_v34  ;;  %v3643_v6 = vmax.f32 %v3387_v42, %v3579_v11  ;;  %v3711_v54 = vmul.f32 %v8247_v32, %v3641_v35  ;;  %v10595_v28 = vmax.f32 %v10594_v61, 0.0  ;;  %v10596_v42 = vld [vmem:[#allocation103_spill] sm:$0xff]  ;;  %3774 = vst [vmem:[%s8887_s3 + $0xb0] sm:$0xff] %v3710_v62  ;;  %v10618_v34 = vld [vmem:[#allocation182_spill] sm:$0xff]  ;;  %v10622_v62 = vld [vmem:[#allocation64_spill] sm:$0xff] }
 0x736   :  { %v3392_v26 = vmax.f32 %v10589_v29, %v10587_v63  ;;  %v3583_v49 = vmax.f32 %v10593_v1, %v10591_v23  ;;  %v3644_v18 = vmax.f32 %v3388_v45, %v3580_v38  ;;  %v3683_v8 = vrot.slane %v8242_v48, 1  ;;  %v10602_v48 = vld [vmem:[#allocation80_spill] sm:$0xff]  ;;  %v10620_v20 = vld [vmem:[#allocation3_spill] sm:$0xff] }
 0x737   :  { %v3584_v59 = vmax.f32 %v10595_v28, %v2509_v14  ;;  %v3712_v13 = vmul.f32 %v8247_v32, %v3642_v9  ;;  %v10597_v11 = vmax.f32 %v10596_v42, 0.0  ;;  %v10599_v21 = vmax.f32 %v10598_v58, 0.0  ;;  %3775 = vst [vmem:[%s8887_s3 + $0xb8] sm:$0xff] %v3711_v54  ;;  %v10627_v46 = vld [vmem:[#allocation67_spill] sm:$0xff]  ;;  %v10633_v42 = vld [vmem:[#allocation185_spill] sm:$0xff] }
 0x738   :  { %v10601_v40 = vmax.f32 %v10600_v55, 0.0  ;;  %v3645_v14 = vmax.f32 %v3389_v24, %v3581_v56  ;;  %v3713_v45 = vmul.f32 %v8247_v32, %v3643_v6  ;;  %v10603_v2 = vmax.f32 %v10602_v48, 0.0  ;;  %v10608_v24 = vld [vmem:[#allocation217_spill] sm:$0xff]  ;;  %v10628_v6 = vld [vmem:[#allocation111_spill] sm:$0xff] }
 0x739   :  { %v3393_v12 = vmax.f32 %v10599_v21, %v10597_v11  ;;  %v10605_v30 = vmax.f32 %v10604_v60, 0.0  ;;  %v3646_v38 = vmax.f32 %v3390_v3, %v3582_v0  ;;  %v3714_v10 = vmul.f32 %v8247_v32, %v3644_v18  ;;  %3776 = vst [vmem:[%s8887_s3 + $0xc0] sm:$0xff] %v3712_v13  ;;  %v10630_v61 = vld [vmem:[#allocation59_spill] sm:$0xff]  ;;  %v10632_v18 = vld [vmem:[#allocation70_spill] sm:$0xff]  ;;  %v10642_v60 = vld [vmem:[#allocation76_spill] sm:$0xff] }
 0x73a   :  { %v3585_v25 = vmax.f32 %v10601_v40, %v2510_v27  ;;  %v10607_v27 = vmax.f32 %v10606_v44, 0.0  ;;  %v10609_v15 = vmax.f32 %v10608_v24, 0.0  ;;  %v3647_v17 = vmax.f32 %v3391_v52, %v3583_v49  ;;  %3777 = vst [vmem:[%s8887_s3 + $0xc8] sm:$0xff] %v3713_v45  ;;  %v10640_v45 = vld [vmem:[#allocation62_spill] sm:$0xff] }
 0x73b   :  { %v3586_v37 = vmax.f32 %v10605_v30, %v10603_v2  ;;  %v3715_v16 = vmul.f32 %v8247_v32, %v3645_v14  ;;  %v10611_v3 = vmax.f32 %v10610_v19, 0.0  ;;  %v10613_v43 = vmax.f32 %v10612_v5, 0.0  ;;  %3778 = vst [vmem:[%s8887_s3 + $0xd0] sm:$0xff] %v3714_v10  ;;  %v10645_v44 = vld [vmem:[#allocation106_spill] sm:$0xff] }
 0x73c   :  { %v3587_v36 = vmax.f32 %v10609_v15, %v10607_v27  ;;  %v3648_v39 = vmax.f32 %v3392_v26, %v3584_v59  ;;  %v8554_v56 = vperm.slane %v3683_v8, 0  ;;  %v3716_v35 = vmul.f32 %v8247_v32, %v3646_v38  ;;  %v10625_v26 = vld [vmem:[#allocation4_spill] sm:$0xff]  ;;  %v10643_v38 = vld [vmem:[#allocation187_spill] sm:$0xff] }
 0x73d   :  { %v3588_v51 = vmax.f32 %v10613_v43, %v10611_v3  ;;  %v10615_v57 = vmax.f32 %v10614_v4, 0.0  ;;  %v10617_v53 = vmax.f32 %v10616_v50, 0.0  ;;  %v3649_v52 = vmax.f32 %v3393_v12, %v3585_v25  ;;  %3779 = vst [vmem:[%s8887_s3 + $0xd8] sm:$0xff] %v3715_v16  ;;  %v10637_v12 = vld [vmem:[#allocation73_spill] sm:$0xff]  ;;  %v10638_v25 = vld [vmem:[#allocation115_spill] sm:$0xff]  ;;  %v10650_v3 = vld [vmem:[#allocation114_spill] sm:$0xff] }
 0x73e   :  { %v3717_v47 = vmul.f32 %v8247_v32, %v3647_v17  ;;  %v10619_v31 = vmax.f32 %v10618_v34, 0.0  ;;  %v10621_v0 = vmax.f32 %v10620_v20, 0.0  ;;  %v3650_v41 = vmax.f32 %v10622_v62, %v3586_v37  ;;  %3780 = vst [vmem:[%s8887_s3 + $0xe0] sm:$0xff] %v3716_v35  ;;  %v10647_v15 = vld [vmem:[#allocation79_spill] sm:$0xff]  ;;  %v10648_v16 = vld [vmem:[#allocation189_spill] sm:$0xff]  ;;  %v10653_v4 = vld [vmem:[#allocation192_spill] sm:$0xff] }
 0x73f   :  { %v3589_v22 = vmax.f32 %v10617_v53, %v10615_v57  ;;  %v3718_v63 = vmul.f32 %v8247_v32, %v3648_v39  ;;  %v10624_v29 = vmax.f32 %v10623_v7, 0.0  ;;  %v10626_v33 = vmax.f32 %v10625_v26, 0.0  ;;  %v10655_v50 = vld [vmem:[#allocation7_spill] sm:$0xff] }
 0x740   :  { %v3590_v9 = vmax.f32 %v10621_v0, %v10619_v31  ;;  %v3651_v1 = vmax.f32 %v10627_v46, %v3587_v36  ;;  %v3719_v49 = vmul.f32 %v8247_v32, %v3649_v52  ;;  %v10629_v54 = vmax.f32 %v10628_v6, 0.0  ;;  %v10635_v32 = vld [vmem:[#allocation102_spill] sm:$0xff]  ;;  %3781 = vst [vmem:[%s8887_s3 + $0xe8] sm:$0xff] %v3717_v47  ;;  %v10657_v52 = vld [vmem:[#allocation85_spill] sm:$0xff]  ;;  %v10658_v31 = vld [vmem:[#allocation195_spill] sm:$0xff] }
 0x741   :  { %v3591_v23 = vmax.f32 %v10626_v33, %v10624_v29  ;;  %v10631_v28 = vmax.f32 %v10630_v61, 0.0  ;;  %v3652_v8 = vmax.f32 %v10632_v18, %v3588_v51  ;;  %v3720_v13 = vmul.f32 %v8554_v56, %v3650_v41  ;;  %3782 = vst [vmem:[%s8887_s3 + $0xf0] sm:$0xff] %v3718_v63  ;;  %v10652_v51 = vld [vmem:[#allocation82_spill] sm:$0xff]  ;;  %v10660_v0 = vld [vmem:[#allocation9_spill] sm:$0xff]  ;;  %v10662_v41 = vld [vmem:[#allocation88_spill] sm:$0xff] }
 0x742   :  { %v10634_v11 = vmax.f32 %v10633_v42, 0.0  ;;  %v10636_v58 = vmax.f32 %v10635_v32, 0.0  ;;  %v3653_v55 = vmax.f32 %v10637_v12, %v3589_v22  ;;  %v3721_v40 = vmul.f32 %v8554_v56, %v3651_v1  ;;  %3783 = vst [vmem:[%s8887_s3 + $0xf8] sm:$0xff] %v3719_v49  ;;  %v10663_v29 = vld [vmem:[#allocation198_spill] sm:$0xff]  ;;  %v10665_v33 = vld [vmem:[#allocation11_spill] sm:$0xff] }
 0x743   :  { %v3592_v59 = vmax.f32 %v10631_v28, %v10629_v54  ;;  %v10639_v14 = vmax.f32 %v10638_v25, 0.0  ;;  %v10641_v48 = vmax.f32 %v10640_v45, 0.0  ;;  %v3654_v30 = vmax.f32 %v10642_v60, %v3590_v9  ;;  %3784 = vst [vmem:[%s8887_s3 + $0x100] sm:$0xff] %v3720_v13  ;;  %v10667_v1 = vld [vmem:[#allocation91_spill] sm:$0xff]  ;;  %v10670_v28 = vld [vmem:[#allocation13_spill] sm:$0xff] }
 0x744   :  { %v3593_v21 = vmax.f32 %v10636_v58, %v10634_v11  ;;  %v3722_v37 = vmul.f32 %v8554_v56, %v3652_v8  ;;  %v10644_v10 = vmax.f32 %v10643_v38, 0.0  ;;  %v10646_v27 = vmax.f32 %v10645_v44, 0.0  ;;  %3785 = vst [vmem:[%s8887_s3 + $0x108] sm:$0xff] %v3721_v40  ;;  %v10668_v54 = vld [vmem:[#allocation199_spill] sm:$0xff]  ;;  %v10672_v8 = vld [vmem:[#allocation94_spill] sm:$0xff]  ;;  %v10673_v11 = vld [vmem:[#allocation201_spill] sm:$0xff] }
 0x745   :  { %v3594_v2 = vmax.f32 %v10641_v48, %v10639_v14  ;;  %v3655_v36 = vmax.f32 %v10647_v15, %v3591_v23  ;;  %v3723_v17 = vmul.f32 %v8554_v56, %v3653_v55  ;;  %v10649_v19 = vmax.f32 %v10648_v16, 0.0  ;;  %v10675_v58 = vld [vmem:[#allocation15_spill] sm:$0xff]  ;;  %v10677_v55 = vld [vmem:[#allocation97_spill] sm:$0xff] }
 0x746   :  { %v3595_v24 = vmax.f32 %v10646_v27, %v10644_v10  ;;  %v10651_v5 = vmax.f32 %v10650_v3, 0.0  ;;  %v3656_v39 = vmax.f32 %v10652_v51, %v3592_v59  ;;  %v3724_v35 = vmul.f32 %v8554_v56, %v3654_v30  ;;  %3786 = vst [vmem:[%s8887_s3 + $0x110] sm:$0xff] %v3722_v37  ;;  %v10678_v14 = vld [vmem:[#allocation203_spill] sm:$0xff]  ;;  %v10682_v30 = vld [vmem:[#allocation113_spill] sm:$0xff] }
 0x747   :  { %v10654_v57 = vmax.f32 %v10653_v4, 0.0  ;;  %v10656_v53 = vmax.f32 %v10655_v50, 0.0  ;;  %v3657_v47 = vmax.f32 %v10657_v52, %v3593_v21  ;;  %v3725_v34 = vmul.f32 %v8554_v56, %v3655_v36  ;;  %3787 = vst [vmem:[%s8887_s3 + $0x118] sm:$0xff] %v3723_v17  ;;  %v10680_v48 = vld [vmem:[#allocation19_spill] sm:$0xff]  ;;  %v10683_v10 = vld [vmem:[#allocation205_spill] sm:$0xff]  ;;  %v10687_v36 = vld [vmem:[#allocation126_spill] sm:$0xff] }
 0x748   :  { %v3596_v43 = vmax.f32 %v10651_v5, %v10649_v19  ;;  %v10659_v20 = vmax.f32 %v10658_v31, 0.0  ;;  %v10661_v9 = vmax.f32 %v10660_v0, 0.0  ;;  %v3658_v63 = vmax.f32 %v10662_v41, %v3594_v2  ;;  %3788 = vst [vmem:[%s8887_s3 + $0x120] sm:$0xff] %v3724_v35  ;;  %v10685_v27 = vld [vmem:[#allocation23_spill] sm:$0xff]  ;;  %v10688_v19 = vld [vmem:[#allocation105_spill] sm:$0xff] }
 0x749   :  { %v3597_v22 = vmax.f32 %v10656_v53, %v10654_v57  ;;  %v3726_v7 = vmul.f32 %v8554_v56, %v3656_v39  ;;  %v10664_v26 = vmax.f32 %v10663_v29, 0.0  ;;  %v10666_v23 = vmax.f32 %v10665_v33, 0.0  ;;  %3789 = vst [vmem:[%s8887_s3 + $0x128] sm:$0xff] %v3725_v34  ;;  %v10690_v5 = vld [vmem:[#allocation27_spill] sm:$0xff]  ;;  %v10692_v39 = vld [vmem:[#allocation136_spill] sm:$0xff]  ;;  %v10693_v57 = vld [vmem:[#allocation206_spill] sm:$0xff] }
 0x74a   :  { %v3598_v62 = vmax.f32 %v10661_v9, %v10659_v20  ;;  %v3659_v49 = vmax.f32 %v10667_v1, %v3595_v24  ;;  %v3727_v6 = vmul.f32 %v8554_v56, %v3657_v47  ;;  %v10669_v61 = vmax.f32 %v10668_v54, 0.0  ;;  %v10695_v53 = vld [vmem:[#allocation31_spill] sm:$0xff]  ;;  %v10697_v47 = vld [vmem:[#allocation166_spill] sm:$0xff]  ;;  %v10698_v20 = vld [vmem:[#allocation32_spill] sm:$0xff] }
 0x74b   :  { %v3599_v46 = vmax.f32 %v10666_v23, %v10664_v26  ;;  %v10671_v59 = vmax.f32 %v10670_v28, 0.0  ;;  %v3660_v13 = vmax.f32 %v10672_v8, %v3596_v43  ;;  %v3728_v42 = vmul.f32 %v8554_v56, %v3658_v63  ;;  %3790 = vst [vmem:[%s8887_s3 + $0x130] sm:$0xff] %v3726_v7  ;;  %v10700_v9 = vld [vmem:[#allocation33_spill] sm:$0xff]  ;;  %v10702_v63 = vld [vmem:[#allocation174_spill] sm:$0xff]  ;;  %v10703_v26 = vld [vmem:[#allocation208_spill] sm:$0xff] }
 0x74c   :  { %v10674_v32 = vmax.f32 %v10673_v11, 0.0  ;;  %v10676_v21 = vmax.f32 %v10675_v58, 0.0  ;;  %v3661_v40 = vmax.f32 %v10677_v55, %v3597_v22  ;;  %v3729_v25 = vmul.f32 %v8554_v56, %v3659_v49  ;;  %3791 = vst [vmem:[%s8887_s3 + $0x138] sm:$0xff] %v3727_v6  ;;  %v10705_v23 = vld [vmem:[#allocation35_spill] sm:$0xff]  ;;  %v10707_v49 = vld [vmem:[#allocation181_spill] sm:$0xff] }
 0x74d   :  { %v3600_v18 = vmax.f32 %v10671_v59, %v10669_v61  ;;  %v10679_v45 = vmax.f32 %v10678_v14, 0.0  ;;  %v10681_v2 = vmax.f32 %v10680_v48, 0.0  ;;  %v3662_v37 = vmax.f32 %v10682_v30, %v3598_v62  ;;  %3792 = vst [vmem:[%s8887_s3 + $0x140] sm:$0xff] %v3728_v42  ;;  %v10708_v61 = vld [vmem:[#allocation34_spill] sm:$0xff]  ;;  %v10710_v59 = vld [vmem:[#allocation153_spill] sm:$0xff] }
 0x74e   :  { %v3601_v12 = vmax.f32 %v10676_v21, %v10674_v32  ;;  %v3730_v38 = vmul.f32 %v8554_v56, %v3660_v13  ;;  %v10684_v44 = vmax.f32 %v10683_v10, 0.0  ;;  %v10686_v24 = vmax.f32 %v10685_v27, 0.0  ;;  %3793 = vst [vmem:[%s8887_s3 + $0x148] sm:$0xff] %v3729_v25  ;;  %v10712_v13 = vld [vmem:[#allocation183_spill] sm:$0xff]  ;;  %v10713_v32 = vld [vmem:[#allocation36_spill] sm:$0xff]  ;;  %v10715_v21 = vld [vmem:[#allocation37_spill] sm:$0xff] }
 0x74f   :  { %v3602_v60 = vmax.f32 %v10681_v2, %v10679_v45  ;;  %v3663_v17 = vmax.f32 %v10687_v36, %v3599_v46  ;;  %v3731_v16 = vmul.f32 %v8554_v56, %v3661_v40  ;;  %v10689_v3 = vmax.f32 %v10688_v19, 0.0  ;;  %v10717_v40 = vld [vmem:[#allocation190_spill] sm:$0xff]  ;;  %v10718_v45 = vld [vmem:[#allocation148_spill] sm:$0xff]  ;;  %v10720_v2 = vld [vmem:[#allocation55_spill] sm:$0xff] }
 0x750   :  { %v3603_v15 = vmax.f32 %v10686_v24, %v10684_v44  ;;  %v10691_v43 = vmax.f32 %v10690_v5, 0.0  ;;  %v3664_v35 = vmax.f32 %v10692_v39, %v3600_v18  ;;  %v3732_v4 = vmul.f32 %v8554_v56, %v3662_v37  ;;  %3794 = vst [vmem:[%s8887_s3 + $0x150] sm:$0xff] %v3730_v38  ;;  %v10722_v37 = vld [vmem:[#allocation210_spill] sm:$0xff]  ;;  %v10724_v10 = vld [vmem:[#allocation39_spill] sm:$0xff]  ;;  %v10726_v24 = vld [vmem:[#allocation193_spill] sm:$0xff] }
 0x751   :  { %v10694_v50 = vmax.f32 %v10693_v57, 0.0  ;;  %v10696_v22 = vmax.f32 %v10695_v53, 0.0  ;;  %v3665_v34 = vmax.f32 %v10697_v47, %v3601_v12  ;;  %v3733_v31 = vmul.f32 %v8554_v56, %v3663_v17  ;;  %3795 = vst [vmem:[%s8887_s3 + $0x158] sm:$0xff] %v3731_v16  ;;  %v10727_v17 = vld [vmem:[#allocation152_spill] sm:$0xff]  ;;  %v10729_v19 = vld [vmem:[#allocation58_spill] sm:$0xff] }
 0x752   :  { %v3604_v51 = vmax.f32 %v10691_v43, %v10689_v3  ;;  %v10699_v0 = vmax.f32 %v10698_v20, 0.0  ;;  %v10701_v62 = vmax.f32 %v10700_v9, 0.0  ;;  %v3666_v7 = vmax.f32 %v10702_v63, %v3602_v60  ;;  %3796 = vst [vmem:[%s8887_s3 + $0x160] sm:$0xff] %v3732_v4  ;;  %v10731_v43 = vld [vmem:[#allocation40_spill] sm:$0xff]  ;;  %v10742_v9 = vld [vmem:[#allocation43_spill] sm:$0xff]  ;;  %v10744_v63 = vld [vmem:[#allocation49_spill] sm:$0xff] }
 0x753   :  { %v3605_v52 = vmax.f32 %v10696_v22, %v10694_v50  ;;  %v3734_v29 = vmul.f32 %v8554_v56, %v3664_v35  ;;  %v10704_v33 = vmax.f32 %v10703_v26, 0.0  ;;  %v10706_v46 = vmax.f32 %v10705_v23, 0.0  ;;  %3797 = vst [vmem:[%s8887_s3 + $0x168] sm:$0xff] %v3733_v31  ;;  %v10733_v39 = vld [vmem:[#allocation156_spill] sm:$0xff]  ;;  %v10736_v22 = vld [vmem:[#allocation61_spill] sm:$0xff] }
 0x754   :  { %v3606_v41 = vmax.f32 %v10701_v62, %v10699_v0  ;;  %v3667_v6 = vmax.f32 %v10707_v49, %v3603_v15  ;;  %v3735_v54 = vmul.f32 %v8554_v56, %v3665_v34  ;;  %v10709_v28 = vmax.f32 %v10708_v61, 0.0  ;;  %v10735_v57 = vld [vmem:[#allocation196_spill] sm:$0xff]  ;;  %v10745_v26 = vld [vmem:[#allocation109_spill] sm:$0xff] }
 0x755   :  { %v3607_v1 = vmax.f32 %v10706_v46, %v10704_v33  ;;  %v10711_v18 = vmax.f32 %v10710_v59, 0.0  ;;  %v3668_v42 = vmax.f32 %v10712_v13, %v3604_v51  ;;  %v3736_v11 = vmul.f32 %v8554_v56, %v3666_v7  ;;  %3798 = vst [vmem:[%s8887_s3 + $0x170] sm:$0xff] %v3734_v29  ;;  %v10738_v47 = vld [vmem:[#allocation200_spill] sm:$0xff]  ;;  %v10753_v59 = vld [vmem:[#allocation202_spill] sm:$0xff]  ;;  %v10754_v13 = vld [vmem:[#allocation207_spill] sm:$0xff] }
 0x756   :  { %v10714_v58 = vmax.f32 %v10713_v32, 0.0  ;;  %v10716_v12 = vmax.f32 %v10715_v21, 0.0  ;;  %v3669_v25 = vmax.f32 %v10717_v40, %v3605_v52  ;;  %v3737_v14 = vmul.f32 %v8554_v56, %v3667_v6  ;;  %3799 = vst [vmem:[%s8887_s3 + $0x178] sm:$0xff] %v3735_v54  ;;  %v10740_v20 = vld [vmem:[#allocation44_spill] sm:$0xff]  ;;  %v10751_v54 = vld [vmem:[#allocation47_spill] sm:$0xff]  ;;  %v10758_v21 = vld [vmem:[#allocation54_spill] sm:$0xff] }
 0x757   :  { %v3608_v8 = vmax.f32 %v10711_v18, %v10709_v28  ;;  %v10719_v48 = vmax.f32 %v10718_v45, 0.0  ;;  %v10721_v60 = vmax.f32 %v10720_v2, 0.0  ;;  %v10723_v38 = vmax.f32 %v10722_v37, 0.0  ;;  %3800 = vst [vmem:[%s8887_s3 + $0x180] sm:$0xff] %v3736_v11  ;;  %v10747_v23 = vld [vmem:[#allocation204_spill] sm:$0xff]  ;;  %v10756_v11 = vld [vmem:[#allocation101_spill] sm:$0xff] }
 0x758   :  { %v3609_v55 = vmax.f32 %v10716_v12, %v10714_v58  ;;  %v10725_v44 = vmax.f32 %v10724_v10, 0.0  ;;  %v3670_v15 = vmax.f32 %v10726_v24, %v3606_v41  ;;  %v3738_v36 = vmul.f32 %v8554_v56, %v3668_v42  ;;  %v10749_v49 = vld [vmem:[#allocation48_spill] sm:$0xff]  ;;  %3801 = vst [vmem:[%s8887_s3 + $0x188] sm:$0xff] %v3737_v14  ;;  %v10760_v40 = vld [vmem:[#allocation53_spill] sm:$0xff]  ;;  %v10768_v24 = vld [vmem:[#allocation167_spill] sm:$0xff] }
 0x759   :  { %v3418_v30 = vmax.f32 %v10721_v60, %v10719_v48  ;;  %v10728_v16 = vmax.f32 %v10727_v17, 0.0  ;;  %v10730_v3 = vmax.f32 %v10729_v19, 0.0  ;;  %v10732_v51 = vmax.f32 %v10731_v43, 0.0  ;;  %v10764_v14 = vld [vmem:[#allocation140_spill] sm:$0xff] }
 0x75a   :  { %v3610_v27 = vmax.f32 %v10725_v44, %v10723_v38  ;;  %v10734_v35 = vmax.f32 %v10733_v39, 0.0  ;;  %v3671_v50 = vmax.f32 %v10735_v57, %v3607_v1  ;;  %v3739_v53 = vmul.f32 %v8554_v56, %v3669_v25  ;;  %3802 = vst [vmem:[%s8887_s3 + $0x190] sm:$0xff] %v3738_v36  ;;  %v10766_v10 = vld [vmem:[#allocation60_spill] sm:$0xff] }
 0x75b   :  { %v3419_v5 = vmax.f32 %v10730_v3, %v10728_v16  ;;  %v10737_v52 = vmax.f32 %v10736_v22, 0.0  ;;  %v10739_v34 = vmax.f32 %v10738_v47, 0.0  ;;  %v10741_v0 = vmax.f32 %v10740_v20, 0.0  ;;  %v10772_v36 = vld [vmem:[#allocation52_spill] sm:$0xff]  ;;  %v10782_v20 = vld [vmem:[#allocation69_spill] sm:$0xff] }
 0x75c   :  { %v3611_v4 = vmax.f32 %v10734_v35, %v10732_v51  ;;  %v10743_v62 = vmax.f32 %v10742_v9, 0.0  ;;  %v3672_v7 = vmax.f32 %v10744_v63, %v3608_v8  ;;  %v3740_v29 = vmul.f32 %v8554_v56, %v3670_v15  ;;  %3803 = vst [vmem:[%s8887_s3 + $0x198] sm:$0xff] %v3739_v53  ;;  %v10774_v51 = vld [vmem:[#allocation66_spill] sm:$0xff]  ;;  %v10776_v35 = vld [vmem:[#allocation68_spill] sm:$0xff] }
 0x75d   :  { %v3420_v31 = vmax.f32 %v10739_v34, %v10737_v52  ;;  %v10746_v33 = vmax.f32 %v10745_v26, 0.0  ;;  %v10748_v46 = vmax.f32 %v10747_v23, 0.0  ;;  %v10750_v6 = vmax.f32 %v10749_v49, 0.0  ;;  %v10780_v53 = vld [vmem:[#allocation144_spill] sm:$0xff]  ;;  %v10784_v9 = vld [vmem:[#allocation74_spill] sm:$0xff] }
 0x75e   :  { %v3612_v41 = vmax.f32 %v10743_v62, %v10741_v0  ;;  %v10752_v61 = vmax.f32 %v10751_v54, 0.0  ;;  %v3673_v18 = vmax.f32 %v10753_v59, %v3609_v55  ;;  %v3741_v8 = vmul.f32 %v8554_v56, %v3671_v50  ;;  %v10762_v55 = vld [vmem:[#allocation209_spill] sm:$0xff]  ;;  %3804 = vst [vmem:[%s8887_s3 + $0x1a0] sm:$0xff] %v3740_v29 }
 0x75f   :  { %v3421_v1 = vmax.f32 %v10748_v46, %v10746_v33  ;;  %v10755_v42 = vmax.f32 %v10754_v13, 0.0  ;;  %v10757_v32 = vmax.f32 %v10756_v11, 0.0  ;;  %v10759_v12 = vmax.f32 %v10758_v21, 0.0 }
 0x760   :  { %v3613_v28 = vmax.f32 %v10752_v61, %v10750_v6  ;;  %v10761_v25 = vmax.f32 %v10760_v40, 0.0  ;;  %v3674_v48 = vmax.f32 %v3418_v30, %v3610_v27  ;;  %v3742_v2 = vmul.f32 %v8554_v56, %v3672_v7  ;;  %v10770_v30 = vld [vmem:[#allocation211_spill] sm:$0xff]  ;;  %3805 = vst [vmem:[%s8887_s3 + $0x1a8] sm:$0xff] %v3741_v8 }
 0x761   :  { %v3422_v58 = vmax.f32 %v10757_v32, %v10755_v42  ;;  %v10763_v60 = vmax.f32 %v10762_v55, 0.0  ;;  %v10765_v37 = vmax.f32 %v10764_v14, 0.0  ;;  %v10767_v44 = vmax.f32 %v10766_v10, 0.0 }
 0x762   :  { %v3614_v45 = vmax.f32 %v10761_v25, %v10759_v12  ;;  %v10769_v15 = vmax.f32 %v10768_v24, 0.0  ;;  %v3675_v16 = vmax.f32 %v3419_v5, %v3611_v4  ;;  %v3743_v19 = vmul.f32 %v8554_v56, %v3673_v18  ;;  %v10778_v5 = vld [vmem:[#allocation213_spill] sm:$0xff]  ;;  %3806 = vst [vmem:[%s8887_s3 + $0x1b0] sm:$0xff] %v3742_v2 }
 0x763   :  { %v3423_v38 = vmax.f32 %v10765_v37, %v10763_v60  ;;  %v10771_v27 = vmax.f32 %v10770_v30, 0.0  ;;  %v10773_v3 = vmax.f32 %v10772_v36, 0.0  ;;  %v10775_v39 = vmax.f32 %v10774_v51, 0.0 }
 0x764   :  { %v3615_v17 = vmax.f32 %v10769_v15, %v10767_v44  ;;  %v10777_v57 = vmax.f32 %v10776_v35, 0.0  ;;  %v3676_v22 = vmax.f32 %v3420_v31, %v3612_v41  ;;  %v3744_v52 = vmul.f32 %v8554_v56, %v3674_v48  ;;  %3807 = vst [vmem:[%s8887_s3 + $0x1b8] sm:$0xff] %v3743_v19 }
 0x765   :  { %v3424_v43 = vmax.f32 %v10773_v3, %v10771_v27  ;;  %v10779_v4 = vmax.f32 %v10778_v5, 0.0  ;;  %v10781_v47 = vmax.f32 %v10780_v53, 0.0  ;;  %v10783_v0 = vmax.f32 %v10782_v20, 0.0 }
 0x766   :  { %v3616_v50 = vmax.f32 %v10777_v57, %v10775_v39  ;;  %v10785_v62 = vmax.f32 %v10784_v9, 0.0  ;;  %v3677_v7 = vmax.f32 %v3421_v1, %v3613_v28  ;;  %v3745_v26 = vmul.f32 %v8554_v56, %v3675_v16  ;;  %3808 = vst [vmem:[%s8887_s3 + $0x1c0] sm:$0xff] %v3744_v52 }
 0x767   :  { %v3425_v34 = vmax.f32 %v10781_v47, %v10779_v4  ;;  %v3678_v31 = vmax.f32 %v3422_v58, %v3614_v45  ;;  %v3746_v41 = vmul.f32 %v8554_v56, %v3676_v22  ;;  %v3679_v29 = vmax.f32 %v3423_v38, %v3615_v17 }
 0x768   :  { %v3617_v63 = vmax.f32 %v10785_v62, %v10783_v0  ;;  %v3747_v33 = vmul.f32 %v8554_v56, %v3677_v7  ;;  %v3680_v23 = vmax.f32 %v3424_v43, %v3616_v50  ;;  %3809 = vst [vmem:[%s8887_s3 + $0x1c8] sm:$0xff] %v3745_v26 }
 0x769   :  { %v3748_v46 = vmul.f32 %v8554_v56, %v3678_v31  ;;  %v3749_v49 = vmul.f32 %v8554_v56, %v3679_v29  ;;  %3810 = vst [vmem:[%s8887_s3 + $0x1d0] sm:$0xff] %v3746_v41 }
 0x76a   :  { %v3681_v1 = vmax.f32 %v3425_v34, %v3617_v63  ;;  %v3750_v6 = vmul.f32 %v8554_v56, %v3680_v23  ;;  %3811 = vst [vmem:[%s8887_s3 + $0x1d8] sm:$0xff] %v3747_v33 }
 0x76b   :  { %3812 = vst [vmem:[%s8887_s3 + $0x1e0] sm:$0xff] %v3748_v46 }
 0x76c   :  { %v3751_v54 = vmul.f32 %v8554_v56, %v3681_v1  ;;  %3813 = vst [vmem:[%s8887_s3 + $0x1e8] sm:$0xff] %v3749_v49 }
 0x76d   :  { %3814 = vst [vmem:[%s8887_s3 + $0x1f0] sm:$0xff] %v3750_v6 }
 0x76e   :  { %3815 = vst [vmem:[%s8887_s3 + $0x1f8] sm:$0xff] %v3751_v54 }

// kernel: forward.4
= control target key start
LH: loop header
LB: loop body
LE: loop exit
PB: predicated region body
PF: predicated region fallthrough
CT: control target
= control target key end

     0   :  { %vm703_vm3 = vcmask 1041409   ;;  %vm728_vm4 = vcmask 64512   ;;  %s1840_s1 = inlined_call_operand.vmem [shape: f32[256,128], index: 1, kind: input, shape index: {}]   ;;  %s1841_s0 = inlined_call_operand.vmem [shape: f32[288,256], index: 0, kind: input, shape index: {}]   ;;  %s1842_s2 = inlined_call_operand.vmem [shape: f32[24,128], index: 2, kind: input, shape index: {}]   ;;  %s1843_s3 = inlined_call_operand.vmem [shape: f32[2,36,128], index: 3, kind: output, shape index: {}]  }
   0x1   :  { %v101_v0 = vld [vmem:[%s1840_s1 + $0x78] sm:$0xff]  ;;  %v100_v2 = vld [vmem:[%s1840_s1 + $0x70] sm:$0xff]  ;;  %v99_v4 = vld [vmem:[%s1840_s1 + $0x68] sm:$0xff] }
   0x2   :  { %v117_v1 = vld [vmem:[%s1840_s1 + $0xf8] sm:$0xff]  ;;  %118 = vmatpush.msra.mxu0 %v101_v0  ;;  %v116_v3 = vld [vmem:[%s1840_s1 + $0xf0] sm:$0xff]  ;;  %v115_v5 = vld [vmem:[%s1840_s1 + $0xe8] sm:$0xff]  ;;  %873 = vmatpush.msra.mxu3 %v101_v0 }
   0x3   :  { %243 = vmatpush.msra.mxu1 %v117_v1  ;;  %889 = vmatpush.msra.mxu2 %v117_v1  ;;  %v98_v6 = vld [vmem:[%s1840_s1 + $0x60] sm:$0xff]  ;;  %v97_v8 = vld [vmem:[%s1840_s1 + $0x58] sm:$0xff]  ;;  %v96_v10 = vld [vmem:[%s1840_s1 + $0x50] sm:$0xff] }
   0x4   :  { %119 = vmatpush.msra.mxu0 %v100_v2  ;;  %v114_v7 = vld [vmem:[%s1840_s1 + $0xe0] sm:$0xff]  ;;  %874 = vmatpush.msra.mxu3 %v100_v2  ;;  %v113_v9 = vld [vmem:[%s1840_s1 + $0xd8] sm:$0xff]  ;;  %v112_v11 = vld [vmem:[%s1840_s1 + $0xd0] sm:$0xff] }
   0x5   :  { %244 = vmatpush.msra.mxu1 %v116_v3  ;;  %890 = vmatpush.msra.mxu2 %v116_v3  ;;  %v95_v12 = vld [vmem:[%s1840_s1 + $0x48] sm:$0xff]  ;;  %v94_v14 = vld [vmem:[%s1840_s1 + $0x40] sm:$0xff]  ;;  %v93_v16 = vld [vmem:[%s1840_s1 + $0x38] sm:$0xff] }
   0x6   :  { %120 = vmatpush.msra.mxu0 %v99_v4  ;;  %875 = vmatpush.msra.mxu3 %v99_v4  ;;  %v111_v13 = vld [vmem:[%s1840_s1 + $0xc8] sm:$0xff]  ;;  %v110_v15 = vld [vmem:[%s1840_s1 + $0xc0] sm:$0xff]  ;;  %v109_v17 = vld [vmem:[%s1840_s1 + $0xb8] sm:$0xff] }
   0x7   :  { %245 = vmatpush.msra.mxu1 %v115_v5  ;;  %891 = vmatpush.msra.mxu2 %v115_v5  ;;  %v92_v18 = vld [vmem:[%s1840_s1 + $0x30] sm:$0xff]  ;;  %v91_v20 = vld [vmem:[%s1840_s1 + $0x28] sm:$0xff]  ;;  %v90_v22 = vld [vmem:[%s1840_s1 + $0x20] sm:$0xff] }
   0x8   :  { %121 = vmatpush.msra.mxu0 %v98_v6  ;;  %876 = vmatpush.msra.mxu3 %v98_v6  ;;  %v108_v19 = vld [vmem:[%s1840_s1 + $0xb0] sm:$0xff]  ;;  %v107_v21 = vld [vmem:[%s1840_s1 + $0xa8] sm:$0xff]  ;;  %v106_v23 = vld [vmem:[%s1840_s1 + $0xa0] sm:$0xff] }
   0x9   :  { %246 = vmatpush.msra.mxu1 %v114_v7  ;;  %892 = vmatpush.msra.mxu2 %v114_v7  ;;  %v89_v24 = vld [vmem:[%s1840_s1 + $0x18] sm:$0xff]  ;;  %v88_v26 = vld [vmem:[%s1840_s1 + $0x10] sm:$0xff]  ;;  %v87_v28 = vld [vmem:[%s1840_s1 + $0x8] sm:$0xff] }
   0xa   :  { %122 = vmatpush.msra.mxu0 %v97_v8  ;;  %877 = vmatpush.msra.mxu3 %v97_v8  ;;  %v105_v25 = vld [vmem:[%s1840_s1 + $0x98] sm:$0xff]  ;;  %v104_v27 = vld [vmem:[%s1840_s1 + $0x90] sm:$0xff]  ;;  %v103_v29 = vld [vmem:[%s1840_s1 + $0x88] sm:$0xff] }
   0xb   :  { %247 = vmatpush.msra.mxu1 %v113_v9  ;;  %893 = vmatpush.msra.mxu2 %v113_v9  ;;  %v86_v30 = vld [vmem:[%s1840_s1] sm:$0xff]  ;;  %v15_v33 = vld [vmem:[%s1841_s0 + $0x8] sm:$0xff]  ;;  %v16_v35 = vld [vmem:[%s1841_s0 + $0x10] sm:$0xff] }
   0xc   :  { %123 = vmatpush.msra.mxu0 %v96_v10  ;;  %878 = vmatpush.msra.mxu3 %v96_v10  ;;  %v102_v31 = vld [vmem:[%s1840_s1 + $0x80] sm:$0xff]  ;;  %v17_v36 = vld [vmem:[%s1841_s0 + $0x18] sm:$0xff]  ;;  %v52_v37 = vld [vmem:[%s1841_s0 + $0x130] sm:$0xff] }
   0xd   :  { %248 = vmatpush.msra.mxu1 %v112_v11  ;;  %894 = vmatpush.msra.mxu2 %v112_v11  ;;  %v14_v32 = vld [vmem:[%s1841_s0] sm:$0xff]  ;;  %v53_v38 = vld [vmem:[%s1841_s0 + $0x138] sm:$0xff]  ;;  %v19_v40 = vld [vmem:[%s1841_s0 + $0x28] sm:$0xff] }
   0xe   :  { %124 = vmatpush.msra.mxu0 %v95_v12  ;;  %879 = vmatpush.msra.mxu3 %v95_v12  ;;  %v50_v34 = vld [vmem:[%s1841_s0 + $0x120] sm:$0xff]  ;;  %v55_v42 = vld [vmem:[%s1841_s0 + $0x148] sm:$0xff]  ;;  %v20_v43 = vld [vmem:[%s1841_s0 + $0x30] sm:$0xff] }
   0xf   :  { %249 = vmatpush.msra.mxu1 %v111_v13  ;;  %895 = vmatpush.msra.mxu2 %v111_v13  ;;  %v18_v39 = vld [vmem:[%s1841_s0 + $0x20] sm:$0xff]  ;;  %v21_v44 = vld [vmem:[%s1841_s0 + $0x38] sm:$0xff]  ;;  %v56_v45 = vld [vmem:[%s1841_s0 + $0x150] sm:$0xff] }
  0x10   :  { %125 = vmatpush.msra.mxu0 %v94_v14  ;;  %880 = vmatpush.msra.mxu3 %v94_v14  ;;  %v54_v41 = vld [vmem:[%s1841_s0 + $0x140] sm:$0xff]  ;;  %v57_v46 = vld [vmem:[%s1841_s0 + $0x158] sm:$0xff]  ;;  %v23_v48 = vld [vmem:[%s1841_s0 + $0x48] sm:$0xff] }
  0x11   :  { %250 = vmatpush.msra.mxu1 %v110_v15  ;;  %896 = vmatpush.msra.mxu2 %v110_v15  ;;  %v22_v47 = vld [vmem:[%s1841_s0 + $0x40] sm:$0xff]  ;;  %v59_v50 = vld [vmem:[%s1841_s0 + $0x168] sm:$0xff]  ;;  %v24_v51 = vld [vmem:[%s1841_s0 + $0x50] sm:$0xff] }
  0x12   :  { %126 = vmatpush.msra.mxu0 %v93_v16  ;;  %881 = vmatpush.msra.mxu3 %v93_v16  ;;  %v58_v49 = vld [vmem:[%s1841_s0 + $0x160] sm:$0xff]  ;;  %v25_v52 = vld [vmem:[%s1841_s0 + $0x58] sm:$0xff]  ;;  %v60_v53 = vld [vmem:[%s1841_s0 + $0x170] sm:$0xff] }
  0x13   :  { %251 = vmatpush.msra.mxu1 %v109_v17  ;;  %897 = vmatpush.msra.mxu2 %v109_v17  ;;  %v61_v54 = vld [vmem:[%s1841_s0 + $0x178] sm:$0xff]  ;;  %v26_v55 = vld [vmem:[%s1841_s0 + $0x60] sm:$0xff]  ;;  %v27_v56 = vld [vmem:[%s1841_s0 + $0x68] sm:$0xff] }
  0x14   :  { %127 = vmatpush.msra.mxu0 %v92_v18  ;;  %882 = vmatpush.msra.mxu3 %v92_v18  ;;  %v62_v57 = vld [vmem:[%s1841_s0 + $0x180] sm:$0xff]  ;;  %v63_v58 = vld [vmem:[%s1841_s0 + $0x188] sm:$0xff]  ;;  %v28_v59 = vld [vmem:[%s1841_s0 + $0x70] sm:$0xff] }
  0x15   :  { %252 = vmatpush.msra.mxu1 %v108_v19  ;;  %898 = vmatpush.msra.mxu2 %v108_v19  ;;  %v29_v60 = vld [vmem:[%s1841_s0 + $0x78] sm:$0xff]  ;;  %v64_v61 = vld [vmem:[%s1841_s0 + $0x190] sm:$0xff]  ;;  %v30_v63 = vld [vmem:[%s1841_s0 + $0x80] sm:$0xff] }
  0x16   :  { %128 = vmatpush.msra.mxu0 %v91_v20  ;;  %883 = vmatpush.msra.mxu3 %v91_v20  ;;  %v65_v62 = vld [vmem:[%s1841_s0 + $0x198] sm:$0xff]  ;;  %v31_v0 = vld [vmem:[%s1841_s0 + $0x88] sm:$0xff]  ;;  %v66_v1 = vld [vmem:[%s1841_s0 + $0x1a0] sm:$0xff] }
  0x17   :  { %253 = vmatpush.msra.mxu1 %v107_v21  ;;  %899 = vmatpush.msra.mxu2 %v107_v21  ;;  %v67_v2 = vld [vmem:[%s1841_s0 + $0x1a8] sm:$0xff]  ;;  %v32_v3 = vld [vmem:[%s1841_s0 + $0x90] sm:$0xff]  ;;  %v33_v4 = vld [vmem:[%s1841_s0 + $0x98] sm:$0xff] }
  0x18   :  { %129 = vmatpush.msra.mxu0 %v90_v22  ;;  %884 = vmatpush.msra.mxu3 %v90_v22  ;;  %v68_v5 = vld [vmem:[%s1841_s0 + $0x1b0] sm:$0xff]  ;;  %v69_v6 = vld [vmem:[%s1841_s0 + $0x1b8] sm:$0xff]  ;;  %v34_v7 = vld [vmem:[%s1841_s0 + $0xa0] sm:$0xff] }
  0x19   :  { %254 = vmatpush.msra.mxu1 %v106_v23  ;;  %900 = vmatpush.msra.mxu2 %v106_v23  ;;  %v35_v8 = vld [vmem:[%s1841_s0 + $0xa8] sm:$0xff]  ;;  %v70_v9 = vld [vmem:[%s1841_s0 + $0x1c0] sm:$0xff]  ;;  %v36_v11 = vld [vmem:[%s1841_s0 + $0xb0] sm:$0xff] }
  0x1a   :  { %130 = vmatpush.msra.mxu0 %v89_v24  ;;  %885 = vmatpush.msra.mxu3 %v89_v24  ;;  %v71_v10 = vld [vmem:[%s1841_s0 + $0x1c8] sm:$0xff]  ;;  %v37_v12 = vld [vmem:[%s1841_s0 + $0xb8] sm:$0xff]  ;;  %v72_v13 = vld [vmem:[%s1841_s0 + $0x1d0] sm:$0xff] }
  0x1b   :  { %255 = vmatpush.msra.mxu1 %v105_v25  ;;  %901 = vmatpush.msra.mxu2 %v105_v25  ;;  %v73_v14 = vld [vmem:[%s1841_s0 + $0x1d8] sm:$0xff]  ;;  %v38_v15 = vld [vmem:[%s1841_s0 + $0xc0] sm:$0xff]  ;;  %v39_v16 = vld [vmem:[%s1841_s0 + $0xc8] sm:$0xff] }
  0x1c   :  { %131 = vmatpush.msra.mxu0 %v88_v26  ;;  %886 = vmatpush.msra.mxu3 %v88_v26  ;;  %v74_v17 = vld [vmem:[%s1841_s0 + $0x1e0] sm:$0xff]  ;;  %v75_v18 = vld [vmem:[%s1841_s0 + $0x1e8] sm:$0xff]  ;;  %v40_v19 = vld [vmem:[%s1841_s0 + $0xd0] sm:$0xff] }
  0x1d   :  { %256 = vmatpush.msra.mxu1 %v104_v27  ;;  %902 = vmatpush.msra.mxu2 %v104_v27  ;;  %v41_v20 = vld [vmem:[%s1841_s0 + $0xd8] sm:$0xff]  ;;  %v76_v21 = vld [vmem:[%s1841_s0 + $0x1f0] sm:$0xff]  ;;  %v42_v23 = vld [vmem:[%s1841_s0 + $0xe0] sm:$0xff] }
  0x1e   :  { %132 = vmatpush.msra.mxu0 %v87_v28  ;;  %887 = vmatpush.msra.mxu3 %v87_v28  ;;  %v77_v22 = vld [vmem:[%s1841_s0 + $0x1f8] sm:$0xff]  ;;  %v43_v24 = vld [vmem:[%s1841_s0 + $0xe8] sm:$0xff]  ;;  %v78_v25 = vld [vmem:[%s1841_s0 + $0x200] sm:$0xff] }
  0x1f   :  { %257 = vmatpush.msra.mxu1 %v103_v29  ;;  %903 = vmatpush.msra.mxu2 %v103_v29  ;;  %v79_v26 = vld [vmem:[%s1841_s0 + $0x208] sm:$0xff]  ;;  %v44_v27 = vld [vmem:[%s1841_s0 + $0xf0] sm:$0xff]  ;;  %v45_v28 = vld [vmem:[%s1841_s0 + $0xf8] sm:$0xff] }
  0x20   :  { %133 = vmatpush.msra.mxu0 %v86_v30  ;;  %888 = vmatpush.msra.mxu3 %v86_v30  ;;  %v80_v29 = vld [vmem:[%s1841_s0 + $0x210] sm:$0xff]  ;;  %v81_v30 = vld [vmem:[%s1841_s0 + $0x218] sm:$0xff] }
  0x21   :  { %258 = vmatpush.msra.mxu1 %v102_v31  ;;  %134 = vmatmul.f32.vlgmr.msra.gmra.mxu0 %v14_v32 }
  0x22   :  { %259 = vmatmul.f32.vlgmr.msra.gmra.mxu1 %v15_v33  ;;  %904 = vmatpush.msra.mxu2 %v102_v31  ;;  %v46_v33 = vld [vmem:[%s1841_s0 + $0x100] sm:$0xff] }
  0x23   :  { %188 = vmatmul.f32.vlgmr.msra.gmra.mxu3 %v50_v34  ;;  %316 = vmatmul.f32.vlgmr.msra.gmra.mxu2 %v53_v38  ;;  %v47_v34 = vld [vmem:[%s1841_s0 + $0x108] sm:$0xff] }
  0x29   :  { %137 = vmatmul.f32.gmra.mxu0 %v16_v35 }
  0x2a   :  { %262 = vmatmul.f32.gmra.mxu1 %v17_v36  ;;  %v82_v36 = vld [vmem:[%s1841_s0 + $0x220] sm:$0xff] }
  0x2b   :  { %191 = vmatmul.f32.gmra.mxu3 %v52_v37  ;;  %319 = vmatmul.f32.gmra.mxu2 %v55_v42  ;;  %v83_v37 = vld [vmem:[%s1841_s0 + $0x228] sm:$0xff] }
  0x31   :  { %140 = vmatmul.f32.gmra.mxu0 %v18_v39 }
  0x32   :  { %265 = vmatmul.f32.gmra.mxu1 %v19_v40  ;;  %v48_v40 = vld [vmem:[%s1841_s0 + $0x110] sm:$0xff] }
  0x33   :  { %194 = vmatmul.f32.gmra.mxu3 %v54_v41  ;;  %322 = vmatmul.f32.gmra.mxu2 %v57_v46  ;;  %v49_v41 = vld [vmem:[%s1841_s0 + $0x118] sm:$0xff] }
  0x39   :  { %143 = vmatmul.f32.gmra.mxu0 %v20_v43 }
  0x3a   :  { %268 = vmatmul.f32.gmra.mxu1 %v21_v44  ;;  %v84_v44 = vld [vmem:[%s1841_s0 + $0x230] sm:$0xff] }
  0x3b   :  { %197 = vmatmul.f32.gmra.mxu3 %v56_v45  ;;  %325 = vmatmul.f32.gmra.mxu2 %v59_v50  ;;  %v85_v45 = vld [vmem:[%s1841_s0 + $0x238] sm:$0xff] }
  0x41   :  { %146 = vmatmul.f32.gmra.mxu0 %v22_v47 }
  0x42   :  { %271 = vmatmul.f32.gmra.mxu1 %v23_v48  ;;  %v51_v48 = vld [vmem:[%s1841_s0 + $0x128] sm:$0xff] }
  0x43   :  { %200 = vmatmul.f32.gmra.mxu3 %v58_v49  ;;  %328 = vmatmul.f32.gmra.mxu2 %v61_v54 }
  0x49   :  { %149 = vmatmul.f32.gmra.mxu0 %v24_v51 }
  0x4a   :  { %274 = vmatmul.f32.gmra.mxu1 %v25_v52 }
  0x4b   :  { %203 = vmatmul.f32.gmra.mxu3 %v60_v53  ;;  %331 = vmatmul.f32.gmra.mxu2 %v63_v58 }
  0x51   :  { %152 = vmatmul.f32.gmra.mxu0 %v26_v55 }
  0x52   :  { %277 = vmatmul.f32.gmra.mxu1 %v27_v56 }
  0x53   :  { %206 = vmatmul.f32.gmra.mxu3 %v62_v57  ;;  %334 = vmatmul.f32.gmra.mxu2 %v65_v62 }
  0x59   :  { %155 = vmatmul.f32.gmra.mxu0 %v28_v59 }
  0x5a   :  { %280 = vmatmul.f32.gmra.mxu1 %v29_v60 }
  0x5b   :  { %209 = vmatmul.f32.gmra.mxu3 %v64_v61  ;;  %337 = vmatmul.f32.gmra.mxu2 %v67_v2 }
  0x61   :  { %158 = vmatmul.f32.gmra.mxu0 %v30_v63 }
  0x62   :  { %283 = vmatmul.f32.gmra.mxu1 %v31_v0 }
  0x63   :  { %212 = vmatmul.f32.gmra.mxu3 %v66_v1  ;;  %340 = vmatmul.f32.gmra.mxu2 %v69_v6 }
  0x69   :  { %161 = vmatmul.f32.gmra.mxu0 %v32_v3 }
  0x6a   :  { %286 = vmatmul.f32.gmra.mxu1 %v33_v4 }
  0x6b   :  { %215 = vmatmul.f32.gmra.mxu3 %v68_v5  ;;  %343 = vmatmul.f32.gmra.mxu2 %v71_v10 }
  0x71   :  { %164 = vmatmul.f32.gmra.mxu0 %v34_v7 }
  0x72   :  { %289 = vmatmul.f32.gmra.mxu1 %v35_v8 }
  0x73   :  { %218 = vmatmul.f32.gmra.mxu3 %v70_v9  ;;  %346 = vmatmul.f32.gmra.mxu2 %v73_v14 }
  0x79   :  { %167 = vmatmul.f32.gmra.mxu0 %v36_v11 }
  0x7a   :  { %292 = vmatmul.f32.gmra.mxu1 %v37_v12 }
  0x7b   :  { %221 = vmatmul.f32.gmra.mxu3 %v72_v13  ;;  %349 = vmatmul.f32.gmra.mxu2 %v75_v18 }
  0x81   :  { %170 = vmatmul.f32.gmra.mxu0 %v38_v15 }
  0x82   :  { %295 = vmatmul.f32.gmra.mxu1 %v39_v16 }
  0x83   :  { %224 = vmatmul.f32.gmra.mxu3 %v74_v17  ;;  %352 = vmatmul.f32.gmra.mxu2 %v77_v22 }
  0x89   :  { %173 = vmatmul.f32.gmra.mxu0 %v40_v19 }
  0x8a   :  { %298 = vmatmul.f32.gmra.mxu1 %v41_v20 }
  0x8b   :  { %227 = vmatmul.f32.gmra.mxu3 %v76_v21  ;;  %355 = vmatmul.f32.gmra.mxu2 %v79_v26 }
  0x91   :  { %176 = vmatmul.f32.gmra.mxu0 %v42_v23 }
  0x92   :  { %301 = vmatmul.f32.gmra.mxu1 %v43_v24 }
  0x93   :  { %230 = vmatmul.f32.gmra.mxu3 %v78_v25  ;;  %358 = vmatmul.f32.gmra.mxu2 %v81_v30 }
  0x99   :  { %179 = vmatmul.f32.gmra.mxu0 %v44_v27 }
  0x9a   :  { %304 = vmatmul.f32.gmra.mxu1 %v45_v28 }
  0x9b   :  { %233 = vmatmul.f32.gmra.mxu3 %v80_v29  ;;  %361 = vmatmul.f32.gmra.mxu2 %v83_v37 }
  0x9e   :  { %v135_v31 = vpop.f32.mrf.mxu0 }
  0x9f   :  { %v260_v32 = vpop.f32.mrf.mxu1 }
  0xa0   :  { %v1222_v35 = vadd.f32 %v260_v32, %v135_v31 }
  0xa1   :  { %182 = vmatmul.f32.gmra.mxu0 %v46_v33 }
  0xa2   :  { %307 = vmatmul.f32.gmra.mxu1 %v47_v34 }
  0xa3   :  { %236 = vmatmul.f32.gmra.mxu3 %v82_v36  ;;  %364 = vmatmul.f32.gmra.mxu2 %v85_v45 }
  0xa6   :  { %v138_v38 = vpop.f32.mrf.mxu0  ;;  %v1238_v43 = vpop.f32.mrf.mxu3 }
  0xa7   :  { %v263_v39 = vpop.f32.mrf.mxu1  ;;  %v317_v51 = vpop.f32.mrf.mxu2 }
  0xa8   :  { %v1236_v42 = vadd.f32 %v263_v39, %v138_v38 }
  0xa9   :  { %185 = vmatmul.f32.gmra.mxu0 %v48_v40 }
  0xaa   :  { %310 = vmatmul.f32.gmra.mxu1 %v49_v41  ;;  %v411_v39 = vmul.f32 %v1236_v42, %v1236_v42 }
  0xab   :  { %239 = vmatmul.f32.gmra.mxu3 %v84_v44 }
  0xae   :  { %v141_v46 = vpop.f32.mrf.mxu0  ;;  %v192_v50 = vpop.f32.mrf.mxu3 }
  0xaf   :  { %v266_v47 = vpop.f32.mrf.mxu1  ;;  %v1251_v52 = vadd.f32 %v317_v51, %v192_v50  ;;  %v320_v57 = vpop.f32.mrf.mxu2 }
  0xb0   :  { %v1249_v49 = vadd.f32 %v266_v47, %v141_v46  ;;  %v410_v46 = vmul.f32 %v1222_v35, %v1222_v35  ;;  %v368_v47 = vadd.f32 %v1236_v42, %v1222_v35 }
  0xb2   :  { %313 = vmatmul.f32.gmra.mxu1 %v51_v48  ;;  %v412_v48 = vmul.f32 %v1249_v49, %v1249_v49  ;;  %v446_v50 = vadd.f32 %v411_v39, %v410_v46  ;;  %v369_v51 = vadd.f32 %v368_v47, %v1249_v49 }
  0xb6   :  { %v144_v53 = vpop.f32.mrf.mxu0  ;;  %v195_v56 = vpop.f32.mrf.mxu3 }
  0xb7   :  { %v269_v54 = vpop.f32.mrf.mxu1  ;;  %v1255_v58 = vadd.f32 %v320_v57, %v195_v56  ;;  %v323_v63 = vpop.f32.mrf.mxu2 }
  0xb8   :  { %v1253_v55 = vadd.f32 %v269_v54, %v144_v53  ;;  %v447_v54 = vadd.f32 %v446_v50, %v412_v48 }
  0xba   :  { %v413_v53 = vmul.f32 %v1253_v55, %v1253_v55  ;;  %v370_v56 = vadd.f32 %v369_v51, %v1253_v55 }
  0xbe   :  { %v147_v59 = vpop.f32.mrf.mxu0  ;;  %v198_v62 = vpop.f32.mrf.mxu3 }
  0xbf   :  { %v272_v60 = vpop.f32.mrf.mxu1  ;;  %v1259_v0 = vadd.f32 %v323_v63, %v198_v62  ;;  %v326_v5 = vpop.f32.mrf.mxu2 }
  0xc0   :  { %v1257_v61 = vadd.f32 %v272_v60, %v147_v59  ;;  %v448_v59 = vadd.f32 %v447_v54, %v413_v53 }
  0xc2   :  { %v414_v57 = vmul.f32 %v1257_v61, %v1257_v61  ;;  %v371_v60 = vadd.f32 %v370_v56, %v1257_v61 }
  0xc6   :  { %v150_v1 = vpop.f32.mrf.mxu0  ;;  %v201_v4 = vpop.f32.mrf.mxu3 }
  0xc7   :  { %v275_v2 = vpop.f32.mrf.mxu1  ;;  %v1263_v6 = vadd.f32 %v326_v5, %v201_v4  ;;  %v329_v11 = vpop.f32.mrf.mxu2  ;;  %v449_v4 = vadd.f32 %v448_v59, %v414_v57 }
  0xc8   :  { %v1261_v3 = vadd.f32 %v275_v2, %v150_v1 }
  0xca   :  { %v415_v62 = vmul.f32 %v1261_v3, %v1261_v3  ;;  %v372_v5 = vadd.f32 %v371_v60, %v1261_v3 }
  0xce   :  { %v153_v7 = vpop.f32.mrf.mxu0  ;;  %v204_v10 = vpop.f32.mrf.mxu3 }
  0xcf   :  { %v278_v8 = vpop.f32.mrf.mxu1  ;;  %v1267_v12 = vadd.f32 %v329_v11, %v204_v10  ;;  %v332_v16 = vpop.f32.mrf.mxu2 }
  0xd0   :  { %v1265_v9 = vadd.f32 %v278_v8, %v153_v7 }
  0xd2   :  { %v416_v7 = vmul.f32 %v1265_v9, %v1265_v9 }
  0xd6   :  { %v156_v13 = vpop.f32.mrf.mxu0  ;;  %v207_v15 = vpop.f32.mrf.mxu3 }
  0xd7   :  { %v281_v14 = vpop.f32.mrf.mxu1  ;;  %v1269_v17 = vadd.f32 %v332_v16, %v207_v15  ;;  %v1273_v21 = vpop.f32.mrf.mxu2  ;;  %v450_v15 = vadd.f32 %v449_v4, %v415_v62  ;;  %v373_v16 = vadd.f32 %v372_v5, %v1265_v9 }
  0xd8   :  { %v1308_v63 = vadd.f32 %v281_v14, %v156_v13 }
  0xd9   :  { %v451_v39 = vadd.f32 %v450_v15, %v416_v7 }
  0xda   :  { %v417_v13 = vmul.f32 %v1308_v63, %v1308_v63  ;;  %v374_v46 = vadd.f32 %v373_v16, %v1308_v63 }
  0xde   :  { %v159_v18 = vpop.f32.mrf.mxu0  ;;  %v1271_v20 = vpop.f32.mrf.mxu3 }
  0xdf   :  { %v284_v19 = vpop.f32.mrf.mxu1  ;;  %v1277_v27 = vpop.f32.mrf.mxu2 }
  0xe0   :  { %v1313_v8 = vadd.f32 %v284_v19, %v159_v18  ;;  %v452_v19 = vadd.f32 %v451_v39, %v417_v13 }
  0xe2   :  { %v418_v47 = vmul.f32 %v1313_v8, %v1313_v8  ;;  %v375_v48 = vadd.f32 %v374_v46, %v1313_v8 }
  0xe6   :  { %v162_v22 = vpop.f32.mrf.mxu0  ;;  %v1275_v26 = vpop.f32.mrf.mxu3 }
  0xe7   :  { %v287_v23 = vpop.f32.mrf.mxu1  ;;  %v1281_v31 = vpop.f32.mrf.mxu2 }
  0xe8   :  { %v1322_v14 = vadd.f32 %v287_v23, %v162_v22  ;;  %v453_v22 = vadd.f32 %v452_v19, %v418_v47 }
  0xea   :  { %v419_v50 = vmul.f32 %v1322_v14, %v1322_v14  ;;  %v376_v23 = vadd.f32 %v375_v48, %v1322_v14 }
  0xee   :  { %v165_v24 = vpop.f32.mrf.mxu0  ;;  %v1279_v30 = vpop.f32.mrf.mxu3 }
  0xef   :  { %v290_v25 = vpop.f32.mrf.mxu1  ;;  %v1285_v36 = vpop.f32.mrf.mxu2 }
  0xf0   :  { %v1327_v18 = vadd.f32 %v290_v25, %v165_v24  ;;  %v454_v24 = vadd.f32 %v453_v22, %v419_v50 }
  0xf2   :  { %v420_v56 = vmul.f32 %v1327_v18, %v1327_v18  ;;  %v377_v25 = vadd.f32 %v376_v23, %v1327_v18 }
  0xf4   :  { %v455_v62 = vadd.f32 %v454_v24, %v420_v56  ;;  %v700_v24 = vld [vmem:[%s1842_s2 + $0x8] sm:$0xff] }
  0xf5   :  { %721 = vmatpush.xpose.msrb.mxu2 %v700_v24 }
  0xf6   :  { %v168_v28 = vpop.f32.mrf.mxu0  ;;  %v1283_v34 = vpop.f32.mrf.mxu3 }
  0xf7   :  { %v293_v29 = vpop.f32.mrf.mxu1  ;;  %v1291_v41 = vpop.f32.mrf.mxu2 }
  0xf8   :  { %v1332_v51 = vadd.f32 %v293_v29, %v168_v28 }
  0xfa   :  { %v421_v59 = vmul.f32 %v1332_v51, %v1332_v51  ;;  %v378_v4 = vadd.f32 %v377_v25, %v1332_v51 }
  0xfe   :  { %v171_v32 = vpop.f32.mrf.mxu0  ;;  %v1289_v40 = vpop.f32.mrf.mxu3 }
  0xff   :  { %v296_v33 = vpop.f32.mrf.mxu1  ;;  %v1317_v11 = vpop.f32.mrf.mxu2 }
 0x100   :  { %v1337_v57 = vadd.f32 %v296_v33, %v171_v32  ;;  %v456_v33 = vadd.f32 %v455_v62, %v421_v59 }
 0x102   :  { %v422_v5 = vmul.f32 %v1337_v57, %v1337_v57  ;;  %v379_v7 = vadd.f32 %v378_v4, %v1337_v57 }
 0x104   :  { %v457_v13 = vadd.f32 %v456_v33, %v422_v5 }
 0x106   :  { %v174_v37 = vpop.f32.mrf.mxu0  ;;  %v1315_v10 = vpop.f32.mrf.mxu3 }
 0x107   :  { %v299_v38 = vpop.f32.mrf.mxu1  ;;  %v1346_v29 = vpop.f32.mrf.mxu2 }
 0x108   :  { %v1342_v60 = vadd.f32 %v299_v38, %v174_v37 }
 0x10a   :  { %v423_v15 = vmul.f32 %v1342_v60, %v1342_v60  ;;  %v380_v39 = vadd.f32 %v379_v7, %v1342_v60 }
 0x10e   :  { %v177_v44 = vpop.f32.mrf.mxu0  ;;  %v1344_v28 = vpop.f32.mrf.mxu3 }
 0x10f   :  { %v302_v45 = vpop.f32.mrf.mxu1  ;;  %v356_v23 = vpop.f32.mrf.mxu2 }
 0x110   :  { %v1351_v32 = vadd.f32 %v302_v45, %v177_v44  ;;  %v458_v44 = vadd.f32 %v457_v13, %v423_v15  ;;  %v429_v15 = vmul.f32 %v1251_v52, %v1251_v52  ;;  %v430_v13 = vmul.f32 %v1255_v58, %v1255_v58 }
 0x112   :  { %v424_v46 = vmul.f32 %v1351_v32, %v1351_v32  ;;  %v381_v45 = vadd.f32 %v380_v39, %v1351_v32 }
 0x116   :  { %v180_v1 = vpop.f32.mrf.mxu0  ;;  %v231_v22 = vpop.f32.mrf.mxu3 }
 0x117   :  { %v305_v2 = vpop.f32.mrf.mxu1 }
 0x118   :  { %v1356_v37 = vadd.f32 %v305_v2, %v180_v1  ;;  %v459_v1 = vadd.f32 %v458_v44, %v424_v46  ;;  %v359_v44 = vpop.f32.mrf.mxu2 }
 0x11a   :  { %v425_v19 = vmul.f32 %v1356_v37, %v1356_v37  ;;  %v382_v2 = vadd.f32 %v381_v45, %v1356_v37  ;;  %v431_v45 = vmul.f32 %v1259_v0, %v1259_v0 }
 0x11c   :  { %v460_v56 = vadd.f32 %v459_v1, %v425_v19 }
 0x11e   :  { %v183_v53 = vpop.f32.mrf.mxu0 }
 0x11f   :  { %v308_v54 = vpop.f32.mrf.mxu1 }
 0x120   :  { %v1361_v47 = vadd.f32 %v308_v54, %v183_v53 }
 0x122   :  { %v426_v50 = vmul.f32 %v1361_v47, %v1361_v47  ;;  %v383_v53 = vadd.f32 %v382_v2, %v1361_v47  ;;  %v432_v2 = vmul.f32 %v1263_v6, %v1263_v6 }
 0x124   :  { %v461_v59 = vadd.f32 %v460_v56, %v426_v50 }
 0x126   :  { %v186_v38 = vpop.f32.mrf.mxu0 }
 0x127   :  { %v311_v16 = vpop.f32.mrf.mxu1 }
 0x128   :  { %v1366_v48 = vadd.f32 %v311_v16, %v186_v38 }
 0x12a   :  { %v427_v54 = vmul.f32 %v1366_v48, %v1366_v48  ;;  %v384_v62 = vadd.f32 %v383_v53, %v1366_v48  ;;  %v433_v53 = vmul.f32 %v1267_v12, %v1267_v12 }
 0x12c   :  { %v462_v5 = vadd.f32 %v461_v59, %v427_v54  ;;  %v1400_v54 = vadd.f32 %v1273_v21, %v1271_v20  ;;  %v434_v59 = vmul.f32 %v1269_v17, %v1269_v17  ;;  %v1414_v20 = vadd.f32 %v1281_v31, %v1279_v30 }
 0x12d   :  { %v1428_v30 = vadd.f32 %v1291_v41, %v1289_v40  ;;  %v1442_v40 = vadd.f32 %v1346_v29, %v1344_v28 }
 0x12f   :  { %v314_v25 = vpop.f32.mrf.mxu1 }
 0x130   :  { %v1379_v4 = vadd.f32 %v314_v25, %v1238_v43  ;;  %v234_v43 = vpop.f32.mrf.mxu3 }
 0x131   :  { %v1453_v29 = vadd.f32 %v359_v44, %v234_v43 }
 0x132   :  { %v385_v33 = vadd.f32 %v384_v62, %v1379_v4  ;;  %v428_v7 = vmul.f32 %v1379_v4, %v1379_v4  ;;  %v1407_v62 = vadd.f32 %v1277_v27, %v1275_v26  ;;  %v1421_v26 = vadd.f32 %v1285_v36, %v1283_v34 }
 0x133   :  { %v1435_v34 = vadd.f32 %v1317_v11, %v1315_v10 }
 0x134   :  { %v386_v38 = vadd.f32 %v385_v33, %v1251_v52  ;;  %v463_v16 = vadd.f32 %v462_v5, %v428_v7  ;;  %v435_v7 = vmul.f32 %v1400_v54, %v1400_v54 }
 0x136   :  { %v387_v39 = vadd.f32 %v386_v38, %v1255_v58  ;;  %v464_v46 = vadd.f32 %v463_v16, %v429_v15  ;;  %v362_v16 = vpop.f32.mrf.mxu2 }
 0x138   :  { %v388_v19 = vadd.f32 %v387_v39, %v1259_v0  ;;  %v465_v1 = vadd.f32 %v464_v46, %v430_v13  ;;  %v237_v38 = vpop.f32.mrf.mxu3  ;;  %v436_v13 = vmul.f32 %v1407_v62, %v1407_v62  ;;  %v437_v46 = vmul.f32 %v1414_v20, %v1414_v20 }
 0x13a   :  { %v389_v50 = vadd.f32 %v388_v19, %v1263_v6  ;;  %v466_v56 = vadd.f32 %v465_v1, %v431_v45  ;;  %v438_v19 = vmul.f32 %v1421_v26, %v1421_v26 }
 0x13c   :  { %v390_v24 = vadd.f32 %v389_v50, %v1267_v12  ;;  %v467_v25 = vadd.f32 %v466_v56, %v432_v2  ;;  %v439_v2 = vmul.f32 %v1428_v30, %v1428_v30  ;;  %v1445_v56 = vadd.f32 %v356_v23, %v231_v22 }
 0x13e   :  { %v391_v5 = vadd.f32 %v390_v24, %v1269_v17  ;;  %v468_v33 = vadd.f32 %v467_v25, %v433_v53  ;;  %v440_v53 = vmul.f32 %v1435_v34, %v1435_v34  ;;  %v365_v25 = vpop.f32.mrf.mxu2  ;;  %v442_v22 = vmul.f32 %v1445_v56, %v1445_v56 }
 0x140   :  { %v469_v21 = vadd.f32 %v468_v33, %v434_v59  ;;  %v392_v15 = vadd.f32 %v391_v5, %v1400_v54  ;;  %v240_v24 = vpop.f32.mrf.mxu3  ;;  %v441_v5 = vmul.f32 %v1442_v40, %v1442_v40 }
 0x142   :  { %v393_v27 = vadd.f32 %v392_v15, %v1407_v62  ;;  %v470_v39 = vadd.f32 %v469_v21, %v435_v7  ;;  %v1458_v7 = vadd.f32 %v362_v16, %v237_v38  ;;  %v366_v21 = vadd.f32 %v365_v25, %v240_v24 }
 0x144   :  { %v394_v31 = vadd.f32 %v393_v27, %v1414_v20  ;;  %v471_v45 = vadd.f32 %v470_v39, %v436_v13  ;;  %v443_v27 = vmul.f32 %v1453_v29, %v1453_v29  ;;  %v444_v43 = vmul.f32 %v1458_v7, %v1458_v7 }
 0x145   :  { %v445_v44 = vmul.f32 %v366_v21, %v366_v21 }
 0x146   :  { %v395_v36 = vadd.f32 %v394_v31, %v1421_v26  ;;  %v472_v1 = vadd.f32 %v471_v45, %v437_v46 }
 0x148   :  { %v396_v41 = vadd.f32 %v395_v36, %v1428_v30  ;;  %v473_v50 = vadd.f32 %v472_v1, %v438_v19 }
 0x14a   :  { %v397_v10 = vadd.f32 %v396_v41, %v1435_v34  ;;  %v474_v11 = vadd.f32 %v473_v50, %v439_v2 }
 0x14c   :  { %v398_v59 = vadd.f32 %v397_v10, %v1442_v40  ;;  %v475_v28 = vadd.f32 %v474_v11, %v440_v53 }
 0x14e   :  { %v476_v23 = vadd.f32 %v475_v28, %v441_v5  ;;  %v399_v33 = vadd.f32 %v398_v59, %v1445_v56 }
 0x150   :  { %v477_v15 = vadd.f32 %v476_v23, %v442_v22  ;;  %v400_v13 = vadd.f32 %v399_v33, %v1453_v29 }
 0x152   :  { %v478_v39 = vadd.f32 %v477_v15, %v443_v27  ;;  %v401_v46 = vadd.f32 %v400_v13, %v1458_v7 }
 0x154   :  { %v479_v31 = vadd.f32 %v478_v39, %v444_v43  ;;  %v402_v45 = vadd.f32 %v401_v46, %v366_v21  ;;  %v488_v46 = vld [vmem:[%s1842_s2] sm:$0x1] }
 0x156   :  { %v403_v19 = vrot.slane %v402_v45, 4  ;;  %v480_v36 = vadd.f32 %v479_v31, %v445_v44 }
 0x158   :  { %v404_v38 = vadd.f32 %v403_v19, %v402_v45  ;;  %v481_v16 = vrot.slane %v480_v36, 4  ;;  %v503_v45 = vld [vmem:[%s1842_s2 + $0x1] sm:$0x1] }
 0x15a   :  { %v405_v1 = vrot.slane %v404_v38, 2  ;;  %v482_v2 = vadd.f32 %v481_v16, %v480_v36 }
 0x15c   :  { %v406_v41 = vadd.f32 %v405_v1, %v404_v38  ;;  %v483_v50 = vrot.slane %v482_v2, 2 }
 0x15e   :  { %v407_v53 = vrot.slane %v406_v41, 1  ;;  %v484_v10 = vadd.f32 %v483_v50, %v482_v2 }
 0x160   :  { %v408_v11 = vadd.f32 %v407_v53, %v406_v41  ;;  %v485_v24 = vrot.slane %v484_v10, 1 }
 0x162   :  { %v409_v25 = vmul.f32 0.0034722222, %v408_v11  ;;  %v486_v59 = vadd.f32 %v485_v24, %v484_v10 }
 0x164   :  { %v487_v5 = vmul.f32 0.0034722222, %v486_v59  ;;  %v489_v28 = vmul.f32 %v409_v25, %v409_v25 }
 0x166   :  { %v490_v22 = vsub.f32 %v487_v5, %v489_v28 }
 0x168   :  { %v491_v23 = vadd.f32 1e-05, %v490_v22 }
 0x16a   :  { %905 = vrsqrt.f32 %v491_v23  ;;  %vm498_vm1 = vweird.f32 %v491_v23 }
 0x170   :  { %v906_v33 = vpop.eup %905 }
 0x171   :  { %v493_v15 = vmul.f32 %v906_v33, %v491_v23  ;;  %vm499_vm0 = vweird.f32 %v906_v33 }
 0x172   :  { %vm500_vm2 = vmor %vm498_vm1, %vm499_vm0 }
 0x173   :  { %v494_v13 = vmul.f32 %v906_v33, %v493_v15 }
 0x175   :  { %v495_v27 = vmul.f32 0.5, %v494_v13 }
 0x177   :  { %v496_v39 = vsub.f32 1.5, %v495_v27 }
 0x179   :  { %v497_v43 = vmul.f32 %v906_v33, %v496_v39 }
 0x17b   :  { %v501_v44 = vsel %vm500_vm2, %v906_v33, %v497_v43 }
 0x17c   :  { %v502_v31 = vmul.f32 %v501_v44, %v488_v46 }
 0x17e   :  { %v504_v19 = vmul.f32 %v502_v31, %v409_v25  ;;  %v1472_v38 = vperm.slane %v502_v31, 0 }
 0x180   :  { %v505_v36 = vsub.f32 %v503_v45, %v504_v19  ;;  %v525_v16 = vmul.f32 %v1472_v38, %v1379_v4  ;;  %v526_v1 = vmul.f32 %v1472_v38, %v1251_v52  ;;  %v527_v41 = vmul.f32 %v1472_v38, %v1255_v58 }
 0x181   :  { %v528_v50 = vmul.f32 %v1472_v38, %v1259_v0  ;;  %v529_v4 = vmul.f32 %v1472_v38, %v1263_v6  ;;  %v530_v58 = vmul.f32 %v1472_v38, %v1267_v12  ;;  %v531_v0 = vmul.f32 %v1472_v38, %v1269_v17 }
 0x182   :  { %v1478_v2 = vperm.slane %v505_v36, 0  ;;  %v542_v24 = vmul.f32 %v1472_v38, %v366_v21  ;;  %v532_v25 = vmul.f32 %v1472_v38, %v1400_v54  ;;  %v533_v6 = vmul.f32 %v1472_v38, %v1407_v62 }
 0x183   :  { %v534_v59 = vmul.f32 %v1472_v38, %v1414_v20  ;;  %v535_v54 = vmul.f32 %v1472_v38, %v1421_v26  ;;  %v536_v23 = vmul.f32 %v1472_v38, %v1428_v30  ;;  %v537_v33 = vmul.f32 %v1472_v38, %v1435_v34 }
 0x184   :  { %v1485_v53 = vadd.f32 %v1478_v2, %v525_v16  ;;  %v1488_v10 = vadd.f32 %v1478_v2, %v526_v1  ;;  %v1493_v11 = vadd.f32 %v1478_v2, %v527_v41  ;;  %v1496_v52 = vadd.f32 %v1478_v2, %v528_v50  ;;  %v727_v50 = vld [vmem:[%s1842_s2 + $0x10] sm:$0xff] }
 0x185   :  { %v566_v5 = vadd.f32 %v1478_v2, %v529_v4  ;;  %v567_v28 = vadd.f32 %v1478_v2, %v530_v58  ;;  %v1512_v12 = vadd.f32 %v1478_v2, %v542_v24  ;;  %v1519_v22 = vadd.f32 %v1478_v2, %v531_v0  ;;  %747 = vmatpush.msrb.mxu3 %v727_v50 }
 0x186   :  { %v598_v17 = vmax.f32 %v1485_v53, 0.0  ;;  %v599_v21 = vmax.f32 %v1488_v10, 0.0  ;;  %v600_v62 = vmax.f32 %v1493_v11, 0.0  ;;  %v601_v20 = vmax.f32 %v1496_v52, 0.0 }
 0x187   :  { %v538_v15 = vmul.f32 %v1472_v38, %v1442_v40  ;;  %v1530_v13 = vadd.f32 %v1478_v2, %v532_v25  ;;  %v539_v26 = vmul.f32 %v1472_v38, %v1445_v56  ;;  %v540_v27 = vmul.f32 %v1472_v38, %v1453_v29 }
 0x188   :  { %v1537_v39 = vadd.f32 %v1478_v2, %v533_v6  ;;  %v602_v46 = vmax.f32 %v566_v5, 0.0  ;;  %v541_v30 = vmul.f32 %v1472_v38, %v1458_v7  ;;  %v1542_v34 = vadd.f32 %v1478_v2, %v534_v59 }
 0x189   :  { %v603_v40 = vmax.f32 %v567_v28, 0.0  ;;  %v615_v43 = vmax.f32 %v1512_v12, 0.0  ;;  %v1546_v44 = vadd.f32 %v1478_v2, %v535_v54  ;;  %v1549_v56 = vadd.f32 %v1478_v2, %v536_v23 }
 0x18a   :  { %v604_v29 = vmax.f32 %v1519_v22, 0.0  ;;  %v675_v31 = vadd.f32 %v599_v21, %v598_v17  ;;  %v1557_v7 = vadd.f32 %v1478_v2, %v537_v33  ;;  %v1560_v45 = vadd.f32 %v1478_v2, %v538_v15  ;;  %638 = vst [vmem:[#allocation2 + $0xb0] sm:$0xff] %v602_v46 }
 0x18b   :  { %v1563_v19 = vadd.f32 %v1478_v2, %v539_v26  ;;  %v605_v36 = vmax.f32 %v1530_v13, 0.0  ;;  %651 = vst [vmem:[#allocation2 + $0x118] sm:$0xff] %v615_v43  ;;  %v1569_v16 = vadd.f32 %v1478_v2, %v540_v27  ;;  %v606_v1 = vmax.f32 %v1537_v39, 0.0 }
 0x18c   :  { %v676_v41 = vadd.f32 %v675_v31, %v600_v62  ;;  %v1578_v4 = vadd.f32 %v1478_v2, %v541_v30  ;;  %v607_v58 = vmax.f32 %v1542_v34, 0.0  ;;  %v507_v0 = vmul.f32 %v1472_v38, %v1222_v35  ;;  %639 = vst [vmem:[#allocation2 + $0xb8] sm:$0xff] %v603_v40 }
 0x18d   :  { %v508_v24 = vmul.f32 %v1472_v38, %v1236_v42  ;;  %v608_v25 = vmax.f32 %v1546_v44, 0.0  ;;  %v509_v59 = vmul.f32 %v1472_v38, %v1249_v49  ;;  %v510_v5 = vmul.f32 %v1472_v38, %v1253_v55  ;;  %640 = vst [vmem:[#allocation2 + $0xc0] sm:$0xff] %v604_v29 }
 0x18e   :  { %v677_v6 = vadd.f32 %v676_v41, %v601_v20  ;;  %v609_v28 = vmax.f32 %v1549_v56, 0.0  ;;  %v610_v35 = vmax.f32 %v1557_v7, 0.0  ;;  %v611_v42 = vmax.f32 %v1560_v45, 0.0  ;;  %641 = vst [vmem:[#allocation2 + $0xc8] sm:$0xff] %v605_v36 }
 0x18f   :  { %v612_v54 = vmax.f32 %v1563_v19, 0.0  ;;  %v613_v22 = vmax.f32 %v1569_v16, 0.0  ;;  %642 = vst [vmem:[#allocation2 + $0xd0] sm:$0xff] %v606_v1  ;;  %v1598_v49 = vadd.f32 %v1478_v2, %v507_v0  ;;  %v1601_v55 = vadd.f32 %v1478_v2, %v508_v24 }
 0x190   :  { %v678_v23 = vadd.f32 %v677_v6, %v602_v46  ;;  %v614_v33 = vmax.f32 %v1578_v4, 0.0  ;;  %v511_v15 = vmul.f32 %v1472_v38, %v1257_v61  ;;  %v512_v13 = vmul.f32 %v1472_v38, %v1261_v3  ;;  %647 = vst [vmem:[#allocation2 + $0xf8] sm:$0xff] %v611_v42 }
 0x191   :  { %v513_v26 = vmul.f32 %v1472_v38, %v1265_v9  ;;  %v514_v39 = vmul.f32 %v1472_v38, %v1308_v63  ;;  %v515_v46 = vmul.f32 %v1472_v38, %v1313_v8  ;;  %v516_v30 = vmul.f32 %v1472_v38, %v1322_v14  ;;  %648 = vst [vmem:[#allocation2 + $0x100] sm:$0xff] %v612_v54 }
 0x192   :  { %v679_v27 = vadd.f32 %v678_v23, %v603_v40  ;;  %v517_v31 = vmul.f32 %v1472_v38, %v1327_v18  ;;  %v518_v61 = vmul.f32 %v1472_v38, %v1332_v51  ;;  %v519_v3 = vmul.f32 %v1472_v38, %v1337_v57  ;;  %649 = vst [vmem:[#allocation2 + $0x108] sm:$0xff] %v613_v22 }
 0x193   :  { %v1623_v9 = vadd.f32 %v1478_v2, %v509_v59  ;;  %v1626_v63 = vadd.f32 %v1478_v2, %v510_v5  ;;  %v580_v8 = vmax.f32 %v1598_v49, 0.0  ;;  %v581_v14 = vmax.f32 %v1601_v55, 0.0  ;;  %650 = vst [vmem:[#allocation2 + $0x110] sm:$0xff] %v614_v33 }
 0x194   :  { %v680_v40 = vadd.f32 %v679_v27, %v604_v29  ;;  %v520_v18 = vmul.f32 %v1472_v38, %v1342_v60  ;;  %v521_v51 = vmul.f32 %v1472_v38, %v1351_v32  ;;  %v522_v57 = vmul.f32 %v1472_v38, %v1356_v37 }
 0x195   :  { %v548_v29 = vadd.f32 %v1478_v2, %v511_v15  ;;  %v523_v50 = vmul.f32 %v1472_v38, %v1361_v47  ;;  %v524_v0 = vmul.f32 %v1472_v38, %v1366_v48  ;;  %v549_v60 = vadd.f32 %v1478_v2, %v512_v13 }
 0x196   :  { %v681_v41 = vadd.f32 %v680_v40, %v605_v36  ;;  %v550_v32 = vadd.f32 %v1478_v2, %v513_v26  ;;  %v1650_v37 = vadd.f32 %v1478_v2, %v514_v39  ;;  %v1653_v36 = vadd.f32 %v1478_v2, %v515_v46  ;;  %v786_v39 = vld [vmem:[#allocation2 + $0xb4] sm:$0xff]  ;;  %v787_v46 = vld [vmem:[#allocation2 + $0xbc] sm:$0xff] }
 0x197   :  { %v582_v47 = vmax.f32 %v1623_v9, 0.0  ;;  %v1659_v48 = vadd.f32 %v1478_v2, %v516_v30  ;;  %v583_v38 = vmax.f32 %v1626_v63, 0.0  ;;  %v652_v6 = vadd.f32 %v581_v14, %v580_v8  ;;  %v788_v30 = vld [vmem:[#allocation2 + $0xc4] sm:$0xff] }
 0x198   :  { %v682_v24 = vadd.f32 %v681_v41, %v606_v1  ;;  %v1667_v59 = vadd.f32 %v1478_v2, %v517_v31  ;;  %v1670_v5 = vadd.f32 %v1478_v2, %v518_v61  ;;  %v1673_v1 = vadd.f32 %v1478_v2, %v519_v3 }
 0x199   :  { %v584_v23 = vmax.f32 %v548_v29, 0.0  ;;  %v1678_v13 = vadd.f32 %v1478_v2, %v520_v18  ;;  %v585_v26 = vmax.f32 %v549_v60, 0.0  ;;  %v653_v27 = vadd.f32 %v652_v6, %v582_v47  ;;  %v789_v29 = vld [vmem:[#allocation2 + $0xcc] sm:$0xff]  ;;  %v817_v53 = vld [vmem:[#allocation2 + $0x104] sm:$0xff] }
 0x19a   :  { %v683_v15 = vadd.f32 %v682_v24, %v607_v58  ;;  %v1683_v31 = vadd.f32 %v1478_v2, %v521_v51  ;;  %v1686_v61 = vadd.f32 %v1478_v2, %v522_v57  ;;  %v1689_v3 = vadd.f32 %v1478_v2, %v523_v50 }
 0x19b   :  { %v586_v40 = vmax.f32 %v550_v32, 0.0  ;;  %v587_v41 = vmax.f32 %v1650_v37, 0.0  ;;  %v588_v60 = vmax.f32 %v1653_v36, 0.0  ;;  %v654_v24 = vadd.f32 %v653_v27, %v583_v38  ;;  %620 = vst [vmem:[#allocation2 + $0x20] sm:$0xff] %v584_v23  ;;  %v816_v37 = vld [vmem:[#allocation2 + $0xfc] sm:$0xff] }
 0x19c   :  { %v684_v18 = vadd.f32 %v683_v15, %v608_v25  ;;  %v589_v51 = vmax.f32 %v1659_v48, 0.0  ;;  %v1700_v57 = vmax.f32 %v598_v17, %v786_v39  ;;  %v1704_v50 = vmax.f32 %v599_v21, %v787_v46  ;;  %621 = vst [vmem:[#allocation2 + $0x28] sm:$0xff] %v585_v26  ;;  %v819_v15 = vld [vmem:[#allocation2 + $0x114] sm:$0xff] }
 0x19d   :  { %v1708_v32 = vmax.f32 %v600_v62, %v788_v30  ;;  %v655_v6 = vadd.f32 %v654_v24, %v584_v23  ;;  %v1714_v48 = vmax.f32 %v601_v20, %v789_v29  ;;  %v1718_v10 = vmax.f32 %v607_v58, %v816_v37  ;;  %622 = vst [vmem:[#allocation2 + $0x30] sm:$0xff] %v586_v40  ;;  %v818_v62 = vld [vmem:[#allocation2 + $0x10c] sm:$0xff] }
 0x19e   :  { %v685_v36 = vadd.f32 %v684_v18, %v609_v28  ;;  %v1721_v17 = vadd.f32 %v1478_v2, %v524_v0  ;;  %v590_v11 = vmax.f32 %v1667_v59, 0.0  ;;  %v591_v21 = vmax.f32 %v1670_v5, 0.0  ;;  %623 = vst [vmem:[#allocation2 + $0x38] sm:$0xff] %v587_v41 }
 0x19f   :  { %v1727_v52 = vmax.f32 %v608_v25, %v817_v53  ;;  %v656_v34 = vadd.f32 %v655_v6, %v585_v26  ;;  %v1733_v2 = vmax.f32 %v609_v28, %v818_v62  ;;  %v1737_v58 = vmax.f32 %v610_v35, %v819_v15  ;;  %624 = vst [vmem:[#allocation2 + $0x40] sm:$0xff] %v588_v60 }
 0x1a0   :  { %v686_v20 = vadd.f32 %v685_v36, %v610_v35  ;;  %v592_v0 = vmax.f32 %v1673_v1, 0.0  ;;  %v593_v59 = vmax.f32 %v1678_v13, 0.0  ;;  %v836_v44 = vmax.f32 %v1700_v57, %v1718_v10 }
 0x1a1   :  { %v837_v25 = vmax.f32 %v1704_v50, %v1727_v52  ;;  %v657_v28 = vadd.f32 %v656_v34, %v586_v40  ;;  %v838_v7 = vmax.f32 %v1708_v32, %v1733_v2  ;;  %v839_v35 = vmax.f32 %v1714_v48, %v1737_v58 }
 0x1a2   :  { %v687_v56 = vadd.f32 %v686_v20, %v611_v42  ;;  %v594_v5 = vmax.f32 %v1683_v31, 0.0  ;;  %v595_v23 = vmax.f32 %v1686_v61, 0.0  ;;  %v596_v26 = vmax.f32 %v1689_v3, 0.0  ;;  %629 = vst [vmem:[#allocation2 + $0x68] sm:$0xff] %v593_v59 }
 0x1a3   :  { %v658_v13 = vadd.f32 %v657_v28, %v587_v41  ;;  %v597_v42 = vmax.f32 %v1721_v17, 0.0  ;;  %v781_v30 = vld [vmem:[#allocation2 + $0x24] sm:$0xff] }
 0x1a4   :  { %v688_v1 = vadd.f32 %v687_v56, %v612_v54  ;;  %630 = vst [vmem:[#allocation2 + $0x70] sm:$0xff] %v594_v5  ;;  %v1765_v40 = vmax.f32 %v580_v8, %v781_v30  ;;  %v775_v30 = vld [vmem:[#allocation2 + $0x20] sm:$0xf] }
 0x1a5   :  { %v659_v27 = vadd.f32 %v658_v13, %v588_v60  ;;  %631 = vst [vmem:[#allocation2 + $0x78] sm:$0xff] %v595_v23  ;;  %v783_v61 = vld [vmem:[#allocation2 + $0x34] sm:$0xff] }
 0x1a6   :  { %v689_v45 = vadd.f32 %v688_v1, %v613_v22  ;;  %632 = vst [vmem:[#allocation2 + $0x80] sm:$0xff] %v596_v26  ;;  %v782_v22 = vld [vmem:[#allocation2 + $0x2c] sm:$0xff]  ;;  %v784_v3 = vld [vmem:[#allocation2 + $0x3c] sm:$0xff]  ;;  %v1773_v12 = vmax.f32 %v582_v47, %v783_v61 }
 0x1a7   :  { %v660_v46 = vadd.f32 %v659_v27, %v589_v51  ;;  %633 = vst [vmem:[#allocation2 + $0x88] sm:$0xff] %v597_v42  ;;  %v1769_v29 = vmax.f32 %v581_v14, %v782_v22  ;;  %v1779_v49 = vmax.f32 %v583_v38, %v784_v3 }
 0x1a8   :  { %v690_v39 = vadd.f32 %v689_v45, %v614_v33 }
 0x1a9   :  { %v661_v54 = vadd.f32 %v660_v46, %v590_v11  ;;  %v805_v61 = vld [vmem:[#allocation2 + $0x68] sm:$0xf] }
 0x1aa   :  { %v691_v19 = vadd.f32 %v690_v39, %v615_v43 }
 0x1ab   :  { %v662_v16 = vadd.f32 %v661_v54, %v591_v21  ;;  %v811_v33 = vld [vmem:[#allocation2 + $0x6c] sm:$0xff] }
 0x1ac   :  { %v692_v31 = vrot.slane %v691_v19, 4  ;;  %v812_v43 = vld [vmem:[#allocation2 + $0x74] sm:$0xff]  ;;  %v1775_v18 = vmax.f32 %v589_v51, %v811_v33 }
 0x1ad   :  { %v663_v4 = vadd.f32 %v662_v16, %v592_v0  ;;  %v813_v8 = vld [vmem:[#allocation2 + $0x7c] sm:$0xff]  ;;  %v1781_v24 = vmax.f32 %v590_v11, %v812_v43 }
 0x1ae   :  { %v693_v60 = vadd.f32 %v692_v31, %v691_v19  ;;  %v814_v37 = vld [vmem:[#allocation2 + $0x84] sm:$0xff]  ;;  %v1783_v55 = vmax.f32 %v591_v21, %v813_v8  ;;  %v831_v9 = vmax.f32 %v1765_v40, %v1775_v18  ;;  %v815_v3 = vld [vmem:[#allocation2 + $0x8c] sm:$0xf]  ;;  %v790_v8 = vld [vmem:[#allocation2 + $0xd4] sm:$0xf] }
 0x1af   :  { %v664_v41 = vadd.f32 %v663_v4, %v593_v59  ;;  %v1787_v47 = vmax.f32 %v592_v0, %v814_v37  ;;  %v832_v51 = vmax.f32 %v1769_v29, %v1781_v24  ;;  %v785_v31 = vld [vmem:[#allocation2 + $0x44] sm:$0xf]  ;;  %v810_v24 = vld [vmem:[#allocation2 + $0xf8] sm:$0xf] }
 0x1b0   :  { %v833_v63 = vmax.f32 %v1773_v12, %v1783_v55  ;;  %v694_v36 = vrot.slane %v693_v60, 2  ;;  %v795_v29 = vmax.f32 %v775_v30, %v785_v31  ;;  %v825_v12 = vmax.f32 %v805_v61, %v815_v3 }
 0x1b1   :  { %v665_v14 = vadd.f32 %v664_v41, %v594_v5  ;;  %v834_v6 = vmax.f32 %v1779_v49, %v1787_v47  ;;  %v820_v49 = vld [vmem:[#allocation2 + $0x11c] sm:$0xf] }
 0x1b2   :  { %v695_v11 = vadd.f32 %v694_v36, %v693_v60  ;;  %v780_v60 = vld [vmem:[#allocation2 + $0xb0] sm:$0xf] }
 0x1b3   :  { %v666_v38 = vadd.f32 %v665_v14, %v595_v23  ;;  %v835_v14 = vmax.f32 %v795_v29, %v825_v12 }
 0x1b4   :  { %v696_v15 = vrot.slane %v695_v11, 1 }
 0x1b5   :  { %v667_v53 = vadd.f32 %v666_v38, %v596_v26 }
 0x1b6   :  { %v697_v0 = vadd.f32 %v696_v15, %v695_v11  ;;  %v830_v11 = vmax.f32 %v810_v24, %v820_v49 }
 0x1b7   :  { %v668_v17 = vadd.f32 %v667_v53, %v597_v42 }
 0x1b8   :  { %v699_v28 = vmul.f32 0.0069444445, %v697_v0 }
 0x1b9   :  { %v669_v21 = vrot.slane %v668_v17, 4 }
 0x1bb   :  { %v670_v62 = vadd.f32 %v669_v21, %v668_v17  ;;  %v800_v17 = vmax.f32 %v780_v60, %v790_v8 }
 0x1bd   :  { %v671_v20 = vrot.slane %v670_v62, 2  ;;  %v840_v18 = vmax.f32 %v800_v17, %v830_v11 }
 0x1bf   :  { %v672_v34 = vadd.f32 %v671_v20, %v670_v62 }
 0x1c1   :  { %v673_v59 = vrot.slane %v672_v34, 1 }
 0x1c3   :  { %v674_v56 = vadd.f32 %v673_v59, %v672_v34 }
 0x1c5   :  { %v698_v5 = vmul.f32 0.0069444445, %v674_v56 }
 0x1c7   :  { %v704_v1 = vsel %vm703_vm3, %v699_v28, %v698_v5 }
 0x1c8   :  { %722 = vmatmul.f32.vlgmr.msrb.gmra.mxu2 %v704_v1 }
 0x24b   :  { %v723_v23 = vpop.f32.mrf.mxu2 }
 0x24c   :  { %v726_v13 = vmax.f32 %v723_v23, 0.0 }
 0x24e   :  { %871 = vmatmul.msk.f32.vlgmr.msrb.gmra.mxu3 %vm728_vm4, %v726_v13 }
 0x2d1   :  { %v749_v26 = vpop.f32.mrf.mxu3 }
 0x2d2   :  { %v872_v45 = vmul.f32 -1.442695, %v749_v26 }
 0x2d4   :  { %907 = vpow2.f32 %v872_v45 }
 0x2da   :  { %v908_v42 = vpop.eup %907 }
 0x2db   :  { %v755_v27 = vadd.f32 1.0, %v908_v42 }
 0x2dd   :  { %909 = vrcp.f32 %v755_v27  ;;  %v767_v54 = vand.u32 2147483648, %v755_v27  ;;  %v765_v22 = vand.u32 2147483647, %v755_v27  ;;  %vm761_vm6 = vweird.f32 %v755_v27 }
 0x2df   :  { %v768_v33 = vor.u32 1.1754944e-38, %v767_v54  ;;  %vm766_vm8 = vcmp.eq.f32.partialorder %v765_v22, 8.507059e+37 }
 0x2e3   :  { %v910_v39 = vpop.eup %909 }
 0x2e4   :  { %v757_v46 = vmul.f32 %v910_v39, %v755_v27  ;;  %vm762_vm5 = vweird.f32 %v910_v39 }
 0x2e5   :  { %vm763_vm7 = vmor %vm761_vm6, %vm762_vm5 }
 0x2e6   :  { %v758_v19 = vsub.f32 1.0, %v757_v46 }
 0x2e8   :  { %v759_v16 = vmul.f32 %v910_v39, %v758_v19 }
 0x2ea   :  { %v760_v4 = vadd.f32 %v910_v39, %v759_v16 }
 0x2ec   :  { %v764_v43 = vsel %vm763_vm7, %v910_v39, %v760_v4 }
 0x2ed   :  { %v769_v41 = vsel %vm766_vm8, %v768_v33, %v764_v43 }
 0x2ee   :  { %v842_v37 = vrot.slane %v769_v41, 1  ;;  %v843_v55 = vperm.slane %v769_v41, 0 }
 0x2f0   :  { %v844_v47 = vperm.slane %v842_v37, 0  ;;  %v847_v38 = vmul.f32 %v843_v55, %v831_v9  ;;  %v848_v36 = vmul.f32 %v843_v55, %v832_v51  ;;  %v849_v53 = vmul.f32 %v843_v55, %v833_v63 }
 0x2f1   :  { %v850_v21 = vmul.f32 %v843_v55, %v834_v6  ;;  %v851_v62 = vmul.f32 %v843_v55, %v835_v14 }
 0x2f2   :  { %857 = vst [vmem:[%s1843_s3] sm:$0xff] %v847_v38  ;;  %v852_v15 = vmul.f32 %v844_v47, %v836_v44  ;;  %v853_v40 = vmul.f32 %v844_v47, %v837_v25  ;;  %v854_v9 = vmul.f32 %v844_v47, %v838_v7  ;;  %v855_v57 = vmul.f32 %v844_v47, %v839_v35 }
 0x2f3   :  { %858 = vst [vmem:[%s1843_s3 + $0x8] sm:$0xff] %v848_v36  ;;  %v856_v50 = vmul.f32 %v844_v47, %v840_v18 }
 0x2f4   :  { %859 = vst [vmem:[%s1843_s3 + $0x10] sm:$0xff] %v849_v53 }
 0x2f5   :  { %860 = vst [vmem:[%s1843_s3 + $0x18] sm:$0xff] %v850_v21 }
 0x2f6   :  { %861 = vst [vmem:[%s1843_s3 + $0x20] sm:$0xf] %v851_v62 }
 0x2f7   :  { %862 = vst [vmem:[%s1843_s3 + $0x28] sm:$0xff] %v852_v15 }
 0x2f8   :  { %863 = vst [vmem:[%s1843_s3 + $0x30] sm:$0xff] %v853_v40 }
 0x2f9   :  { %864 = vst [vmem:[%s1843_s3 + $0x38] sm:$0xff] %v854_v9 }
 0x2fa   :  { %865 = vst [vmem:[%s1843_s3 + $0x40] sm:$0xff] %v855_v57 }
 0x2fb   :  { %866 = vst [vmem:[%s1843_s3 + $0x48] sm:$0xf] %v856_v50 }

// kernel: forward.5
= control target key start
LH: loop header
LB: loop body
LE: loop exit
PB: predicated region body
PF: predicated region fallthrough
CT: control target
= control target key end

     0   :  { %s923_s0 = inlined_call_operand.vmem [shape: f32[2,640], index: 0, kind: input, shape index: {}]   ;;  %s924_s1 = inlined_call_operand.vmem [shape: f32[640,128], index: 1, kind: input, shape index: {}]   ;;  %s925_s2 = inlined_call_operand.vmem [shape: f32[128,128], index: 2, kind: input, shape index: {}]   ;;  %s926_s3 = inlined_call_operand.vmem [shape: f32[128,128], index: 3, kind: input, shape index: {}]   ;;  %s927_s4 = inlined_call_operand.vmem [shape: f32[24,128], index: 4, kind: input, shape index: {}]   ;;  %s928_s5 = inlined_call_operand.hbm [shape: f32[2,128], index: 5, kind: output, shape index: {}]  }
   0x1   :  { %v38_v0 = vld [vmem:[%s924_s1 + $0x78] sm:$0xff]  ;;  %v37_v1 = vld [vmem:[%s924_s1 + $0x70] sm:$0xff]  ;;  %v36_v2 = vld [vmem:[%s924_s1 + $0x68] sm:$0xff] }
   0x2   :  { %118 = vmatpush.msra.mxu0 %v38_v0  ;;  %v70_v3 = vld [vmem:[%s924_s1 + $0x178] sm:$0xff]  ;;  %v35_v4 = vld [vmem:[%s924_s1 + $0x60] sm:$0xff]  ;;  %v69_v5 = vld [vmem:[%s924_s1 + $0x170] sm:$0xff] }
   0x3   :  { %158 = vmatpush.msra.mxu2 %v70_v3  ;;  %v86_v6 = vld [vmem:[%s924_s1 + $0x1f8] sm:$0xff]  ;;  %v68_v8 = vld [vmem:[%s924_s1 + $0x168] sm:$0xff]  ;;  %v85_v9 = vld [vmem:[%s924_s1 + $0x1f0] sm:$0xff] }
   0x4   :  { %119 = vmatpush.msra.mxu0 %v37_v1  ;;  %178 = vmatpush.msra.mxu3 %v86_v6  ;;  %v54_v7 = vld [vmem:[%s924_s1 + $0xf8] sm:$0xff]  ;;  %v53_v11 = vld [vmem:[%s924_s1 + $0xf0] sm:$0xff]  ;;  %v67_v12 = vld [vmem:[%s924_s1 + $0x160] sm:$0xff] }
   0x5   :  { %v34_v10 = vld [vmem:[%s924_s1 + $0x58] sm:$0xff]  ;;  %159 = vmatpush.msra.mxu2 %v69_v5  ;;  %138 = vmatpush.msra.mxu1 %v54_v7  ;;  %v84_v13 = vld [vmem:[%s924_s1 + $0x1e8] sm:$0xff]  ;;  %v33_v15 = vld [vmem:[%s924_s1 + $0x50] sm:$0xff] }
   0x6   :  { %120 = vmatpush.msra.mxu0 %v36_v2  ;;  %179 = vmatpush.msra.mxu3 %v85_v9  ;;  %v52_v14 = vld [vmem:[%s924_s1 + $0xe8] sm:$0xff]  ;;  %v83_v16 = vld [vmem:[%s924_s1 + $0x1e0] sm:$0xff]  ;;  %v66_v17 = vld [vmem:[%s924_s1 + $0x158] sm:$0xff] }
   0x7   :  { %160 = vmatpush.msra.mxu2 %v68_v8  ;;  %139 = vmatpush.msra.mxu1 %v53_v11  ;;  %v51_v18 = vld [vmem:[%s924_s1 + $0xe0] sm:$0xff]  ;;  %v32_v19 = vld [vmem:[%s924_s1 + $0x48] sm:$0xff]  ;;  %v82_v20 = vld [vmem:[%s924_s1 + $0x1d8] sm:$0xff] }
   0x8   :  { %121 = vmatpush.msra.mxu0 %v35_v4  ;;  %180 = vmatpush.msra.mxu3 %v84_v13  ;;  %v65_v21 = vld [vmem:[%s924_s1 + $0x150] sm:$0xff]  ;;  %v50_v22 = vld [vmem:[%s924_s1 + $0xd8] sm:$0xff]  ;;  %v31_v23 = vld [vmem:[%s924_s1 + $0x40] sm:$0xff] }
   0x9   :  { %161 = vmatpush.msra.mxu2 %v67_v12  ;;  %140 = vmatpush.msra.mxu1 %v52_v14  ;;  %v81_v24 = vld [vmem:[%s924_s1 + $0x1d0] sm:$0xff]  ;;  %v64_v25 = vld [vmem:[%s924_s1 + $0x148] sm:$0xff]  ;;  %v30_v27 = vld [vmem:[%s924_s1 + $0x38] sm:$0xff] }
   0xa   :  { %122 = vmatpush.msra.mxu0 %v34_v10  ;;  %181 = vmatpush.msra.mxu3 %v83_v16  ;;  %v49_v26 = vld [vmem:[%s924_s1 + $0xd0] sm:$0xff]  ;;  %v80_v28 = vld [vmem:[%s924_s1 + $0x1c8] sm:$0xff]  ;;  %v63_v29 = vld [vmem:[%s924_s1 + $0x140] sm:$0xff] }
   0xb   :  { %162 = vmatpush.msra.mxu2 %v66_v17  ;;  %141 = vmatpush.msra.mxu1 %v51_v18  ;;  %v48_v30 = vld [vmem:[%s924_s1 + $0xc8] sm:$0xff]  ;;  %v29_v31 = vld [vmem:[%s924_s1 + $0x30] sm:$0xff]  ;;  %v79_v32 = vld [vmem:[%s924_s1 + $0x1c0] sm:$0xff] }
   0xc   :  { %123 = vmatpush.msra.mxu0 %v33_v15  ;;  %182 = vmatpush.msra.mxu3 %v82_v20  ;;  %v62_v33 = vld [vmem:[%s924_s1 + $0x138] sm:$0xff]  ;;  %v47_v34 = vld [vmem:[%s924_s1 + $0xc0] sm:$0xff]  ;;  %v28_v35 = vld [vmem:[%s924_s1 + $0x28] sm:$0xff] }
   0xd   :  { %163 = vmatpush.msra.mxu2 %v65_v21  ;;  %142 = vmatpush.msra.mxu1 %v50_v22  ;;  %v78_v36 = vld [vmem:[%s924_s1 + $0x1b8] sm:$0xff]  ;;  %v61_v37 = vld [vmem:[%s924_s1 + $0x130] sm:$0xff]  ;;  %v27_v39 = vld [vmem:[%s924_s1 + $0x20] sm:$0xff] }
   0xe   :  { %124 = vmatpush.msra.mxu0 %v32_v19  ;;  %183 = vmatpush.msra.mxu3 %v81_v24  ;;  %v46_v38 = vld [vmem:[%s924_s1 + $0xb8] sm:$0xff]  ;;  %v77_v40 = vld [vmem:[%s924_s1 + $0x1b0] sm:$0xff]  ;;  %v60_v41 = vld [vmem:[%s924_s1 + $0x128] sm:$0xff] }
   0xf   :  { %164 = vmatpush.msra.mxu2 %v64_v25  ;;  %143 = vmatpush.msra.mxu1 %v49_v26  ;;  %v45_v42 = vld [vmem:[%s924_s1 + $0xb0] sm:$0xff]  ;;  %v26_v43 = vld [vmem:[%s924_s1 + $0x18] sm:$0xff]  ;;  %v76_v44 = vld [vmem:[%s924_s1 + $0x1a8] sm:$0xff] }
  0x10   :  { %125 = vmatpush.msra.mxu0 %v31_v23  ;;  %184 = vmatpush.msra.mxu3 %v80_v28  ;;  %v59_v45 = vld [vmem:[%s924_s1 + $0x120] sm:$0xff]  ;;  %v44_v46 = vld [vmem:[%s924_s1 + $0xa8] sm:$0xff]  ;;  %v25_v48 = vld [vmem:[%s924_s1 + $0x10] sm:$0xff] }
  0x11   :  { %165 = vmatpush.msra.mxu2 %v63_v29  ;;  %144 = vmatpush.msra.mxu1 %v48_v30  ;;  %v21_v47 = vld [vmem:[%s923_s0] sm:$0xff]  ;;  %v24_v49 = vld [vmem:[%s924_s1 + $0x8] sm:$0xff]  ;;  %v58_v51 = vld [vmem:[%s924_s1 + $0x118] sm:$0xff] }
  0x12   :  { %126 = vmatpush.msra.mxu0 %v30_v27  ;;  %185 = vmatpush.msra.mxu3 %v79_v32  ;;  %v75_v50 = vld [vmem:[%s924_s1 + $0x1a0] sm:$0xff]  ;;  %105 = vst [vmem:[#allocation1] ss:$4 sm:$0xff] %v21_v47  ;;  %v57_v53 = vld [vmem:[%s924_s1 + $0x110] sm:$0xff]  ;;  %v74_v54 = vld [vmem:[%s924_s1 + $0x198] sm:$0xff] }
  0x13   :  { %166 = vmatpush.msra.mxu2 %v62_v33  ;;  %145 = vmatpush.msra.mxu1 %v47_v34  ;;  %v43_v52 = vld [vmem:[%s924_s1 + $0xa0] sm:$0xff]  ;;  %v42_v55 = vld [vmem:[%s924_s1 + $0x98] sm:$0xff]  ;;  %v22_v56 = vld [vmem:[%s923_s0 + $0x8] sm:$0x3] }
  0x14   :  { %127 = vmatpush.msra.mxu0 %v29_v31  ;;  %186 = vmatpush.msra.mxu3 %v78_v36  ;;  %107 = vst [vmem:[#allocation1 + $0x20] ss:$4 sm:$0xff] %v22_v56 }
  0x15   :  { %167 = vmatpush.msra.mxu2 %v61_v37  ;;  %146 = vmatpush.msra.mxu1 %v46_v38 }
  0x16   :  { %128 = vmatpush.msra.mxu0 %v28_v35  ;;  %187 = vmatpush.msra.mxu3 %v77_v40 }
  0x17   :  { %168 = vmatpush.msra.mxu2 %v60_v41  ;;  %147 = vmatpush.msra.mxu1 %v45_v42 }
  0x18   :  { %129 = vmatpush.msra.mxu0 %v27_v39  ;;  %188 = vmatpush.msra.mxu3 %v76_v44 }
  0x19   :  { %169 = vmatpush.msra.mxu2 %v59_v45  ;;  %148 = vmatpush.msra.mxu1 %v44_v46 }
  0x1a   :  { %130 = vmatpush.msra.mxu0 %v26_v43  ;;  %189 = vmatpush.msra.mxu3 %v75_v50 }
  0x1c   :  { %131 = vmatpush.msra.mxu0 %v25_v48 }
  0x1d   :  { %10 = vsyncpa [#allocation3], 0  ;;  %v23_v57 = vld [vmem:[%s924_s1] sm:$0xff]  ;;  %170 = vmatpush.msra.mxu2 %v58_v51  ;;  %149 = vmatpush.msra.mxu1 %v43_v52  ;;  %v73_v58 = vld [vmem:[%s924_s1 + $0x190] sm:$0xff]  ;;  %vm220_vm0 = vcmask 1041408   ;;  %vm282_vm4 = vcmask 64512  }
  0x1e   :  { %132 = vmatpush.msra.mxu0 %v24_v49  ;;  %v102_v59 = vld [vmem:[%s924_s1 + $0x278] sm:$0xff]  ;;  %190 = vmatpush.msra.mxu3 %v74_v54  ;;  %v56_v60 = vld [vmem:[%s924_s1 + $0x108] sm:$0xff]  ;;  %v41_v61 = vld [vmem:[%s924_s1 + $0x90] sm:$0xff]  ;;  %s466_s27 = sshll.u32 %s928_s5, 4  ;;  %s467_s27 = int_to_ptr.hbm [resolvable:$true] %s466_s27 }
  0x1f   :  { %171 = vmatpush.msra.mxu2 %v57_v53  ;;  %150 = vmatpush.msra.mxu1 %v42_v55  ;;  %v72_v62 = vld [vmem:[%s924_s1 + $0x188] sm:$0xff]  ;;  %v101_v63 = vld [vmem:[%s924_s1 + $0x270] sm:$0xff]  ;;  %v55_v0 = vld [vmem:[%s924_s1 + $0x100] sm:$0xff] }
  0x20   :  { %133 = vmatpush.msra.mxu0 %v23_v57  ;;  %191 = vmatpush.msra.mxu3 %v73_v58  ;;  %v110_v1 = vld.sshfl [vmem:[#allocation1 + $0x10] sm:$0xff pattern:$0x73625140]  ;;  %v40_v2 = vld [vmem:[%s924_s1 + $0x88] sm:$0xff]  ;;  %v71_v4 = vld [vmem:[%s924_s1 + $0x180] sm:$0xff] }
  0x21   :  { %172 = vmatpush.msra.mxu2 %v56_v60  ;;  %v100_v3 = vld [vmem:[%s924_s1 + $0x268] sm:$0xff]  ;;  %151 = vmatpush.msra.mxu1 %v41_v61  ;;  %v111_v5 = vld.sshfl [vmem:[#allocation1 + $0x18] sm:$0xff pattern:$0x73625140]  ;;  %v39_v6 = vld [vmem:[%s924_s1 + $0x80] sm:$0xff] }
  0x22   :  { %198 = vmatpush.msrb.mxu0 %v102_v59  ;;  %192 = vmatpush.msra.mxu3 %v72_v62  ;;  %v99_v7 = vld [vmem:[%s924_s1 + $0x260] sm:$0xff]  ;;  %v109_v8 = vld.sshfl [vmem:[#allocation1 + $0x8] sm:$0xff pattern:$0x73625140]  ;;  %v98_v10 = vld [vmem:[%s924_s1 + $0x258] sm:$0xff] }
  0x23   :  { %173 = vmatpush.msra.mxu2 %v55_v0  ;;  %152 = vmatpush.msra.mxu1 %v40_v2  ;;  %v108_v9 = vld.sshfl [vmem:[#allocation1] sm:$0xff pattern:$0x73625140]  ;;  %v97_v11 = vld [vmem:[%s924_s1 + $0x250] sm:$0xff]  ;;  %v96_v12 = vld [vmem:[%s924_s1 + $0x248] sm:$0xff] }
  0x24   :  { %199 = vmatpush.msrb.mxu0 %v101_v63  ;;  %174 = vmatmul.f32.vlgmr.msra.gmra.mxu2 %v110_v1  ;;  %v95_v13 = vld [vmem:[%s924_s1 + $0x240] sm:$0xff]  ;;  %v94_v14 = vld [vmem:[%s924_s1 + $0x238] sm:$0xff]  ;;  %v93_v15 = vld [vmem:[%s924_s1 + $0x230] sm:$0xff] }
  0x25   :  { %193 = vmatpush.msra.mxu3 %v71_v4  ;;  %153 = vmatpush.msra.mxu1 %v39_v6  ;;  %v92_v16 = vld [vmem:[%s924_s1 + $0x228] sm:$0xff]  ;;  %v91_v17 = vld [vmem:[%s924_s1 + $0x220] sm:$0xff]  ;;  %v90_v18 = vld [vmem:[%s924_s1 + $0x218] sm:$0xff] }
  0x26   :  { %200 = vmatpush.msrb.mxu0 %v100_v3  ;;  %194 = vmatmul.f32.vlgmr.msra.gmra.mxu3 %v111_v5  ;;  %v89_v19 = vld [vmem:[%s924_s1 + $0x210] sm:$0xff]  ;;  %v88_v20 = vld [vmem:[%s924_s1 + $0x208] sm:$0xff]  ;;  %v87_v21 = vld [vmem:[%s924_s1 + $0x200] sm:$0xff] }
  0x27   :  { %154 = vmatmul.f32.vlgmr.msra.gmra.mxu1 %v109_v8  ;;  %134 = vmatmul.f32.vlgmr.msra.gmra.mxu0 %v108_v9  ;;  %v112_v22 = vld.sshfl [vmem:[#allocation1 + $0x20] sm:$0xff pattern:$0x73625140]  ;;  %v259_v46 = vld [vmem:[%s927_s4 + $0x8] sm:$0xff]  ;;  %v281_v53 = vld [vmem:[%s927_s4 + $0x10] sm:$0xff] }
  0x28   :  { %201 = vmatpush.msrb.mxu0 %v99_v7  ;;  %275 = vmatpush.xpose.msrb.mxu2 %v259_v46  ;;  %v218_v59 = vld [vmem:[%s927_s4] sm:$0x1]  ;;  %v219_v63 = vld [vmem:[%s927_s4 + $0x1] sm:$0x1]  ;;  %v341_v9 = vld [vmem:[%s925_s2 + $0x78] sm:$0xff] }
  0x29   :  { %342 = vmatpush.msrb.mxu3 %v341_v9  ;;  %v403_v9 = vld [vmem:[%s926_s3 + $0x8] sm:$0xff] }
  0x2a   :  { %202 = vmatpush.msrb.mxu0 %v98_v10  ;;  %v340_v10 = vld [vmem:[%s925_s2 + $0x70] sm:$0xff] }
  0x2b   :  { %343 = vmatpush.msrb.mxu3 %v340_v10  ;;  %v402_v10 = vld [vmem:[%s926_s3] sm:$0xff] }
  0x2c   :  { %203 = vmatpush.msrb.mxu0 %v97_v11  ;;  %301 = vmatpush.msra.mxu2 %v281_v53  ;;  %v339_v11 = vld [vmem:[%s925_s2 + $0x68] sm:$0xff] }
  0x2d   :  { %344 = vmatpush.msrb.mxu3 %v339_v11 }
  0x2e   :  { %204 = vmatpush.msrb.mxu0 %v96_v12  ;;  %v338_v12 = vld [vmem:[%s925_s2 + $0x60] sm:$0xff] }
  0x2f   :  { %345 = vmatpush.msrb.mxu3 %v338_v12 }
  0x30   :  { %205 = vmatpush.msrb.mxu0 %v95_v13  ;;  %v337_v13 = vld [vmem:[%s925_s2 + $0x58] sm:$0xff] }
  0x31   :  { %346 = vmatpush.msrb.mxu3 %v337_v13 }
  0x32   :  { %206 = vmatpush.msrb.mxu0 %v94_v14  ;;  %v336_v14 = vld [vmem:[%s925_s2 + $0x50] sm:$0xff] }
  0x33   :  { %347 = vmatpush.msrb.mxu3 %v336_v14 }
  0x34   :  { %207 = vmatpush.msrb.mxu0 %v93_v15  ;;  %v335_v15 = vld [vmem:[%s925_s2 + $0x48] sm:$0xff] }
  0x35   :  { %348 = vmatpush.msrb.mxu3 %v335_v15 }
  0x36   :  { %208 = vmatpush.msrb.mxu0 %v92_v16  ;;  %v334_v16 = vld [vmem:[%s925_s2 + $0x40] sm:$0xff] }
  0x37   :  { %349 = vmatpush.msrb.mxu3 %v334_v16 }
  0x38   :  { %209 = vmatpush.msrb.mxu0 %v91_v17  ;;  %v333_v17 = vld [vmem:[%s925_s2 + $0x38] sm:$0xff] }
  0x39   :  { %350 = vmatpush.msrb.mxu3 %v333_v17 }
  0x3a   :  { %210 = vmatpush.msrb.mxu0 %v90_v18  ;;  %v332_v18 = vld [vmem:[%s925_s2 + $0x30] sm:$0xff] }
  0x3b   :  { %351 = vmatpush.msrb.mxu3 %v332_v18  ;;  %v362_v18 = vld [vmem:[%s927_s4 + $0x2] sm:$0x1] }
  0x3c   :  { %211 = vmatpush.msrb.mxu0 %v89_v19  ;;  %v331_v19 = vld [vmem:[%s925_s2 + $0x28] sm:$0xff] }
  0x3d   :  { %352 = vmatpush.msrb.mxu3 %v331_v19 }
  0x3e   :  { %212 = vmatpush.msrb.mxu0 %v88_v20  ;;  %v330_v20 = vld [vmem:[%s925_s2 + $0x20] sm:$0xff] }
  0x3f   :  { %353 = vmatpush.msrb.mxu3 %v330_v20 }
  0x40   :  { %213 = vmatpush.msrb.mxu0 %v87_v21  ;;  %v329_v21 = vld [vmem:[%s925_s2 + $0x18] sm:$0xff] }
  0x41   :  { %214 = vmatmul.f32.vlgmr.msrb.gmra.mxu0 %v112_v22  ;;  %v328_v22 = vld [vmem:[%s925_s2 + $0x10] sm:$0xff]  ;;  %354 = vmatpush.msrb.mxu3 %v329_v21 }
  0x43   :  { %355 = vmatpush.msrb.mxu3 %v328_v22  ;;  %v363_v22 = vld [vmem:[%s927_s4 + $0x3] sm:$0x1] }
  0xa4   :  { %v135_v23 = vpop.f32.mrf.mxu0  ;;  %v155_v24 = vpop.f32.mrf.mxu1 }
  0xa5   :  { %v156_v25 = vadd.f32 %v155_v24, %v135_v23  ;;  %v327_v23 = vld [vmem:[%s925_s2 + $0x8] sm:$0xff]  ;;  %v326_v24 = vld [vmem:[%s925_s2] sm:$0xff] }
  0xa6   :  { %356 = vmatpush.msrb.mxu3 %v327_v23 }
  0xa7   :  { %v175_v26 = vpop.f32.mrf.mxu2 }
  0xa8   :  { %v176_v27 = vadd.f32 %v175_v26, %v156_v25  ;;  %357 = vmatpush.msrb.mxu3 %v326_v24 }
  0xa9   :  { %v195_v28 = vpop.f32.mrf.mxu3 }
  0xaa   :  { %v196_v29 = vadd.f32 %v195_v28, %v176_v27 }
  0xbe   :  { %v215_v30 = vpop.f32.mrf.mxu0 }
  0xbf   :  { %v216_v31 = vadd.f32 %v215_v30, %v196_v29 }
  0xc1   :  { %v221_v32 = vsel %vm220_vm0, %v216_v31, 0.0  ;;  %v229_v33 = vmul.f32 %v216_v31, %v216_v31 }
  0xc2   :  { %v222_v34 = vrot.slane %v221_v32, 4 }
  0xc3   :  { %v230_v35 = vsel %vm220_vm0, %v229_v33, 0.0 }
  0xc4   :  { %v223_v36 = vadd.f32 %v222_v34, %v221_v32  ;;  %v231_v37 = vrot.slane %v230_v35, 4 }
  0xc6   :  { %v224_v38 = vrot.slane %v223_v36, 2  ;;  %v232_v39 = vadd.f32 %v231_v37, %v230_v35 }
  0xc8   :  { %v225_v40 = vadd.f32 %v224_v38, %v223_v36  ;;  %v233_v41 = vrot.slane %v232_v39, 2 }
  0xca   :  { %v226_v42 = vrot.slane %v225_v40, 1  ;;  %v234_v43 = vadd.f32 %v233_v41, %v232_v39  ;;  %v416_v41 = vld [vmem:[%s926_s3 + $0x70] sm:$0xff] }
  0xcc   :  { %v227_v44 = vadd.f32 %v226_v42, %v225_v40  ;;  %v235_v45 = vrot.slane %v234_v43, 1  ;;  %v417_v40 = vld [vmem:[%s926_s3 + $0x78] sm:$0xff]  ;;  %v415_v42 = vld [vmem:[%s926_s3 + $0x68] sm:$0xff] }
  0xcd   :  { %420 = vmatpush.msrb.mxu1 %v417_v40 }
  0xce   :  { %v228_v47 = vmul.f32 0.5, %v227_v44  ;;  %v236_v48 = vadd.f32 %v235_v45, %v234_v43  ;;  %v414_v43 = vld [vmem:[%s926_s3 + $0x60] sm:$0xff]  ;;  %v413_v44 = vld [vmem:[%s926_s3 + $0x58] sm:$0xff]  ;;  %v412_v45 = vld [vmem:[%s926_s3 + $0x50] sm:$0xff] }
  0xcf   :  { %421 = vmatpush.msrb.mxu1 %v416_v41 }
  0xd0   :  { %v237_v49 = vmul.f32 0.5, %v236_v48  ;;  %v238_v50 = vmul.f32 %v228_v47, %v228_v47 }
  0xd1   :  { %422 = vmatpush.msrb.mxu1 %v415_v42 }
  0xd2   :  { %v239_v51 = vsub.f32 %v237_v49, %v238_v50 }
  0xd3   :  { %423 = vmatpush.msrb.mxu1 %v414_v43 }
  0xd4   :  { %v240_v52 = vadd.f32 1e-05, %v239_v51  ;;  %v410_v51 = vld [vmem:[%s926_s3 + $0x40] sm:$0xff] }
  0xd5   :  { %424 = vmatpush.msrb.mxu1 %v413_v44 }
  0xd6   :  { %479 = vrsqrt.f32 %v240_v52  ;;  %vm247_vm2 = vweird.f32 %v240_v52 }
  0xd7   :  { %425 = vmatpush.msrb.mxu1 %v412_v45 }
  0xdc   :  { %v480_v54 = vpop.eup %479 }
  0xdd   :  { %v242_v55 = vmul.f32 %v480_v54, %v240_v52  ;;  %vm248_vm1 = vweird.f32 %v480_v54 }
  0xde   :  { %vm249_vm3 = vmor %vm247_vm2, %vm248_vm1 }
  0xdf   :  { %v243_v56 = vmul.f32 %v480_v54, %v242_v55  ;;  %v409_v55 = vld [vmem:[%s926_s3 + $0x38] sm:$0xff] }
  0xe1   :  { %v244_v57 = vmul.f32 0.5, %v243_v56 }
  0xe3   :  { %v245_v58 = vsub.f32 1.5, %v244_v57 }
  0xe5   :  { %v246_v60 = vmul.f32 %v480_v54, %v245_v58  ;;  %v408_v58 = vld [vmem:[%s926_s3 + $0x30] sm:$0xff] }
  0xe7   :  { %v250_v61 = vsel %vm249_vm3, %v480_v54, %v246_v60 }
  0xe8   :  { %v251_v62 = vmul.f32 %v250_v61, %v218_v59  ;;  %v407_v61 = vld [vmem:[%s926_s3 + $0x28] sm:$0xff] }
  0xea   :  { %v254_v0 = vperm.slane %v251_v62, 0  ;;  %v252_v1 = vmul.f32 %v251_v62, %v228_v47  ;;  %v411_v47 = vld [vmem:[%s926_s3 + $0x48] sm:$0xff] }
  0xeb   :  { %426 = vmatpush.msrb.mxu1 %v411_v47 }
  0xec   :  { %v253_v2 = vsub.f32 %v219_v63, %v252_v1  ;;  %v255_v3 = vmul.f32 %v254_v0, %v216_v31  ;;  %v406_v0 = vld [vmem:[%s926_s3 + $0x20] sm:$0xff] }
  0xed   :  { %427 = vmatpush.msrb.mxu1 %v410_v51 }
  0xee   :  { %v256_v4 = vperm.slane %v253_v2, 0 }
  0xef   :  { %428 = vmatpush.msrb.mxu1 %v409_v55 }
  0xf0   :  { %v257_v5 = vadd.f32 %v256_v4, %v255_v3  ;;  %v405_v3 = vld [vmem:[%s926_s3 + $0x18] sm:$0xff] }
  0xf1   :  { %429 = vmatpush.msrb.mxu1 %v408_v58 }
  0xf2   :  { %v258_v6 = vmax.f32 %v257_v5, 0.0 }
  0xf3   :  { %430 = vmatpush.msrb.mxu1 %v407_v61 }
  0xf4   :  { %276 = vmatmul.f32.vlgmr.msrb.gmra.mxu2 %v258_v6 }
  0xf5   :  { %431 = vmatpush.msrb.mxu1 %v406_v0 }
  0xf7   :  { %432 = vmatpush.msrb.mxu1 %v405_v3 }
 0x177   :  { %v277_v7 = vpop.f32.mrf.mxu2 }
 0x178   :  { %v280_v8 = vmax.f32 %v277_v7, 0.0 }
 0x17a   :  { %475 = vmatmul.msk.f32.vlgmr.msra.gmra.mxu2 %vm282_vm4, %v280_v8 }
 0x1fd   :  { %v303_v25 = vpop.f32.mrf.mxu2 }
 0x1fe   :  { %v476_v26 = vmul.f32 -1.442695, %v303_v25 }
 0x200   :  { %481 = vpow2.f32 %v476_v26 }
 0x206   :  { %v482_v27 = vpop.eup %481 }
 0x207   :  { %v309_v28 = vadd.f32 1.0, %v482_v27 }
 0x209   :  { %483 = vrcp.f32 %v309_v28  ;;  %v321_v32 = vand.u32 2147483648, %v309_v28  ;;  %v319_v34 = vand.u32 2147483647, %v309_v28  ;;  %vm315_vm6 = vweird.f32 %v309_v28 }
 0x20b   :  { %v322_v36 = vor.u32 1.1754944e-38, %v321_v32  ;;  %vm320_vm8 = vcmp.eq.f32.partialorder %v319_v34, 8.507059e+37  ;;  %v478_v32 = vld [vmem:[%s927_s4 + $0x4] ss:$0 sm:$0xff]  ;;  %s517_s4 = smov [#allocation2]  }
 0x20c   :  { %s464_s24 = sshll.u32 %s517_s4, 4  ;;  %s465_s24 = int_to_ptr.vmem [resolvable:$true] %s464_s24 }
 0x20f   :  { %v484_v29 = vpop.eup %483 }
 0x210   :  { %v311_v30 = vmul.f32 %v484_v29, %v309_v28  ;;  %vm316_vm5 = vweird.f32 %v484_v29 }
 0x211   :  { %vm317_vm7 = vmor %vm315_vm6, %vm316_vm5 }
 0x212   :  { %v312_v31 = vsub.f32 1.0, %v311_v30  ;;  %v440_v30 = vlaneseq }
 0x214   :  { %v313_v33 = vmul.f32 %v484_v29, %v312_v31  ;;  %v441_v31 = vand.u32 127, %v440_v30 }
 0x216   :  { %v314_v35 = vadd.f32 %v484_v29, %v313_v33  ;;  %vm442_vm12 = vcmp.lt.s32.totalorder %v441_v31, 10 }
 0x218   :  { %v318_v37 = vsel %vm317_vm7, %v484_v29, %v314_v35 }
 0x219   :  { %v323_v38 = vsel %vm320_vm8, %v322_v36, %v318_v37 }
 0x21a   :  { %v325_v39 = vmul.f32 %v323_v38, %v258_v6  ;;  %v404_v6 = vld [vmem:[%s926_s3 + $0x10] sm:$0xff] }
 0x21b   :  { %433 = vmatpush.msrb.mxu1 %v404_v6 }
 0x21c   :  { %358 = vmatmul.f32.vlgmr.msrb.gmra.mxu3 %v325_v39 }
 0x21d   :  { %434 = vmatpush.msrb.mxu1 %v403_v9 }
 0x21f   :  { %435 = vmatpush.msrb.mxu1 %v402_v10 }
 0x29f   :  { %v359_v46 = vpop.f32.mrf.mxu3 }
 0x2a0   :  { %v364_v48 = vsel %vm220_vm0, %v359_v46, 0.0  ;;  %v372_v49 = vmul.f32 %v359_v46, %v359_v46 }
 0x2a1   :  { %v365_v50 = vrot.slane %v364_v48, 4 }
 0x2a2   :  { %v373_v52 = vsel %vm220_vm0, %v372_v49, 0.0 }
 0x2a3   :  { %v366_v53 = vadd.f32 %v365_v50, %v364_v48  ;;  %v374_v54 = vrot.slane %v373_v52, 4 }
 0x2a5   :  { %v367_v56 = vrot.slane %v366_v53, 2  ;;  %v375_v57 = vadd.f32 %v374_v54, %v373_v52 }
 0x2a7   :  { %v368_v59 = vadd.f32 %v367_v56, %v366_v53  ;;  %v376_v60 = vrot.slane %v375_v57, 2 }
 0x2a9   :  { %v369_v62 = vrot.slane %v368_v59, 1  ;;  %v377_v63 = vadd.f32 %v376_v60, %v375_v57 }
 0x2ab   :  { %v370_v1 = vadd.f32 %v369_v62, %v368_v59  ;;  %v378_v2 = vrot.slane %v377_v63, 1 }
 0x2ad   :  { %v371_v4 = vmul.f32 0.5, %v370_v1  ;;  %v379_v5 = vadd.f32 %v378_v2, %v377_v63 }
 0x2af   :  { %v380_v7 = vmul.f32 0.5, %v379_v5  ;;  %v381_v8 = vmul.f32 %v371_v4, %v371_v4 }
 0x2b1   :  { %v382_v11 = vsub.f32 %v380_v7, %v381_v8 }
 0x2b3   :  { %v383_v12 = vadd.f32 1e-05, %v382_v11 }
 0x2b5   :  { %485 = vrsqrt.f32 %v383_v12  ;;  %vm390_vm10 = vweird.f32 %v383_v12 }
 0x2bb   :  { %v486_v13 = vpop.eup %485 }
 0x2bc   :  { %v385_v14 = vmul.f32 %v486_v13, %v383_v12  ;;  %vm391_vm9 = vweird.f32 %v486_v13 }
 0x2bd   :  { %vm392_vm11 = vmor %vm390_vm10, %vm391_vm9 }
 0x2be   :  { %v386_v15 = vmul.f32 %v486_v13, %v385_v14 }
 0x2c0   :  { %v387_v16 = vmul.f32 0.5, %v386_v15 }
 0x2c2   :  { %v388_v17 = vsub.f32 1.5, %v387_v16 }
 0x2c4   :  { %v389_v19 = vmul.f32 %v486_v13, %v388_v17 }
 0x2c6   :  { %v393_v20 = vsel %vm392_vm11, %v486_v13, %v389_v19 }
 0x2c7   :  { %v394_v21 = vmul.f32 %v393_v20, %v362_v18 }
 0x2c9   :  { %v395_v23 = vmul.f32 %v394_v21, %v371_v4  ;;  %v397_v24 = vperm.slane %v394_v21, 0 }
 0x2cb   :  { %v396_v25 = vsub.f32 %v363_v22, %v395_v23  ;;  %v398_v26 = vmul.f32 %v397_v24, %v359_v46 }
 0x2cd   :  { %v399_v27 = vperm.slane %v396_v25, 0 }
 0x2cf   :  { %v400_v28 = vadd.f32 %v399_v27, %v398_v26 }
 0x2d1   :  { %v401_v29 = vmax.f32 %v400_v28, 0.0 }
 0x2d3   :  { %436 = vmatmul.f32.vlgmr.msrb.gmra.mxu1 %v401_v29 }
 0x350   :  { %v437_v33 = vpop.f32.mrf.mxu1 }
 0x351   :  { %v438_v34 = vadd.f32 %v478_v32, %v437_v33 }
 0x353   :  { %v443_v35 = vsel %vm442_vm12, %v438_v34, -1e+30 }
 0x354   :  { %v444_v36 = vsel %vm220_vm0, %v443_v35, -inf }
 0x355   :  { %445 = vmax.xlane.f32.xlu0 %v444_v36 }
 0x3c8   :  { %v446_v37 = vpop.xlane.xlu0 %445 }
 0x3c9   :  { %v447_v38 = vsub.f32 %v443_v35, %v446_v37 }
 0x3cb   :  { %v448_v39 = vmul.f32 1.442695, %v447_v38 }
 0x3cd   :  { %487 = vpow2.f32 %v448_v39 }
 0x3d3   :  { %v488_v40 = vpop.eup %487 }
 0x3d4   :  { %v450_v41 = vsel %vm442_vm12, %v488_v40, 0.0 }
 0x3d5   :  { %v451_v42 = vsel %vm220_vm0, %v450_v41, 0.0 }
 0x3d6   :  { %452 = vadd.xlane.f32.xlu0 %v451_v42 }
 0x449   :  { %v453_v43 = vpop.xlane.xlu0 %452 }
 0x44a   :  { %489 = vlog2.f32 %v453_v43 }
 0x450   :  { %v490_v44 = vpop.eup %489 }
 0x451   :  { %v455_v45 = vmul.f32 0.6931472, %v490_v44 }
 0x453   :  { %v456_v46 = vsub.f32 %v447_v38, %v455_v45 }
 0x455   :  { %v457_v47 = vsel %vm442_vm12, %v456_v46, 0.0 }
 0x456   :  { %458 = vst [vmem:[#allocation2] sm:$0x3] %v457_v47 }
 0x457   :  { %469 = dma.vmem_to_hbm [thread:$0]  %s465_s24, 32, %s467_s27, [#allocation3]  }
 0x458   :  { %515 = dma.done.wait [#allocation3], 32  }
 0x459   :  { %516 = vsyncadd [#allocation3], 4294967264 }
 0x45a   :  { %474 = vsyncpa [#allocation3], 1 }

</bundles_post_ra>
